<compile_context>
chip_gen: v6e
topology: v6e:2x2x1
jax: 0.10.0
libtpu: 0.0.40
codegen_flags: <defaults>
</compile_context>

<pallas_src>
import math
import jax
import jax.numpy as jnp
from jax.experimental import pallas as pl
from jax.experimental.pallas import tpu as pltpu

# Set to jnp.bfloat16 on v6e/v7x to halve weight HBM traffic (weights are cast once at
# pack time; accumulation and bias epilogue stay f32).  Default f32 preserves PyTorch
# numerics and is the right choice on v5e.
MXU_DTYPE = jnp.float32

_COMPILER_PARAMS = pltpu.CompilerParams(
    dimension_semantics=("arbitrary",),
    vmem_limit_bytes=32 * 1024 * 1024,
)


# ----------------------------- Pallas kernels --------------------------------
def _conv_gemm_kernel(w_ref, c_ref, b_ref, o_ref):
    # Lane-dense transposed conv GEMM: (Cout, K) @ (K, M) + bias (Cout, 1).
    o_ref[...] = (jnp.dot(w_ref[...], c_ref[...],
                          preferred_element_type=jnp.float32)
                  + b_ref[...]).astype(o_ref.dtype)


def _linear_chain_kernel(x_ref, *rest):
    # N fused dense layers, everything resident in VMEM, single grid step.
    # Intermediates are kept in f32 (weights may be bf16; jnp promotes them).
    o_ref = rest[-1]
    wb = rest[:-1]
    h = x_ref[...].astype(jnp.float32)
    for l in range(len(wb) // 2):
        w = wb[2 * l][...]
        b = wb[2 * l + 1][...]
        h = jnp.dot(h, w, preferred_element_type=jnp.float32) + b
    o_ref[...] = h.astype(o_ref.dtype)


# --------------------------- pallas_call wrappers -----------------------------
def conv_gemm(wmat, cols_t, bias_col):
    """wmat: (Cout, K), cols_t: (K, M), bias_col: (Cout, 1) -> (Cout, M) f32.

    Single grid step, full-extent blocks -> no padding / slicing anywhere."""
    cout, k = wmat.shape
    _, m = cols_t.shape
    return pl.pallas_call(
        _conv_gemm_kernel,
        out_shape=jax.ShapeDtypeStruct((cout, m), jnp.float32),
        grid_spec=pltpu.PrefetchScalarGridSpec(
            num_scalar_prefetch=0,
            grid=(1,),
            in_specs=[
                pl.BlockSpec((cout, k), lambda i: (0, 0)),   # full tiny weight
                pl.BlockSpec((k, m), lambda i: (0, 0)),      # full lane-dense cols^T
                pl.BlockSpec((cout, 1), lambda i: (0, 0)),   # bias column
            ],
            out_specs=pl.BlockSpec((cout, m), lambda i: (0, 0)),
        ),
        compiler_params=_COMPILER_PARAMS,
    )(wmat, cols_t.astype(MXU_DTYPE), bias_col)


def linear_chain(x, layers):
    """Fused y = (((x @ w1 + b1) @ w2 + b2) ...) in ONE pallas_call.

    layers: list of (w (in, out), b (1, out)).  Full-extent blocks, one grid step;
    the batch dim (2) is legal as a full-extent block so no padding is needed."""
    n_batch, k0 = x.shape
    args = [x.astype(MXU_DTYPE)]
    in_specs = [pl.BlockSpec((n_batch, k0), lambda i: (0, 0))]
    for (w, b) in layers:
        args += [w, b]
        in_specs += [pl.BlockSpec(w.shape, lambda i: (0, 0)),
                     pl.BlockSpec(b.shape, lambda i: (0, 0))]
    n_out = layers[-1][0].shape[1]
    return pl.pallas_call(
        _linear_chain_kernel,
        out_shape=jax.ShapeDtypeStruct((n_batch, n_out), jnp.float32),
        grid_spec=pltpu.PrefetchScalarGridSpec(
            num_scalar_prefetch=0,
            grid=(1,),
            in_specs=in_specs,
            out_specs=pl.BlockSpec((n_batch, n_out), lambda i: (0, 0)),
        ),
        compiler_params=_COMPILER_PARAMS,
    )(*args)


# --------------------------- layer wrappers (glue) ---------------------------
def conv2d_cm(x_cm, wmat, bias_col, kh, kw, stride, padding):
    """Channel-major conv.  x_cm: (Cin, N, H, W); wmat: (Cout, Cin*kh*kw);
    bias_col: (Cout, 1).  Returns (Cout, N, oh, ow)."""
    cin, n, _, _ = x_cm.shape
    if padding:
        x_cm = jnp.pad(x_cm, ((0, 0), (0, 0), (padding, padding), (padding, padding)))
    hp, wp = x_cm.shape[2], x_cm.shape[3]
    oh = (hp - kh) // stride + 1
    ow = (wp - kw) // stride + 1
    taps = []
    for i in range(kh):
        for j in range(kw):
            taps.append(x_cm[:, :, i:i + stride * oh:stride, j:j + stride * ow:stride])
    cols = jnp.stack(taps, axis=1)                     # (Cin, kh*kw, N, oh, ow)
    cols_t = cols.reshape(cin * kh * kw, n * oh * ow)  # K small, M lane-dense
    out_t = conv_gemm(wmat, cols_t, bias_col)          # (Cout, M)
    return out_t.reshape(-1, n, oh, ow)


def conv_transpose2d_cm(x_cm, wmat, bias_col, kh, kw, stride, padding, output_padding):
    """Fractionally-strided conv: dilate input, pad by (k-1-p), conv (stride 1) with the
    pre-flipped/transposed kernel (packed in pack_params).  Channel-major throughout."""
    cin, n, h, w = x_cm.shape
    oph, opw = output_padding
    hd, wd = (h - 1) * stride + 1, (w - 1) * stride + 1
    xd = jnp.zeros((cin, n, hd, wd), x_cm.dtype).at[:, :, ::stride, ::stride].set(x_cm)
    ph, pw = kh - 1 - padding, kw - 1 - padding
    xd = jnp.pad(xd, ((0, 0), (0, 0), (ph, ph + oph), (pw, pw + opw)))
    return conv2d_cm(xd, wmat, bias_col, kh, kw, stride=1, padding=0)


# ------------------------------ parameters -----------------------------------
def _uniform(key, shape, bound):
    return jax.random.uniform(key, shape, jnp.float32, -bound, bound)


def init_params(key, d):
    """PyTorch-style init, raw (unpacked) layout."""
    ks = jax.random.split(key, 20)
    p = {}

    def conv_p(kw_, kb_, shape):           # (Cout, Cin, kh, kw)
        bound = 1.0 / math.sqrt(shape[1] * shape[2] * shape[3])
        return _uniform(kw_, shape, bound), _uniform(kb_, (shape[0],), bound)

    def convT_p(kw_, kb_, shape):          # (Cin, Cout, kh, kw)
        bound = 1.0 / math.sqrt(shape[1] * shape[2] * shape[3])
        return _uniform(kw_, shape, bound), _uniform(kb_, (shape[1],), bound)

    def lin_p(kw_, kb_, out_f, in_f):
        bound = 1.0 / math.sqrt(in_f)
        return _uniform(kw_, (out_f, in_f), bound), _uniform(kb_, (out_f,), bound)

    # Encoder
    p["c1_w"], p["c1_b"] = conv_p(ks[0], ks[1], (8, 1, 3, 3))
    p["c2_w"], p["c2_b"] = conv_p(ks[2], ks[3], (16, 8, 3, 3))
    p["c3_w"], p["c3_b"] = conv_p(ks[4], ks[5], (32, 16, 3, 3))
    p["el1_w"], p["el1_b"] = lin_p(ks[6], ks[7], 512, 1536)
    p["el2_w"], p["el2_b"] = lin_p(ks[8], ks[9], d, 512)
    # Decoder
    p["dl1_w"], p["dl1_b"] = lin_p(ks[10], ks[11], 512, d)
    p["dl2_w"], p["dl2_b"] = lin_p(ks[12], ks[13], 1536, 512)
    p["t1_w"], p["t1_b"] = convT_p(ks[14], ks[15], (32, 16, 3, 3))
    p["t2_w"], p["t2_b"] = convT_p(ks[16], ks[17], (16, 8, 3, 3))
    p["t3_w"], p["t3_b"] = convT_p(ks[18], ks[19], (8, 1, 3, 3))
    return p


def pack_params(p):
    """One-time packing: conv weights -> (Cout, K) matrices (no padding), transposed-conv
    kernels flipped+transposed, linear weights transposed, biases reshaped, dtype cast."""
    def pack_conv(w, b):                    # w: (Cout, Cin, kh, kw)
        cout = w.shape[0]
        k = w.shape[1] * w.shape[2] * w.shape[3]
        return w.reshape(cout, k).astype(MXU_DTYPE), b.reshape(cout, 1).astype(jnp.float32)

    def pack_convT(w, b):                   # w: (Cin, Cout, kh, kw)
        wf = w[:, :, ::-1, ::-1].transpose(1, 0, 2, 3)   # flipped -> (Cout, Cin, kh, kw)
        return pack_conv(wf, b)

    def pack_lin(w, b):                     # w: (out, in) -> (in, out)
        return w.T.astype(MXU_DTYPE), b.reshape(1, -1).astype(jnp.float32)

    q = {}
    q["c1_w"], q["c1_b"] = pack_conv(p["c1_w"], p["c1_b"])
    q["c2_w"], q["c2_b"] = pack_conv(p["c2_w"], p["c2_b"])
    q["c3_w"], q["c3_b"] = pack_conv(p["c3_w"], p["c3_b"])
    q["el1_w"], q["el1_b"] = pack_lin(p["el1_w"], p["el1_b"])
    q["el2_w"], q["el2_b"] = pack_lin(p["el2_w"], p["el2_b"])
    q["dl1_w"], q["dl1_b"] = pack_lin(p["dl1_w"], p["dl1_b"])
    q["dl2_w"], q["dl2_b"] = pack_lin(p["dl2_w"], p["dl2_b"])
    q["t1_w"], q["t1_b"] = pack_convT(p["t1_w"], p["t1_b"])
    q["t2_w"], q["t2_b"] = pack_convT(p["t2_w"], p["t2_b"])
    q["t3_w"], q["t3_b"] = pack_convT(p["t3_w"], p["t3_b"])
    return q


# ------------------------------ model forward --------------------------------
def autoencoder_forward(pp, x):
    n = x.shape[0]
    # NCHW (N,1,H,W) -> channel-major (1,N,H,W): pure reshape because Cin == 1.
    a = x.reshape(1, n, x.shape[2], x.shape[3])

    # Encoder convs (channel-major layout throughout, no inter-layer transposes).
    a = conv2d_cm(a, pp["c1_w"], pp["c1_b"], 3, 3, stride=2, padding=1)   # (8,  N, 18, 50)
    a = conv2d_cm(a, pp["c2_w"], pp["c2_b"], 3, 3, stride=2, padding=1)   # (16, N, 9, 25)
    a = conv2d_cm(a, pp["c3_w"], pp["c3_b"], 3, 3, stride=2, padding=0)   # (32, N, 4, 12)

    # 2x Flatten(-2): per-sample (c, h, w) order -> (N, 1536).
    flat = a.reshape(32, n, 48).transpose(1, 0, 2).reshape(n, 1536)

    # Encoder + decoder linears fused into one pallas_call (latent stays in VMEM).
    y = linear_chain(flat, [(pp["el1_w"], pp["el1_b"]), (pp["el2_w"], pp["el2_b"]),
                            (pp["dl1_w"], pp["dl1_b"]), (pp["dl2_w"], pp["dl2_b"])])  # (N, 1536)

    # 2x Unflatten(-1): back to channel-major (32, N, 4, 12).
    b = y.reshape(n, 32, 48).transpose(1, 0, 2).reshape(32, n, 4, 12)

    # Decoder transposed convs.
    b = conv_transpose2d_cm(b, pp["t1_w"], pp["t1_b"], 3, 3, stride=2,
                            padding=0, output_padding=(0, 0))             # (16, N, 9, 25)
    b = conv_transpose2d_cm(b, pp["t2_w"], pp["t2_b"], 3, 3, stride=2,
                            padding=1, output_padding=(1, 1))             # (8,  N, 18, 50)
    b = conv_transpose2d_cm(b, pp["t3_w"], pp["t3_b"], 3, 3, stride=2,
                            padding=1, output_padding=(1, 0))             # (1,  N, 36, 99)

    # channel-major (1, N, 36, 99) -> NCHW (N, 1, 36, 99): pure reshape (Cout == 1).
    return b.reshape(n, 1, 36, 99)


# ---------------------------------- main --------------------------------------
if __name__ == "__main__":
    key = jax.random.PRNGKey(0)
    pkey, xkey = jax.random.split(key)
    d = 32
    params = init_params(pkey, d)
    packed = pack_params(params)   # one-time weight packing (hoisted out of forward)

    # Spatial size (36, 99) is the unique size consistent with the module's
    # Linear(1536, ...) flatten (32 channels * 4 * 12 at the bottleneck).
    x = jax.random.normal(xkey, (2, 1, 36, 99), jnp.float32)

    fwd = jax.jit(autoencoder_forward)
    y = fwd(packed, x)
    y = jax.block_until_ready(y)
    assert y.shape == x.shape, f"got {y.shape}, want {x.shape}"
    assert y.dtype == jnp.float32
    print("KERNEL_OK")
</pallas_src>

<mosaic_0001>
module attributes {stable_mosaic.version = 11 : i64} {
  func.func @_conv_gemm_kernel(%arg0: i32, %arg1: memref<8x9xf32, #tpu.memory_space<vmem>>, %arg2: memref<9x1800xf32, #tpu.memory_space<vmem>>, %arg3: memref<8x1xf32, #tpu.memory_space<vmem>>, %arg4: memref<8x1800xf32, #tpu.memory_space<vmem>>) attributes {dimension_semantics = [#tpu.dimension_semantics<arbitrary>], iteration_bounds = array<i64: 1>, scalar_prefetch = 0 : i64, scratch_operands = 0 : i64, tpu.core_type = #tpu.core_type<tc>, window_params = [{pipeline_mode = #tpu.pipeline_mode<synchronous>, transform_indices = @transform_0, window_bounds = array<i64: 8, 9>}, {pipeline_mode = #tpu.pipeline_mode<synchronous>, transform_indices = @transform_1, window_bounds = array<i64: 9, 1800>}, {pipeline_mode = #tpu.pipeline_mode<synchronous>, transform_indices = @transform_2, window_bounds = array<i64: 8, 1>}, {pipeline_mode = #tpu.pipeline_mode<synchronous>, transform_indices = @transform_3, window_bounds = array<i64: 8, 1800>}]} {
    %c0 = arith.constant 0 : index
    %c0_0 = arith.constant 0 : index
    %0 = vector.load %arg1[%c0, %c0_0] : memref<8x9xf32, #tpu.memory_space<vmem>>, vector<8x9xf32>
    %c0_1 = arith.constant 0 : index
    %c0_2 = arith.constant 0 : index
    %1 = vector.load %arg2[%c0_1, %c0_2] : memref<9x1800xf32, #tpu.memory_space<vmem>>, vector<9x1800xf32>
    %cst = arith.constant dense<0.000000e+00> : vector<8x1800xf32>
    %2 = tpu.matmul %0, %1, %cst {dimension_numbers = #tpu.dot_dimension_numbers<[1], [0], [0], [1], [0, 0, 1, 1], [], []>} : vector<8x9xf32>, vector<9x1800xf32>, vector<8x1800xf32> -> vector<8x1800xf32>
    %c0_3 = arith.constant 0 : index
    %c0_4 = arith.constant 0 : index
    %3 = vector.load %arg3[%c0_3, %c0_4] : memref<8x1xf32, #tpu.memory_space<vmem>>, vector<8x1xf32>
    %4 = vector.broadcast %3 : vector<8x1xf32> to vector<8x1800xf32>
    %5 = arith.addf %2, %4 : vector<8x1800xf32>
    %c0_5 = arith.constant 0 : index
    %c0_6 = arith.constant 0 : index
    %6 = vector.load %arg4[%c0_5, %c0_6] : memref<8x1800xf32, #tpu.memory_space<vmem>>, vector<8x1800xf32>
    tpu.vector_store %arg4[%c0_5, %c0_6], %5 {strides = array<i32>} : memref<8x1800xf32, #tpu.memory_space<vmem>>, vector<8x1800xf32>,
    return
  }
  func.func @transform_0(%arg0: i32) -> (i32, i32) {
    %c0_i32 = arith.constant 0 : i32
    %c0_i32_0 = arith.constant 0 : i32
    %c0_i32_1 = arith.constant 0 : i32
    return %c0_i32, %c0_i32_0 : i32, i32
  }
  func.func @transform_1(%arg0: i32) -> (i32, i32) {
    %c0_i32 = arith.constant 0 : i32
    %c0_i32_0 = arith.constant 0 : i32
    %c0_i32_1 = arith.constant 0 : i32
    return %c0_i32, %c0_i32_0 : i32, i32
  }
  func.func @transform_2(%arg0: i32) -> (i32, i32) {
    %c0_i32 = arith.constant 0 : i32
    %c0_i32_0 = arith.constant 0 : i32
    %c0_i32_1 = arith.constant 0 : i32
    return %c0_i32, %c0_i32_0 : i32, i32
  }
  func.func @transform_3(%arg0: i32) -> (i32, i32) {
    %c0_i32 = arith.constant 0 : i32
    %c0_i32_0 = arith.constant 0 : i32
    %c0_i32_1 = arith.constant 0 : i32
    return %c0_i32, %c0_i32_0 : i32, i32
  }
}

module attributes {stable_mosaic.version = 11 : i64} {
  func.func @_conv_gemm_kernel(%arg0: i32, %arg1: memref<16x72xf32, #tpu.memory_space<vmem>>, %arg2: memref<72x450xf32, #tpu.memory_space<vmem>>, %arg3: memref<16x1xf32, #tpu.memory_space<vmem>>, %arg4: memref<16x450xf32, #tpu.memory_space<vmem>>) attributes {dimension_semantics = [#tpu.dimension_semantics<arbitrary>], iteration_bounds = array<i64: 1>, scalar_prefetch = 0 : i64, scratch_operands = 0 : i64, tpu.core_type = #tpu.core_type<tc>, window_params = [{pipeline_mode = #tpu.pipeline_mode<synchronous>, transform_indices = @transform_0, window_bounds = array<i64: 16, 72>}, {pipeline_mode = #tpu.pipeline_mode<synchronous>, transform_indices = @transform_1, window_bounds = array<i64: 72, 450>}, {pipeline_mode = #tpu.pipeline_mode<synchronous>, transform_indices = @transform_2, window_bounds = array<i64: 16, 1>}, {pipeline_mode = #tpu.pipeline_mode<synchronous>, transform_indices = @transform_3, window_bounds = array<i64: 16, 450>}]} {
    %c0 = arith.constant 0 : index
    %c0_0 = arith.constant 0 : index
    %0 = vector.load %arg1[%c0, %c0_0] : memref<16x72xf32, #tpu.memory_space<vmem>>, vector<16x72xf32>
    %c0_1 = arith.constant 0 : index
    %c0_2 = arith.constant 0 : index
    %1 = vector.load %arg2[%c0_1, %c0_2] : memref<72x450xf32, #tpu.memory_space<vmem>>, vector<72x450xf32>
    %cst = arith.constant dense<0.000000e+00> : vector<16x450xf32>
    %2 = tpu.matmul %0, %1, %cst {dimension_numbers = #tpu.dot_dimension_numbers<[1], [0], [0], [1], [0, 0, 1, 1], [], []>} : vector<16x72xf32>, vector<72x450xf32>, vector<16x450xf32> -> vector<16x450xf32>
    %c0_3 = arith.constant 0 : index
    %c0_4 = arith.constant 0 : index
    %3 = vector.load %arg3[%c0_3, %c0_4] : memref<16x1xf32, #tpu.memory_space<vmem>>, vector<16x1xf32>
    %4 = vector.broadcast %3 : vector<16x1xf32> to vector<16x450xf32>
    %5 = arith.addf %2, %4 : vector<16x450xf32>
    %c0_5 = arith.constant 0 : index
    %c0_6 = arith.constant 0 : index
    %6 = vector.load %arg4[%c0_5, %c0_6] : memref<16x450xf32, #tpu.memory_space<vmem>>, vector<16x450xf32>
    tpu.vector_store %arg4[%c0_5, %c0_6], %5 {strides = array<i32>} : memref<16x450xf32, #tpu.memory_space<vmem>>, vector<16x450xf32>,
    return
  }
  func.func @transform_0(%arg0: i32) -> (i32, i32) {
    %c0_i32 = arith.constant 0 : i32
    %c0_i32_0 = arith.constant 0 : i32
    %c0_i32_1 = arith.constant 0 : i32
    return %c0_i32, %c0_i32_0 : i32, i32
  }
  func.func @transform_1(%arg0: i32) -> (i32, i32) {
    %c0_i32 = arith.constant 0 : i32
    %c0_i32_0 = arith.constant 0 : i32
    %c0_i32_1 = arith.constant 0 : i32
    return %c0_i32, %c0_i32_0 : i32, i32
  }
  func.func @transform_2(%arg0: i32) -> (i32, i32) {
    %c0_i32 = arith.constant 0 : i32
    %c0_i32_0 = arith.constant 0 : i32
    %c0_i32_1 = arith.constant 0 : i32
    return %c0_i32, %c0_i32_0 : i32, i32
  }
  func.func @transform_3(%arg0: i32) -> (i32, i32) {
    %c0_i32 = arith.constant 0 : i32
    %c0_i32_0 = arith.constant 0 : i32
    %c0_i32_1 = arith.constant 0 : i32
    return %c0_i32, %c0_i32_0 : i32, i32
  }
}

module attributes {stable_mosaic.version = 11 : i64} {
  func.func @_conv_gemm_kernel(%arg0: i32, %arg1: memref<32x144xf32, #tpu.memory_space<vmem>>, %arg2: memref<144x96xf32, #tpu.memory_space<vmem>>, %arg3: memref<32x1xf32, #tpu.memory_space<vmem>>, %arg4: memref<32x96xf32, #tpu.memory_space<vmem>>) attributes {dimension_semantics = [#tpu.dimension_semantics<arbitrary>], iteration_bounds = array<i64: 1>, scalar_prefetch = 0 : i64, scratch_operands = 0 : i64, tpu.core_type = #tpu.core_type<tc>, window_params = [{pipeline_mode = #tpu.pipeline_mode<synchronous>, transform_indices = @transform_0, window_bounds = array<i64: 32, 144>}, {pipeline_mode = #tpu.pipeline_mode<synchronous>, transform_indices = @transform_1, window_bounds = array<i64: 144, 96>}, {pipeline_mode = #tpu.pipeline_mode<synchronous>, transform_indices = @transform_2, window_bounds = array<i64: 32, 1>}, {pipeline_mode = #tpu.pipeline_mode<synchronous>, transform_indices = @transform_3, window_bounds = array<i64: 32, 96>}]} {
    %c0 = arith.constant 0 : index
    %c0_0 = arith.constant 0 : index
    %0 = vector.load %arg1[%c0, %c0_0] : memref<32x144xf32, #tpu.memory_space<vmem>>, vector<32x144xf32>
    %c0_1 = arith.constant 0 : index
    %c0_2 = arith.constant 0 : index
    %1 = vector.load %arg2[%c0_1, %c0_2] : memref<144x96xf32, #tpu.memory_space<vmem>>, vector<144x96xf32>
    %cst = arith.constant dense<0.000000e+00> : vector<32x96xf32>
    %2 = tpu.matmul %0, %1, %cst {dimension_numbers = #tpu.dot_dimension_numbers<[1], [0], [0], [1], [0, 0, 1, 1], [], []>} : vector<32x144xf32>, vector<144x96xf32>, vector<32x96xf32> -> vector<32x96xf32>
    %c0_3 = arith.constant 0 : index
    %c0_4 = arith.constant 0 : index
    %3 = vector.load %arg3[%c0_3, %c0_4] : memref<32x1xf32, #tpu.memory_space<vmem>>, vector<32x1xf32>
    %4 = vector.broadcast %3 : vector<32x1xf32> to vector<32x96xf32>
    %5 = arith.addf %2, %4 : vector<32x96xf32>
    %c0_5 = arith.constant 0 : index
    %c0_6 = arith.constant 0 : index
    %6 = vector.load %arg4[%c0_5, %c0_6] : memref<32x96xf32, #tpu.memory_space<vmem>>, vector<32x96xf32>
    tpu.vector_store %arg4[%c0_5, %c0_6], %5 {strides = array<i32>} : memref<32x96xf32, #tpu.memory_space<vmem>>, vector<32x96xf32>,
    return
  }
  func.func @transform_0(%arg0: i32) -> (i32, i32) {
    %c0_i32 = arith.constant 0 : i32
    %c0_i32_0 = arith.constant 0 : i32
    %c0_i32_1 = arith.constant 0 : i32
    return %c0_i32, %c0_i32_0 : i32, i32
  }
  func.func @transform_1(%arg0: i32) -> (i32, i32) {
    %c0_i32 = arith.constant 0 : i32
    %c0_i32_0 = arith.constant 0 : i32
    %c0_i32_1 = arith.constant 0 : i32
    return %c0_i32, %c0_i32_0 : i32, i32
  }
  func.func @transform_2(%arg0: i32) -> (i32, i32) {
    %c0_i32 = arith.constant 0 : i32
    %c0_i32_0 = arith.constant 0 : i32
    %c0_i32_1 = arith.constant 0 : i32
    return %c0_i32, %c0_i32_0 : i32, i32
  }
  func.func @transform_3(%arg0: i32) -> (i32, i32) {
    %c0_i32 = arith.constant 0 : i32
    %c0_i32_0 = arith.constant 0 : i32
    %c0_i32_1 = arith.constant 0 : i32
    return %c0_i32, %c0_i32_0 : i32, i32
  }
}

module attributes {stable_mosaic.version = 11 : i64} {
  func.func @_linear_chain_kernel(%arg0: i32, %arg1: memref<2x1536xf32, #tpu.memory_space<vmem>>, %arg2: memref<1536x512xf32, #tpu.memory_space<vmem>>, %arg3: memref<1x512xf32, #tpu.memory_space<vmem>>, %arg4: memref<512x32xf32, #tpu.memory_space<vmem>>, %arg5: memref<1x32xf32, #tpu.memory_space<vmem>>, %arg6: memref<32x512xf32, #tpu.memory_space<vmem>>, %arg7: memref<1x512xf32, #tpu.memory_space<vmem>>, %arg8: memref<512x1536xf32, #tpu.memory_space<vmem>>, %arg9: memref<1x1536xf32, #tpu.memory_space<vmem>>, %arg10: memref<2x1536xf32, #tpu.memory_space<vmem>>) attributes {dimension_semantics = [#tpu.dimension_semantics<arbitrary>], iteration_bounds = array<i64: 1>, scalar_prefetch = 0 : i64, scratch_operands = 0 : i64, tpu.core_type = #tpu.core_type<tc>, window_params = [{pipeline_mode = #tpu.pipeline_mode<synchronous>, transform_indices = @transform_0, window_bounds = array<i64: 2, 1536>}, {pipeline_mode = #tpu.pipeline_mode<synchronous>, transform_indices = @transform_1, window_bounds = array<i64: 1536, 512>}, {pipeline_mode = #tpu.pipeline_mode<synchronous>, transform_indices = @transform_2, window_bounds = array<i64: 1, 512>}, {pipeline_mode = #tpu.pipeline_mode<synchronous>, transform_indices = @transform_3, window_bounds = array<i64: 512, 32>}, {pipeline_mode = #tpu.pipeline_mode<synchronous>, transform_indices = @transform_4, window_bounds = array<i64: 1, 32>}, {pipeline_mode = #tpu.pipeline_mode<synchronous>, transform_indices = @transform_5, window_bounds = array<i64: 32, 512>}, {pipeline_mode = #tpu.pipeline_mode<synchronous>, transform_indices = @transform_6, window_bounds = array<i64: 1, 512>}, {pipeline_mode = #tpu.pipeline_mode<synchronous>, transform_indices = @transform_7, window_bounds = array<i64: 512, 1536>}, {pipeline_mode = #tpu.pipeline_mode<synchronous>, transform_indices = @transform_8, window_bounds = array<i64: 1, 1536>}, {pipeline_mode = #tpu.pipeline_mode<synchronous>, transform_indices = @transform_9, window_bounds = array<i64: 2, 1536>}]} {
    %c0 = arith.constant 0 : index
    %c0_0 = arith.constant 0 : index
    %0 = vector.load %arg1[%c0, %c0_0] : memref<2x1536xf32, #tpu.memory_space<vmem>>, vector<2x1536xf32>
    %c0_1 = arith.constant 0 : index
    %c0_2 = arith.constant 0 : index
    %1 = vector.load %arg2[%c0_1, %c0_2] : memref<1536x512xf32, #tpu.memory_space<vmem>>, vector<1536x512xf32>
    %c0_3 = arith.constant 0 : index
    %c0_4 = arith.constant 0 : index
    %2 = vector.load %arg3[%c0_3, %c0_4] : memref<1x512xf32, #tpu.memory_space<vmem>>, vector<1x512xf32>
    %cst = arith.constant dense<0.000000e+00> : vector<2x512xf32>
    %3 = tpu.matmul %0, %1, %cst {dimension_numbers = #tpu.dot_dimension_numbers<[1], [0], [0], [1], [0, 0, 1, 1], [], []>} : vector<2x1536xf32>, vector<1536x512xf32>, vector<2x512xf32> -> vector<2x512xf32>
    %4 = vector.broadcast %2 : vector<1x512xf32> to vector<2x512xf32>
    %5 = arith.addf %3, %4 : vector<2x512xf32>
    %c0_5 = arith.constant 0 : index
    %c0_6 = arith.constant 0 : index
    %6 = vector.load %arg4[%c0_5, %c0_6] : memref<512x32xf32, #tpu.memory_space<vmem>>, vector<512x32xf32>
    %c0_7 = arith.constant 0 : index
    %c0_8 = arith.constant 0 : index
    %7 = vector.load %arg5[%c0_7, %c0_8] : memref<1x32xf32, #tpu.memory_space<vmem>>, vector<1x32xf32>
    %cst_9 = arith.constant dense<0.000000e+00> : vector<2x32xf32>
    %8 = tpu.matmul %5, %6, %cst_9 {dimension_numbers = #tpu.dot_dimension_numbers<[1], [0], [0], [1], [0, 0, 1, 1], [], []>} : vector<2x512xf32>, vector<512x32xf32>, vector<2x32xf32> -> vector<2x32xf32>
    %9 = vector.broadcast %7 : vector<1x32xf32> to vector<2x32xf32>
    %10 = arith.addf %8, %9 : vector<2x32xf32>
    %c0_10 = arith.constant 0 : index
    %c0_11 = arith.constant 0 : index
    %11 = vector.load %arg6[%c0_10, %c0_11] : memref<32x512xf32, #tpu.memory_space<vmem>>, vector<32x512xf32>
    %c0_12 = arith.constant 0 : index
    %c0_13 = arith.constant 0 : index
    %12 = vector.load %arg7[%c0_12, %c0_13] : memref<1x512xf32, #tpu.memory_space<vmem>>, vector<1x512xf32>
    %cst_14 = arith.constant dense<0.000000e+00> : vector<2x512xf32>
    %13 = tpu.matmul %10, %11, %cst_14 {dimension_numbers = #tpu.dot_dimension_numbers<[1], [0], [0], [1], [0, 0, 1, 1], [], []>} : vector<2x32xf32>, vector<32x512xf32>, vector<2x512xf32> -> vector<2x512xf32>
    %14 = vector.broadcast %12 : vector<1x512xf32> to vector<2x512xf32>
    %15 = arith.addf %13, %14 : vector<2x512xf32>
    %c0_15 = arith.constant 0 : index
    %c0_16 = arith.constant 0 : index
    %16 = vector.load %arg8[%c0_15, %c0_16] : memref<512x1536xf32, #tpu.memory_space<vmem>>, vector<512x1536xf32>
    %c0_17 = arith.constant 0 : index
    %c0_18 = arith.constant 0 : index
    %17 = vector.load %arg9[%c0_17, %c0_18] : memref<1x1536xf32, #tpu.memory_space<vmem>>, vector<1x1536xf32>
    %cst_19 = arith.constant dense<0.000000e+00> : vector<2x1536xf32>
    %18 = tpu.matmul %15, %16, %cst_19 {dimension_numbers = #tpu.dot_dimension_numbers<[1], [0], [0], [1], [0, 0, 1, 1], [], []>} : vector<2x512xf32>, vector<512x1536xf32>, vector<2x1536xf32> -> vector<2x1536xf32>
    %19 = vector.broadcast %17 : vector<1x1536xf32> to vector<2x1536xf32>
    %20 = arith.addf %18, %19 : vector<2x1536xf32>
    %c0_20 = arith.constant 0 : index
    %c0_21 = arith.constant 0 : index
    %21 = vector.load %arg10[%c0_20, %c0_21] : memref<2x1536xf32, #tpu.memory_space<vmem>>, vector<2x1536xf32>
    tpu.vector_store %arg10[%c0_20, %c0_21], %20 {strides = array<i32>} : memref<2x1536xf32, #tpu.memory_space<vmem>>, vector<2x1536xf32>,
    return
  }
  func.func @transform_0(%arg0: i32) -> (i32, i32) {
    %c0_i32 = arith.constant 0 : i32
    %c0_i32_0 = arith.constant 0 : i32
    %c0_i32_1 = arith.constant 0 : i32
    return %c0_i32, %c0_i32_0 : i32, i32
  }
  func.func @transform_1(%arg0: i32) -> (i32, i32) {
    %c0_i32 = arith.constant 0 : i32
    %c0_i32_0 = arith.constant 0 : i32
    %c0_i32_1 = arith.constant 0 : i32
    return %c0_i32, %c0_i32_0 : i32, i32
  }
  func.func @transform_2(%arg0: i32) -> (i32, i32) {
    %c0_i32 = arith.constant 0 : i32
    %c0_i32_0 = arith.constant 0 : i32
    %c0_i32_1 = arith.constant 0 : i32
    return %c0_i32, %c0_i32_0 : i32, i32
  }
  func.func @transform_3(%arg0: i32) -> (i32, i32) {
    %c0_i32 = arith.constant 0 : i32
    %c0_i32_0 = arith.constant 0 : i32
    %c0_i32_1 = arith.constant 0 : i32
    return %c0_i32, %c0_i32_0 : i32, i32
  }
  func.func @transform_4(%arg0: i32) -> (i32, i32) {
    %c0_i32 = arith.constant 0 : i32
    %c0_i32_0 = arith.constant 0 : i32
    %c0_i32_1 = arith.constant 0 : i32
    return %c0_i32, %c0_i32_0 : i32, i32
  }
  func.func @transform_5(%arg0: i32) -> (i32, i32) {
    %c0_i32 = arith.constant 0 : i32
    %c0_i32_0 = arith.constant 0 : i32
    %c0_i32_1 = arith.constant 0 : i32
    return %c0_i32, %c0_i32_0 : i32, i32
  }
  func.func @transform_6(%arg0: i32) -> (i32, i32) {
    %c0_i32 = arith.constant 0 : i32
    %c0_i32_0 = arith.constant 0 : i32
    %c0_i32_1 = arith.constant 0 : i32
    return %c0_i32, %c0_i32_0 : i32, i32
  }
  func.func @transform_7(%arg0: i32) -> (i32, i32) {
    %c0_i32 = arith.constant 0 : i32
    %c0_i32_0 = arith.constant 0 : i32
    %c0_i32_1 = arith.constant 0 : i32
    return %c0_i32, %c0_i32_0 : i32, i32
  }
  func.func @transform_8(%arg0: i32) -> (i32, i32) {
    %c0_i32 = arith.constant 0 : i32
    %c0_i32_0 = arith.constant 0 : i32
    %c0_i32_1 = arith.constant 0 : i32
    return %c0_i32, %c0_i32_0 : i32, i32
  }
  func.func @transform_9(%arg0: i32) -> (i32, i32) {
    %c0_i32 = arith.constant 0 : i32
    %c0_i32_0 = arith.constant 0 : i32
    %c0_i32_1 = arith.constant 0 : i32
    return %c0_i32, %c0_i32_0 : i32, i32
  }
}

module attributes {stable_mosaic.version = 11 : i64} {
  func.func @_conv_gemm_kernel(%arg0: i32, %arg1: memref<16x288xf32, #tpu.memory_space<vmem>>, %arg2: memref<288x450xf32, #tpu.memory_space<vmem>>, %arg3: memref<16x1xf32, #tpu.memory_space<vmem>>, %arg4: memref<16x450xf32, #tpu.memory_space<vmem>>) attributes {dimension_semantics = [#tpu.dimension_semantics<arbitrary>], iteration_bounds = array<i64: 1>, scalar_prefetch = 0 : i64, scratch_operands = 0 : i64, tpu.core_type = #tpu.core_type<tc>, window_params = [{pipeline_mode = #tpu.pipeline_mode<synchronous>, transform_indices = @transform_0, window_bounds = array<i64: 16, 288>}, {pipeline_mode = #tpu.pipeline_mode<synchronous>, transform_indices = @transform_1, window_bounds = array<i64: 288, 450>}, {pipeline_mode = #tpu.pipeline_mode<synchronous>, transform_indices = @transform_2, window_bounds = array<i64: 16, 1>}, {pipeline_mode = #tpu.pipeline_mode<synchronous>, transform_indices = @transform_3, window_bounds = array<i64: 16, 450>}]} {
    %c0 = arith.constant 0 : index
    %c0_0 = arith.constant 0 : index
    %0 = vector.load %arg1[%c0, %c0_0] : memref<16x288xf32, #tpu.memory_space<vmem>>, vector<16x288xf32>
    %c0_1 = arith.constant 0 : index
    %c0_2 = arith.constant 0 : index
    %1 = vector.load %arg2[%c0_1, %c0_2] : memref<288x450xf32, #tpu.memory_space<vmem>>, vector<288x450xf32>
    %cst = arith.constant dense<0.000000e+00> : vector<16x450xf32>
    %2 = tpu.matmul %0, %1, %cst {dimension_numbers = #tpu.dot_dimension_numbers<[1], [0], [0], [1], [0, 0, 1, 1], [], []>} : vector<16x288xf32>, vector<288x450xf32>, vector<16x450xf32> -> vector<16x450xf32>
    %c0_3 = arith.constant 0 : index
    %c0_4 = arith.constant 0 : index
    %3 = vector.load %arg3[%c0_3, %c0_4] : memref<16x1xf32, #tpu.memory_space<vmem>>, vector<16x1xf32>
    %4 = vector.broadcast %3 : vector<16x1xf32> to vector<16x450xf32>
    %5 = arith.addf %2, %4 : vector<16x450xf32>
    %c0_5 = arith.constant 0 : index
    %c0_6 = arith.constant 0 : index
    %6 = vector.load %arg4[%c0_5, %c0_6] : memref<16x450xf32, #tpu.memory_space<vmem>>, vector<16x450xf32>
    tpu.vector_store %arg4[%c0_5, %c0_6], %5 {strides = array<i32>} : memref<16x450xf32, #tpu.memory_space<vmem>>, vector<16x450xf32>,
    return
  }
  func.func @transform_0(%arg0: i32) -> (i32, i32) {
    %c0_i32 = arith.constant 0 : i32
    %c0_i32_0 = arith.constant 0 : i32
    %c0_i32_1 = arith.constant 0 : i32
    return %c0_i32, %c0_i32_0 : i32, i32
  }
  func.func @transform_1(%arg0: i32) -> (i32, i32) {
    %c0_i32 = arith.constant 0 : i32
    %c0_i32_0 = arith.constant 0 : i32
    %c0_i32_1 = arith.constant 0 : i32
    return %c0_i32, %c0_i32_0 : i32, i32
  }
  func.func @transform_2(%arg0: i32) -> (i32, i32) {
    %c0_i32 = arith.constant 0 : i32
    %c0_i32_0 = arith.constant 0 : i32
    %c0_i32_1 = arith.constant 0 : i32
    return %c0_i32, %c0_i32_0 : i32, i32
  }
  func.func @transform_3(%arg0: i32) -> (i32, i32) {
    %c0_i32 = arith.constant 0 : i32
    %c0_i32_0 = arith.constant 0 : i32
    %c0_i32_1 = arith.constant 0 : i32
    return %c0_i32, %c0_i32_0 : i32, i32
  }
}

module attributes {stable_mosaic.version = 11 : i64} {
  func.func @_conv_gemm_kernel(%arg0: i32, %arg1: memref<8x144xf32, #tpu.memory_space<vmem>>, %arg2: memref<144x1800xf32, #tpu.memory_space<vmem>>, %arg3: memref<8x1xf32, #tpu.memory_space<vmem>>, %arg4: memref<8x1800xf32, #tpu.memory_space<vmem>>) attributes {dimension_semantics = [#tpu.dimension_semantics<arbitrary>], iteration_bounds = array<i64: 1>, scalar_prefetch = 0 : i64, scratch_operands = 0 : i64, tpu.core_type = #tpu.core_type<tc>, window_params = [{pipeline_mode = #tpu.pipeline_mode<synchronous>, transform_indices = @transform_0, window_bounds = array<i64: 8, 144>}, {pipeline_mode = #tpu.pipeline_mode<synchronous>, transform_indices = @transform_1, window_bounds = array<i64: 144, 1800>}, {pipeline_mode = #tpu.pipeline_mode<synchronous>, transform_indices = @transform_2, window_bounds = array<i64: 8, 1>}, {pipeline_mode = #tpu.pipeline_mode<synchronous>, transform_indices = @transform_3, window_bounds = array<i64: 8, 1800>}]} {
    %c0 = arith.constant 0 : index
    %c0_0 = arith.constant 0 : index
    %0 = vector.load %arg1[%c0, %c0_0] : memref<8x144xf32, #tpu.memory_space<vmem>>, vector<8x144xf32>
    %c0_1 = arith.constant 0 : index
    %c0_2 = arith.constant 0 : index
    %1 = vector.load %arg2[%c0_1, %c0_2] : memref<144x1800xf32, #tpu.memory_space<vmem>>, vector<144x1800xf32>
    %cst = arith.constant dense<0.000000e+00> : vector<8x1800xf32>
    %2 = tpu.matmul %0, %1, %cst {dimension_numbers = #tpu.dot_dimension_numbers<[1], [0], [0], [1], [0, 0, 1, 1], [], []>} : vector<8x144xf32>, vector<144x1800xf32>, vector<8x1800xf32> -> vector<8x1800xf32>
    %c0_3 = arith.constant 0 : index
    %c0_4 = arith.constant 0 : index
    %3 = vector.load %arg3[%c0_3, %c0_4] : memref<8x1xf32, #tpu.memory_space<vmem>>, vector<8x1xf32>
    %4 = vector.broadcast %3 : vector<8x1xf32> to vector<8x1800xf32>
    %5 = arith.addf %2, %4 : vector<8x1800xf32>
    %c0_5 = arith.constant 0 : index
    %c0_6 = arith.constant 0 : index
    %6 = vector.load %arg4[%c0_5, %c0_6] : memref<8x1800xf32, #tpu.memory_space<vmem>>, vector<8x1800xf32>
    tpu.vector_store %arg4[%c0_5, %c0_6], %5 {strides = array<i32>} : memref<8x1800xf32, #tpu.memory_space<vmem>>, vector<8x1800xf32>,
    return
  }
  func.func @transform_0(%arg0: i32) -> (i32, i32) {
    %c0_i32 = arith.constant 0 : i32
    %c0_i32_0 = arith.constant 0 : i32
    %c0_i32_1 = arith.constant 0 : i32
    return %c0_i32, %c0_i32_0 : i32, i32
  }
  func.func @transform_1(%arg0: i32) -> (i32, i32) {
    %c0_i32 = arith.constant 0 : i32
    %c0_i32_0 = arith.constant 0 : i32
    %c0_i32_1 = arith.constant 0 : i32
    return %c0_i32, %c0_i32_0 : i32, i32
  }
  func.func @transform_2(%arg0: i32) -> (i32, i32) {
    %c0_i32 = arith.constant 0 : i32
    %c0_i32_0 = arith.constant 0 : i32
    %c0_i32_1 = arith.constant 0 : i32
    return %c0_i32, %c0_i32_0 : i32, i32
  }
  func.func @transform_3(%arg0: i32) -> (i32, i32) {
    %c0_i32 = arith.constant 0 : i32
    %c0_i32_0 = arith.constant 0 : i32
    %c0_i32_1 = arith.constant 0 : i32
    return %c0_i32, %c0_i32_0 : i32, i32
  }
}

module attributes {stable_mosaic.version = 11 : i64} {
  func.func @_conv_gemm_kernel(%arg0: i32, %arg1: memref<1x72xf32, #tpu.memory_space<vmem>>, %arg2: memref<72x7128xf32, #tpu.memory_space<vmem>>, %arg3: memref<1x1xf32, #tpu.memory_space<vmem>>, %arg4: memref<1x7128xf32, #tpu.memory_space<vmem>>) attributes {dimension_semantics = [#tpu.dimension_semantics<arbitrary>], iteration_bounds = array<i64: 1>, scalar_prefetch = 0 : i64, scratch_operands = 0 : i64, tpu.core_type = #tpu.core_type<tc>, window_params = [{pipeline_mode = #tpu.pipeline_mode<synchronous>, transform_indices = @transform_0, window_bounds = array<i64: 1, 72>}, {pipeline_mode = #tpu.pipeline_mode<synchronous>, transform_indices = @transform_1, window_bounds = array<i64: 72, 7128>}, {pipeline_mode = #tpu.pipeline_mode<synchronous>, transform_indices = @transform_2, window_bounds = array<i64: 1, 1>}, {pipeline_mode = #tpu.pipeline_mode<synchronous>, transform_indices = @transform_3, window_bounds = array<i64: 1, 7128>}]} {
    %c0 = arith.constant 0 : index
    %c0_0 = arith.constant 0 : index
    %0 = vector.load %arg1[%c0, %c0_0] : memref<1x72xf32, #tpu.memory_space<vmem>>, vector<1x72xf32>
    %c0_1 = arith.constant 0 : index
    %c0_2 = arith.constant 0 : index
    %1 = vector.load %arg2[%c0_1, %c0_2] : memref<72x7128xf32, #tpu.memory_space<vmem>>, vector<72x7128xf32>
    %cst = arith.constant dense<0.000000e+00> : vector<1x7128xf32>
    %2 = tpu.matmul %0, %1, %cst {dimension_numbers = #tpu.dot_dimension_numbers<[1], [0], [0], [1], [0, 0, 1, 1], [], []>} : vector<1x72xf32>, vector<72x7128xf32>, vector<1x7128xf32> -> vector<1x7128xf32>
    %c0_3 = arith.constant 0 : index
    %c0_4 = arith.constant 0 : index
    %3 = vector.load %arg3[%c0_3, %c0_4] : memref<1x1xf32, #tpu.memory_space<vmem>>, vector<1x1xf32>
    %4 = vector.broadcast %3 : vector<1x1xf32> to vector<1x7128xf32>
    %5 = arith.addf %2, %4 : vector<1x7128xf32>
    %c0_5 = arith.constant 0 : index
    %c0_6 = arith.constant 0 : index
    %6 = vector.load %arg4[%c0_5, %c0_6] : memref<1x7128xf32, #tpu.memory_space<vmem>>, vector<1x7128xf32>
    tpu.vector_store %arg4[%c0_5, %c0_6], %5 {strides = array<i32>} : memref<1x7128xf32, #tpu.memory_space<vmem>>, vector<1x7128xf32>,
    return
  }
  func.func @transform_0(%arg0: i32) -> (i32, i32) {
    %c0_i32 = arith.constant 0 : i32
    %c0_i32_0 = arith.constant 0 : i32
    %c0_i32_1 = arith.constant 0 : i32
    return %c0_i32, %c0_i32_0 : i32, i32
  }
  func.func @transform_1(%arg0: i32) -> (i32, i32) {
    %c0_i32 = arith.constant 0 : i32
    %c0_i32_0 = arith.constant 0 : i32
    %c0_i32_1 = arith.constant 0 : i32
    return %c0_i32, %c0_i32_0 : i32, i32
  }
  func.func @transform_2(%arg0: i32) -> (i32, i32) {
    %c0_i32 = arith.constant 0 : i32
    %c0_i32_0 = arith.constant 0 : i32
    %c0_i32_1 = arith.constant 0 : i32
    return %c0_i32, %c0_i32_0 : i32, i32
  }
  func.func @transform_3(%arg0: i32) -> (i32, i32) {
    %c0_i32 = arith.constant 0 : i32
    %c0_i32_0 = arith.constant 0 : i32
    %c0_i32_1 = arith.constant 0 : i32
    return %c0_i32, %c0_i32_0 : i32, i32
  }
}

</mosaic_0001>

<bundles_post_ra>
// kernel: autoencoder_forward.7
= control target key start
LH: loop header
LB: loop body
LE: loop exit
PB: predicated region body
PF: predicated region fallthrough
CT: control target
= control target key end

     0   :  { %8 = vsyncpa [#allocation3], 0  ;;  %s761_s12 = smov [#allocation2]   ;;  %s969_s0 = inlined_call_operand.hbm [shape: f32[8,9], index: 0, kind: input, shape index: {}]   ;;  %s970_s1 = inlined_call_operand.vmem [shape: f32[9,1800], index: 1, kind: input, shape index: {}]   ;;  %s971_s2 = inlined_call_operand.vmem [shape: f32[8,1], index: 2, kind: input, shape index: {}]   ;;  %s972_s3 = inlined_call_operand.vmem [shape: f32[8,1800], index: 3, kind: output, shape index: {}]  }
   0x1   :  { %s15_s13 = sshll.u32 %s761_s12, 4  ;;  %s16_s13 = int_to_ptr.vmem [resolvable:$true] %s15_s13 }
   0x2   :  { %s747_s14 = scalar_lea.vmem %s16_s13, 128  ;;  %p752_p1 = scmp.lt.s32.totalorder %s16_s13, %s16_s13 }
   0x3   :  { %p748_p0 = scmp.ne.s32.totalorder %s16_s13, %s747_s14  ;;  %p753_p2 = scmp.lt.s32.totalorder %s747_s14, %s747_s14 }
   0x5   :  { %p754_p3 = por %p753_p2, %p752_p1 }
   0x7   :  { %p755_p4 = pnand %p754_p3, %p748_p0 }
   0x9   :  { %758 = shalt.err (!%p755_p4)
}
   0xa   :  { %18 = dma.hbm_to_vmem [thread:$0]  %s969_s0, 128, %s16_s13, [#allocation3]  }
   0xb   :  { %759 = dma.done.wait [#allocation3], 128  }
   0xc   :  { %760 = vsyncadd [#allocation3], 4294967168  ;;  %v762_v0 = vmov 0.0   ;;  %v763_v1 = vmov 0   ;;  %vm67_vm0 = vcmask 1040384   ;;  %v28_v5 = vld [vmem:[%s970_s1 + $0x8] sm:$0xff] }
   0xd   :  { %177 = vmatprep.mubr.f32.mxu0 %v762_v0  ;;  %248 = vmatprep.mubr.f32.mxu1 %v762_v0  ;;  %v43_v2 = vld [vmem:[%s970_s1 + $0x80] sm:$0x1]  ;;  %v42_v3 = vld [vmem:[%s970_s1 + $0x78] sm:$0x1]  ;;  %v45_v4 = vld [vmem:[%s970_s1 + $0x90] sm:$0x1] }
   0xe   :  { %738 = vset.pattern.permute.xlu0 %v763_v1  ;;  %701 = vmatprep.subr.msk.mxu0 %vm67_vm0, %v43_v2  ;;  %v44_v6 = vld [vmem:[%s970_s1 + $0x88] sm:$0x1]  ;;  %v27_v7 = vld [vmem:[%s970_s1] sm:$0xff]  ;;  %v30_v8 = vld [vmem:[%s970_s1 + $0x18] sm:$0xff]  ;;  %vm63_vm1 = vcmask 72704   ;;  %vm764_vm2 = vmmov 0  }
   0xf   :  { %704 = vmatprep.subr.msk.mxu1 %vm67_vm0, %v45_v4  ;;  %702 = vmatpush1.msk.msra.mxu0 %vm67_vm0, %v42_v3  ;;  %v815_v9 = vld [vmem:[#allocation2] sm:$0xff]  ;;  %v29_v10 = vld [vmem:[%s970_s1 + $0x10] sm:$0xff]  ;;  %v46_v12 = vld [vmem:[%s970_s1 + $0x98] sm:$0x1]  ;;  %vm694_vm3 = vcmask 64512  }
  0x10   :  { %705 = vmatpush1.msk.msra.mxu1 %vm67_vm0, %v44_v6  ;;  %143 = vmatprep.subr.mxu0 %v28_v5  ;;  %v47_v11 = vld [vmem:[%s970_s1 + $0xa0] sm:$0x1]  ;;  %v49_v13 = vld [vmem:[%s970_s1 + $0xb0] sm:$0x1]  ;;  %v32_v14 = vld [vmem:[%s970_s1 + $0x28] sm:$0xff] }
  0x11   :  { %214 = vmatprep.subr.mxu1 %v30_v8  ;;  %144 = vmatpush1.msra.mxu0 %v27_v7  ;;  %v48_v15 = vld [vmem:[%s970_s1 + $0xa8] sm:$0x1]  ;;  %v31_v16 = vld [vmem:[%s970_s1 + $0x20] sm:$0xff]  ;;  %v34_v17 = vld [vmem:[%s970_s1 + $0x38] sm:$0xff] }
  0x12   :  { %215 = vmatpush1.msra.mxu1 %v29_v10  ;;  %703 = vmatmul.mubr.msk.f32.vlgmr.msra.gmra.mxu0 %vm63_vm1, %v815_v9  ;;  %v33_v18 = vld [vmem:[%s970_s1 + $0x30] sm:$0xff]  ;;  %v51_v19 = vld [vmem:[%s970_s1 + $0xc0] sm:$0x1]  ;;  %v50_v20 = vld [vmem:[%s970_s1 + $0xb8] sm:$0x1] }
  0x13   :  { %707 = vmatprep.subr.msk.mxu0 %vm67_vm0, %v47_v11  ;;  %706 = vmatmul.mubr.msk.f32.vlgmr.msra.gmra.mxu1 %vm63_vm1, %v815_v9  ;;  %v53_v21 = vld [vmem:[%s970_s1 + $0xd0] sm:$0x1]  ;;  %v36_v22 = vld [vmem:[%s970_s1 + $0x48] sm:$0xff]  ;;  %v35_v24 = vld [vmem:[%s970_s1 + $0x40] sm:$0xff] }
  0x14   :  { %708 = vmatpush1.msk.msra.mxu0 %vm67_vm0, %v46_v12  ;;  %710 = vmatprep.subr.msk.mxu1 %vm67_vm0, %v49_v13  ;;  %v52_v23 = vld [vmem:[%s970_s1 + $0xc8] sm:$0x1]  ;;  %v38_v25 = vld [vmem:[%s970_s1 + $0x58] sm:$0xff]  ;;  %v37_v26 = vld [vmem:[%s970_s1 + $0x50] sm:$0xff] }
  0x15   :  { %285 = vmatprep.subr.mxu0 %v32_v14  ;;  %711 = vmatpush1.msk.msra.mxu1 %vm67_vm0, %v48_v15  ;;  %v55_v27 = vld [vmem:[%s970_s1 + $0xe0] sm:$0x1]  ;;  %v54_v28 = vld [vmem:[%s970_s1 + $0xd8] sm:$0x1]  ;;  %v40_v29 = vld [vmem:[%s970_s1 + $0x68] sm:$0xff] }
  0x16   :  { %286 = vmatpush1.msra.mxu0 %v31_v16  ;;  %319 = vmatprep.mubr.f32.mxu0 %v762_v0  ;;  %v56_v30 = vld [vmem:[%s970_s1 + $0xe8] sm:$0x1]  ;;  %v39_v31 = vld [vmem:[%s970_s1 + $0x60] sm:$0xff]  ;;  %v41_v32 = vld [vmem:[%s970_s1 + $0x70] sm:$0xff] }
  0x17   :  { %356 = vmatprep.subr.mxu1 %v34_v17  ;;  %709 = vmatmul.mubr.msk.f32.vlgmr.msra.gmra.mxu0 %vm63_vm1, %v815_v9  ;;  %v57_v33 = vld [vmem:[%s971_s2] sm:$0xff] }
  0x18   :  { %357 = vmatpush1.msra.mxu1 %v33_v18  ;;  %390 = vmatprep.mubr.f32.mxu1 %v762_v0 }
  0x19   :  { %713 = vmatprep.subr.msk.mxu0 %vm67_vm0, %v51_v19  ;;  %712 = vmatmul.mubr.msk.f32.vlgmr.msra.gmra.mxu1 %vm63_vm1, %v815_v9 }
  0x1a   :  { %714 = vmatpush1.msk.msra.mxu0 %vm67_vm0, %v50_v20  ;;  %716 = vmatprep.subr.msk.mxu1 %vm67_vm0, %v53_v21 }
  0x1b   :  { %427 = vmatprep.subr.mxu0 %v36_v22  ;;  %717 = vmatpush1.msk.msra.mxu1 %vm67_vm0, %v52_v23 }
  0x1c   :  { %428 = vmatpush1.msra.mxu0 %v35_v24  ;;  %461 = vmatprep.mubr.f32.mxu0 %v762_v0 }
  0x1d   :  { %498 = vmatprep.subr.mxu1 %v38_v25  ;;  %715 = vmatmul.mubr.msk.f32.vlgmr.msra.gmra.mxu0 %vm63_vm1, %v815_v9 }
  0x1e   :  { %499 = vmatpush1.msra.mxu1 %v37_v26  ;;  %532 = vmatprep.mubr.f32.mxu1 %v762_v0 }
  0x1f   :  { %719 = vmatprep.subr.msk.mxu0 %vm67_vm0, %v55_v27  ;;  %718 = vmatmul.mubr.msk.f32.vlgmr.msra.gmra.mxu1 %vm63_vm1, %v815_v9 }
  0x20   :  { %720 = vmatpush1.msk.msra.mxu0 %vm67_vm0, %v54_v28  ;;  %727 = vmatprep.subr.mxu1 %v762_v0 }
  0x21   :  { %569 = vmatprep.subr.mxu0 %v40_v29  ;;  %728 = vmatpush3.msk.msra.mxu1 %vm67_vm0, %v56_v30 }
  0x22   :  { %570 = vmatpush1.msra.mxu0 %v39_v31  ;;  %603 = vmatprep.mubr.f32.mxu0 %v762_v0 }
  0x23   :  { %729 = vmatprep.subr.mxu1 %v762_v0  ;;  %721 = vmatmul.mubr.msk.f32.vlgmr.msra.gmra.mxu0 %vm63_vm1, %v815_v9 }
  0x24   :  { %730 = vmatpush3.msra.mxu1 %v41_v32  ;;  %731 = vmatprep.mubr.msk.f32.mxu1 %vm764_vm2, %v762_v0 }
  0x25   :  { %60 = vperm.xlu0 %738, %v57_v33   ;;  %732 = vmatmul.mubr.msk.f32.vlgmr.msra.gmra.mxu1 %vm63_vm1, %v815_v9 }
  0xa0   :  { %v61_v34 = vpop.permute.xlu0 %60 }
  0xd2   :  { %v179_v35 = vpop.f32.mrf.mxu0 }
  0xd3   :  { %v180_v36 = vadd.f32 %v179_v35, %v61_v34  ;;  %v250_v37 = vpop.f32.mrf.mxu1 }
  0xd4   :  { %v251_v38 = vadd.f32 %v250_v37, %v61_v34  ;;  %v181_v39 = vpop.f32.mrf.mxu0 }
  0xd5   :  { %680 = vst [vmem:[%s972_s3] sm:$0xff] %v180_v36  ;;  %v182_v40 = vadd.f32 %v181_v39, %v61_v34  ;;  %v252_v41 = vpop.f32.mrf.mxu1 }
  0xd6   :  { %682 = vst [vmem:[%s972_s3 + $0x10] sm:$0xff] %v251_v38  ;;  %v253_v42 = vadd.f32 %v252_v41, %v61_v34 }
  0xd7   :  { %681 = vst [vmem:[%s972_s3 + $0x8] sm:$0xff] %v182_v40  ;;  %v321_v43 = vpop.f32.mrf.mxu0 }
  0xd8   :  { %683 = vst [vmem:[%s972_s3 + $0x18] sm:$0xff] %v253_v42  ;;  %v322_v44 = vadd.f32 %v321_v43, %v61_v34 }
  0xd9   :  { %v392_v45 = vpop.f32.mrf.mxu1  ;;  %v323_v46 = vpop.f32.mrf.mxu0 }
  0xda   :  { %684 = vst [vmem:[%s972_s3 + $0x20] sm:$0xff] %v322_v44  ;;  %v393_v47 = vadd.f32 %v392_v45, %v61_v34  ;;  %v324_v48 = vadd.f32 %v323_v46, %v61_v34 }
  0xdb   :  { %v394_v49 = vpop.f32.mrf.mxu1 }
  0xdc   :  { %686 = vst [vmem:[%s972_s3 + $0x30] sm:$0xff] %v393_v47  ;;  %685 = vst [vmem:[%s972_s3 + $0x28] sm:$0xff] %v324_v48  ;;  %v395_v50 = vadd.f32 %v394_v49, %v61_v34 }
  0xdd   :  { %v463_v51 = vpop.f32.mrf.mxu0 }
  0xde   :  { %687 = vst [vmem:[%s972_s3 + $0x38] sm:$0xff] %v395_v50  ;;  %v464_v52 = vadd.f32 %v463_v51, %v61_v34 }
  0xdf   :  { %v534_v53 = vpop.f32.mrf.mxu1  ;;  %v465_v54 = vpop.f32.mrf.mxu0 }
  0xe0   :  { %688 = vst [vmem:[%s972_s3 + $0x40] sm:$0xff] %v464_v52  ;;  %v535_v55 = vadd.f32 %v534_v53, %v61_v34  ;;  %v466_v56 = vadd.f32 %v465_v54, %v61_v34 }
  0xe1   :  { %v536_v57 = vpop.f32.mrf.mxu1 }
  0xe2   :  { %690 = vst [vmem:[%s972_s3 + $0x50] sm:$0xff] %v535_v55  ;;  %689 = vst [vmem:[%s972_s3 + $0x48] sm:$0xff] %v466_v56  ;;  %v537_v58 = vadd.f32 %v536_v57, %v61_v34 }
  0xe3   :  { %v605_v59 = vpop.f32.mrf.mxu0 }
  0xe4   :  { %691 = vst [vmem:[%s972_s3 + $0x58] sm:$0xff] %v537_v58  ;;  %v606_v60 = vadd.f32 %v605_v59, %v61_v34 }
  0xe5   :  { %v676_v61 = vpop.f32.mrf.mxu1  ;;  %v607_v62 = vpop.f32.mrf.mxu0 }
  0xe6   :  { %692 = vst [vmem:[%s972_s3 + $0x60] sm:$0xff] %v606_v60  ;;  %v677_v63 = vadd.f32 %v676_v61, %v61_v34  ;;  %v608_v0 = vadd.f32 %v607_v62, %v61_v34 }
  0xe7   :  { %v733_v1 = vpop.f32.mrf.mxu1 }
  0xe8   :  { %695 = vst.msk [vmem:[%s972_s3 + $0x70] sm:$0xff] %vm694_vm3, %v677_v63  ;;  %693 = vst [vmem:[%s972_s3 + $0x68] sm:$0xff] %v608_v0 }
  0xe9   :  { %700 = vsyncpa [#allocation3], 1 }

// kernel: autoencoder_forward.8
= control target key start
LH: loop header
LB: loop body
LE: loop exit
PB: predicated region body
PF: predicated region fallthrough
CT: control target
= control target key end

     0   :  { %v245_v3 = vmov 0.0   ;;  %vm64_vm0 = vcmask 588800   ;;  %v246_v40 = vmov 0   ;;  %vm228_vm1 = vcmask 539648   ;;  %s421_s1 = inlined_call_operand.vmem [shape: f32[72,450], index: 1, kind: input, shape index: {}]   ;;  %s422_s0 = inlined_call_operand.vmem [shape: f32[16,72], index: 0, kind: input, shape index: {}]   ;;  %s423_s2 = inlined_call_operand.vmem [shape: f32[16,1], index: 2, kind: input, shape index: {}]   ;;  %s424_s3 = inlined_call_operand.vmem [shape: f32[16,450], index: 3, kind: output, shape index: {}]  }
   0x1   :  { %v49_v0 = vld [vmem:[%s421_s1 + $0x108] sm:$0xff]  ;;  %v51_v1 = vld [vmem:[%s421_s1 + $0x118] sm:$0xff]  ;;  %v48_v2 = vld [vmem:[%s421_s1 + $0x100] sm:$0xff]  ;;  %135 = vmatprep.mubr.f32.mxu0 %v245_v3  ;;  %212 = vmatprep.mubr.f32.mxu1 %v245_v3 }
   0x2   :  { %85 = vmatprep.subr.mxu0 %v49_v0  ;;  %162 = vmatprep.subr.mxu1 %v51_v1  ;;  %v50_v4 = vld [vmem:[%s421_s1 + $0x110] sm:$0xff]  ;;  %v45_v5 = vld [vmem:[%s421_s1 + $0xe8] sm:$0xff]  ;;  %v47_v6 = vld [vmem:[%s421_s1 + $0xf8] sm:$0xff] }
   0x3   :  { %86 = vmatpush1.msra.mxu0 %v48_v2  ;;  %163 = vmatpush1.msra.mxu1 %v50_v4  ;;  %v44_v7 = vld [vmem:[%s421_s1 + $0xe0] sm:$0xff]  ;;  %v46_v8 = vld [vmem:[%s421_s1 + $0xf0] sm:$0xff]  ;;  %v41_v9 = vld [vmem:[%s421_s1 + $0xc8] sm:$0xff] }
   0x4   :  { %87 = vmatprep.subr.mxu0 %v45_v5  ;;  %164 = vmatprep.subr.mxu1 %v47_v6  ;;  %v43_v10 = vld [vmem:[%s421_s1 + $0xd8] sm:$0xff]  ;;  %v40_v11 = vld [vmem:[%s421_s1 + $0xc0] sm:$0xff]  ;;  %v42_v12 = vld [vmem:[%s421_s1 + $0xd0] sm:$0xff] }
   0x5   :  { %88 = vmatpush1.msra.mxu0 %v44_v7  ;;  %165 = vmatpush1.msra.mxu1 %v46_v8  ;;  %v37_v13 = vld [vmem:[%s421_s1 + $0xa8] sm:$0xff]  ;;  %v39_v14 = vld [vmem:[%s421_s1 + $0xb8] sm:$0xff]  ;;  %v36_v15 = vld [vmem:[%s421_s1 + $0xa0] sm:$0xff] }
   0x6   :  { %89 = vmatprep.subr.mxu0 %v41_v9  ;;  %166 = vmatprep.subr.mxu1 %v43_v10  ;;  %v38_v16 = vld [vmem:[%s421_s1 + $0xb0] sm:$0xff]  ;;  %v33_v17 = vld [vmem:[%s421_s1 + $0x88] sm:$0xff]  ;;  %v35_v18 = vld [vmem:[%s421_s1 + $0x98] sm:$0xff] }
   0x7   :  { %90 = vmatpush1.msra.mxu0 %v40_v11  ;;  %167 = vmatpush1.msra.mxu1 %v42_v12  ;;  %v32_v19 = vld [vmem:[%s421_s1 + $0x80] sm:$0xff]  ;;  %v34_v20 = vld [vmem:[%s421_s1 + $0x90] sm:$0xff]  ;;  %v29_v21 = vld [vmem:[%s421_s1 + $0x68] sm:$0xff] }
   0x8   :  { %91 = vmatprep.subr.mxu0 %v37_v13  ;;  %168 = vmatprep.subr.mxu1 %v39_v14  ;;  %v31_v22 = vld [vmem:[%s421_s1 + $0x78] sm:$0xff]  ;;  %v28_v23 = vld [vmem:[%s421_s1 + $0x60] sm:$0xff]  ;;  %v30_v24 = vld [vmem:[%s421_s1 + $0x70] sm:$0xff] }
   0x9   :  { %92 = vmatpush1.msra.mxu0 %v36_v15  ;;  %169 = vmatpush1.msra.mxu1 %v38_v16  ;;  %v25_v25 = vld [vmem:[%s421_s1 + $0x48] sm:$0xff]  ;;  %v27_v26 = vld [vmem:[%s421_s1 + $0x58] sm:$0xff]  ;;  %v24_v27 = vld [vmem:[%s421_s1 + $0x40] sm:$0xff] }
   0xa   :  { %93 = vmatprep.subr.mxu0 %v33_v17  ;;  %170 = vmatprep.subr.mxu1 %v35_v18  ;;  %v26_v28 = vld [vmem:[%s421_s1 + $0x50] sm:$0xff]  ;;  %v21_v29 = vld [vmem:[%s421_s1 + $0x28] sm:$0xff]  ;;  %v23_v30 = vld [vmem:[%s421_s1 + $0x38] sm:$0xff] }
   0xb   :  { %94 = vmatpush1.msra.mxu0 %v32_v19  ;;  %171 = vmatpush1.msra.mxu1 %v34_v20  ;;  %v20_v31 = vld [vmem:[%s421_s1 + $0x20] sm:$0xff]  ;;  %v22_v32 = vld [vmem:[%s421_s1 + $0x30] sm:$0xff]  ;;  %v17_v33 = vld [vmem:[%s421_s1 + $0x8] sm:$0xff] }
   0xc   :  { %95 = vmatprep.subr.mxu0 %v29_v21  ;;  %172 = vmatprep.subr.mxu1 %v31_v22  ;;  %v19_v34 = vld [vmem:[%s421_s1 + $0x18] sm:$0xff]  ;;  %v16_v35 = vld [vmem:[%s421_s1] sm:$0xff]  ;;  %v18_v36 = vld [vmem:[%s421_s1 + $0x10] sm:$0xff] }
   0xd   :  { %96 = vmatpush1.msra.mxu0 %v28_v23  ;;  %173 = vmatpush1.msra.mxu1 %v30_v24  ;;  %v14_v37 = vld [vmem:[%s422_s0] sm:$0xff]  ;;  %v15_v39 = vld [vmem:[%s422_s0 + $0x8] sm:$0xff] }
   0xe   :  { %97 = vmatprep.subr.mxu0 %v25_v25  ;;  %174 = vmatprep.subr.mxu1 %v27_v26  ;;  %v52_v38 = vld [vmem:[%s423_s2] sm:$0xff]  ;;  %v53_v41 = vld [vmem:[%s423_s2 + $0x8] sm:$0xff] }
   0xf   :  { %98 = vmatpush1.msra.mxu0 %v24_v27  ;;  %175 = vmatpush1.msra.mxu1 %v26_v28 }
  0x10   :  { %99 = vmatprep.subr.mxu0 %v21_v29  ;;  %176 = vmatprep.subr.mxu1 %v23_v30 }
  0x11   :  { %100 = vmatpush1.msra.mxu0 %v20_v31  ;;  %177 = vmatpush1.msra.mxu1 %v22_v32 }
  0x12   :  { %101 = vmatprep.subr.mxu0 %v17_v33  ;;  %178 = vmatprep.subr.mxu1 %v19_v34 }
  0x13   :  { %102 = vmatpush1.msra.mxu0 %v16_v35  ;;  %179 = vmatpush1.msra.mxu1 %v18_v36 }
  0x14   :  { %238 = vmatmul.mubr.msk.f32.vlgmr.msra.gmra.mxu0 %vm64_vm0, %v14_v37  ;;  %240 = vmatmul.mubr.msk.f32.vlgmr.msra.gmra.mxu1 %vm64_vm0, %v14_v37 }
  0x15   :  { %141 = vmatprep.mubr.f32.mxu0 %v245_v3  ;;  %218 = vmatprep.mubr.f32.mxu1 %v245_v3 }
  0x16   :  { %244 = vset.pattern.permute.xlu0 %v246_v40 }
  0x17   :  { %56 = vperm.xlu0 %244, %v52_v38  }
  0x18   :  { %239 = vmatmul.mubr.msk.f32.gmra.mxu0 %vm64_vm0, %v15_v39  ;;  %241 = vmatmul.mubr.msk.f32.gmra.mxu1 %vm64_vm0, %v15_v39 }
  0x1b   :  { %61 = vperm.xlu0 %244, %v53_v41  }
  0x92   :  { %v57_v42 = vpop.permute.xlu0 %56 }
  0x96   :  { %v62_v49 = vpop.permute.xlu0 %61 }
  0xd4   :  { %v137_v43 = vpop.f32.mrf.mxu0  ;;  %v214_v44 = vpop.f32.mrf.mxu1 }
  0xd5   :  { %v138_v45 = vadd.f32 %v137_v43, %v57_v42  ;;  %v215_v46 = vadd.f32 %v214_v44, %v57_v42 }
  0xd6   :  { %v139_v47 = vpop.f32.mrf.mxu0  ;;  %v216_v48 = vpop.f32.mrf.mxu1 }
  0xd7   :  { %225 = vst [vmem:[%s424_s3] sm:$0xff] %v138_v45  ;;  %227 = vst [vmem:[%s424_s3 + $0x10] sm:$0xff] %v215_v46  ;;  %v140_v50 = vadd.f32 %v139_v47, %v57_v42  ;;  %v217_v51 = vadd.f32 %v216_v48, %v57_v42 }
  0xd8   :  { %v143_v52 = vpop.f32.mrf.mxu0  ;;  %v220_v53 = vpop.f32.mrf.mxu1 }
  0xd9   :  { %226 = vst [vmem:[%s424_s3 + $0x8] sm:$0xff] %v140_v50  ;;  %229 = vst.msk [vmem:[%s424_s3 + $0x18] sm:$0xff] %vm228_vm1, %v217_v51  ;;  %v144_v54 = vadd.f32 %v143_v52, %v62_v49  ;;  %v221_v55 = vadd.f32 %v220_v53, %v62_v49 }
  0xda   :  { %v145_v56 = vpop.f32.mrf.mxu0  ;;  %v222_v57 = vpop.f32.mrf.mxu1 }
  0xdb   :  { %230 = vst [vmem:[%s424_s3 + $0x20] sm:$0xff] %v144_v54  ;;  %232 = vst [vmem:[%s424_s3 + $0x30] sm:$0xff] %v221_v55  ;;  %v146_v58 = vadd.f32 %v145_v56, %v62_v49  ;;  %v223_v59 = vadd.f32 %v222_v57, %v62_v49 }
  0xdd   :  { %231 = vst [vmem:[%s424_s3 + $0x28] sm:$0xff] %v146_v58  ;;  %233 = vst.msk [vmem:[%s424_s3 + $0x38] sm:$0xff] %vm228_vm1, %v223_v59 }

// kernel: autoencoder_forward.9
= control target key start
LH: loop header
LB: loop body
LE: loop exit
PB: predicated region body
PF: predicated region fallthrough
CT: control target
= control target key end

     0   :  { %v215_v0 = vmov 0.0   ;;  %vm64_vm0 = vcmask 130048   ;;  %v216_v29 = vmov 0   ;;  %vm162_vm1 = vcmask 785408   ;;  %s383_s1 = inlined_call_operand.vmem [shape: f32[144,96], index: 1, kind: input, shape index: {}]   ;;  %s384_s0 = inlined_call_operand.vmem [shape: f32[32,144], index: 0, kind: input, shape index: {}]   ;;  %s385_s2 = inlined_call_operand.vmem [shape: f32[32,1], index: 2, kind: input, shape index: {}]   ;;  %s386_s3 = inlined_call_operand.vmem [shape: f32[32,96], index: 3, kind: output, shape index: {}]  }
   0x1   :  { %77 = vmatprep.subr.mxu0 %v215_v0  ;;  %175 = vmatprep.subr.mxu1 %v215_v0  ;;  %v37_v1 = vld [vmem:[%s383_s1 + $0x78] sm:$0xff]  ;;  %v36_v2 = vld [vmem:[%s383_s1 + $0x70] sm:$0xff]  ;;  %v35_v3 = vld [vmem:[%s383_s1 + $0x68] sm:$0xff] }
   0x2   :  { %78 = vmatpush1.msra.mxu0 %v37_v1  ;;  %193 = vmatpush1.msra.mxu1 %v37_v1  ;;  %v34_v4 = vld [vmem:[%s383_s1 + $0x60] sm:$0xff]  ;;  %v33_v5 = vld [vmem:[%s383_s1 + $0x58] sm:$0xff]  ;;  %v32_v6 = vld [vmem:[%s383_s1 + $0x50] sm:$0xff] }
   0x3   :  { %79 = vmatprep.subr.mxu0 %v215_v0  ;;  %176 = vmatprep.subr.mxu1 %v215_v0  ;;  %v31_v7 = vld [vmem:[%s383_s1 + $0x48] sm:$0xff]  ;;  %v30_v8 = vld [vmem:[%s383_s1 + $0x40] sm:$0xff]  ;;  %v29_v9 = vld [vmem:[%s383_s1 + $0x38] sm:$0xff] }
   0x4   :  { %80 = vmatpush1.msra.mxu0 %v36_v2  ;;  %194 = vmatpush1.msra.mxu1 %v36_v2  ;;  %v28_v10 = vld [vmem:[%s383_s1 + $0x30] sm:$0xff]  ;;  %v27_v11 = vld [vmem:[%s383_s1 + $0x28] sm:$0xff]  ;;  %v26_v12 = vld [vmem:[%s383_s1 + $0x20] sm:$0xff] }
   0x5   :  { %81 = vmatprep.subr.mxu0 %v215_v0  ;;  %177 = vmatprep.subr.mxu1 %v215_v0  ;;  %v25_v13 = vld [vmem:[%s383_s1 + $0x18] sm:$0xff]  ;;  %v24_v14 = vld [vmem:[%s383_s1 + $0x10] sm:$0xff]  ;;  %v23_v15 = vld [vmem:[%s383_s1 + $0x8] sm:$0xff] }
   0x6   :  { %82 = vmatpush1.msra.mxu0 %v35_v3  ;;  %195 = vmatpush1.msra.mxu1 %v35_v3  ;;  %v22_v16 = vld [vmem:[%s383_s1] sm:$0xff]  ;;  %v39_v17 = vld [vmem:[%s383_s1 + $0x88] sm:$0xff]  ;;  %v17_v23 = vld [vmem:[%s384_s0 + $0x18] sm:$0xff] }
   0x7   :  { %83 = vmatprep.subr.mxu0 %v215_v0  ;;  %178 = vmatprep.subr.mxu1 %v215_v0  ;;  %v38_v18 = vld [vmem:[%s383_s1 + $0x80] sm:$0xff]  ;;  %v15_v19 = vld [vmem:[%s384_s0 + $0x8] sm:$0xff]  ;;  %v21_v24 = vld [vmem:[%s384_s0 + $0x38] sm:$0xff] }
   0x8   :  { %84 = vmatpush1.msra.mxu0 %v34_v4  ;;  %196 = vmatpush1.msra.mxu1 %v34_v4  ;;  %v19_v20 = vld [vmem:[%s384_s0 + $0x28] sm:$0xff]  ;;  %v14_v21 = vld [vmem:[%s384_s0] sm:$0xff]  ;;  %v42_v25 = vld [vmem:[%s385_s2 + $0x10] sm:$0xff] }
   0x9   :  { %85 = vmatprep.subr.mxu0 %v215_v0  ;;  %179 = vmatprep.subr.mxu1 %v215_v0  ;;  %v18_v22 = vld [vmem:[%s384_s0 + $0x20] sm:$0xff]  ;;  %v16_v27 = vld [vmem:[%s384_s0 + $0x10] sm:$0xff]  ;;  %v43_v30 = vld [vmem:[%s385_s2 + $0x18] sm:$0xff] }
   0xa   :  { %86 = vmatpush1.msra.mxu0 %v33_v5  ;;  %197 = vmatpush1.msra.mxu1 %v33_v5  ;;  %v40_v26 = vld [vmem:[%s385_s2] sm:$0xff]  ;;  %v20_v28 = vld [vmem:[%s384_s0 + $0x30] sm:$0xff]  ;;  %v41_v31 = vld [vmem:[%s385_s2 + $0x8] sm:$0xff] }
   0xb   :  { %87 = vmatprep.subr.mxu0 %v215_v0  ;;  %180 = vmatprep.subr.mxu1 %v215_v0 }
   0xc   :  { %88 = vmatpush1.msra.mxu0 %v32_v6  ;;  %198 = vmatpush1.msra.mxu1 %v32_v6 }
   0xd   :  { %89 = vmatprep.subr.mxu0 %v215_v0  ;;  %181 = vmatprep.subr.mxu1 %v215_v0 }
   0xe   :  { %90 = vmatpush1.msra.mxu0 %v31_v7  ;;  %199 = vmatpush1.msra.mxu1 %v31_v7 }
   0xf   :  { %91 = vmatprep.subr.mxu0 %v215_v0  ;;  %182 = vmatprep.subr.mxu1 %v215_v0 }
  0x10   :  { %92 = vmatpush1.msra.mxu0 %v30_v8  ;;  %200 = vmatpush1.msra.mxu1 %v30_v8 }
  0x11   :  { %93 = vmatprep.subr.mxu0 %v215_v0  ;;  %183 = vmatprep.subr.mxu1 %v215_v0 }
  0x12   :  { %94 = vmatpush1.msra.mxu0 %v29_v9  ;;  %201 = vmatpush1.msra.mxu1 %v29_v9 }
  0x13   :  { %95 = vmatprep.subr.mxu0 %v215_v0  ;;  %184 = vmatprep.subr.mxu1 %v215_v0 }
  0x14   :  { %96 = vmatpush1.msra.mxu0 %v28_v10  ;;  %202 = vmatpush1.msra.mxu1 %v28_v10 }
  0x15   :  { %97 = vmatprep.subr.mxu0 %v215_v0  ;;  %185 = vmatprep.subr.mxu1 %v215_v0 }
  0x16   :  { %98 = vmatpush1.msra.mxu0 %v27_v11  ;;  %203 = vmatpush1.msra.mxu1 %v27_v11 }
  0x17   :  { %99 = vmatprep.subr.mxu0 %v215_v0  ;;  %186 = vmatprep.subr.mxu1 %v215_v0 }
  0x18   :  { %100 = vmatpush1.msra.mxu0 %v26_v12  ;;  %204 = vmatpush1.msra.mxu1 %v26_v12 }
  0x19   :  { %101 = vmatprep.subr.mxu0 %v215_v0  ;;  %187 = vmatprep.subr.mxu1 %v215_v0 }
  0x1a   :  { %102 = vmatpush1.msra.mxu0 %v25_v13  ;;  %205 = vmatpush1.msra.mxu1 %v25_v13 }
  0x1b   :  { %103 = vmatprep.subr.mxu0 %v215_v0  ;;  %188 = vmatprep.subr.mxu1 %v215_v0 }
  0x1c   :  { %104 = vmatpush1.msra.mxu0 %v24_v14  ;;  %206 = vmatpush1.msra.mxu1 %v24_v14 }
  0x1d   :  { %105 = vmatprep.subr.mxu0 %v215_v0  ;;  %189 = vmatprep.subr.mxu1 %v215_v0 }
  0x1e   :  { %106 = vmatpush1.msra.mxu0 %v23_v15  ;;  %207 = vmatpush1.msra.mxu1 %v23_v15 }
  0x1f   :  { %107 = vmatprep.subr.mxu0 %v215_v0  ;;  %190 = vmatprep.subr.mxu1 %v215_v0 }
  0x20   :  { %108 = vmatpush1.msra.mxu0 %v22_v16  ;;  %208 = vmatpush1.msra.mxu1 %v22_v16 }
  0x21   :  { %137 = vmatprep.subr.mxu0 %v215_v0  ;;  %191 = vmatprep.subr.mxu1 %v215_v0 }
  0x22   :  { %138 = vmatpush2.msra.mxu0 %v39_v17  ;;  %209 = vmatpush2.msra.mxu1 %v39_v17 }
  0x23   :  { %139 = vmatprep.subr.mxu0 %v215_v0  ;;  %192 = vmatprep.subr.mxu1 %v215_v0 }
  0x24   :  { %140 = vmatpush2.msra.mxu0 %v38_v18  ;;  %210 = vmatpush2.msra.mxu1 %v38_v18 }
  0x25   :  { %171 = vmatprep.mubr.msk.f32.mxu0 %vm64_vm0, %v15_v19  ;;  %173 = vmatprep.mubr.msk.f32.mxu1 %vm64_vm0, %v19_v20 }
  0x26   :  { %142 = vmatmul.mubr.f32.vlgmr.msra.gmra.mxu0 %v14_v21  ;;  %152 = vmatmul.mubr.f32.vlgmr.msra.gmra.mxu1 %v18_v22 }
  0x27   :  { %172 = vmatprep.mubr.msk.f32.mxu0 %vm64_vm0, %v17_v23  ;;  %174 = vmatprep.mubr.msk.f32.mxu1 %vm64_vm0, %v21_v24 }
  0x28   :  { %214 = vset.pattern.permute.xlu1 %v216_v29  ;;  %213 = vset.pattern.permute.xlu0 %v216_v29 }
  0x29   :  { %56 = vperm.xlu1 %214, %v42_v25   ;;  %46 = vperm.xlu0 %213, %v40_v26  }
  0x2a   :  { %147 = vmatmul.mubr.f32.gmra.mxu0 %v16_v27  ;;  %157 = vmatmul.mubr.f32.gmra.mxu1 %v20_v28 }
  0x2d   :  { %61 = vperm.xlu1 %214, %v43_v30   ;;  %51 = vperm.xlu0 %213, %v41_v31  }
  0xa4   :  { %v57_v32 = vpop.permute.xlu1 %56  ;;  %v47_v33 = vpop.permute.xlu0 %46 }
  0xa8   :  { %v62_v40 = vpop.permute.xlu1 %61  ;;  %v52_v41 = vpop.permute.xlu0 %51 }
  0xe6   :  { %v143_v34 = vpop.f32.mrf.mxu0  ;;  %v153_v35 = vpop.f32.mrf.mxu1 }
  0xe7   :  { %v144_v36 = vadd.f32 %v143_v34, %v47_v33  ;;  %v154_v37 = vadd.f32 %v153_v35, %v57_v32 }
  0xe8   :  { %v145_v38 = vpop.f32.mrf.mxu0  ;;  %v155_v39 = vpop.f32.mrf.mxu1 }
  0xe9   :  { %163 = vst.msk [vmem:[%s386_s3] sm:$0xff] %vm162_vm1, %v144_v36  ;;  %165 = vst.msk [vmem:[%s386_s3 + $0x10] sm:$0xff] %vm162_vm1, %v154_v37 }
  0xea   :  { %v148_v42 = vpop.f32.mrf.mxu0  ;;  %v158_v43 = vpop.f32.mrf.mxu1 }
  0xeb   :  { %v149_v44 = vadd.f32 %v148_v42, %v52_v41  ;;  %v159_v45 = vadd.f32 %v158_v43, %v62_v40 }
  0xec   :  { %v150_v46 = vpop.f32.mrf.mxu0  ;;  %v160_v47 = vpop.f32.mrf.mxu1 }
  0xed   :  { %164 = vst.msk [vmem:[%s386_s3 + $0x8] sm:$0xff] %vm162_vm1, %v149_v44  ;;  %166 = vst.msk [vmem:[%s386_s3 + $0x18] sm:$0xff] %vm162_vm1, %v159_v45 }

// kernel: autoencoder_forward.10
= control target key start
LH: loop header
LB: loop body
LE: loop exit
PB: predicated region body
PF: predicated region fallthrough
CT: control target
= control target key end

     0   :  { %vm1992_vm0 = vcmask 261120   ;;  %s9081_s1 = inlined_call_operand.vmem [shape: f32[1536,512], index: 1, kind: input, shape index: {}]   ;;  %s9082_s0 = inlined_call_operand.vmem [shape: f32[2,1536], index: 0, kind: input, shape index: {}]   ;;  %s9083_s2 = inlined_call_operand.vmem [shape: f32[1,512], index: 2, kind: input, shape index: {}]   ;;  %s9084_s3 = inlined_call_operand.vmem [shape: f32[512,32], index: 3, kind: input, shape index: {}]   ;;  %s9085_s5 = inlined_call_operand.vmem [shape: f32[32,512], index: 5, kind: input, shape index: {}]   ;;  %s9086_s7 = inlined_call_operand.vmem [shape: f32[512,1536], index: 7, kind: input, shape index: {}]   ;;  %s9087_s4 = inlined_call_operand.vmem [shape: f32[1,32], index: 4, kind: input, shape index: {}]   ;;  %s9088_s6 = inlined_call_operand.vmem [shape: f32[1,512], index: 6, kind: input, shape index: {}]   ;;  %s9089_s8 = inlined_call_operand.vmem [shape: f32[1,1536], index: 8, kind: input, shape index: {}]   ;;  %s9090_s9 = inlined_call_operand.vmem [shape: f32[2,1536], index: 9, kind: output, shape index: {}]  }
   0x1   :  { %v96_v0 = vld [vmem:[%s9081_s1 + $0x1e8] sm:$0xff]  ;;  %v95_v2 = vld [vmem:[%s9081_s1 + $0x1e0] sm:$0xff] }
   0x2   :  { %v224_v1 = vld [vmem:[%s9081_s1 + $0x5e8] sm:$0xff]  ;;  %891 = vmatprep.subr.mxu0 %v96_v0  ;;  %v223_v3 = vld [vmem:[%s9081_s1 + $0x5e0] sm:$0xff] }
   0x3   :  { %962 = vmatprep.subr.mxu1 %v224_v1  ;;  %v92_v4 = vld [vmem:[%s9081_s1 + $0x1c8] sm:$0xff]  ;;  %892 = vmatpush1.msra.mxu0 %v95_v2  ;;  %v91_v6 = vld [vmem:[%s9081_s1 + $0x1c0] sm:$0xff] }
   0x4   :  { %v220_v5 = vld [vmem:[%s9081_s1 + $0x5c8] sm:$0xff]  ;;  %963 = vmatpush1.msra.mxu1 %v223_v3  ;;  %v219_v7 = vld [vmem:[%s9081_s1 + $0x5c0] sm:$0xff]  ;;  %893 = vmatprep.subr.mxu0 %v92_v4 }
   0x5   :  { %v88_v8 = vld [vmem:[%s9081_s1 + $0x1a8] sm:$0xff]  ;;  %964 = vmatprep.subr.mxu1 %v220_v5  ;;  %v87_v10 = vld [vmem:[%s9081_s1 + $0x1a0] sm:$0xff]  ;;  %894 = vmatpush1.msra.mxu0 %v91_v6 }
   0x6   :  { %v216_v9 = vld [vmem:[%s9081_s1 + $0x5a8] sm:$0xff]  ;;  %v215_v11 = vld [vmem:[%s9081_s1 + $0x5a0] sm:$0xff]  ;;  %965 = vmatpush1.msra.mxu1 %v219_v7  ;;  %895 = vmatprep.subr.mxu0 %v88_v8 }
   0x7   :  { %v84_v12 = vld [vmem:[%s9081_s1 + $0x188] sm:$0xff]  ;;  %966 = vmatprep.subr.mxu1 %v216_v9  ;;  %v83_v14 = vld [vmem:[%s9081_s1 + $0x180] sm:$0xff]  ;;  %896 = vmatpush1.msra.mxu0 %v87_v10 }
   0x8   :  { %v212_v13 = vld [vmem:[%s9081_s1 + $0x588] sm:$0xff]  ;;  %v211_v15 = vld [vmem:[%s9081_s1 + $0x580] sm:$0xff]  ;;  %967 = vmatpush1.msra.mxu1 %v215_v11  ;;  %897 = vmatprep.subr.mxu0 %v84_v12 }
   0x9   :  { %v80_v16 = vld [vmem:[%s9081_s1 + $0x168] sm:$0xff]  ;;  %968 = vmatprep.subr.mxu1 %v212_v13  ;;  %v79_v18 = vld [vmem:[%s9081_s1 + $0x160] sm:$0xff]  ;;  %898 = vmatpush1.msra.mxu0 %v83_v14 }
   0xa   :  { %v208_v17 = vld [vmem:[%s9081_s1 + $0x568] sm:$0xff]  ;;  %v207_v19 = vld [vmem:[%s9081_s1 + $0x560] sm:$0xff]  ;;  %969 = vmatpush1.msra.mxu1 %v211_v15  ;;  %899 = vmatprep.subr.mxu0 %v80_v16 }
   0xb   :  { %v76_v20 = vld [vmem:[%s9081_s1 + $0x148] sm:$0xff]  ;;  %970 = vmatprep.subr.mxu1 %v208_v17  ;;  %v75_v22 = vld [vmem:[%s9081_s1 + $0x140] sm:$0xff]  ;;  %900 = vmatpush1.msra.mxu0 %v79_v18 }
   0xc   :  { %v204_v21 = vld [vmem:[%s9081_s1 + $0x548] sm:$0xff]  ;;  %v203_v23 = vld [vmem:[%s9081_s1 + $0x540] sm:$0xff]  ;;  %971 = vmatpush1.msra.mxu1 %v207_v19  ;;  %901 = vmatprep.subr.mxu0 %v76_v20 }
   0xd   :  { %v72_v24 = vld [vmem:[%s9081_s1 + $0x128] sm:$0xff]  ;;  %972 = vmatprep.subr.mxu1 %v204_v21  ;;  %v71_v26 = vld [vmem:[%s9081_s1 + $0x120] sm:$0xff]  ;;  %902 = vmatpush1.msra.mxu0 %v75_v22 }
   0xe   :  { %v200_v25 = vld [vmem:[%s9081_s1 + $0x528] sm:$0xff]  ;;  %v199_v27 = vld [vmem:[%s9081_s1 + $0x520] sm:$0xff]  ;;  %973 = vmatpush1.msra.mxu1 %v203_v23  ;;  %903 = vmatprep.subr.mxu0 %v72_v24 }
   0xf   :  { %v68_v28 = vld [vmem:[%s9081_s1 + $0x108] sm:$0xff]  ;;  %974 = vmatprep.subr.mxu1 %v200_v25  ;;  %v67_v30 = vld [vmem:[%s9081_s1 + $0x100] sm:$0xff]  ;;  %904 = vmatpush1.msra.mxu0 %v71_v26 }
  0x10   :  { %v196_v29 = vld [vmem:[%s9081_s1 + $0x508] sm:$0xff]  ;;  %v195_v31 = vld [vmem:[%s9081_s1 + $0x500] sm:$0xff]  ;;  %975 = vmatpush1.msra.mxu1 %v199_v27  ;;  %905 = vmatprep.subr.mxu0 %v68_v28 }
  0x11   :  { %v64_v32 = vld [vmem:[%s9081_s1 + $0xe8] sm:$0xff]  ;;  %976 = vmatprep.subr.mxu1 %v196_v29  ;;  %v63_v34 = vld [vmem:[%s9081_s1 + $0xe0] sm:$0xff]  ;;  %906 = vmatpush1.msra.mxu0 %v67_v30  ;;  %v805_v30 = vlaneseq }
  0x12   :  { %v192_v33 = vld [vmem:[%s9081_s1 + $0x4e8] sm:$0xff]  ;;  %v191_v35 = vld [vmem:[%s9081_s1 + $0x4e0] sm:$0xff]  ;;  %977 = vmatpush1.msra.mxu1 %v195_v31  ;;  %907 = vmatprep.subr.mxu0 %v64_v32  ;;  %v3973_v31 = vmov 1983009808  }
  0x13   :  { %v60_v36 = vld [vmem:[%s9081_s1 + $0xc8] sm:$0xff]  ;;  %978 = vmatprep.subr.mxu1 %v192_v33  ;;  %v59_v38 = vld [vmem:[%s9081_s1 + $0xc0] sm:$0xff]  ;;  %908 = vmatpush1.msra.mxu0 %v63_v34  ;;  %v830_v32 = vunpack.c.l.s4 %v3973_v31 }
  0x14   :  { %v188_v37 = vld [vmem:[%s9081_s1 + $0x4c8] sm:$0xff]  ;;  %v187_v39 = vld [vmem:[%s9081_s1 + $0x4c0] sm:$0xff]  ;;  %979 = vmatpush1.msra.mxu1 %v191_v35  ;;  %909 = vmatprep.subr.mxu0 %v60_v36 }
  0x15   :  { %v56_v40 = vld [vmem:[%s9081_s1 + $0xa8] sm:$0xff]  ;;  %980 = vmatprep.subr.mxu1 %v188_v37  ;;  %v55_v42 = vld [vmem:[%s9081_s1 + $0xa0] sm:$0xff]  ;;  %910 = vmatpush1.msra.mxu0 %v59_v38 }
  0x16   :  { %v184_v41 = vld [vmem:[%s9081_s1 + $0x4a8] sm:$0xff]  ;;  %v183_v43 = vld [vmem:[%s9081_s1 + $0x4a0] sm:$0xff]  ;;  %981 = vmatpush1.msra.mxu1 %v187_v39  ;;  %911 = vmatprep.subr.mxu0 %v56_v40 }
  0x17   :  { %v52_v44 = vld [vmem:[%s9081_s1 + $0x88] sm:$0xff]  ;;  %982 = vmatprep.subr.mxu1 %v184_v41  ;;  %v51_v46 = vld [vmem:[%s9081_s1 + $0x80] sm:$0xff]  ;;  %912 = vmatpush1.msra.mxu0 %v55_v42  ;;  %v4331_v41 = vshrl.u32 %v805_v30, 7  ;;  %v831_v42 = vunpack.c.0.s8 %v830_v32 }
  0x18   :  { %v180_v45 = vld [vmem:[%s9081_s1 + $0x488] sm:$0xff]  ;;  %v179_v47 = vld [vmem:[%s9081_s1 + $0x480] sm:$0xff]  ;;  %983 = vmatpush1.msra.mxu1 %v183_v43  ;;  %913 = vmatprep.subr.mxu0 %v52_v44 }
  0x19   :  { %v48_v48 = vld [vmem:[%s9081_s1 + $0x68] sm:$0xff]  ;;  %984 = vmatprep.subr.mxu1 %v180_v45  ;;  %v47_v50 = vld [vmem:[%s9081_s1 + $0x60] sm:$0xff]  ;;  %914 = vmatpush1.msra.mxu0 %v51_v46 }
  0x1a   :  { %v176_v49 = vld [vmem:[%s9081_s1 + $0x468] sm:$0xff]  ;;  %v175_v51 = vld [vmem:[%s9081_s1 + $0x460] sm:$0xff]  ;;  %985 = vmatpush1.msra.mxu1 %v179_v47  ;;  %915 = vmatprep.subr.mxu0 %v48_v48 }
  0x1b   :  { %v44_v52 = vld [vmem:[%s9081_s1 + $0x48] sm:$0xff]  ;;  %986 = vmatprep.subr.mxu1 %v176_v49  ;;  %v43_v54 = vld [vmem:[%s9081_s1 + $0x40] sm:$0xff]  ;;  %916 = vmatpush1.msra.mxu0 %v47_v50 }
  0x1c   :  { %v172_v53 = vld [vmem:[%s9081_s1 + $0x448] sm:$0xff]  ;;  %v171_v55 = vld [vmem:[%s9081_s1 + $0x440] sm:$0xff]  ;;  %987 = vmatpush1.msra.mxu1 %v175_v51  ;;  %917 = vmatprep.subr.mxu0 %v44_v52  ;;  %v4361_v52 = vsub.s32 %v831_v42, %v4331_v41 }
  0x1d   :  { %v40_v56 = vld [vmem:[%s9081_s1 + $0x28] sm:$0xff]  ;;  %988 = vmatprep.subr.mxu1 %v172_v53  ;;  %v39_v58 = vld [vmem:[%s9081_s1 + $0x20] sm:$0xff]  ;;  %918 = vmatpush1.msra.mxu0 %v43_v54 }
  0x1e   :  { %v168_v57 = vld [vmem:[%s9081_s1 + $0x428] sm:$0xff]  ;;  %v167_v59 = vld [vmem:[%s9081_s1 + $0x420] sm:$0xff]  ;;  %989 = vmatpush1.msra.mxu1 %v171_v55  ;;  %919 = vmatprep.subr.mxu0 %v40_v56 }
  0x1f   :  { %v36_v60 = vld [vmem:[%s9081_s1 + $0x8] sm:$0xff]  ;;  %990 = vmatprep.subr.mxu1 %v168_v57  ;;  %v35_v62 = vld [vmem:[%s9081_s1] sm:$0xff]  ;;  %920 = vmatpush1.msra.mxu0 %v39_v58 }
  0x20   :  { %v164_v61 = vld [vmem:[%s9081_s1 + $0x408] sm:$0xff]  ;;  %v163_v63 = vld [vmem:[%s9081_s1 + $0x400] sm:$0xff]  ;;  %991 = vmatpush1.msra.mxu1 %v167_v59  ;;  %921 = vmatprep.subr.mxu0 %v36_v60 }
  0x21   :  { %v160_v0 = vld [vmem:[%s9081_s1 + $0x3e8] sm:$0xff]  ;;  %992 = vmatprep.subr.mxu1 %v164_v61  ;;  %v159_v2 = vld [vmem:[%s9081_s1 + $0x3e0] sm:$0xff]  ;;  %922 = vmatpush1.msra.mxu0 %v35_v62 }
  0x22   :  { %v288_v1 = vld [vmem:[%s9081_s1 + $0x7e8] sm:$0xff]  ;;  %v287_v3 = vld [vmem:[%s9081_s1 + $0x7e0] sm:$0xff]  ;;  %993 = vmatpush1.msra.mxu1 %v163_v63  ;;  %923 = vmatprep.subr.mxu0 %v160_v0 }
  0x23   :  { %v156_v4 = vld [vmem:[%s9081_s1 + $0x3c8] sm:$0xff]  ;;  %994 = vmatprep.subr.mxu1 %v288_v1  ;;  %v155_v6 = vld [vmem:[%s9081_s1 + $0x3c0] sm:$0xff]  ;;  %924 = vmatpush2.msra.mxu0 %v159_v2 }
  0x24   :  { %v284_v5 = vld [vmem:[%s9081_s1 + $0x7c8] sm:$0xff]  ;;  %v283_v7 = vld [vmem:[%s9081_s1 + $0x7c0] sm:$0xff]  ;;  %995 = vmatpush2.msra.mxu1 %v287_v3  ;;  %925 = vmatprep.subr.mxu0 %v156_v4 }
  0x25   :  { %v152_v8 = vld [vmem:[%s9081_s1 + $0x3a8] sm:$0xff]  ;;  %996 = vmatprep.subr.mxu1 %v284_v5  ;;  %v151_v10 = vld [vmem:[%s9081_s1 + $0x3a0] sm:$0xff]  ;;  %926 = vmatpush2.msra.mxu0 %v155_v6 }
  0x26   :  { %v280_v9 = vld [vmem:[%s9081_s1 + $0x7a8] sm:$0xff]  ;;  %v279_v11 = vld [vmem:[%s9081_s1 + $0x7a0] sm:$0xff]  ;;  %997 = vmatpush2.msra.mxu1 %v283_v7  ;;  %927 = vmatprep.subr.mxu0 %v152_v8 }
  0x27   :  { %v148_v12 = vld [vmem:[%s9081_s1 + $0x388] sm:$0xff]  ;;  %998 = vmatprep.subr.mxu1 %v280_v9  ;;  %v147_v14 = vld [vmem:[%s9081_s1 + $0x380] sm:$0xff]  ;;  %928 = vmatpush2.msra.mxu0 %v151_v10 }
  0x28   :  { %v276_v13 = vld [vmem:[%s9081_s1 + $0x788] sm:$0xff]  ;;  %v275_v15 = vld [vmem:[%s9081_s1 + $0x780] sm:$0xff]  ;;  %999 = vmatpush2.msra.mxu1 %v279_v11  ;;  %929 = vmatprep.subr.mxu0 %v148_v12 }
  0x29   :  { %v144_v16 = vld [vmem:[%s9081_s1 + $0x368] sm:$0xff]  ;;  %1000 = vmatprep.subr.mxu1 %v276_v13  ;;  %v143_v18 = vld [vmem:[%s9081_s1 + $0x360] sm:$0xff]  ;;  %930 = vmatpush2.msra.mxu0 %v147_v14 }
  0x2a   :  { %v272_v17 = vld [vmem:[%s9081_s1 + $0x768] sm:$0xff]  ;;  %v271_v19 = vld [vmem:[%s9081_s1 + $0x760] sm:$0xff]  ;;  %1001 = vmatpush2.msra.mxu1 %v275_v15  ;;  %931 = vmatprep.subr.mxu0 %v144_v16 }
  0x2b   :  { %v140_v20 = vld [vmem:[%s9081_s1 + $0x348] sm:$0xff]  ;;  %1002 = vmatprep.subr.mxu1 %v272_v17  ;;  %v139_v22 = vld [vmem:[%s9081_s1 + $0x340] sm:$0xff]  ;;  %932 = vmatpush2.msra.mxu0 %v143_v18 }
  0x2c   :  { %v268_v21 = vld [vmem:[%s9081_s1 + $0x748] sm:$0xff]  ;;  %v267_v23 = vld [vmem:[%s9081_s1 + $0x740] sm:$0xff]  ;;  %1003 = vmatpush2.msra.mxu1 %v271_v19  ;;  %933 = vmatprep.subr.mxu0 %v140_v20 }
  0x2d   :  { %v136_v24 = vld [vmem:[%s9081_s1 + $0x328] sm:$0xff]  ;;  %1004 = vmatprep.subr.mxu1 %v268_v21  ;;  %v135_v26 = vld [vmem:[%s9081_s1 + $0x320] sm:$0xff]  ;;  %934 = vmatpush2.msra.mxu0 %v139_v22 }
  0x2e   :  { %v264_v25 = vld [vmem:[%s9081_s1 + $0x728] sm:$0xff]  ;;  %v263_v27 = vld [vmem:[%s9081_s1 + $0x720] sm:$0xff]  ;;  %1005 = vmatpush2.msra.mxu1 %v267_v23  ;;  %935 = vmatprep.subr.mxu0 %v136_v24 }
  0x2f   :  { %v132_v28 = vld [vmem:[%s9081_s1 + $0x308] sm:$0xff]  ;;  %1006 = vmatprep.subr.mxu1 %v264_v25  ;;  %v131_v33 = vld [vmem:[%s9081_s1 + $0x300] sm:$0xff]  ;;  %936 = vmatpush2.msra.mxu0 %v135_v26 }
  0x30   :  { %v260_v29 = vld [vmem:[%s9081_s1 + $0x708] sm:$0xff]  ;;  %v259_v34 = vld [vmem:[%s9081_s1 + $0x700] sm:$0xff]  ;;  %1007 = vmatpush2.msra.mxu1 %v263_v27  ;;  %937 = vmatprep.subr.mxu0 %v132_v28 }
  0x31   :  { %v128_v35 = vld [vmem:[%s9081_s1 + $0x2e8] sm:$0xff]  ;;  %1008 = vmatprep.subr.mxu1 %v260_v29  ;;  %v127_v37 = vld [vmem:[%s9081_s1 + $0x2e0] sm:$0xff]  ;;  %938 = vmatpush2.msra.mxu0 %v131_v33 }
  0x32   :  { %v256_v36 = vld [vmem:[%s9081_s1 + $0x6e8] sm:$0xff]  ;;  %v255_v38 = vld [vmem:[%s9081_s1 + $0x6e0] sm:$0xff]  ;;  %1009 = vmatpush2.msra.mxu1 %v259_v34  ;;  %939 = vmatprep.subr.mxu0 %v128_v35 }
  0x33   :  { %v124_v39 = vld [vmem:[%s9081_s1 + $0x2c8] sm:$0xff]  ;;  %1010 = vmatprep.subr.mxu1 %v256_v36  ;;  %v123_v43 = vld [vmem:[%s9081_s1 + $0x2c0] sm:$0xff]  ;;  %940 = vmatpush2.msra.mxu0 %v127_v37 }
  0x34   :  { %v252_v40 = vld [vmem:[%s9081_s1 + $0x6c8] sm:$0xff]  ;;  %v251_v44 = vld [vmem:[%s9081_s1 + $0x6c0] sm:$0xff]  ;;  %1011 = vmatpush2.msra.mxu1 %v255_v38  ;;  %941 = vmatprep.subr.mxu0 %v124_v39 }
  0x35   :  { %v120_v45 = vld [vmem:[%s9081_s1 + $0x2a8] sm:$0xff]  ;;  %1012 = vmatprep.subr.mxu1 %v252_v40  ;;  %v119_v47 = vld [vmem:[%s9081_s1 + $0x2a0] sm:$0xff]  ;;  %942 = vmatpush2.msra.mxu0 %v123_v43 }
  0x36   :  { %v248_v46 = vld [vmem:[%s9081_s1 + $0x6a8] sm:$0xff]  ;;  %v247_v48 = vld [vmem:[%s9081_s1 + $0x6a0] sm:$0xff]  ;;  %1013 = vmatpush2.msra.mxu1 %v251_v44  ;;  %943 = vmatprep.subr.mxu0 %v120_v45 }
  0x37   :  { %v32_v49 = vld [vmem:[%s9082_s0] sm:$0xff]  ;;  %v116_v50 = vld [vmem:[%s9081_s1 + $0x288] sm:$0xff]  ;;  %1014 = vmatprep.subr.mxu1 %v248_v46  ;;  %944 = vmatpush2.msra.mxu0 %v119_v47 }
  0x38   :  { %v244_v51 = vld [vmem:[%s9081_s1 + $0x688] sm:$0xff]  ;;  %v115_v53 = vld [vmem:[%s9081_s1 + $0x280] sm:$0xff]  ;;  %1015 = vmatpush2.msra.mxu1 %v247_v48  ;;  %v828_v57 = vcombine.high %v32_v49, %v32_v49  ;;  %945 = vmatprep.subr.mxu0 %v116_v50  ;;  %v4388_v62 = vrot.slane %v32_v49, %v4361_v52 }
  0x39   :  { %v243_v54 = vld [vmem:[%s9081_s1 + $0x680] sm:$0xff]  ;;  %v112_v55 = vld [vmem:[%s9081_s1 + $0x268] sm:$0xff]  ;;  %1016 = vmatprep.subr.mxu1 %v244_v51  ;;  %946 = vmatpush2.msra.mxu0 %v115_v53 }
  0x3a   :  { %v240_v56 = vld [vmem:[%s9081_s1 + $0x668] sm:$0xff]  ;;  %v111_v58 = vld [vmem:[%s9081_s1 + $0x260] sm:$0xff]  ;;  %1017 = vmatpush2.msra.mxu1 %v243_v54  ;;  %947 = vmatprep.subr.mxu0 %v112_v55  ;;  %v4403_v3 = vrot.slane %v828_v57, %v4361_v52  ;;  %v4419_v8 = vcombine.high %v4388_v62, %v4388_v62 }
  0x3b   :  { %v239_v59 = vld [vmem:[%s9081_s1 + $0x660] sm:$0xff]  ;;  %v108_v60 = vld [vmem:[%s9081_s1 + $0x248] sm:$0xff]  ;;  %1018 = vmatprep.subr.mxu1 %v240_v56  ;;  %948 = vmatpush2.msra.mxu0 %v111_v58 }
  0x3c   :  { %v236_v61 = vld [vmem:[%s9081_s1 + $0x648] sm:$0xff]  ;;  %v107_v63 = vld [vmem:[%s9081_s1 + $0x240] sm:$0xff]  ;;  %1019 = vmatpush2.msra.mxu1 %v239_v59  ;;  %949 = vmatprep.subr.mxu0 %v108_v60  ;;  %v4429_v11 = vcombine.high %v4403_v3, %v4403_v3 }
  0x3d   :  { %v235_v0 = vld [vmem:[%s9081_s1 + $0x640] sm:$0xff]  ;;  %v104_v1 = vld [vmem:[%s9081_s1 + $0x228] sm:$0xff]  ;;  %1020 = vmatprep.subr.mxu1 %v236_v61  ;;  %950 = vmatpush2.msra.mxu0 %v107_v63 }
  0x3e   :  { %v232_v2 = vld [vmem:[%s9081_s1 + $0x628] sm:$0xff]  ;;  %v103_v4 = vld [vmem:[%s9081_s1 + $0x220] sm:$0xff]  ;;  %1021 = vmatpush2.msra.mxu1 %v235_v0  ;;  %951 = vmatprep.subr.mxu0 %v104_v1 }
  0x3f   :  { %v231_v5 = vld [vmem:[%s9081_s1 + $0x620] sm:$0xff]  ;;  %v100_v6 = vld [vmem:[%s9081_s1 + $0x208] sm:$0xff]  ;;  %1022 = vmatprep.subr.mxu1 %v232_v2  ;;  %952 = vmatpush2.msra.mxu0 %v103_v4 }
  0x40   :  { %v228_v7 = vld [vmem:[%s9081_s1 + $0x608] sm:$0xff]  ;;  %v99_v9 = vld [vmem:[%s9081_s1 + $0x200] sm:$0xff]  ;;  %1023 = vmatpush2.msra.mxu1 %v231_v5  ;;  %953 = vmatprep.subr.mxu0 %v100_v6 }
  0x41   :  { %v227_v10 = vld [vmem:[%s9081_s1 + $0x600] sm:$0xff]  ;;  %1024 = vmatprep.subr.mxu1 %v228_v7  ;;  %v352_v12 = vld [vmem:[%s9081_s1 + $0x9e8] sm:$0xff]  ;;  %954 = vmatpush2.msra.mxu0 %v99_v9 }
  0x42   :  { %955 = vmatprep.mubr.f32.mxu0 %v4419_v8  ;;  %v480_v13 = vld [vmem:[%s9081_s1 + $0xde8] sm:$0xff]  ;;  %1025 = vmatpush2.msra.mxu1 %v227_v10  ;;  %v351_v14 = vld [vmem:[%s9081_s1 + $0x9e0] sm:$0xff] }
  0x43   :  { %956 = vmatmul.mubr.f32.vlgmr.msra.gmra.mxu0 %v4388_v62  ;;  %v479_v15 = vld [vmem:[%s9081_s1 + $0xde0] sm:$0xff]  ;;  %1026 = vmatprep.mubr.f32.mxu1 %v4429_v11  ;;  %v348_v16 = vld [vmem:[%s9081_s1 + $0x9c8] sm:$0xff] }
  0x44   :  { %1033 = vmatprep.subr.mxu0 %v352_v12  ;;  %v476_v17 = vld [vmem:[%s9081_s1 + $0xdc8] sm:$0xff]  ;;  %1104 = vmatprep.subr.mxu1 %v480_v13  ;;  %v347_v18 = vld [vmem:[%s9081_s1 + $0x9c0] sm:$0xff] }
  0x45   :  { %1027 = vmatmul.mubr.f32.vlgmr.msra.gmra.mxu1 %v4403_v3  ;;  %v475_v19 = vld [vmem:[%s9081_s1 + $0xdc0] sm:$0xff]  ;;  %1034 = vmatpush1.msra.mxu0 %v351_v14  ;;  %v344_v20 = vld [vmem:[%s9081_s1 + $0x9a8] sm:$0xff] }
  0x46   :  { %1105 = vmatpush1.msra.mxu1 %v479_v15  ;;  %v472_v21 = vld [vmem:[%s9081_s1 + $0xda8] sm:$0xff]  ;;  %1035 = vmatprep.subr.mxu0 %v348_v16  ;;  %v343_v22 = vld [vmem:[%s9081_s1 + $0x9a0] sm:$0xff] }
  0x47   :  { %1106 = vmatprep.subr.mxu1 %v476_v17  ;;  %v471_v23 = vld [vmem:[%s9081_s1 + $0xda0] sm:$0xff]  ;;  %1036 = vmatpush1.msra.mxu0 %v347_v18  ;;  %v340_v24 = vld [vmem:[%s9081_s1 + $0x988] sm:$0xff] }
  0x48   :  { %1107 = vmatpush1.msra.mxu1 %v475_v19  ;;  %v468_v25 = vld [vmem:[%s9081_s1 + $0xd88] sm:$0xff]  ;;  %1037 = vmatprep.subr.mxu0 %v344_v20  ;;  %v339_v26 = vld [vmem:[%s9081_s1 + $0x980] sm:$0xff] }
  0x49   :  { %1108 = vmatprep.subr.mxu1 %v472_v21  ;;  %v467_v27 = vld [vmem:[%s9081_s1 + $0xd80] sm:$0xff]  ;;  %1038 = vmatpush1.msra.mxu0 %v343_v22  ;;  %v336_v28 = vld [vmem:[%s9081_s1 + $0x968] sm:$0xff] }
  0x4a   :  { %1109 = vmatpush1.msra.mxu1 %v471_v23  ;;  %v464_v29 = vld [vmem:[%s9081_s1 + $0xd68] sm:$0xff]  ;;  %1039 = vmatprep.subr.mxu0 %v340_v24  ;;  %v335_v30 = vld [vmem:[%s9081_s1 + $0x960] sm:$0xff] }
  0x4b   :  { %1110 = vmatprep.subr.mxu1 %v468_v25  ;;  %v463_v31 = vld [vmem:[%s9081_s1 + $0xd60] sm:$0xff]  ;;  %1040 = vmatpush1.msra.mxu0 %v339_v26  ;;  %v332_v32 = vld [vmem:[%s9081_s1 + $0x948] sm:$0xff] }
  0x4c   :  { %1111 = vmatpush1.msra.mxu1 %v467_v27  ;;  %v460_v33 = vld [vmem:[%s9081_s1 + $0xd48] sm:$0xff]  ;;  %1041 = vmatprep.subr.mxu0 %v336_v28  ;;  %v331_v34 = vld [vmem:[%s9081_s1 + $0x940] sm:$0xff] }
  0x4d   :  { %1112 = vmatprep.subr.mxu1 %v464_v29  ;;  %v459_v35 = vld [vmem:[%s9081_s1 + $0xd40] sm:$0xff]  ;;  %1042 = vmatpush1.msra.mxu0 %v335_v30  ;;  %v328_v36 = vld [vmem:[%s9081_s1 + $0x928] sm:$0xff] }
  0x4e   :  { %1113 = vmatpush1.msra.mxu1 %v463_v31  ;;  %v456_v37 = vld [vmem:[%s9081_s1 + $0xd28] sm:$0xff]  ;;  %1043 = vmatprep.subr.mxu0 %v332_v32  ;;  %v327_v38 = vld [vmem:[%s9081_s1 + $0x920] sm:$0xff] }
  0x4f   :  { %1114 = vmatprep.subr.mxu1 %v460_v33  ;;  %v455_v39 = vld [vmem:[%s9081_s1 + $0xd20] sm:$0xff]  ;;  %1044 = vmatpush1.msra.mxu0 %v331_v34  ;;  %v324_v40 = vld [vmem:[%s9081_s1 + $0x908] sm:$0xff] }
  0x50   :  { %1115 = vmatpush1.msra.mxu1 %v459_v35  ;;  %v452_v42 = vld [vmem:[%s9081_s1 + $0xd08] sm:$0xff]  ;;  %1045 = vmatprep.subr.mxu0 %v328_v36  ;;  %v323_v43 = vld [vmem:[%s9081_s1 + $0x900] sm:$0xff] }
  0x51   :  { %1116 = vmatprep.subr.mxu1 %v456_v37  ;;  %v451_v44 = vld [vmem:[%s9081_s1 + $0xd00] sm:$0xff]  ;;  %1046 = vmatpush1.msra.mxu0 %v327_v38  ;;  %v320_v45 = vld [vmem:[%s9081_s1 + $0x8e8] sm:$0xff] }
  0x52   :  { %1117 = vmatpush1.msra.mxu1 %v455_v39  ;;  %v448_v46 = vld [vmem:[%s9081_s1 + $0xce8] sm:$0xff]  ;;  %1047 = vmatprep.subr.mxu0 %v324_v40  ;;  %v319_v47 = vld [vmem:[%s9081_s1 + $0x8e0] sm:$0xff] }
  0x53   :  { %1118 = vmatprep.subr.mxu1 %v452_v42  ;;  %v447_v48 = vld [vmem:[%s9081_s1 + $0xce0] sm:$0xff]  ;;  %1048 = vmatpush1.msra.mxu0 %v323_v43  ;;  %v316_v49 = vld [vmem:[%s9081_s1 + $0x8c8] sm:$0xff] }
  0x54   :  { %1119 = vmatpush1.msra.mxu1 %v451_v44  ;;  %v444_v50 = vld [vmem:[%s9081_s1 + $0xcc8] sm:$0xff]  ;;  %1049 = vmatprep.subr.mxu0 %v320_v45  ;;  %v315_v51 = vld [vmem:[%s9081_s1 + $0x8c0] sm:$0xff] }
  0x55   :  { %1120 = vmatprep.subr.mxu1 %v448_v46  ;;  %v443_v53 = vld [vmem:[%s9081_s1 + $0xcc0] sm:$0xff]  ;;  %1050 = vmatpush1.msra.mxu0 %v319_v47  ;;  %v312_v54 = vld [vmem:[%s9081_s1 + $0x8a8] sm:$0xff] }
  0x56   :  { %1121 = vmatpush1.msra.mxu1 %v447_v48  ;;  %v440_v55 = vld [vmem:[%s9081_s1 + $0xca8] sm:$0xff]  ;;  %1051 = vmatprep.subr.mxu0 %v316_v49  ;;  %v311_v56 = vld [vmem:[%s9081_s1 + $0x8a0] sm:$0xff] }
  0x57   :  { %1122 = vmatprep.subr.mxu1 %v444_v50  ;;  %v439_v57 = vld [vmem:[%s9081_s1 + $0xca0] sm:$0xff]  ;;  %1052 = vmatpush1.msra.mxu0 %v315_v51  ;;  %v308_v58 = vld [vmem:[%s9081_s1 + $0x888] sm:$0xff] }
  0x58   :  { %1123 = vmatpush1.msra.mxu1 %v443_v53  ;;  %v436_v59 = vld [vmem:[%s9081_s1 + $0xc88] sm:$0xff]  ;;  %1053 = vmatprep.subr.mxu0 %v312_v54  ;;  %v307_v60 = vld [vmem:[%s9081_s1 + $0x880] sm:$0xff] }
  0x59   :  { %1124 = vmatprep.subr.mxu1 %v440_v55  ;;  %v435_v61 = vld [vmem:[%s9081_s1 + $0xc80] sm:$0xff]  ;;  %1054 = vmatpush1.msra.mxu0 %v311_v56  ;;  %v304_v63 = vld [vmem:[%s9081_s1 + $0x868] sm:$0xff] }
  0x5a   :  { %1125 = vmatpush1.msra.mxu1 %v439_v57  ;;  %v432_v0 = vld [vmem:[%s9081_s1 + $0xc68] sm:$0xff]  ;;  %1055 = vmatprep.subr.mxu0 %v308_v58  ;;  %v303_v1 = vld [vmem:[%s9081_s1 + $0x860] sm:$0xff] }
  0x5b   :  { %1126 = vmatprep.subr.mxu1 %v436_v59  ;;  %v431_v2 = vld [vmem:[%s9081_s1 + $0xc60] sm:$0xff]  ;;  %1056 = vmatpush1.msra.mxu0 %v307_v60  ;;  %v300_v4 = vld [vmem:[%s9081_s1 + $0x848] sm:$0xff] }
  0x5c   :  { %1127 = vmatpush1.msra.mxu1 %v435_v61  ;;  %v428_v5 = vld [vmem:[%s9081_s1 + $0xc48] sm:$0xff]  ;;  %1057 = vmatprep.subr.mxu0 %v304_v63  ;;  %v299_v6 = vld [vmem:[%s9081_s1 + $0x840] sm:$0xff] }
  0x5d   :  { %1128 = vmatprep.subr.mxu1 %v432_v0  ;;  %v427_v7 = vld [vmem:[%s9081_s1 + $0xc40] sm:$0xff]  ;;  %1058 = vmatpush1.msra.mxu0 %v303_v1  ;;  %v296_v9 = vld [vmem:[%s9081_s1 + $0x828] sm:$0xff] }
  0x5e   :  { %1129 = vmatpush1.msra.mxu1 %v431_v2  ;;  %v424_v10 = vld [vmem:[%s9081_s1 + $0xc28] sm:$0xff]  ;;  %1059 = vmatprep.subr.mxu0 %v300_v4  ;;  %v295_v12 = vld [vmem:[%s9081_s1 + $0x820] sm:$0xff] }
  0x5f   :  { %1130 = vmatprep.subr.mxu1 %v428_v5  ;;  %v423_v13 = vld [vmem:[%s9081_s1 + $0xc20] sm:$0xff]  ;;  %1060 = vmatpush1.msra.mxu0 %v299_v6  ;;  %v292_v14 = vld [vmem:[%s9081_s1 + $0x808] sm:$0xff] }
  0x60   :  { %1131 = vmatpush1.msra.mxu1 %v427_v7  ;;  %v420_v15 = vld [vmem:[%s9081_s1 + $0xc08] sm:$0xff]  ;;  %1061 = vmatprep.subr.mxu0 %v296_v9  ;;  %v291_v16 = vld [vmem:[%s9081_s1 + $0x800] sm:$0xff] }
  0x61   :  { %1132 = vmatprep.subr.mxu1 %v424_v10  ;;  %v419_v17 = vld [vmem:[%s9081_s1 + $0xc00] sm:$0xff]  ;;  %1062 = vmatpush1.msra.mxu0 %v295_v12  ;;  %v416_v18 = vld [vmem:[%s9081_s1 + $0xbe8] sm:$0xff] }
  0x62   :  { %1133 = vmatpush1.msra.mxu1 %v423_v13  ;;  %v544_v19 = vld [vmem:[%s9081_s1 + $0xfe8] sm:$0xff]  ;;  %1063 = vmatprep.subr.mxu0 %v292_v14  ;;  %v415_v20 = vld [vmem:[%s9081_s1 + $0xbe0] sm:$0xff] }
  0x63   :  { %1134 = vmatprep.subr.mxu1 %v420_v15  ;;  %v543_v21 = vld [vmem:[%s9081_s1 + $0xfe0] sm:$0xff]  ;;  %1064 = vmatpush1.msra.mxu0 %v291_v16  ;;  %v412_v22 = vld [vmem:[%s9081_s1 + $0xbc8] sm:$0xff] }
  0x64   :  { %1135 = vmatpush1.msra.mxu1 %v419_v17  ;;  %v540_v23 = vld [vmem:[%s9081_s1 + $0xfc8] sm:$0xff]  ;;  %1065 = vmatprep.subr.mxu0 %v416_v18  ;;  %v411_v24 = vld [vmem:[%s9081_s1 + $0xbc0] sm:$0xff] }
  0x65   :  { %1136 = vmatprep.subr.mxu1 %v544_v19  ;;  %v539_v25 = vld [vmem:[%s9081_s1 + $0xfc0] sm:$0xff]  ;;  %1066 = vmatpush2.msra.mxu0 %v415_v20  ;;  %v408_v26 = vld [vmem:[%s9081_s1 + $0xba8] sm:$0xff] }
  0x66   :  { %1137 = vmatpush2.msra.mxu1 %v543_v21  ;;  %v536_v27 = vld [vmem:[%s9081_s1 + $0xfa8] sm:$0xff]  ;;  %1067 = vmatprep.subr.mxu0 %v412_v22  ;;  %v407_v28 = vld [vmem:[%s9081_s1 + $0xba0] sm:$0xff] }
  0x67   :  { %1138 = vmatprep.subr.mxu1 %v540_v23  ;;  %v535_v29 = vld [vmem:[%s9081_s1 + $0xfa0] sm:$0xff]  ;;  %1068 = vmatpush2.msra.mxu0 %v411_v24  ;;  %v404_v30 = vld [vmem:[%s9081_s1 + $0xb88] sm:$0xff] }
  0x68   :  { %1139 = vmatpush2.msra.mxu1 %v539_v25  ;;  %v532_v31 = vld [vmem:[%s9081_s1 + $0xf88] sm:$0xff]  ;;  %1069 = vmatprep.subr.mxu0 %v408_v26  ;;  %v403_v32 = vld [vmem:[%s9081_s1 + $0xb80] sm:$0xff] }
  0x69   :  { %1140 = vmatprep.subr.mxu1 %v536_v27  ;;  %v531_v33 = vld [vmem:[%s9081_s1 + $0xf80] sm:$0xff]  ;;  %1070 = vmatpush2.msra.mxu0 %v407_v28  ;;  %v400_v34 = vld [vmem:[%s9081_s1 + $0xb68] sm:$0xff] }
  0x6a   :  { %1141 = vmatpush2.msra.mxu1 %v535_v29  ;;  %v528_v35 = vld [vmem:[%s9081_s1 + $0xf68] sm:$0xff]  ;;  %1071 = vmatprep.subr.mxu0 %v404_v30  ;;  %v399_v36 = vld [vmem:[%s9081_s1 + $0xb60] sm:$0xff] }
  0x6b   :  { %1142 = vmatprep.subr.mxu1 %v532_v31  ;;  %v527_v37 = vld [vmem:[%s9081_s1 + $0xf60] sm:$0xff]  ;;  %1072 = vmatpush2.msra.mxu0 %v403_v32  ;;  %v396_v38 = vld [vmem:[%s9081_s1 + $0xb48] sm:$0xff] }
  0x6c   :  { %1143 = vmatpush2.msra.mxu1 %v531_v33  ;;  %v524_v39 = vld [vmem:[%s9081_s1 + $0xf48] sm:$0xff]  ;;  %1073 = vmatprep.subr.mxu0 %v400_v34  ;;  %v395_v40 = vld [vmem:[%s9081_s1 + $0xb40] sm:$0xff] }
  0x6d   :  { %1144 = vmatprep.subr.mxu1 %v528_v35  ;;  %v523_v42 = vld [vmem:[%s9081_s1 + $0xf40] sm:$0xff]  ;;  %1074 = vmatpush2.msra.mxu0 %v399_v36  ;;  %v392_v43 = vld [vmem:[%s9081_s1 + $0xb28] sm:$0xff] }
  0x6e   :  { %1145 = vmatpush2.msra.mxu1 %v527_v37  ;;  %v520_v44 = vld [vmem:[%s9081_s1 + $0xf28] sm:$0xff]  ;;  %1075 = vmatprep.subr.mxu0 %v396_v38  ;;  %v391_v45 = vld [vmem:[%s9081_s1 + $0xb20] sm:$0xff] }
  0x6f   :  { %1146 = vmatprep.subr.mxu1 %v524_v39  ;;  %v519_v46 = vld [vmem:[%s9081_s1 + $0xf20] sm:$0xff]  ;;  %1076 = vmatpush2.msra.mxu0 %v395_v40  ;;  %v388_v47 = vld [vmem:[%s9081_s1 + $0xb08] sm:$0xff] }
  0x70   :  { %1147 = vmatpush2.msra.mxu1 %v523_v42  ;;  %v516_v48 = vld [vmem:[%s9081_s1 + $0xf08] sm:$0xff]  ;;  %1077 = vmatprep.subr.mxu0 %v392_v43  ;;  %v387_v49 = vld [vmem:[%s9081_s1 + $0xb00] sm:$0xff] }
  0x71   :  { %1148 = vmatprep.subr.mxu1 %v520_v44  ;;  %v515_v50 = vld [vmem:[%s9081_s1 + $0xf00] sm:$0xff]  ;;  %1078 = vmatpush2.msra.mxu0 %v391_v45  ;;  %v384_v51 = vld [vmem:[%s9081_s1 + $0xae8] sm:$0xff] }
  0x72   :  { %1149 = vmatpush2.msra.mxu1 %v519_v46  ;;  %v512_v53 = vld [vmem:[%s9081_s1 + $0xee8] sm:$0xff]  ;;  %1079 = vmatprep.subr.mxu0 %v388_v47  ;;  %v383_v54 = vld [vmem:[%s9081_s1 + $0xae0] sm:$0xff] }
  0x73   :  { %1150 = vmatprep.subr.mxu1 %v516_v48  ;;  %v511_v55 = vld [vmem:[%s9081_s1 + $0xee0] sm:$0xff]  ;;  %1080 = vmatpush2.msra.mxu0 %v387_v49  ;;  %v380_v56 = vld [vmem:[%s9081_s1 + $0xac8] sm:$0xff] }
  0x74   :  { %1151 = vmatpush2.msra.mxu1 %v515_v50  ;;  %v508_v57 = vld [vmem:[%s9081_s1 + $0xec8] sm:$0xff]  ;;  %1081 = vmatprep.subr.mxu0 %v384_v51  ;;  %v379_v58 = vld [vmem:[%s9081_s1 + $0xac0] sm:$0xff] }
  0x75   :  { %1152 = vmatprep.subr.mxu1 %v512_v53  ;;  %v507_v59 = vld [vmem:[%s9081_s1 + $0xec0] sm:$0xff]  ;;  %1082 = vmatpush2.msra.mxu0 %v383_v54  ;;  %v376_v60 = vld [vmem:[%s9081_s1 + $0xaa8] sm:$0xff] }
  0x76   :  { %1153 = vmatpush2.msra.mxu1 %v511_v55  ;;  %v504_v61 = vld [vmem:[%s9081_s1 + $0xea8] sm:$0xff]  ;;  %1083 = vmatprep.subr.mxu0 %v380_v56  ;;  %v375_v63 = vld [vmem:[%s9081_s1 + $0xaa0] sm:$0xff] }
  0x77   :  { %1154 = vmatprep.subr.mxu1 %v508_v57  ;;  %v503_v0 = vld [vmem:[%s9081_s1 + $0xea0] sm:$0xff]  ;;  %v33_v1 = vld [vmem:[%s9082_s0 + $0x8] sm:$0xff]  ;;  %1084 = vmatpush2.msra.mxu0 %v379_v58 }
  0x78   :  { %1155 = vmatpush2.msra.mxu1 %v507_v59  ;;  %v372_v2 = vld [vmem:[%s9081_s1 + $0xa88] sm:$0xff]  ;;  %1085 = vmatprep.subr.mxu0 %v376_v60  ;;  %v371_v5 = vld [vmem:[%s9081_s1 + $0xa80] sm:$0xff]  ;;  %v845_v10 = vcombine.high %v33_v1, %v33_v1  ;;  %v4793_v16 = vrot.slane %v33_v1, %v4361_v52 }
  0x79   :  { %v500_v4 = vld [vmem:[%s9081_s1 + $0xe88] sm:$0xff]  ;;  %1156 = vmatprep.subr.mxu1 %v504_v61  ;;  %v499_v6 = vld [vmem:[%s9081_s1 + $0xe80] sm:$0xff]  ;;  %1086 = vmatpush2.msra.mxu0 %v375_v63 }
  0x7a   :  { %1157 = vmatpush2.msra.mxu1 %v503_v0  ;;  %v368_v7 = vld [vmem:[%s9081_s1 + $0xa68] sm:$0xff]  ;;  %1087 = vmatprep.subr.mxu0 %v372_v2  ;;  %v367_v12 = vld [vmem:[%s9081_s1 + $0xa60] sm:$0xff]  ;;  %v4808_v21 = vrot.slane %v845_v10, %v4361_v52  ;;  %v4824_v26 = vcombine.high %v4793_v16, %v4793_v16 }
  0x7b   :  { %v496_v9 = vld [vmem:[%s9081_s1 + $0xe68] sm:$0xff]  ;;  %1158 = vmatprep.subr.mxu1 %v500_v4  ;;  %v495_v13 = vld [vmem:[%s9081_s1 + $0xe60] sm:$0xff]  ;;  %1088 = vmatpush2.msra.mxu0 %v371_v5 }
  0x7c   :  { %1159 = vmatpush2.msra.mxu1 %v499_v6  ;;  %v364_v14 = vld [vmem:[%s9081_s1 + $0xa48] sm:$0xff]  ;;  %1089 = vmatprep.subr.mxu0 %v368_v7  ;;  %v363_v17 = vld [vmem:[%s9081_s1 + $0xa40] sm:$0xff]  ;;  %v4834_v29 = vcombine.high %v4808_v21, %v4808_v21 }
  0x7d   :  { %v492_v15 = vld [vmem:[%s9081_s1 + $0xe48] sm:$0xff]  ;;  %1160 = vmatprep.subr.mxu1 %v496_v9  ;;  %v491_v18 = vld [vmem:[%s9081_s1 + $0xe40] sm:$0xff]  ;;  %1090 = vmatpush2.msra.mxu0 %v367_v12 }
  0x7e   :  { %1161 = vmatpush2.msra.mxu1 %v495_v13  ;;  %v360_v19 = vld [vmem:[%s9081_s1 + $0xa28] sm:$0xff]  ;;  %1091 = vmatprep.subr.mxu0 %v364_v14  ;;  %v359_v22 = vld [vmem:[%s9081_s1 + $0xa20] sm:$0xff] }
  0x7f   :  { %v488_v20 = vld [vmem:[%s9081_s1 + $0xe28] sm:$0xff]  ;;  %1162 = vmatprep.subr.mxu1 %v492_v15  ;;  %v487_v23 = vld [vmem:[%s9081_s1 + $0xe20] sm:$0xff]  ;;  %1092 = vmatpush2.msra.mxu0 %v363_v17 }
  0x80   :  { %1163 = vmatpush2.msra.mxu1 %v491_v18  ;;  %v356_v24 = vld [vmem:[%s9081_s1 + $0xa08] sm:$0xff]  ;;  %1093 = vmatprep.subr.mxu0 %v360_v19  ;;  %v355_v27 = vld [vmem:[%s9081_s1 + $0xa00] sm:$0xff] }
  0x81   :  { %v484_v25 = vld [vmem:[%s9081_s1 + $0xe08] sm:$0xff]  ;;  %1164 = vmatprep.subr.mxu1 %v488_v20  ;;  %1094 = vmatpush2.msra.mxu0 %v359_v22  ;;  %v483_v28 = vld [vmem:[%s9081_s1 + $0xe00] sm:$0xff] }
  0x82   :  { %1165 = vmatpush2.msra.mxu1 %v487_v23  ;;  %1095 = vmatprep.subr.mxu0 %v356_v24  ;;  %v608_v30 = vld [vmem:[%s9081_s1 + $0x11e8] sm:$0xff]  ;;  %v607_v32 = vld [vmem:[%s9081_s1 + $0x11e0] sm:$0xff] }
  0x83   :  { %1166 = vmatprep.subr.mxu1 %v484_v25  ;;  %1096 = vmatpush2.msra.mxu0 %v355_v27  ;;  %v736_v31 = vld [vmem:[%s9081_s1 + $0x15e8] sm:$0xff]  ;;  %v735_v33 = vld [vmem:[%s9081_s1 + $0x15e0] sm:$0xff] }
  0x84   :  { %1097 = vmatprep.mubr.f32.mxu0 %v4824_v26  ;;  %1167 = vmatpush2.msra.mxu1 %v483_v28  ;;  %v604_v34 = vld [vmem:[%s9081_s1 + $0x11c8] sm:$0xff]  ;;  %v603_v36 = vld [vmem:[%s9081_s1 + $0x11c0] sm:$0xff] }
  0x85   :  { %1098 = vmatmul.mubr.f32.vlgmr.msra.gmra.mxu0 %v4793_v16  ;;  %1168 = vmatprep.mubr.f32.mxu1 %v4834_v29  ;;  %v732_v35 = vld [vmem:[%s9081_s1 + $0x15c8] sm:$0xff]  ;;  %v731_v37 = vld [vmem:[%s9081_s1 + $0x15c0] sm:$0xff] }
  0x86   :  { %1175 = vmatprep.subr.mxu0 %v608_v30  ;;  %1246 = vmatprep.subr.mxu1 %v736_v31  ;;  %v600_v38 = vld [vmem:[%s9081_s1 + $0x11a8] sm:$0xff]  ;;  %v599_v40 = vld [vmem:[%s9081_s1 + $0x11a0] sm:$0xff] }
  0x87   :  { %1169 = vmatmul.mubr.f32.vlgmr.msra.gmra.mxu1 %v4808_v21  ;;  %1176 = vmatpush1.msra.mxu0 %v607_v32  ;;  %v728_v39 = vld [vmem:[%s9081_s1 + $0x15a8] sm:$0xff]  ;;  %v727_v42 = vld [vmem:[%s9081_s1 + $0x15a0] sm:$0xff] }
  0x88   :  { %1247 = vmatpush1.msra.mxu1 %v735_v33  ;;  %1177 = vmatprep.subr.mxu0 %v604_v34  ;;  %v596_v43 = vld [vmem:[%s9081_s1 + $0x1188] sm:$0xff]  ;;  %v595_v45 = vld [vmem:[%s9081_s1 + $0x1180] sm:$0xff] }
  0x89   :  { %1248 = vmatprep.subr.mxu1 %v732_v35  ;;  %1178 = vmatpush1.msra.mxu0 %v603_v36  ;;  %v724_v44 = vld [vmem:[%s9081_s1 + $0x1588] sm:$0xff]  ;;  %v723_v46 = vld [vmem:[%s9081_s1 + $0x1580] sm:$0xff] }
  0x8a   :  { %1249 = vmatpush1.msra.mxu1 %v731_v37  ;;  %1179 = vmatprep.subr.mxu0 %v600_v38  ;;  %v592_v47 = vld [vmem:[%s9081_s1 + $0x1168] sm:$0xff]  ;;  %v591_v49 = vld [vmem:[%s9081_s1 + $0x1160] sm:$0xff] }
  0x8b   :  { %1250 = vmatprep.subr.mxu1 %v728_v39  ;;  %1180 = vmatpush1.msra.mxu0 %v599_v40  ;;  %v720_v48 = vld [vmem:[%s9081_s1 + $0x1568] sm:$0xff]  ;;  %v719_v50 = vld [vmem:[%s9081_s1 + $0x1560] sm:$0xff] }
  0x8c   :  { %1251 = vmatpush1.msra.mxu1 %v727_v42  ;;  %1181 = vmatprep.subr.mxu0 %v596_v43  ;;  %v588_v51 = vld [vmem:[%s9081_s1 + $0x1148] sm:$0xff]  ;;  %v587_v54 = vld [vmem:[%s9081_s1 + $0x1140] sm:$0xff] }
  0x8d   :  { %1252 = vmatprep.subr.mxu1 %v724_v44  ;;  %1182 = vmatpush1.msra.mxu0 %v595_v45  ;;  %v716_v53 = vld [vmem:[%s9081_s1 + $0x1548] sm:$0xff]  ;;  %v715_v55 = vld [vmem:[%s9081_s1 + $0x1540] sm:$0xff] }
  0x8e   :  { %1253 = vmatpush1.msra.mxu1 %v723_v46  ;;  %1183 = vmatprep.subr.mxu0 %v592_v47  ;;  %v584_v56 = vld [vmem:[%s9081_s1 + $0x1128] sm:$0xff]  ;;  %v583_v58 = vld [vmem:[%s9081_s1 + $0x1120] sm:$0xff] }
  0x8f   :  { %1254 = vmatprep.subr.mxu1 %v720_v48  ;;  %1184 = vmatpush1.msra.mxu0 %v591_v49  ;;  %v712_v57 = vld [vmem:[%s9081_s1 + $0x1528] sm:$0xff]  ;;  %v711_v59 = vld [vmem:[%s9081_s1 + $0x1520] sm:$0xff] }
  0x90   :  { %1255 = vmatpush1.msra.mxu1 %v719_v50  ;;  %1185 = vmatprep.subr.mxu0 %v588_v51  ;;  %v580_v60 = vld [vmem:[%s9081_s1 + $0x1108] sm:$0xff]  ;;  %v579_v63 = vld [vmem:[%s9081_s1 + $0x1100] sm:$0xff] }
  0x91   :  { %1256 = vmatprep.subr.mxu1 %v716_v53  ;;  %1186 = vmatpush1.msra.mxu0 %v587_v54  ;;  %v708_v61 = vld [vmem:[%s9081_s1 + $0x1508] sm:$0xff]  ;;  %v707_v0 = vld [vmem:[%s9081_s1 + $0x1500] sm:$0xff] }
  0x92   :  { %1257 = vmatpush1.msra.mxu1 %v715_v55  ;;  %1187 = vmatprep.subr.mxu0 %v584_v56  ;;  %v576_v1 = vld [vmem:[%s9081_s1 + $0x10e8] sm:$0xff]  ;;  %v575_v4 = vld [vmem:[%s9081_s1 + $0x10e0] sm:$0xff] }
  0x93   :  { %1258 = vmatprep.subr.mxu1 %v712_v57  ;;  %1188 = vmatpush1.msra.mxu0 %v583_v58  ;;  %v704_v2 = vld [vmem:[%s9081_s1 + $0x14e8] sm:$0xff]  ;;  %v703_v5 = vld [vmem:[%s9081_s1 + $0x14e0] sm:$0xff] }
  0x94   :  { %1259 = vmatpush1.msra.mxu1 %v711_v59  ;;  %1189 = vmatprep.subr.mxu0 %v580_v60  ;;  %v572_v6 = vld [vmem:[%s9081_s1 + $0x10c8] sm:$0xff]  ;;  %v571_v9 = vld [vmem:[%s9081_s1 + $0x10c0] sm:$0xff] }
  0x95   :  { %1260 = vmatprep.subr.mxu1 %v708_v61  ;;  %1190 = vmatpush1.msra.mxu0 %v579_v63  ;;  %v700_v7 = vld [vmem:[%s9081_s1 + $0x14c8] sm:$0xff]  ;;  %v699_v10 = vld [vmem:[%s9081_s1 + $0x14c0] sm:$0xff] }
  0x96   :  { %1261 = vmatpush1.msra.mxu1 %v707_v0  ;;  %1191 = vmatprep.subr.mxu0 %v576_v1  ;;  %v568_v12 = vld [vmem:[%s9081_s1 + $0x10a8] sm:$0xff]  ;;  %v567_v14 = vld [vmem:[%s9081_s1 + $0x10a0] sm:$0xff] }
  0x97   :  { %1262 = vmatprep.subr.mxu1 %v704_v2  ;;  %1192 = vmatpush1.msra.mxu0 %v575_v4  ;;  %v696_v13 = vld [vmem:[%s9081_s1 + $0x14a8] sm:$0xff]  ;;  %v695_v15 = vld [vmem:[%s9081_s1 + $0x14a0] sm:$0xff] }
  0x98   :  { %1263 = vmatpush1.msra.mxu1 %v703_v5  ;;  %1193 = vmatprep.subr.mxu0 %v572_v6  ;;  %v564_v17 = vld [vmem:[%s9081_s1 + $0x1088] sm:$0xff]  ;;  %v563_v19 = vld [vmem:[%s9081_s1 + $0x1080] sm:$0xff] }
  0x99   :  { %1264 = vmatprep.subr.mxu1 %v700_v7  ;;  %1194 = vmatpush1.msra.mxu0 %v571_v9  ;;  %v692_v18 = vld [vmem:[%s9081_s1 + $0x1488] sm:$0xff]  ;;  %v691_v20 = vld [vmem:[%s9081_s1 + $0x1480] sm:$0xff] }
  0x9a   :  { %1265 = vmatpush1.msra.mxu1 %v699_v10  ;;  %1195 = vmatprep.subr.mxu0 %v568_v12  ;;  %v560_v22 = vld [vmem:[%s9081_s1 + $0x1068] sm:$0xff]  ;;  %v559_v24 = vld [vmem:[%s9081_s1 + $0x1060] sm:$0xff] }
  0x9b   :  { %1266 = vmatprep.subr.mxu1 %v696_v13  ;;  %1196 = vmatpush1.msra.mxu0 %v567_v14  ;;  %v688_v23 = vld [vmem:[%s9081_s1 + $0x1468] sm:$0xff]  ;;  %v687_v25 = vld [vmem:[%s9081_s1 + $0x1460] sm:$0xff] }
  0x9c   :  { %1267 = vmatpush1.msra.mxu1 %v695_v15  ;;  %1197 = vmatprep.subr.mxu0 %v564_v17  ;;  %v556_v27 = vld [vmem:[%s9081_s1 + $0x1048] sm:$0xff]  ;;  %v555_v30 = vld [vmem:[%s9081_s1 + $0x1040] sm:$0xff] }
  0x9d   :  { %1268 = vmatprep.subr.mxu1 %v692_v18  ;;  %1198 = vmatpush1.msra.mxu0 %v563_v19  ;;  %v684_v28 = vld [vmem:[%s9081_s1 + $0x1448] sm:$0xff]  ;;  %v683_v31 = vld [vmem:[%s9081_s1 + $0x1440] sm:$0xff] }
  0x9e   :  { %1269 = vmatpush1.msra.mxu1 %v691_v20  ;;  %1199 = vmatprep.subr.mxu0 %v560_v22  ;;  %v552_v32 = vld [vmem:[%s9081_s1 + $0x1028] sm:$0xff]  ;;  %v551_v34 = vld [vmem:[%s9081_s1 + $0x1020] sm:$0xff] }
  0x9f   :  { %1270 = vmatprep.subr.mxu1 %v688_v23  ;;  %1200 = vmatpush1.msra.mxu0 %v559_v24  ;;  %v680_v33 = vld [vmem:[%s9081_s1 + $0x1428] sm:$0xff]  ;;  %v679_v35 = vld [vmem:[%s9081_s1 + $0x1420] sm:$0xff] }
  0xa0   :  { %1271 = vmatpush1.msra.mxu1 %v687_v25  ;;  %1201 = vmatprep.subr.mxu0 %v556_v27  ;;  %v548_v36 = vld [vmem:[%s9081_s1 + $0x1008] sm:$0xff]  ;;  %v547_v38 = vld [vmem:[%s9081_s1 + $0x1000] sm:$0xff] }
  0xa1   :  { %1272 = vmatprep.subr.mxu1 %v684_v28  ;;  %1202 = vmatpush1.msra.mxu0 %v555_v30  ;;  %v676_v37 = vld [vmem:[%s9081_s1 + $0x1408] sm:$0xff]  ;;  %v675_v39 = vld [vmem:[%s9081_s1 + $0x1400] sm:$0xff]  ;;  %v34_v30 = vld [vmem:[%s9082_s0 + $0x10] sm:$0xff] }
  0xa2   :  { %1273 = vmatpush1.msra.mxu1 %v683_v31  ;;  %1203 = vmatprep.subr.mxu0 %v552_v32  ;;  %v672_v40 = vld [vmem:[%s9081_s1 + $0x13e8] sm:$0xff]  ;;  %v671_v43 = vld [vmem:[%s9081_s1 + $0x13e0] sm:$0xff] }
  0xa3   :  { %1274 = vmatprep.subr.mxu1 %v680_v33  ;;  %1204 = vmatpush1.msra.mxu0 %v551_v34  ;;  %v800_v42 = vld [vmem:[%s9081_s1 + $0x17e8] sm:$0xff]  ;;  %v799_v44 = vld [vmem:[%s9081_s1 + $0x17e0] sm:$0xff] }
  0xa4   :  { %1275 = vmatpush1.msra.mxu1 %v679_v35  ;;  %1205 = vmatprep.subr.mxu0 %v548_v36  ;;  %v668_v45 = vld [vmem:[%s9081_s1 + $0x13c8] sm:$0xff]  ;;  %v667_v47 = vld [vmem:[%s9081_s1 + $0x13c0] sm:$0xff] }
  0xa5   :  { %1276 = vmatprep.subr.mxu1 %v676_v37  ;;  %1206 = vmatpush1.msra.mxu0 %v547_v38  ;;  %v796_v46 = vld [vmem:[%s9081_s1 + $0x17c8] sm:$0xff]  ;;  %v795_v48 = vld [vmem:[%s9081_s1 + $0x17c0] sm:$0xff]  ;;  %v862_v37 = vcombine.high %v34_v30, %v34_v30 }
  0xa6   :  { %1277 = vmatpush1.msra.mxu1 %v675_v39  ;;  %1207 = vmatprep.subr.mxu0 %v672_v40  ;;  %v664_v49 = vld [vmem:[%s9081_s1 + $0x13a8] sm:$0xff]  ;;  %v663_v51 = vld [vmem:[%s9081_s1 + $0x13a0] sm:$0xff] }
  0xa7   :  { %1278 = vmatprep.subr.mxu1 %v800_v42  ;;  %1208 = vmatpush2.msra.mxu0 %v671_v43  ;;  %v792_v50 = vld [vmem:[%s9081_s1 + $0x17a8] sm:$0xff]  ;;  %v791_v53 = vld [vmem:[%s9081_s1 + $0x17a0] sm:$0xff]  ;;  %v5198_v43 = vrot.slane %v34_v30, %v4361_v52  ;;  %v70_v30 = vld [vmem:[%s9081_s1 + $0x118] sm:$0xff] }
  0xa8   :  { %1279 = vmatpush2.msra.mxu1 %v799_v44  ;;  %1209 = vmatprep.subr.mxu0 %v668_v45  ;;  %v660_v54 = vld [vmem:[%s9081_s1 + $0x1388] sm:$0xff]  ;;  %v659_v56 = vld [vmem:[%s9081_s1 + $0x1380] sm:$0xff] }
  0xa9   :  { %1280 = vmatprep.subr.mxu1 %v796_v46  ;;  %1210 = vmatpush2.msra.mxu0 %v667_v47  ;;  %v788_v55 = vld [vmem:[%s9081_s1 + $0x1788] sm:$0xff]  ;;  %v787_v57 = vld [vmem:[%s9081_s1 + $0x1780] sm:$0xff] }
  0xaa   :  { %1281 = vmatpush2.msra.mxu1 %v795_v48  ;;  %1211 = vmatprep.subr.mxu0 %v664_v49  ;;  %v656_v58 = vld [vmem:[%s9081_s1 + $0x1368] sm:$0xff]  ;;  %v655_v60 = vld [vmem:[%s9081_s1 + $0x1360] sm:$0xff]  ;;  %v5213_v48 = vrot.slane %v862_v37, %v4361_v52  ;;  %v193_v37 = vld [vmem:[%s9081_s1 + $0x4f0] sm:$0xff] }
  0xab   :  { %1282 = vmatprep.subr.mxu1 %v792_v50  ;;  %1212 = vmatpush2.msra.mxu0 %v663_v51  ;;  %v784_v59 = vld [vmem:[%s9081_s1 + $0x1768] sm:$0xff]  ;;  %v783_v61 = vld [vmem:[%s9081_s1 + $0x1760] sm:$0xff] }
  0xac   :  { %1283 = vmatpush2.msra.mxu1 %v791_v53  ;;  %1213 = vmatprep.subr.mxu0 %v660_v54  ;;  %v652_v63 = vld [vmem:[%s9081_s1 + $0x1348] sm:$0xff]  ;;  %v651_v1 = vld [vmem:[%s9081_s1 + $0x1340] sm:$0xff]  ;;  %v5229_v54 = vcombine.high %v5198_v43, %v5198_v43 }
  0xad   :  { %1284 = vmatprep.subr.mxu1 %v788_v55  ;;  %1214 = vmatpush2.msra.mxu0 %v659_v56  ;;  %v780_v0 = vld [vmem:[%s9081_s1 + $0x1748] sm:$0xff]  ;;  %v779_v2 = vld [vmem:[%s9081_s1 + $0x1740] sm:$0xff] }
  0xae   :  { %1285 = vmatpush2.msra.mxu1 %v787_v57  ;;  %1215 = vmatprep.subr.mxu0 %v656_v58  ;;  %v648_v4 = vld [vmem:[%s9081_s1 + $0x1328] sm:$0xff]  ;;  %v647_v6 = vld [vmem:[%s9081_s1 + $0x1320] sm:$0xff]  ;;  %v5239_v57 = vcombine.high %v5213_v48, %v5213_v48  ;;  %v98_v58 = vld [vmem:[%s9081_s1 + $0x1f8] sm:$0xff] }
  0xaf   :  { %1286 = vmatprep.subr.mxu1 %v784_v59  ;;  %1216 = vmatpush2.msra.mxu0 %v655_v60  ;;  %v776_v5 = vld [vmem:[%s9081_s1 + $0x1728] sm:$0xff]  ;;  %v775_v7 = vld [vmem:[%s9081_s1 + $0x1720] sm:$0xff]  ;;  %v226_v59 = vld [vmem:[%s9081_s1 + $0x5f8] sm:$0xff] }
  0xb0   :  { %1287 = vmatpush2.msra.mxu1 %v783_v61  ;;  %1217 = vmatprep.subr.mxu0 %v652_v63  ;;  %v644_v9 = vld [vmem:[%s9081_s1 + $0x1308] sm:$0xff]  ;;  %v643_v12 = vld [vmem:[%s9081_s1 + $0x1300] sm:$0xff]  ;;  %v97_v60 = vld [vmem:[%s9081_s1 + $0x1f0] sm:$0xff] }
  0xb1   :  { %1288 = vmatprep.subr.mxu1 %v780_v0  ;;  %1218 = vmatpush2.msra.mxu0 %v651_v1  ;;  %v772_v10 = vld [vmem:[%s9081_s1 + $0x1708] sm:$0xff]  ;;  %v771_v13 = vld [vmem:[%s9081_s1 + $0x1700] sm:$0xff]  ;;  %v225_v61 = vld [vmem:[%s9081_s1 + $0x5f0] sm:$0xff] }
  0xb2   :  { %1289 = vmatpush2.msra.mxu1 %v779_v2  ;;  %1219 = vmatprep.subr.mxu0 %v648_v4  ;;  %v640_v14 = vld [vmem:[%s9081_s1 + $0x12e8] sm:$0xff]  ;;  %v639_v17 = vld [vmem:[%s9081_s1 + $0x12e0] sm:$0xff]  ;;  %v94_v63 = vld [vmem:[%s9081_s1 + $0x1d8] sm:$0xff] }
  0xb3   :  { %1290 = vmatprep.subr.mxu1 %v776_v5  ;;  %1220 = vmatpush2.msra.mxu0 %v647_v6  ;;  %v768_v15 = vld [vmem:[%s9081_s1 + $0x16e8] sm:$0xff]  ;;  %v767_v18 = vld [vmem:[%s9081_s1 + $0x16e0] sm:$0xff]  ;;  %v222_v0 = vld [vmem:[%s9081_s1 + $0x5d8] sm:$0xff] }
  0xb4   :  { %1291 = vmatpush2.msra.mxu1 %v775_v7  ;;  %1221 = vmatprep.subr.mxu0 %v644_v9  ;;  %v636_v19 = vld [vmem:[%s9081_s1 + $0x12c8] sm:$0xff]  ;;  %v635_v22 = vld [vmem:[%s9081_s1 + $0x12c0] sm:$0xff]  ;;  %v93_v1 = vld [vmem:[%s9081_s1 + $0x1d0] sm:$0xff] }
  0xb5   :  { %1292 = vmatprep.subr.mxu1 %v772_v10  ;;  %1222 = vmatpush2.msra.mxu0 %v643_v12  ;;  %v764_v20 = vld [vmem:[%s9081_s1 + $0x16c8] sm:$0xff]  ;;  %v763_v23 = vld [vmem:[%s9081_s1 + $0x16c0] sm:$0xff]  ;;  %v221_v2 = vld [vmem:[%s9081_s1 + $0x5d0] sm:$0xff] }
  0xb6   :  { %1293 = vmatpush2.msra.mxu1 %v771_v13  ;;  %1223 = vmatprep.subr.mxu0 %v640_v14  ;;  %v632_v24 = vld [vmem:[%s9081_s1 + $0x12a8] sm:$0xff]  ;;  %v631_v27 = vld [vmem:[%s9081_s1 + $0x12a0] sm:$0xff]  ;;  %v90_v4 = vld [vmem:[%s9081_s1 + $0x1b8] sm:$0xff] }
  0xb7   :  { %1294 = vmatprep.subr.mxu1 %v768_v15  ;;  %1224 = vmatpush2.msra.mxu0 %v639_v17  ;;  %v760_v25 = vld [vmem:[%s9081_s1 + $0x16a8] sm:$0xff]  ;;  %v759_v28 = vld [vmem:[%s9081_s1 + $0x16a0] sm:$0xff]  ;;  %v218_v5 = vld [vmem:[%s9081_s1 + $0x5b8] sm:$0xff] }
  0xb8   :  { %1295 = vmatpush2.msra.mxu1 %v767_v18  ;;  %1225 = vmatprep.subr.mxu0 %v636_v19  ;;  %v628_v31 = vld [vmem:[%s9081_s1 + $0x1288] sm:$0xff]  ;;  %v627_v33 = vld [vmem:[%s9081_s1 + $0x1280] sm:$0xff]  ;;  %v89_v6 = vld [vmem:[%s9081_s1 + $0x1b0] sm:$0xff] }
  0xb9   :  { %1296 = vmatprep.subr.mxu1 %v764_v20  ;;  %1226 = vmatpush2.msra.mxu0 %v635_v22  ;;  %v756_v32 = vld [vmem:[%s9081_s1 + $0x1688] sm:$0xff]  ;;  %v755_v34 = vld [vmem:[%s9081_s1 + $0x1680] sm:$0xff]  ;;  %v217_v7 = vld [vmem:[%s9081_s1 + $0x5b0] sm:$0xff] }
  0xba   :  { %1297 = vmatpush2.msra.mxu1 %v763_v23  ;;  %1227 = vmatprep.subr.mxu0 %v632_v24  ;;  %v624_v35 = vld [vmem:[%s9081_s1 + $0x1268] sm:$0xff]  ;;  %v623_v38 = vld [vmem:[%s9081_s1 + $0x1260] sm:$0xff]  ;;  %v86_v9 = vld [vmem:[%s9081_s1 + $0x198] sm:$0xff] }
  0xbb   :  { %1298 = vmatprep.subr.mxu1 %v760_v25  ;;  %1228 = vmatpush2.msra.mxu0 %v631_v27  ;;  %v752_v36 = vld [vmem:[%s9081_s1 + $0x1668] sm:$0xff]  ;;  %v751_v39 = vld [vmem:[%s9081_s1 + $0x1660] sm:$0xff]  ;;  %v214_v10 = vld [vmem:[%s9081_s1 + $0x598] sm:$0xff] }
  0xbc   :  { %1299 = vmatpush2.msra.mxu1 %v759_v28  ;;  %1229 = vmatprep.subr.mxu0 %v628_v31  ;;  %v620_v40 = vld [vmem:[%s9081_s1 + $0x1248] sm:$0xff]  ;;  %v619_v44 = vld [vmem:[%s9081_s1 + $0x1240] sm:$0xff]  ;;  %v85_v12 = vld [vmem:[%s9081_s1 + $0x190] sm:$0xff] }
  0xbd   :  { %1300 = vmatprep.subr.mxu1 %v756_v32  ;;  %1230 = vmatpush2.msra.mxu0 %v627_v33  ;;  %v748_v42 = vld [vmem:[%s9081_s1 + $0x1648] sm:$0xff]  ;;  %v747_v45 = vld [vmem:[%s9081_s1 + $0x1640] sm:$0xff]  ;;  %v213_v13 = vld [vmem:[%s9081_s1 + $0x590] sm:$0xff] }
  0xbe   :  { %1301 = vmatpush2.msra.mxu1 %v755_v34  ;;  %1231 = vmatprep.subr.mxu0 %v624_v35  ;;  %v616_v46 = vld [vmem:[%s9081_s1 + $0x1228] sm:$0xff]  ;;  %v615_v49 = vld [vmem:[%s9081_s1 + $0x1220] sm:$0xff]  ;;  %v82_v14 = vld [vmem:[%s9081_s1 + $0x178] sm:$0xff] }
  0xbf   :  { %1302 = vmatprep.subr.mxu1 %v752_v36  ;;  %1232 = vmatpush2.msra.mxu0 %v623_v38  ;;  %v744_v47 = vld [vmem:[%s9081_s1 + $0x1628] sm:$0xff]  ;;  %v743_v50 = vld [vmem:[%s9081_s1 + $0x1620] sm:$0xff]  ;;  %v210_v15 = vld [vmem:[%s9081_s1 + $0x578] sm:$0xff] }
  0xc0   :  { %1303 = vmatpush2.msra.mxu1 %v751_v39  ;;  %1233 = vmatprep.subr.mxu0 %v620_v40  ;;  %v612_v51 = vld [vmem:[%s9081_s1 + $0x1208] sm:$0xff]  ;;  %v611_v55 = vld [vmem:[%s9081_s1 + $0x1200] sm:$0xff]  ;;  %v81_v17 = vld [vmem:[%s9081_s1 + $0x170] sm:$0xff] }
  0xc1   :  { %1304 = vmatprep.subr.mxu1 %v748_v42  ;;  %1234 = vmatpush2.msra.mxu0 %v619_v44  ;;  %v740_v53 = vld [vmem:[%s9081_s1 + $0x1608] sm:$0xff]  ;;  %v739_v56 = vld [vmem:[%s9081_s1 + $0x1600] sm:$0xff]  ;;  %v209_v18 = vld [vmem:[%s9081_s1 + $0x570] sm:$0xff] }
  0xc2   :  { %1305 = vmatpush2.msra.mxu1 %v747_v45  ;;  %1235 = vmatprep.subr.mxu0 %v616_v46  ;;  %v78_v19 = vld [vmem:[%s9081_s1 + $0x158] sm:$0xff]  ;;  %v77_v22 = vld [vmem:[%s9081_s1 + $0x150] sm:$0xff] }
  0xc3   :  { %1306 = vmatprep.subr.mxu1 %v744_v47  ;;  %1236 = vmatpush2.msra.mxu0 %v615_v49  ;;  %v206_v20 = vld [vmem:[%s9081_s1 + $0x558] sm:$0xff]  ;;  %v205_v23 = vld [vmem:[%s9081_s1 + $0x550] sm:$0xff] }
  0xc4   :  { %1307 = vmatpush2.msra.mxu1 %v743_v50  ;;  %1237 = vmatprep.subr.mxu0 %v612_v51  ;;  %v74_v24 = vld [vmem:[%s9081_s1 + $0x138] sm:$0xff]  ;;  %v73_v27 = vld [vmem:[%s9081_s1 + $0x130] sm:$0xff] }
  0xc5   :  { %1308 = vmatprep.subr.mxu1 %v740_v53  ;;  %1238 = vmatpush2.msra.mxu0 %v611_v55  ;;  %v202_v25 = vld [vmem:[%s9081_s1 + $0x538] sm:$0xff]  ;;  %v201_v28 = vld [vmem:[%s9081_s1 + $0x530] sm:$0xff] }
  0xc6   :  { %1239 = vmatprep.mubr.f32.mxu0 %v5229_v54  ;;  %1309 = vmatpush2.msra.mxu1 %v739_v56  ;;  %v198_v31 = vld [vmem:[%s9081_s1 + $0x518] sm:$0xff]  ;;  %v69_v32 = vld [vmem:[%s9081_s1 + $0x110] sm:$0xff] }
  0xc7   :  { %1240 = vmatmul.mubr.f32.vlgmr.msra.gmra.mxu0 %v5198_v43  ;;  %1310 = vmatprep.mubr.f32.mxu1 %v5239_v57  ;;  %v197_v33 = vld [vmem:[%s9081_s1 + $0x510] sm:$0xff]  ;;  %v66_v34 = vld [vmem:[%s9081_s1 + $0xf8] sm:$0xff] }
  0xc8   :  { %1317 = vmatprep.subr.mxu0 %v98_v58  ;;  %1388 = vmatprep.subr.mxu1 %v226_v59  ;;  %v194_v35 = vld [vmem:[%s9081_s1 + $0x4f8] sm:$0xff]  ;;  %v65_v36 = vld [vmem:[%s9081_s1 + $0xf0] sm:$0xff] }
  0xc9   :  { %1311 = vmatmul.mubr.f32.vlgmr.msra.gmra.mxu1 %v5213_v48  ;;  %1318 = vmatpush1.msra.mxu0 %v97_v60  ;;  %v62_v38 = vld [vmem:[%s9081_s1 + $0xd8] sm:$0xff]  ;;  %v61_v40 = vld [vmem:[%s9081_s1 + $0xd0] sm:$0xff] }
  0xca   :  { %1389 = vmatpush1.msra.mxu1 %v225_v61  ;;  %1319 = vmatprep.subr.mxu0 %v94_v63  ;;  %v190_v39 = vld [vmem:[%s9081_s1 + $0x4d8] sm:$0xff]  ;;  %v189_v42 = vld [vmem:[%s9081_s1 + $0x4d0] sm:$0xff] }
  0xcb   :  { %1390 = vmatprep.subr.mxu1 %v222_v0  ;;  %1320 = vmatpush1.msra.mxu0 %v93_v1  ;;  %v58_v44 = vld [vmem:[%s9081_s1 + $0xb8] sm:$0xff]  ;;  %v57_v46 = vld [vmem:[%s9081_s1 + $0xb0] sm:$0xff] }
  0xcc   :  { %1391 = vmatpush1.msra.mxu1 %v221_v2  ;;  %1321 = vmatprep.subr.mxu0 %v90_v4  ;;  %v186_v45 = vld [vmem:[%s9081_s1 + $0x4b8] sm:$0xff]  ;;  %v185_v47 = vld [vmem:[%s9081_s1 + $0x4b0] sm:$0xff] }
  0xcd   :  { %1392 = vmatprep.subr.mxu1 %v218_v5  ;;  %1322 = vmatpush1.msra.mxu0 %v89_v6  ;;  %v54_v49 = vld [vmem:[%s9081_s1 + $0x98] sm:$0xff]  ;;  %v53_v51 = vld [vmem:[%s9081_s1 + $0x90] sm:$0xff] }
  0xce   :  { %1393 = vmatpush1.msra.mxu1 %v217_v7  ;;  %1323 = vmatprep.subr.mxu0 %v86_v9  ;;  %v182_v50 = vld [vmem:[%s9081_s1 + $0x498] sm:$0xff]  ;;  %v181_v53 = vld [vmem:[%s9081_s1 + $0x490] sm:$0xff] }
  0xcf   :  { %1394 = vmatprep.subr.mxu1 %v214_v10  ;;  %1324 = vmatpush1.msra.mxu0 %v85_v12  ;;  %v50_v55 = vld [vmem:[%s9081_s1 + $0x78] sm:$0xff]  ;;  %v49_v58 = vld [vmem:[%s9081_s1 + $0x70] sm:$0xff] }
  0xd0   :  { %1395 = vmatpush1.msra.mxu1 %v213_v13  ;;  %1325 = vmatprep.subr.mxu0 %v82_v14  ;;  %v178_v56 = vld [vmem:[%s9081_s1 + $0x478] sm:$0xff]  ;;  %v177_v59 = vld [vmem:[%s9081_s1 + $0x470] sm:$0xff] }
  0xd1   :  { %1396 = vmatprep.subr.mxu1 %v210_v15  ;;  %1326 = vmatpush1.msra.mxu0 %v81_v17  ;;  %v46_v60 = vld [vmem:[%s9081_s1 + $0x58] sm:$0xff]  ;;  %v45_v63 = vld [vmem:[%s9081_s1 + $0x50] sm:$0xff] }
  0xd2   :  { %1397 = vmatpush1.msra.mxu1 %v209_v18  ;;  %1327 = vmatprep.subr.mxu0 %v78_v19  ;;  %v174_v61 = vld [vmem:[%s9081_s1 + $0x458] sm:$0xff]  ;;  %v173_v0 = vld [vmem:[%s9081_s1 + $0x450] sm:$0xff] }
  0xd3   :  { %1398 = vmatprep.subr.mxu1 %v206_v20  ;;  %1328 = vmatpush1.msra.mxu0 %v77_v22  ;;  %v42_v1 = vld [vmem:[%s9081_s1 + $0x38] sm:$0xff]  ;;  %v41_v4 = vld [vmem:[%s9081_s1 + $0x30] sm:$0xff] }
  0xd4   :  { %1399 = vmatpush1.msra.mxu1 %v205_v23  ;;  %1329 = vmatprep.subr.mxu0 %v74_v24  ;;  %v170_v2 = vld [vmem:[%s9081_s1 + $0x438] sm:$0xff]  ;;  %v169_v5 = vld [vmem:[%s9081_s1 + $0x430] sm:$0xff] }
  0xd5   :  { %1400 = vmatprep.subr.mxu1 %v202_v25  ;;  %1330 = vmatpush1.msra.mxu0 %v73_v27  ;;  %v38_v6 = vld [vmem:[%s9081_s1 + $0x18] sm:$0xff]  ;;  %v37_v9 = vld [vmem:[%s9081_s1 + $0x10] sm:$0xff] }
  0xd6   :  { %1401 = vmatpush1.msra.mxu1 %v201_v28  ;;  %1331 = vmatprep.subr.mxu0 %v70_v30  ;;  %v166_v7 = vld [vmem:[%s9081_s1 + $0x418] sm:$0xff]  ;;  %v165_v10 = vld [vmem:[%s9081_s1 + $0x410] sm:$0xff] }
  0xd7   :  { %1402 = vmatprep.subr.mxu1 %v198_v31  ;;  %1332 = vmatpush1.msra.mxu0 %v69_v32  ;;  %v162_v12 = vld [vmem:[%s9081_s1 + $0x3f8] sm:$0xff]  ;;  %v161_v14 = vld [vmem:[%s9081_s1 + $0x3f0] sm:$0xff] }
  0xd8   :  { %1403 = vmatpush1.msra.mxu1 %v197_v33  ;;  %1333 = vmatprep.subr.mxu0 %v66_v34  ;;  %v290_v13 = vld [vmem:[%s9081_s1 + $0x7f8] sm:$0xff]  ;;  %v289_v15 = vld [vmem:[%s9081_s1 + $0x7f0] sm:$0xff] }
  0xd9   :  { %1404 = vmatprep.subr.mxu1 %v194_v35  ;;  %1334 = vmatpush1.msra.mxu0 %v65_v36  ;;  %v158_v17 = vld [vmem:[%s9081_s1 + $0x3d8] sm:$0xff]  ;;  %v157_v19 = vld [vmem:[%s9081_s1 + $0x3d0] sm:$0xff] }
  0xda   :  { %1405 = vmatpush1.msra.mxu1 %v193_v37  ;;  %1335 = vmatprep.subr.mxu0 %v62_v38  ;;  %v286_v18 = vld [vmem:[%s9081_s1 + $0x7d8] sm:$0xff]  ;;  %v285_v20 = vld [vmem:[%s9081_s1 + $0x7d0] sm:$0xff] }
  0xdb   :  { %1406 = vmatprep.subr.mxu1 %v190_v39  ;;  %1336 = vmatpush1.msra.mxu0 %v61_v40  ;;  %v154_v22 = vld [vmem:[%s9081_s1 + $0x3b8] sm:$0xff]  ;;  %v153_v24 = vld [vmem:[%s9081_s1 + $0x3b0] sm:$0xff] }
  0xdc   :  { %1407 = vmatpush1.msra.mxu1 %v189_v42  ;;  %1337 = vmatprep.subr.mxu0 %v58_v44  ;;  %v282_v23 = vld [vmem:[%s9081_s1 + $0x7b8] sm:$0xff]  ;;  %v281_v25 = vld [vmem:[%s9081_s1 + $0x7b0] sm:$0xff] }
  0xdd   :  { %1408 = vmatprep.subr.mxu1 %v186_v45  ;;  %1338 = vmatpush1.msra.mxu0 %v57_v46  ;;  %v150_v27 = vld [vmem:[%s9081_s1 + $0x398] sm:$0xff]  ;;  %v149_v30 = vld [vmem:[%s9081_s1 + $0x390] sm:$0xff] }
  0xde   :  { %1409 = vmatpush1.msra.mxu1 %v185_v47  ;;  %1339 = vmatprep.subr.mxu0 %v54_v49  ;;  %v278_v28 = vld [vmem:[%s9081_s1 + $0x798] sm:$0xff]  ;;  %v277_v31 = vld [vmem:[%s9081_s1 + $0x790] sm:$0xff] }
  0xdf   :  { %1410 = vmatprep.subr.mxu1 %v182_v50  ;;  %1340 = vmatpush1.msra.mxu0 %v53_v51  ;;  %v146_v32 = vld [vmem:[%s9081_s1 + $0x378] sm:$0xff]  ;;  %v145_v34 = vld [vmem:[%s9081_s1 + $0x370] sm:$0xff] }
  0xe0   :  { %1411 = vmatpush1.msra.mxu1 %v181_v53  ;;  %1341 = vmatprep.subr.mxu0 %v50_v55  ;;  %v274_v33 = vld [vmem:[%s9081_s1 + $0x778] sm:$0xff]  ;;  %v273_v35 = vld [vmem:[%s9081_s1 + $0x770] sm:$0xff] }
  0xe1   :  { %1412 = vmatprep.subr.mxu1 %v178_v56  ;;  %1342 = vmatpush1.msra.mxu0 %v49_v58  ;;  %v142_v36 = vld [vmem:[%s9081_s1 + $0x358] sm:$0xff]  ;;  %v141_v38 = vld [vmem:[%s9081_s1 + $0x350] sm:$0xff] }
  0xe2   :  { %1413 = vmatpush1.msra.mxu1 %v177_v59  ;;  %1343 = vmatprep.subr.mxu0 %v46_v60  ;;  %v270_v37 = vld [vmem:[%s9081_s1 + $0x758] sm:$0xff]  ;;  %v269_v39 = vld [vmem:[%s9081_s1 + $0x750] sm:$0xff] }
  0xe3   :  { %1414 = vmatprep.subr.mxu1 %v174_v61  ;;  %1344 = vmatpush1.msra.mxu0 %v45_v63  ;;  %v138_v40 = vld [vmem:[%s9081_s1 + $0x338] sm:$0xff]  ;;  %v137_v44 = vld [vmem:[%s9081_s1 + $0x330] sm:$0xff] }
  0xe4   :  { %1415 = vmatpush1.msra.mxu1 %v173_v0  ;;  %1345 = vmatprep.subr.mxu0 %v42_v1  ;;  %v266_v42 = vld [vmem:[%s9081_s1 + $0x738] sm:$0xff]  ;;  %v265_v45 = vld [vmem:[%s9081_s1 + $0x730] sm:$0xff] }
  0xe5   :  { %1416 = vmatprep.subr.mxu1 %v170_v2  ;;  %1346 = vmatpush1.msra.mxu0 %v41_v4  ;;  %v134_v46 = vld [vmem:[%s9081_s1 + $0x318] sm:$0xff]  ;;  %v133_v49 = vld [vmem:[%s9081_s1 + $0x310] sm:$0xff] }
  0xe6   :  { %1417 = vmatpush1.msra.mxu1 %v169_v5  ;;  %1347 = vmatprep.subr.mxu0 %v38_v6  ;;  %v262_v47 = vld [vmem:[%s9081_s1 + $0x718] sm:$0xff]  ;;  %v261_v50 = vld [vmem:[%s9081_s1 + $0x710] sm:$0xff] }
  0xe7   :  { %1418 = vmatprep.subr.mxu1 %v166_v7  ;;  %1348 = vmatpush1.msra.mxu0 %v37_v9  ;;  %v130_v51 = vld [vmem:[%s9081_s1 + $0x2f8] sm:$0xff]  ;;  %v129_v55 = vld [vmem:[%s9081_s1 + $0x2f0] sm:$0xff] }
  0xe8   :  { %1419 = vmatpush1.msra.mxu1 %v165_v10  ;;  %1349 = vmatprep.subr.mxu0 %v162_v12  ;;  %v258_v53 = vld [vmem:[%s9081_s1 + $0x6f8] sm:$0xff]  ;;  %v257_v56 = vld [vmem:[%s9081_s1 + $0x6f0] sm:$0xff] }
  0xe9   :  { %1420 = vmatprep.subr.mxu1 %v290_v13  ;;  %1350 = vmatpush2.msra.mxu0 %v161_v14  ;;  %v126_v58 = vld [vmem:[%s9081_s1 + $0x2d8] sm:$0xff]  ;;  %v125_v60 = vld [vmem:[%s9081_s1 + $0x2d0] sm:$0xff] }
  0xea   :  { %1421 = vmatpush2.msra.mxu1 %v289_v15  ;;  %1351 = vmatprep.subr.mxu0 %v158_v17  ;;  %v254_v59 = vld [vmem:[%s9081_s1 + $0x6d8] sm:$0xff]  ;;  %v253_v61 = vld [vmem:[%s9081_s1 + $0x6d0] sm:$0xff] }
  0xeb   :  { %1422 = vmatprep.subr.mxu1 %v286_v18  ;;  %1352 = vmatpush2.msra.mxu0 %v157_v19  ;;  %v122_v63 = vld [vmem:[%s9081_s1 + $0x2b8] sm:$0xff]  ;;  %v121_v1 = vld [vmem:[%s9081_s1 + $0x2b0] sm:$0xff] }
  0xec   :  { %1423 = vmatpush2.msra.mxu1 %v285_v20  ;;  %1353 = vmatprep.subr.mxu0 %v154_v22  ;;  %v250_v0 = vld [vmem:[%s9081_s1 + $0x6b8] sm:$0xff]  ;;  %v249_v2 = vld [vmem:[%s9081_s1 + $0x6b0] sm:$0xff] }
  0xed   :  { %1424 = vmatprep.subr.mxu1 %v282_v23  ;;  %1354 = vmatpush2.msra.mxu0 %v153_v24  ;;  %v118_v4 = vld [vmem:[%s9081_s1 + $0x298] sm:$0xff]  ;;  %v117_v6 = vld [vmem:[%s9081_s1 + $0x290] sm:$0xff] }
  0xee   :  { %1425 = vmatpush2.msra.mxu1 %v281_v25  ;;  %1355 = vmatprep.subr.mxu0 %v150_v27  ;;  %v246_v5 = vld [vmem:[%s9081_s1 + $0x698] sm:$0xff]  ;;  %v245_v7 = vld [vmem:[%s9081_s1 + $0x690] sm:$0xff] }
  0xef   :  { %1426 = vmatprep.subr.mxu1 %v278_v28  ;;  %1356 = vmatpush2.msra.mxu0 %v149_v30  ;;  %v114_v9 = vld [vmem:[%s9081_s1 + $0x278] sm:$0xff]  ;;  %v113_v12 = vld [vmem:[%s9081_s1 + $0x270] sm:$0xff] }
  0xf0   :  { %1427 = vmatpush2.msra.mxu1 %v277_v31  ;;  %1357 = vmatprep.subr.mxu0 %v146_v32  ;;  %v242_v10 = vld [vmem:[%s9081_s1 + $0x678] sm:$0xff]  ;;  %v241_v13 = vld [vmem:[%s9081_s1 + $0x670] sm:$0xff] }
  0xf1   :  { %1428 = vmatprep.subr.mxu1 %v274_v33  ;;  %1358 = vmatpush2.msra.mxu0 %v145_v34  ;;  %v110_v14 = vld [vmem:[%s9081_s1 + $0x258] sm:$0xff]  ;;  %v109_v17 = vld [vmem:[%s9081_s1 + $0x250] sm:$0xff] }
  0xf2   :  { %1429 = vmatpush2.msra.mxu1 %v273_v35  ;;  %1359 = vmatprep.subr.mxu0 %v142_v36  ;;  %v238_v15 = vld [vmem:[%s9081_s1 + $0x658] sm:$0xff]  ;;  %v237_v18 = vld [vmem:[%s9081_s1 + $0x650] sm:$0xff] }
  0xf3   :  { %1430 = vmatprep.subr.mxu1 %v270_v37  ;;  %1360 = vmatpush2.msra.mxu0 %v141_v38  ;;  %v106_v19 = vld [vmem:[%s9081_s1 + $0x238] sm:$0xff]  ;;  %v105_v22 = vld [vmem:[%s9081_s1 + $0x230] sm:$0xff] }
  0xf4   :  { %1431 = vmatpush2.msra.mxu1 %v269_v39  ;;  %1361 = vmatprep.subr.mxu0 %v138_v40  ;;  %v234_v20 = vld [vmem:[%s9081_s1 + $0x638] sm:$0xff]  ;;  %v233_v23 = vld [vmem:[%s9081_s1 + $0x630] sm:$0xff] }
  0xf5   :  { %1432 = vmatprep.subr.mxu1 %v266_v42  ;;  %1362 = vmatpush2.msra.mxu0 %v137_v44  ;;  %v102_v24 = vld [vmem:[%s9081_s1 + $0x218] sm:$0xff]  ;;  %v101_v27 = vld [vmem:[%s9081_s1 + $0x210] sm:$0xff] }
  0xf6   :  { %1433 = vmatpush2.msra.mxu1 %v265_v45  ;;  %1363 = vmatprep.subr.mxu0 %v134_v46  ;;  %v230_v25 = vld [vmem:[%s9081_s1 + $0x618] sm:$0xff]  ;;  %v229_v28 = vld [vmem:[%s9081_s1 + $0x610] sm:$0xff] }
  0xf7   :  { %1434 = vmatprep.subr.mxu1 %v262_v47  ;;  %1364 = vmatpush2.msra.mxu0 %v133_v49  ;;  %v354_v30 = vld [vmem:[%s9081_s1 + $0x9f8] sm:$0xff]  ;;  %v353_v32 = vld [vmem:[%s9081_s1 + $0x9f0] sm:$0xff] }
  0xf8   :  { %1435 = vmatpush2.msra.mxu1 %v261_v50  ;;  %1365 = vmatprep.subr.mxu0 %v130_v51  ;;  %v482_v31 = vld [vmem:[%s9081_s1 + $0xdf8] sm:$0xff]  ;;  %v481_v33 = vld [vmem:[%s9081_s1 + $0xdf0] sm:$0xff] }
  0xf9   :  { %1436 = vmatprep.subr.mxu1 %v258_v53  ;;  %1366 = vmatpush2.msra.mxu0 %v129_v55  ;;  %v478_v34 = vld [vmem:[%s9081_s1 + $0xdd8] sm:$0xff]  ;;  %v473_v37 = vld [vmem:[%s9081_s1 + $0xdb0] sm:$0xff] }
  0xfa   :  { %1437 = vmatpush2.msra.mxu1 %v257_v56  ;;  %1367 = vmatprep.subr.mxu0 %v126_v58  ;;  %v346_v35 = vld [vmem:[%s9081_s1 + $0x9b8] sm:$0xff]  ;;  %v341_v40 = vld [vmem:[%s9081_s1 + $0x990] sm:$0xff] }
  0xfb   :  { %1438 = vmatprep.subr.mxu1 %v254_v59  ;;  %1368 = vmatpush2.msra.mxu0 %v125_v60  ;;  %v474_v36 = vld [vmem:[%s9081_s1 + $0xdb8] sm:$0xff]  ;;  %v469_v42 = vld [vmem:[%s9081_s1 + $0xd90] sm:$0xff] }
  0xfc   :  { %1439 = vmatpush2.msra.mxu1 %v253_v61  ;;  %1369 = vmatprep.subr.mxu0 %v122_v63  ;;  %v342_v38 = vld [vmem:[%s9081_s1 + $0x998] sm:$0xff]  ;;  %v337_v46 = vld [vmem:[%s9081_s1 + $0x970] sm:$0xff] }
  0xfd   :  { %1440 = vmatprep.subr.mxu1 %v250_v0  ;;  %1370 = vmatpush2.msra.mxu0 %v121_v1  ;;  %v470_v39 = vld [vmem:[%s9081_s1 + $0xd98] sm:$0xff]  ;;  %v465_v47 = vld [vmem:[%s9081_s1 + $0xd70] sm:$0xff] }
  0xfe   :  { %1441 = vmatpush2.msra.mxu1 %v249_v2  ;;  %1371 = vmatprep.subr.mxu0 %v118_v4  ;;  %v338_v44 = vld [vmem:[%s9081_s1 + $0x978] sm:$0xff]  ;;  %v333_v51 = vld [vmem:[%s9081_s1 + $0x950] sm:$0xff] }
  0xff   :  { %1442 = vmatprep.subr.mxu1 %v246_v5  ;;  %1372 = vmatpush2.msra.mxu0 %v117_v6  ;;  %v466_v45 = vld [vmem:[%s9081_s1 + $0xd78] sm:$0xff]  ;;  %v461_v53 = vld [vmem:[%s9081_s1 + $0xd50] sm:$0xff] }
 0x100   :  { %1443 = vmatpush2.msra.mxu1 %v245_v7  ;;  %1373 = vmatprep.subr.mxu0 %v114_v9  ;;  %v334_v49 = vld [vmem:[%s9081_s1 + $0x958] sm:$0xff]  ;;  %v329_v58 = vld [vmem:[%s9081_s1 + $0x930] sm:$0xff] }
 0x101   :  { %1444 = vmatprep.subr.mxu1 %v242_v10  ;;  %1374 = vmatpush2.msra.mxu0 %v113_v12  ;;  %v462_v50 = vld [vmem:[%s9081_s1 + $0xd58] sm:$0xff]  ;;  %v457_v59 = vld [vmem:[%s9081_s1 + $0xd30] sm:$0xff] }
 0x102   :  { %1445 = vmatpush2.msra.mxu1 %v241_v13  ;;  %1375 = vmatprep.subr.mxu0 %v110_v14  ;;  %v330_v55 = vld [vmem:[%s9081_s1 + $0x938] sm:$0xff]  ;;  %v325_v63 = vld [vmem:[%s9081_s1 + $0x910] sm:$0xff] }
 0x103   :  { %1446 = vmatprep.subr.mxu1 %v238_v15  ;;  %1376 = vmatpush2.msra.mxu0 %v109_v17  ;;  %v458_v56 = vld [vmem:[%s9081_s1 + $0xd38] sm:$0xff]  ;;  %v453_v0 = vld [vmem:[%s9081_s1 + $0xd10] sm:$0xff] }
 0x104   :  { %1447 = vmatpush2.msra.mxu1 %v237_v18  ;;  %1377 = vmatprep.subr.mxu0 %v106_v19  ;;  %v326_v60 = vld [vmem:[%s9081_s1 + $0x918] sm:$0xff]  ;;  %v321_v4 = vld [vmem:[%s9081_s1 + $0x8f0] sm:$0xff] }
 0x105   :  { %1448 = vmatprep.subr.mxu1 %v234_v20  ;;  %1378 = vmatpush2.msra.mxu0 %v105_v22  ;;  %v454_v61 = vld [vmem:[%s9081_s1 + $0xd18] sm:$0xff]  ;;  %v449_v5 = vld [vmem:[%s9081_s1 + $0xcf0] sm:$0xff] }
 0x106   :  { %1449 = vmatpush2.msra.mxu1 %v233_v23  ;;  %1379 = vmatprep.subr.mxu0 %v102_v24  ;;  %v322_v1 = vld [vmem:[%s9081_s1 + $0x8f8] sm:$0xff]  ;;  %v317_v9 = vld [vmem:[%s9081_s1 + $0x8d0] sm:$0xff] }
 0x107   :  { %1450 = vmatprep.subr.mxu1 %v230_v25  ;;  %1380 = vmatpush2.msra.mxu0 %v101_v27  ;;  %v450_v2 = vld [vmem:[%s9081_s1 + $0xcf8] sm:$0xff]  ;;  %v445_v10 = vld [vmem:[%s9081_s1 + $0xcd0] sm:$0xff] }
 0x108   :  { %1381 = vmatprep.mubr.f32.mxu0 %v4419_v8  ;;  %1451 = vmatpush2.msra.mxu1 %v229_v28  ;;  %v350_v8 = vld [vmem:[%s9081_s1 + $0x9d8] sm:$0xff]  ;;  %v313_v14 = vld [vmem:[%s9081_s1 + $0x8b0] sm:$0xff] }
 0x109   :  { %1382 = vmatmul.mubr.f32.vlgmr.msra.gmra.mxu0 %v4388_v62  ;;  %1452 = vmatprep.mubr.f32.mxu1 %v4429_v11  ;;  %v349_v62 = vld [vmem:[%s9081_s1 + $0x9d0] sm:$0xff]  ;;  %v318_v6 = vld [vmem:[%s9081_s1 + $0x8d8] sm:$0xff] }
 0x10a   :  { %1459 = vmatprep.subr.mxu0 %v354_v30  ;;  %1530 = vmatprep.subr.mxu1 %v482_v31  ;;  %v477_v11 = vld [vmem:[%s9081_s1 + $0xdd0] sm:$0xff]  ;;  %v446_v7 = vld [vmem:[%s9081_s1 + $0xcd8] sm:$0xff] }
 0x10b   :  { %1453 = vmatmul.mubr.f32.vlgmr.msra.gmra.mxu1 %v4403_v3  ;;  %1460 = vmatpush1.msra.mxu0 %v353_v32  ;;  %v345_v3 = vld [vmem:[%s9081_s1 + $0x9b0] sm:$0xff]  ;;  %v314_v12 = vld [vmem:[%s9081_s1 + $0x8b8] sm:$0xff] }
 0x10c   :  { %1531 = vmatpush1.msra.mxu1 %v481_v33  ;;  %1461 = vmatprep.subr.mxu0 %v350_v8  ;;  %v442_v13 = vld [vmem:[%s9081_s1 + $0xcb8] sm:$0xff]  ;;  %v441_v15 = vld [vmem:[%s9081_s1 + $0xcb0] sm:$0xff] }
 0x10d   :  { %1532 = vmatprep.subr.mxu1 %v478_v34  ;;  %1462 = vmatpush1.msra.mxu0 %v349_v62  ;;  %v310_v17 = vld [vmem:[%s9081_s1 + $0x898] sm:$0xff]  ;;  %v309_v19 = vld [vmem:[%s9081_s1 + $0x890] sm:$0xff] }
 0x10e   :  { %1533 = vmatpush1.msra.mxu1 %v477_v11  ;;  %1463 = vmatprep.subr.mxu0 %v346_v35  ;;  %v438_v18 = vld [vmem:[%s9081_s1 + $0xc98] sm:$0xff]  ;;  %v437_v20 = vld [vmem:[%s9081_s1 + $0xc90] sm:$0xff] }
 0x10f   :  { %1534 = vmatprep.subr.mxu1 %v474_v36  ;;  %1464 = vmatpush1.msra.mxu0 %v345_v3  ;;  %v306_v22 = vld [vmem:[%s9081_s1 + $0x878] sm:$0xff]  ;;  %v305_v24 = vld [vmem:[%s9081_s1 + $0x870] sm:$0xff] }
 0x110   :  { %1535 = vmatpush1.msra.mxu1 %v473_v37  ;;  %1465 = vmatprep.subr.mxu0 %v342_v38  ;;  %v434_v23 = vld [vmem:[%s9081_s1 + $0xc78] sm:$0xff]  ;;  %v433_v25 = vld [vmem:[%s9081_s1 + $0xc70] sm:$0xff] }
 0x111   :  { %1536 = vmatprep.subr.mxu1 %v470_v39  ;;  %1466 = vmatpush1.msra.mxu0 %v341_v40  ;;  %v302_v27 = vld [vmem:[%s9081_s1 + $0x858] sm:$0xff]  ;;  %v301_v30 = vld [vmem:[%s9081_s1 + $0x850] sm:$0xff] }
 0x112   :  { %1537 = vmatpush1.msra.mxu1 %v469_v42  ;;  %1467 = vmatprep.subr.mxu0 %v338_v44  ;;  %v430_v28 = vld [vmem:[%s9081_s1 + $0xc58] sm:$0xff]  ;;  %v429_v31 = vld [vmem:[%s9081_s1 + $0xc50] sm:$0xff] }
 0x113   :  { %1538 = vmatprep.subr.mxu1 %v466_v45  ;;  %1468 = vmatpush1.msra.mxu0 %v337_v46  ;;  %v298_v32 = vld [vmem:[%s9081_s1 + $0x838] sm:$0xff]  ;;  %v297_v8 = vld [vmem:[%s9081_s1 + $0x830] sm:$0xff] }
 0x114   :  { %1539 = vmatpush1.msra.mxu1 %v465_v47  ;;  %1469 = vmatprep.subr.mxu0 %v334_v49  ;;  %v426_v33 = vld [vmem:[%s9081_s1 + $0xc38] sm:$0xff]  ;;  %v425_v34 = vld [vmem:[%s9081_s1 + $0xc30] sm:$0xff] }
 0x115   :  { %1540 = vmatprep.subr.mxu1 %v462_v50  ;;  %1470 = vmatpush1.msra.mxu0 %v333_v51  ;;  %v294_v62 = vld [vmem:[%s9081_s1 + $0x818] sm:$0xff]  ;;  %v293_v35 = vld [vmem:[%s9081_s1 + $0x810] sm:$0xff] }
 0x116   :  { %1541 = vmatpush1.msra.mxu1 %v461_v53  ;;  %1471 = vmatprep.subr.mxu0 %v330_v55  ;;  %v422_v11 = vld [vmem:[%s9081_s1 + $0xc18] sm:$0xff]  ;;  %v421_v36 = vld [vmem:[%s9081_s1 + $0xc10] sm:$0xff] }
 0x117   :  { %1542 = vmatprep.subr.mxu1 %v458_v56  ;;  %1472 = vmatpush1.msra.mxu0 %v329_v58  ;;  %v418_v3 = vld [vmem:[%s9081_s1 + $0xbf8] sm:$0xff]  ;;  %v417_v38 = vld [vmem:[%s9081_s1 + $0xbf0] sm:$0xff] }
 0x118   :  { %1543 = vmatpush1.msra.mxu1 %v457_v59  ;;  %1473 = vmatprep.subr.mxu0 %v326_v60  ;;  %v546_v37 = vld [vmem:[%s9081_s1 + $0xff8] sm:$0xff]  ;;  %v545_v39 = vld [vmem:[%s9081_s1 + $0xff0] sm:$0xff] }
 0x119   :  { %1544 = vmatprep.subr.mxu1 %v454_v61  ;;  %1474 = vmatpush1.msra.mxu0 %v325_v63  ;;  %v414_v40 = vld [vmem:[%s9081_s1 + $0xbd8] sm:$0xff]  ;;  %v413_v44 = vld [vmem:[%s9081_s1 + $0xbd0] sm:$0xff] }
 0x11a   :  { %1545 = vmatpush1.msra.mxu1 %v453_v0  ;;  %1475 = vmatprep.subr.mxu0 %v322_v1  ;;  %v542_v42 = vld [vmem:[%s9081_s1 + $0xfd8] sm:$0xff]  ;;  %v541_v45 = vld [vmem:[%s9081_s1 + $0xfd0] sm:$0xff] }
 0x11b   :  { %1546 = vmatprep.subr.mxu1 %v450_v2  ;;  %1476 = vmatpush1.msra.mxu0 %v321_v4  ;;  %v410_v46 = vld [vmem:[%s9081_s1 + $0xbb8] sm:$0xff]  ;;  %v409_v49 = vld [vmem:[%s9081_s1 + $0xbb0] sm:$0xff] }
 0x11c   :  { %1547 = vmatpush1.msra.mxu1 %v449_v5  ;;  %1477 = vmatprep.subr.mxu0 %v318_v6  ;;  %v538_v47 = vld [vmem:[%s9081_s1 + $0xfb8] sm:$0xff]  ;;  %v537_v50 = vld [vmem:[%s9081_s1 + $0xfb0] sm:$0xff] }
 0x11d   :  { %1548 = vmatprep.subr.mxu1 %v446_v7  ;;  %1478 = vmatpush1.msra.mxu0 %v317_v9  ;;  %v406_v51 = vld [vmem:[%s9081_s1 + $0xb98] sm:$0xff]  ;;  %v405_v55 = vld [vmem:[%s9081_s1 + $0xb90] sm:$0xff] }
 0x11e   :  { %1549 = vmatpush1.msra.mxu1 %v445_v10  ;;  %1479 = vmatprep.subr.mxu0 %v314_v12  ;;  %v534_v53 = vld [vmem:[%s9081_s1 + $0xf98] sm:$0xff]  ;;  %v533_v56 = vld [vmem:[%s9081_s1 + $0xf90] sm:$0xff] }
 0x11f   :  { %1550 = vmatprep.subr.mxu1 %v442_v13  ;;  %1480 = vmatpush1.msra.mxu0 %v313_v14  ;;  %v402_v58 = vld [vmem:[%s9081_s1 + $0xb78] sm:$0xff]  ;;  %v401_v60 = vld [vmem:[%s9081_s1 + $0xb70] sm:$0xff] }
 0x120   :  { %1551 = vmatpush1.msra.mxu1 %v441_v15  ;;  %1481 = vmatprep.subr.mxu0 %v310_v17  ;;  %v530_v59 = vld [vmem:[%s9081_s1 + $0xf78] sm:$0xff]  ;;  %v529_v61 = vld [vmem:[%s9081_s1 + $0xf70] sm:$0xff] }
 0x121   :  { %1552 = vmatprep.subr.mxu1 %v438_v18  ;;  %1482 = vmatpush1.msra.mxu0 %v309_v19  ;;  %v398_v63 = vld [vmem:[%s9081_s1 + $0xb58] sm:$0xff]  ;;  %v397_v1 = vld [vmem:[%s9081_s1 + $0xb50] sm:$0xff] }
 0x122   :  { %1553 = vmatpush1.msra.mxu1 %v437_v20  ;;  %1483 = vmatprep.subr.mxu0 %v306_v22  ;;  %v526_v0 = vld [vmem:[%s9081_s1 + $0xf58] sm:$0xff]  ;;  %v525_v2 = vld [vmem:[%s9081_s1 + $0xf50] sm:$0xff] }
 0x123   :  { %1554 = vmatprep.subr.mxu1 %v434_v23  ;;  %1484 = vmatpush1.msra.mxu0 %v305_v24  ;;  %v394_v4 = vld [vmem:[%s9081_s1 + $0xb38] sm:$0xff]  ;;  %v393_v6 = vld [vmem:[%s9081_s1 + $0xb30] sm:$0xff] }
 0x124   :  { %1555 = vmatpush1.msra.mxu1 %v433_v25  ;;  %1485 = vmatprep.subr.mxu0 %v302_v27  ;;  %v522_v5 = vld [vmem:[%s9081_s1 + $0xf38] sm:$0xff]  ;;  %v521_v7 = vld [vmem:[%s9081_s1 + $0xf30] sm:$0xff] }
 0x125   :  { %1556 = vmatprep.subr.mxu1 %v430_v28  ;;  %1486 = vmatpush1.msra.mxu0 %v301_v30  ;;  %v390_v9 = vld [vmem:[%s9081_s1 + $0xb18] sm:$0xff]  ;;  %v389_v12 = vld [vmem:[%s9081_s1 + $0xb10] sm:$0xff] }
 0x126   :  { %1557 = vmatpush1.msra.mxu1 %v429_v31  ;;  %1487 = vmatprep.subr.mxu0 %v298_v32  ;;  %v518_v10 = vld [vmem:[%s9081_s1 + $0xf18] sm:$0xff]  ;;  %v517_v13 = vld [vmem:[%s9081_s1 + $0xf10] sm:$0xff] }
 0x127   :  { %1558 = vmatprep.subr.mxu1 %v426_v33  ;;  %1488 = vmatpush1.msra.mxu0 %v297_v8  ;;  %v386_v14 = vld [vmem:[%s9081_s1 + $0xaf8] sm:$0xff]  ;;  %v385_v17 = vld [vmem:[%s9081_s1 + $0xaf0] sm:$0xff] }
 0x128   :  { %1559 = vmatpush1.msra.mxu1 %v425_v34  ;;  %1489 = vmatprep.subr.mxu0 %v294_v62  ;;  %v514_v15 = vld [vmem:[%s9081_s1 + $0xef8] sm:$0xff]  ;;  %v513_v18 = vld [vmem:[%s9081_s1 + $0xef0] sm:$0xff] }
 0x129   :  { %1560 = vmatprep.subr.mxu1 %v422_v11  ;;  %1490 = vmatpush1.msra.mxu0 %v293_v35  ;;  %v382_v19 = vld [vmem:[%s9081_s1 + $0xad8] sm:$0xff]  ;;  %v381_v22 = vld [vmem:[%s9081_s1 + $0xad0] sm:$0xff] }
 0x12a   :  { %1561 = vmatpush1.msra.mxu1 %v421_v36  ;;  %1491 = vmatprep.subr.mxu0 %v418_v3  ;;  %v510_v20 = vld [vmem:[%s9081_s1 + $0xed8] sm:$0xff]  ;;  %v509_v23 = vld [vmem:[%s9081_s1 + $0xed0] sm:$0xff] }
 0x12b   :  { %1562 = vmatprep.subr.mxu1 %v546_v37  ;;  %1492 = vmatpush2.msra.mxu0 %v417_v38  ;;  %v378_v24 = vld [vmem:[%s9081_s1 + $0xab8] sm:$0xff]  ;;  %v377_v27 = vld [vmem:[%s9081_s1 + $0xab0] sm:$0xff] }
 0x12c   :  { %1563 = vmatpush2.msra.mxu1 %v545_v39  ;;  %1493 = vmatprep.subr.mxu0 %v414_v40  ;;  %v506_v25 = vld [vmem:[%s9081_s1 + $0xeb8] sm:$0xff]  ;;  %v505_v28 = vld [vmem:[%s9081_s1 + $0xeb0] sm:$0xff] }
 0x12d   :  { %1564 = vmatprep.subr.mxu1 %v542_v42  ;;  %1494 = vmatpush2.msra.mxu0 %v413_v44  ;;  %v374_v30 = vld [vmem:[%s9081_s1 + $0xa98] sm:$0xff]  ;;  %v373_v32 = vld [vmem:[%s9081_s1 + $0xa90] sm:$0xff] }
 0x12e   :  { %1565 = vmatpush2.msra.mxu1 %v541_v45  ;;  %1495 = vmatprep.subr.mxu0 %v410_v46  ;;  %v502_v31 = vld [vmem:[%s9081_s1 + $0xe98] sm:$0xff]  ;;  %v501_v33 = vld [vmem:[%s9081_s1 + $0xe90] sm:$0xff] }
 0x12f   :  { %1566 = vmatprep.subr.mxu1 %v538_v47  ;;  %1496 = vmatpush2.msra.mxu0 %v409_v49  ;;  %v370_v8 = vld [vmem:[%s9081_s1 + $0xa78] sm:$0xff]  ;;  %v369_v62 = vld [vmem:[%s9081_s1 + $0xa70] sm:$0xff] }
 0x130   :  { %1567 = vmatpush2.msra.mxu1 %v537_v50  ;;  %1497 = vmatprep.subr.mxu0 %v406_v51  ;;  %v498_v34 = vld [vmem:[%s9081_s1 + $0xe78] sm:$0xff]  ;;  %v497_v11 = vld [vmem:[%s9081_s1 + $0xe70] sm:$0xff] }
 0x131   :  { %1568 = vmatprep.subr.mxu1 %v534_v53  ;;  %1498 = vmatpush2.msra.mxu0 %v405_v55  ;;  %v366_v35 = vld [vmem:[%s9081_s1 + $0xa58] sm:$0xff]  ;;  %v365_v3 = vld [vmem:[%s9081_s1 + $0xa50] sm:$0xff] }
 0x132   :  { %1569 = vmatpush2.msra.mxu1 %v533_v56  ;;  %1499 = vmatprep.subr.mxu0 %v402_v58  ;;  %v494_v36 = vld [vmem:[%s9081_s1 + $0xe58] sm:$0xff]  ;;  %v493_v37 = vld [vmem:[%s9081_s1 + $0xe50] sm:$0xff] }
 0x133   :  { %1570 = vmatprep.subr.mxu1 %v530_v59  ;;  %1500 = vmatpush2.msra.mxu0 %v401_v60  ;;  %v362_v38 = vld [vmem:[%s9081_s1 + $0xa38] sm:$0xff]  ;;  %v361_v40 = vld [vmem:[%s9081_s1 + $0xa30] sm:$0xff] }
 0x134   :  { %1571 = vmatpush2.msra.mxu1 %v529_v61  ;;  %1501 = vmatprep.subr.mxu0 %v398_v63  ;;  %v490_v39 = vld [vmem:[%s9081_s1 + $0xe38] sm:$0xff]  ;;  %v489_v42 = vld [vmem:[%s9081_s1 + $0xe30] sm:$0xff] }
 0x135   :  { %1572 = vmatprep.subr.mxu1 %v526_v0  ;;  %1502 = vmatpush2.msra.mxu0 %v397_v1  ;;  %v358_v44 = vld [vmem:[%s9081_s1 + $0xa18] sm:$0xff]  ;;  %v357_v46 = vld [vmem:[%s9081_s1 + $0xa10] sm:$0xff] }
 0x136   :  { %1573 = vmatpush2.msra.mxu1 %v525_v2  ;;  %1503 = vmatprep.subr.mxu0 %v394_v4  ;;  %v486_v45 = vld [vmem:[%s9081_s1 + $0xe18] sm:$0xff]  ;;  %v485_v47 = vld [vmem:[%s9081_s1 + $0xe10] sm:$0xff] }
 0x137   :  { %1574 = vmatprep.subr.mxu1 %v522_v5  ;;  %1504 = vmatpush2.msra.mxu0 %v393_v6  ;;  %v610_v49 = vld [vmem:[%s9081_s1 + $0x11f8] sm:$0xff]  ;;  %v609_v51 = vld [vmem:[%s9081_s1 + $0x11f0] sm:$0xff] }
 0x138   :  { %1575 = vmatpush2.msra.mxu1 %v521_v7  ;;  %1505 = vmatprep.subr.mxu0 %v390_v9  ;;  %v738_v50 = vld [vmem:[%s9081_s1 + $0x15f8] sm:$0xff]  ;;  %v737_v53 = vld [vmem:[%s9081_s1 + $0x15f0] sm:$0xff] }
 0x139   :  { %1576 = vmatprep.subr.mxu1 %v518_v10  ;;  %1506 = vmatpush2.msra.mxu0 %v389_v12  ;;  %v734_v55 = vld [vmem:[%s9081_s1 + $0x15d8] sm:$0xff]  ;;  %v729_v59 = vld [vmem:[%s9081_s1 + $0x15b0] sm:$0xff] }
 0x13a   :  { %1577 = vmatpush2.msra.mxu1 %v517_v13  ;;  %1507 = vmatprep.subr.mxu0 %v386_v14  ;;  %v602_v56 = vld [vmem:[%s9081_s1 + $0x11b8] sm:$0xff]  ;;  %v597_v63 = vld [vmem:[%s9081_s1 + $0x1190] sm:$0xff] }
 0x13b   :  { %1578 = vmatprep.subr.mxu1 %v514_v15  ;;  %1508 = vmatpush2.msra.mxu0 %v385_v17  ;;  %v730_v58 = vld [vmem:[%s9081_s1 + $0x15b8] sm:$0xff]  ;;  %v725_v0 = vld [vmem:[%s9081_s1 + $0x1590] sm:$0xff] }
 0x13c   :  { %1579 = vmatpush2.msra.mxu1 %v513_v18  ;;  %1509 = vmatprep.subr.mxu0 %v382_v19  ;;  %v598_v60 = vld [vmem:[%s9081_s1 + $0x1198] sm:$0xff]  ;;  %v593_v4 = vld [vmem:[%s9081_s1 + $0x1170] sm:$0xff] }
 0x13d   :  { %1580 = vmatprep.subr.mxu1 %v510_v20  ;;  %1510 = vmatpush2.msra.mxu0 %v381_v22  ;;  %v726_v61 = vld [vmem:[%s9081_s1 + $0x1598] sm:$0xff]  ;;  %v721_v5 = vld [vmem:[%s9081_s1 + $0x1570] sm:$0xff] }
 0x13e   :  { %1581 = vmatpush2.msra.mxu1 %v509_v23  ;;  %1511 = vmatprep.subr.mxu0 %v378_v24  ;;  %v594_v1 = vld [vmem:[%s9081_s1 + $0x1178] sm:$0xff]  ;;  %v589_v9 = vld [vmem:[%s9081_s1 + $0x1150] sm:$0xff] }
 0x13f   :  { %1582 = vmatprep.subr.mxu1 %v506_v25  ;;  %1512 = vmatpush2.msra.mxu0 %v377_v27  ;;  %v722_v2 = vld [vmem:[%s9081_s1 + $0x1578] sm:$0xff]  ;;  %v717_v10 = vld [vmem:[%s9081_s1 + $0x1550] sm:$0xff] }
 0x140   :  { %1583 = vmatpush2.msra.mxu1 %v505_v28  ;;  %1513 = vmatprep.subr.mxu0 %v374_v30  ;;  %v590_v6 = vld [vmem:[%s9081_s1 + $0x1158] sm:$0xff]  ;;  %v585_v14 = vld [vmem:[%s9081_s1 + $0x1130] sm:$0xff] }
 0x141   :  { %1584 = vmatprep.subr.mxu1 %v502_v31  ;;  %1514 = vmatpush2.msra.mxu0 %v373_v32  ;;  %v718_v7 = vld [vmem:[%s9081_s1 + $0x1558] sm:$0xff]  ;;  %v713_v15 = vld [vmem:[%s9081_s1 + $0x1530] sm:$0xff] }
 0x142   :  { %1585 = vmatpush2.msra.mxu1 %v501_v33  ;;  %1515 = vmatprep.subr.mxu0 %v370_v8  ;;  %v586_v12 = vld [vmem:[%s9081_s1 + $0x1138] sm:$0xff]  ;;  %v581_v19 = vld [vmem:[%s9081_s1 + $0x1110] sm:$0xff] }
 0x143   :  { %1586 = vmatprep.subr.mxu1 %v498_v34  ;;  %1516 = vmatpush2.msra.mxu0 %v369_v62  ;;  %v714_v13 = vld [vmem:[%s9081_s1 + $0x1538] sm:$0xff]  ;;  %v709_v20 = vld [vmem:[%s9081_s1 + $0x1510] sm:$0xff] }
 0x144   :  { %1587 = vmatpush2.msra.mxu1 %v497_v11  ;;  %1517 = vmatprep.subr.mxu0 %v366_v35  ;;  %v582_v17 = vld [vmem:[%s9081_s1 + $0x1118] sm:$0xff]  ;;  %v577_v24 = vld [vmem:[%s9081_s1 + $0x10f0] sm:$0xff] }
 0x145   :  { %1588 = vmatprep.subr.mxu1 %v494_v36  ;;  %1518 = vmatpush2.msra.mxu0 %v365_v3  ;;  %v710_v18 = vld [vmem:[%s9081_s1 + $0x1518] sm:$0xff]  ;;  %v705_v25 = vld [vmem:[%s9081_s1 + $0x14f0] sm:$0xff] }
 0x146   :  { %1589 = vmatpush2.msra.mxu1 %v493_v37  ;;  %1519 = vmatprep.subr.mxu0 %v362_v38  ;;  %v578_v22 = vld [vmem:[%s9081_s1 + $0x10f8] sm:$0xff]  ;;  %v573_v30 = vld [vmem:[%s9081_s1 + $0x10d0] sm:$0xff] }
 0x147   :  { %1590 = vmatprep.subr.mxu1 %v490_v39  ;;  %1520 = vmatpush2.msra.mxu0 %v361_v40  ;;  %v706_v23 = vld [vmem:[%s9081_s1 + $0x14f8] sm:$0xff]  ;;  %v701_v31 = vld [vmem:[%s9081_s1 + $0x14d0] sm:$0xff] }
 0x148   :  { %1591 = vmatpush2.msra.mxu1 %v489_v42  ;;  %1521 = vmatprep.subr.mxu0 %v358_v44  ;;  %v574_v27 = vld [vmem:[%s9081_s1 + $0x10d8] sm:$0xff]  ;;  %v569_v8 = vld [vmem:[%s9081_s1 + $0x10b0] sm:$0xff] }
 0x149   :  { %1592 = vmatprep.subr.mxu1 %v486_v45  ;;  %1522 = vmatpush2.msra.mxu0 %v357_v46  ;;  %v702_v28 = vld [vmem:[%s9081_s1 + $0x14d8] sm:$0xff]  ;;  %v697_v34 = vld [vmem:[%s9081_s1 + $0x14b0] sm:$0xff] }
 0x14a   :  { %1523 = vmatprep.mubr.f32.mxu0 %v4824_v26  ;;  %1593 = vmatpush2.msra.mxu1 %v485_v47  ;;  %v606_v26 = vld [vmem:[%s9081_s1 + $0x11d8] sm:$0xff]  ;;  %v565_v35 = vld [vmem:[%s9081_s1 + $0x1090] sm:$0xff] }
 0x14b   :  { %1524 = vmatmul.mubr.f32.vlgmr.msra.gmra.mxu0 %v4793_v16  ;;  %1594 = vmatprep.mubr.f32.mxu1 %v4834_v29  ;;  %v605_v16 = vld [vmem:[%s9081_s1 + $0x11d0] sm:$0xff]  ;;  %v570_v32 = vld [vmem:[%s9081_s1 + $0x10b8] sm:$0xff] }
 0x14c   :  { %1601 = vmatprep.subr.mxu0 %v610_v49  ;;  %1672 = vmatprep.subr.mxu1 %v738_v50  ;;  %v733_v29 = vld [vmem:[%s9081_s1 + $0x15d0] sm:$0xff]  ;;  %v698_v33 = vld [vmem:[%s9081_s1 + $0x14b8] sm:$0xff] }
 0x14d   :  { %1595 = vmatmul.mubr.f32.vlgmr.msra.gmra.mxu1 %v4808_v21  ;;  %1602 = vmatpush1.msra.mxu0 %v609_v51  ;;  %v601_v21 = vld [vmem:[%s9081_s1 + $0x11b0] sm:$0xff]  ;;  %v566_v62 = vld [vmem:[%s9081_s1 + $0x1098] sm:$0xff] }
 0x14e   :  { %1673 = vmatpush1.msra.mxu1 %v737_v53  ;;  %1603 = vmatprep.subr.mxu0 %v606_v26  ;;  %v694_v11 = vld [vmem:[%s9081_s1 + $0x1498] sm:$0xff]  ;;  %v693_v36 = vld [vmem:[%s9081_s1 + $0x1490] sm:$0xff] }
 0x14f   :  { %1674 = vmatprep.subr.mxu1 %v734_v55  ;;  %1604 = vmatpush1.msra.mxu0 %v605_v16  ;;  %v562_v3 = vld [vmem:[%s9081_s1 + $0x1078] sm:$0xff]  ;;  %v561_v38 = vld [vmem:[%s9081_s1 + $0x1070] sm:$0xff] }
 0x150   :  { %1675 = vmatpush1.msra.mxu1 %v733_v29  ;;  %1605 = vmatprep.subr.mxu0 %v602_v56  ;;  %v690_v37 = vld [vmem:[%s9081_s1 + $0x1478] sm:$0xff]  ;;  %v689_v39 = vld [vmem:[%s9081_s1 + $0x1470] sm:$0xff] }
 0x151   :  { %1676 = vmatprep.subr.mxu1 %v730_v58  ;;  %1606 = vmatpush1.msra.mxu0 %v601_v21  ;;  %v558_v40 = vld [vmem:[%s9081_s1 + $0x1058] sm:$0xff]  ;;  %v557_v44 = vld [vmem:[%s9081_s1 + $0x1050] sm:$0xff] }
 0x152   :  { %1677 = vmatpush1.msra.mxu1 %v729_v59  ;;  %1607 = vmatprep.subr.mxu0 %v598_v60  ;;  %v686_v42 = vld [vmem:[%s9081_s1 + $0x1458] sm:$0xff]  ;;  %v685_v45 = vld [vmem:[%s9081_s1 + $0x1450] sm:$0xff] }
 0x153   :  { %1678 = vmatprep.subr.mxu1 %v726_v61  ;;  %1608 = vmatpush1.msra.mxu0 %v597_v63  ;;  %v554_v46 = vld [vmem:[%s9081_s1 + $0x1038] sm:$0xff]  ;;  %v553_v49 = vld [vmem:[%s9081_s1 + $0x1030] sm:$0xff] }
 0x154   :  { %1679 = vmatpush1.msra.mxu1 %v725_v0  ;;  %1609 = vmatprep.subr.mxu0 %v594_v1  ;;  %v682_v47 = vld [vmem:[%s9081_s1 + $0x1438] sm:$0xff]  ;;  %v681_v50 = vld [vmem:[%s9081_s1 + $0x1430] sm:$0xff] }
 0x155   :  { %1680 = vmatprep.subr.mxu1 %v722_v2  ;;  %1610 = vmatpush1.msra.mxu0 %v593_v4  ;;  %v550_v51 = vld [vmem:[%s9081_s1 + $0x1018] sm:$0xff]  ;;  %v549_v26 = vld [vmem:[%s9081_s1 + $0x1010] sm:$0xff] }
 0x156   :  { %1681 = vmatpush1.msra.mxu1 %v721_v5  ;;  %1611 = vmatprep.subr.mxu0 %v590_v6  ;;  %v678_v53 = vld [vmem:[%s9081_s1 + $0x1418] sm:$0xff]  ;;  %v677_v55 = vld [vmem:[%s9081_s1 + $0x1410] sm:$0xff] }
 0x157   :  { %1682 = vmatprep.subr.mxu1 %v718_v7  ;;  %1612 = vmatpush1.msra.mxu0 %v589_v9  ;;  %v674_v16 = vld [vmem:[%s9081_s1 + $0x13f8] sm:$0xff]  ;;  %v673_v56 = vld [vmem:[%s9081_s1 + $0x13f0] sm:$0xff] }
 0x158   :  { %1683 = vmatpush1.msra.mxu1 %v717_v10  ;;  %1613 = vmatprep.subr.mxu0 %v586_v12  ;;  %v802_v29 = vld [vmem:[%s9081_s1 + $0x17f8] sm:$0xff]  ;;  %v801_v58 = vld [vmem:[%s9081_s1 + $0x17f0] sm:$0xff] }
 0x159   :  { %1684 = vmatprep.subr.mxu1 %v714_v13  ;;  %1614 = vmatpush1.msra.mxu0 %v585_v14  ;;  %v670_v21 = vld [vmem:[%s9081_s1 + $0x13d8] sm:$0xff]  ;;  %v669_v60 = vld [vmem:[%s9081_s1 + $0x13d0] sm:$0xff] }
 0x15a   :  { %1685 = vmatpush1.msra.mxu1 %v713_v15  ;;  %1615 = vmatprep.subr.mxu0 %v582_v17  ;;  %v798_v59 = vld [vmem:[%s9081_s1 + $0x17d8] sm:$0xff]  ;;  %v797_v61 = vld [vmem:[%s9081_s1 + $0x17d0] sm:$0xff] }
 0x15b   :  { %1686 = vmatprep.subr.mxu1 %v710_v18  ;;  %1616 = vmatpush1.msra.mxu0 %v581_v19  ;;  %v666_v63 = vld [vmem:[%s9081_s1 + $0x13b8] sm:$0xff]  ;;  %v665_v1 = vld [vmem:[%s9081_s1 + $0x13b0] sm:$0xff]  ;;  %v6286_v19 = vsub.s32 1, %v4331_v41 }
 0x15c   :  { %1687 = vmatpush1.msra.mxu1 %v709_v20  ;;  %1617 = vmatprep.subr.mxu0 %v578_v22  ;;  %v794_v0 = vld [vmem:[%s9081_s1 + $0x17b8] sm:$0xff]  ;;  %v793_v2 = vld [vmem:[%s9081_s1 + $0x17b0] sm:$0xff] }
 0x15d   :  { %1688 = vmatprep.subr.mxu1 %v706_v23  ;;  %1618 = vmatpush1.msra.mxu0 %v577_v24  ;;  %v662_v4 = vld [vmem:[%s9081_s1 + $0x1398] sm:$0xff]  ;;  %v661_v6 = vld [vmem:[%s9081_s1 + $0x1390] sm:$0xff]  ;;  %v6297_v23 = vld [vmem:[%s9083_s2] sm:$0xf]  ;;  %v6299_v24 = vpop.f32.mrf.mxu0 }
 0x15e   :  { %1689 = vmatpush1.msra.mxu1 %v705_v25  ;;  %1619 = vmatprep.subr.mxu0 %v574_v27  ;;  %v790_v5 = vld [vmem:[%s9081_s1 + $0x1798] sm:$0xff]  ;;  %v789_v7 = vld [vmem:[%s9081_s1 + $0x1790] sm:$0xff] }
 0x15f   :  { %1690 = vmatprep.subr.mxu1 %v702_v28  ;;  %1620 = vmatpush1.msra.mxu0 %v573_v30  ;;  %v658_v9 = vld [vmem:[%s9081_s1 + $0x1378] sm:$0xff]  ;;  %v657_v12 = vld [vmem:[%s9081_s1 + $0x1370] sm:$0xff] }
 0x160   :  { %1691 = vmatpush1.msra.mxu1 %v701_v31  ;;  %1621 = vmatprep.subr.mxu0 %v570_v32  ;;  %v786_v10 = vld [vmem:[%s9081_s1 + $0x1778] sm:$0xff]  ;;  %v785_v13 = vld [vmem:[%s9081_s1 + $0x1770] sm:$0xff] }
 0x161   :  { %1692 = vmatprep.subr.mxu1 %v698_v33  ;;  %1622 = vmatpush1.msra.mxu0 %v569_v8  ;;  %v654_v14 = vld [vmem:[%s9081_s1 + $0x1358] sm:$0xff]  ;;  %v653_v17 = vld [vmem:[%s9081_s1 + $0x1350] sm:$0xff]  ;;  %v812_v33 = vrot.slane %v6297_v23, %v6286_v19 }
 0x162   :  { %1693 = vmatpush1.msra.mxu1 %v697_v34  ;;  %1623 = vmatprep.subr.mxu0 %v566_v62  ;;  %v782_v15 = vld [vmem:[%s9081_s1 + $0x1758] sm:$0xff]  ;;  %v781_v18 = vld [vmem:[%s9081_s1 + $0x1750] sm:$0xff]  ;;  %v6327_v62 = vpop.f32.mrf.mxu1 }
 0x163   :  { %1694 = vmatprep.subr.mxu1 %v694_v11  ;;  %1624 = vmatpush1.msra.mxu0 %v565_v35  ;;  %v650_v20 = vld [vmem:[%s9081_s1 + $0x1338] sm:$0xff]  ;;  %v649_v25 = vld [vmem:[%s9081_s1 + $0x1330] sm:$0xff]  ;;  %v959_v11 = vpop.f32.mrf.mxu0 }
 0x164   :  { %1695 = vmatpush1.msra.mxu1 %v693_v36  ;;  %1625 = vmatprep.subr.mxu0 %v562_v3  ;;  %v778_v22 = vld [vmem:[%s9081_s1 + $0x1738] sm:$0xff]  ;;  %v777_v27 = vld [vmem:[%s9081_s1 + $0x1730] sm:$0xff] }
 0x165   :  { %1696 = vmatprep.subr.mxu1 %v690_v37  ;;  %1626 = vmatpush1.msra.mxu0 %v561_v38  ;;  %v646_v28 = vld [vmem:[%s9081_s1 + $0x1318] sm:$0xff]  ;;  %v645_v31 = vld [vmem:[%s9081_s1 + $0x1310] sm:$0xff]  ;;  %v6341_v38 = vpop.f32.mrf.mxu0 }
 0x166   :  { %1697 = vmatpush1.msra.mxu1 %v689_v39  ;;  %1627 = vmatprep.subr.mxu0 %v558_v40  ;;  %v774_v30 = vld [vmem:[%s9081_s1 + $0x1718] sm:$0xff]  ;;  %v773_v32 = vld [vmem:[%s9081_s1 + $0x1710] sm:$0xff] }
 0x167   :  { %1698 = vmatprep.subr.mxu1 %v686_v42  ;;  %1628 = vmatpush1.msra.mxu0 %v557_v44  ;;  %v642_v8 = vld [vmem:[%s9081_s1 + $0x12f8] sm:$0xff]  ;;  %v641_v35 = vld [vmem:[%s9081_s1 + $0x12f0] sm:$0xff]  ;;  %v960_v42 = vadd.f32 %v959_v11, %v812_v33  ;;  %v1755_v11 = vld [vmem:[%s9084_s3 + $0x60] sm:$0xff] }
 0x168   :  { %1699 = vmatpush1.msra.mxu1 %v685_v45  ;;  %1629 = vmatprep.subr.mxu0 %v554_v46  ;;  %v770_v34 = vld [vmem:[%s9081_s1 + $0x16f8] sm:$0xff]  ;;  %v769_v36 = vld [vmem:[%s9081_s1 + $0x16f0] sm:$0xff]  ;;  %v1030_v46 = vpop.f32.mrf.mxu1 }
 0x169   :  { %1700 = vmatprep.subr.mxu1 %v682_v47  ;;  %1630 = vmatpush1.msra.mxu0 %v553_v49  ;;  %v638_v3 = vld [vmem:[%s9081_s1 + $0x12d8] sm:$0xff]  ;;  %v637_v39 = vld [vmem:[%s9081_s1 + $0x12d0] sm:$0xff] }
 0x16a   :  { %1701 = vmatpush1.msra.mxu1 %v681_v50  ;;  %1631 = vmatprep.subr.mxu0 %v550_v51  ;;  %v766_v37 = vld [vmem:[%s9081_s1 + $0x16d8] sm:$0xff]  ;;  %v765_v40 = vld [vmem:[%s9081_s1 + $0x16d0] sm:$0xff] }
 0x16b   :  { %1702 = vmatprep.subr.mxu1 %v678_v53  ;;  %1632 = vmatpush1.msra.mxu0 %v549_v26  ;;  %v634_v44 = vld [vmem:[%s9081_s1 + $0x12b8] sm:$0xff]  ;;  %v633_v47 = vld [vmem:[%s9081_s1 + $0x12b0] sm:$0xff]  ;;  %v6367_v53 = vpop.f32.mrf.mxu1  ;;  %v1101_v26 = vpop.f32.mrf.mxu0 }
 0x16c   :  { %1703 = vmatpush1.msra.mxu1 %v677_v55  ;;  %1633 = vmatprep.subr.mxu0 %v674_v16  ;;  %v762_v45 = vld [vmem:[%s9081_s1 + $0x16b8] sm:$0xff]  ;;  %v761_v49 = vld [vmem:[%s9081_s1 + $0x16b0] sm:$0xff] }
 0x16d   :  { %1704 = vmatprep.subr.mxu1 %v802_v29  ;;  %1634 = vmatpush2.msra.mxu0 %v673_v56  ;;  %v630_v50 = vld [vmem:[%s9081_s1 + $0x1298] sm:$0xff]  ;;  %v629_v55 = vld [vmem:[%s9081_s1 + $0x1290] sm:$0xff]  ;;  %v1031_v29 = vadd.f32 %v1030_v46, %v960_v42 }
 0x16e   :  { %1705 = vmatpush2.msra.mxu1 %v801_v58  ;;  %1635 = vmatprep.subr.mxu0 %v670_v21  ;;  %v758_v51 = vld [vmem:[%s9081_s1 + $0x1698] sm:$0xff]  ;;  %v757_v16 = vld [vmem:[%s9081_s1 + $0x1690] sm:$0xff] }
 0x16f   :  { %1706 = vmatprep.subr.mxu1 %v798_v59  ;;  %1636 = vmatpush2.msra.mxu0 %v669_v60  ;;  %v626_v56 = vld [vmem:[%s9081_s1 + $0x1278] sm:$0xff]  ;;  %v625_v21 = vld [vmem:[%s9081_s1 + $0x1270] sm:$0xff]  ;;  %v1102_v60 = vadd.f32 %v1101_v26, %v1031_v29  ;;  %v1751_v29 = vld [vmem:[%s9084_s3 + $0x40] sm:$0xff] }
 0x170   :  { %1707 = vmatpush2.msra.mxu1 %v797_v61  ;;  %1637 = vmatprep.subr.mxu0 %v666_v63  ;;  %v754_v58 = vld [vmem:[%s9081_s1 + $0x1678] sm:$0xff]  ;;  %v753_v59 = vld [vmem:[%s9081_s1 + $0x1670] sm:$0xff] }
 0x171   :  { %1708 = vmatprep.subr.mxu1 %v794_v0  ;;  %1638 = vmatpush2.msra.mxu0 %v665_v1  ;;  %v622_v61 = vld [vmem:[%s9081_s1 + $0x1258] sm:$0xff]  ;;  %v1172_v0 = vpop.f32.mrf.mxu1  ;;  %v621_v1 = vld [vmem:[%s9081_s1 + $0x1250] sm:$0xff] }
 0x172   :  { %1709 = vmatpush2.msra.mxu1 %v793_v2  ;;  %1639 = vmatprep.subr.mxu0 %v662_v4  ;;  %v750_v63 = vld [vmem:[%s9081_s1 + $0x1658] sm:$0xff]  ;;  %v749_v2 = vld [vmem:[%s9081_s1 + $0x1650] sm:$0xff] }
 0x173   :  { %1710 = vmatprep.subr.mxu1 %v790_v5  ;;  %1640 = vmatpush2.msra.mxu0 %v661_v6  ;;  %v618_v4 = vld [vmem:[%s9081_s1 + $0x1238] sm:$0xff]  ;;  %v617_v6 = vld [vmem:[%s9081_s1 + $0x1230] sm:$0xff] }
 0x174   :  { %1711 = vmatpush2.msra.mxu1 %v789_v7  ;;  %1641 = vmatprep.subr.mxu0 %v658_v9  ;;  %v746_v5 = vld [vmem:[%s9081_s1 + $0x1638] sm:$0xff]  ;;  %v745_v7 = vld [vmem:[%s9081_s1 + $0x1630] sm:$0xff] }
 0x175   :  { %1712 = vmatprep.subr.mxu1 %v786_v10  ;;  %1642 = vmatpush2.msra.mxu0 %v657_v12  ;;  %v1173_v10 = vadd.f32 %v1172_v0, %v1102_v60  ;;  %v614_v12 = vld [vmem:[%s9081_s1 + $0x1218] sm:$0xff]  ;;  %v1789_v33 = vld [vmem:[%s9084_s3 + $0x170] sm:$0xff] }
 0x176   :  { %1713 = vmatpush2.msra.mxu1 %v785_v13  ;;  %1643 = vmatprep.subr.mxu0 %v654_v14  ;;  %v742_v13 = vld [vmem:[%s9081_s1 + $0x1618] sm:$0xff]  ;;  %v613_v14 = vld [vmem:[%s9081_s1 + $0x1210] sm:$0xff] }
 0x177   :  { %1714 = vmatprep.subr.mxu1 %v782_v15  ;;  %1644 = vmatpush2.msra.mxu0 %v653_v17  ;;  %v1769_v42 = vld [vmem:[%s9084_s3 + $0xd0] sm:$0xff]  ;;  %v1786_v46 = vld [vmem:[%s9084_s3 + $0x158] sm:$0xff] }
 0x178   :  { %1715 = vmatpush2.msra.mxu1 %v781_v18  ;;  %1645 = vmatprep.subr.mxu0 %v650_v20  ;;  %v741_v18 = vld [vmem:[%s9081_s1 + $0x1610] sm:$0xff]  ;;  %v1750_v60 = vld [vmem:[%s9084_s3 + $0x38] sm:$0xff] }
 0x179   :  { %1716 = vmatprep.subr.mxu1 %v778_v22  ;;  %1646 = vmatpush2.msra.mxu0 %v649_v25  ;;  %v1774_v25 = vld [vmem:[%s9084_s3 + $0xf8] sm:$0xff]  ;;  %v1785_v26 = vld [vmem:[%s9084_s3 + $0x150] sm:$0xff] }
 0x17a   :  { %1717 = vmatpush2.msra.mxu1 %v777_v27  ;;  %1647 = vmatprep.subr.mxu0 %v646_v28  ;;  %v1758_v28 = vld [vmem:[%s9084_s3 + $0x78] sm:$0xff]  ;;  %v1749_v0 = vld [vmem:[%s9084_s3 + $0x30] sm:$0xff] }
 0x17b   :  { %1718 = vmatprep.subr.mxu1 %v774_v30  ;;  %1648 = vmatpush2.msra.mxu0 %v645_v31  ;;  %v1757_v30 = vld [vmem:[%s9084_s3 + $0x70] sm:$0xff] }
 0x17c   :  { %1719 = vmatpush2.msra.mxu1 %v773_v32  ;;  %1649 = vmatprep.subr.mxu0 %v642_v8  ;;  %v1805_v31 = vld [vmem:[%s9084_s3 + $0x1f0] sm:$0xff]  ;;  %v1756_v32 = vld [vmem:[%s9084_s3 + $0x68] sm:$0xff]  ;;  %v1771_v8 = vld [vmem:[%s9084_s3 + $0xe0] sm:$0xff] }
 0x17d   :  { %1720 = vmatprep.subr.mxu1 %v770_v34  ;;  %1650 = vmatpush2.msra.mxu0 %v641_v35  ;;  %v1804_v34 = vld [vmem:[%s9084_s3 + $0x1e8] sm:$0xff] }
 0x17e   :  { %1721 = vmatpush2.msra.mxu1 %v769_v36  ;;  %1651 = vmatprep.subr.mxu0 %v638_v3  ;;  %v1788_v35 = vld [vmem:[%s9084_s3 + $0x168] sm:$0xff]  ;;  %v1770_v36 = vld [vmem:[%s9084_s3 + $0xd8] sm:$0xff]  ;;  %v1803_v3 = vld [vmem:[%s9084_s3 + $0x1e0] sm:$0xff] }
 0x17f   :  { %1722 = vmatprep.subr.mxu1 %v766_v37  ;;  %1652 = vmatpush2.msra.mxu0 %v637_v39  ;;  %v6480_v37 = vsub.s32 0, %v4331_v41  ;;  %v1754_v39 = vld [vmem:[%s9084_s3 + $0x58] sm:$0xff] }
 0x180   :  { %1723 = vmatpush2.msra.mxu1 %v765_v40  ;;  %1653 = vmatprep.subr.mxu0 %v634_v44  ;;  %v1787_v40 = vld [vmem:[%s9084_s3 + $0x160] sm:$0xff]  ;;  %v1802_v44 = vld [vmem:[%s9084_s3 + $0x1d8] sm:$0xff] }
 0x181   :  { %1724 = vmatprep.subr.mxu1 %v762_v45  ;;  %1654 = vmatpush2.msra.mxu0 %v633_v47  ;;  %v1753_v45 = vld [vmem:[%s9084_s3 + $0x50] sm:$0xff]  ;;  %v1768_v47 = vld [vmem:[%s9084_s3 + $0xc8] sm:$0xff] }
 0x182   :  { %1725 = vmatpush2.msra.mxu1 %v761_v49  ;;  %1655 = vmatprep.subr.mxu0 %v630_v50  ;;  %v1801_v49 = vld [vmem:[%s9084_s3 + $0x1d0] sm:$0xff]  ;;  %v808_v50 = vrot.slane %v6297_v23, %v6480_v37 }
 0x183   :  { %1726 = vmatprep.subr.mxu1 %v758_v51  ;;  %1656 = vmatpush2.msra.mxu0 %v629_v55  ;;  %v1752_v51 = vld [vmem:[%s9084_s3 + $0x48] sm:$0xff]  ;;  %v1767_v55 = vld [vmem:[%s9084_s3 + $0xc0] sm:$0xff] }
 0x184   :  { %1727 = vmatpush2.msra.mxu1 %v757_v16  ;;  %1657 = vmatprep.subr.mxu0 %v626_v56  ;;  %v1800_v16 = vld [vmem:[%s9084_s3 + $0x1c8] sm:$0xff] }
 0x185   :  { %1728 = vmatprep.subr.mxu1 %v754_v58  ;;  %1658 = vmatpush2.msra.mxu0 %v625_v21  ;;  %v1784_v56 = vld [vmem:[%s9084_s3 + $0x148] sm:$0xff]  ;;  %v1766_v58 = vld [vmem:[%s9084_s3 + $0xb8] sm:$0xff]  ;;  %v1799_v21 = vld [vmem:[%s9084_s3 + $0x1c0] sm:$0xff] }
 0x186   :  { %1729 = vmatpush2.msra.mxu1 %v753_v59  ;;  %1659 = vmatprep.subr.mxu0 %v622_v61  ;;  %v958_v59 = vadd.f32 %v6299_v24, %v808_v50  ;;  %v1783_v61 = vld [vmem:[%s9084_s3 + $0x140] sm:$0xff]  ;;  %v1798_v24 = vld [vmem:[%s9084_s3 + $0x1b8] sm:$0xff] }
 0x187   :  { %1730 = vmatprep.subr.mxu1 %v750_v63  ;;  %v6411_v9 = vpop.f32.mrf.mxu0  ;;  %1660 = vmatpush2.msra.mxu0 %v621_v1  ;;  %v1765_v63 = vld [vmem:[%s9084_s3 + $0xb0] sm:$0xff]  ;;  %v1782_v1 = vld [vmem:[%s9084_s3 + $0x138] sm:$0xff] }
 0x188   :  { %1731 = vmatpush2.msra.mxu1 %v749_v2  ;;  %1661 = vmatprep.subr.mxu0 %v618_v4  ;;  %v1764_v2 = vld [vmem:[%s9084_s3 + $0xa8] sm:$0xff]  ;;  %v1797_v4 = vld [vmem:[%s9084_s3 + $0x1b0] sm:$0xff] }
 0x189   :  { %1732 = vmatprep.subr.mxu1 %v746_v5  ;;  %v6422_v15 = vpop.f32.mrf.mxu1  ;;  %v1243_v17 = vpop.f32.mrf.mxu0  ;;  %1662 = vmatpush2.msra.mxu0 %v617_v6  ;;  %v1029_v5 = vadd.f32 %v6327_v62, %v958_v59  ;;  %v1748_v6 = vld [vmem:[%s9084_s3 + $0x28] sm:$0xff] }
 0x18a   :  { %1733 = vmatpush2.msra.mxu1 %v745_v7  ;;  %v1244_v20 = vadd.f32 %v1243_v17, %v1173_v10  ;;  %1663 = vmatprep.subr.mxu0 %v614_v12  ;;  %v1781_v7 = vld [vmem:[%s9084_s3 + $0x130] sm:$0xff]  ;;  %v1763_v10 = vld [vmem:[%s9084_s3 + $0xa0] sm:$0xff]  ;;  %v1796_v62 = vld [vmem:[%s9084_s3 + $0x1a8] sm:$0xff] }
 0x18b   :  { %1734 = vmatprep.subr.mxu1 %v742_v13  ;;  %v1314_v22 = vpop.f32.mrf.mxu1  ;;  %1664 = vmatpush2.msra.mxu0 %v613_v14  ;;  %v1100_v12 = vadd.f32 %v6341_v38, %v1029_v5  ;;  %v1747_v13 = vld [vmem:[%s9084_s3 + $0x20] sm:$0xff]  ;;  %v1780_v14 = vld [vmem:[%s9084_s3 + $0x128] sm:$0xff]  ;;  %v1762_v17 = vld [vmem:[%s9084_s3 + $0x98] sm:$0xff] }
 0x18c   :  { %1665 = vmatprep.mubr.f32.mxu0 %v5229_v54  ;;  %v1315_v27 = vadd.f32 %v1314_v22, %v1244_v20  ;;  %1735 = vmatpush2.msra.mxu1 %v741_v18  ;;  %v1773_v54 = vld [vmem:[%s9084_s3 + $0xf0] sm:$0xff]  ;;  %v1795_v38 = vld [vmem:[%s9084_s3 + $0x1a0] sm:$0xff]  ;;  %v1746_v18 = vld [vmem:[%s9084_s3 + $0x18] sm:$0xff] }
 0x18d   :  { %1736 = vmatprep.mubr.f32.mxu1 %v5239_v57  ;;  %1666 = vmatmul.mubr.f32.vlgmr.msra.gmra.mxu0 %v5198_v43  ;;  %v1772_v57 = vld [vmem:[%s9084_s3 + $0xe8] sm:$0xff]  ;;  %v1806_v43 = vld [vmem:[%s9084_s3 + $0x1f8] sm:$0xff]  ;;  %v1779_v20 = vld [vmem:[%s9084_s3 + $0x120] sm:$0xff] }
 0x18e   :  { %1737 = vmatmul.mubr.f32.vlgmr.msra.gmra.mxu1 %v5213_v48  ;;  %3898 = vmatprep.subr.mxu0 %v1774_v25  ;;  %v1790_v48 = vld [vmem:[%s9084_s3 + $0x178] sm:$0xff]  ;;  %v1761_v22 = vld [vmem:[%s9084_s3 + $0x90] sm:$0xff]  ;;  %v1171_v25 = vadd.f32 %v6367_v53, %v1100_v12  ;;  %v1759_v53 = vld [vmem:[%s9084_s3 + $0x80] sm:$0xff] }
 0x18f   :  { %1878 = vmatprep.mubr.f32.mxu0 %v1315_v27  ;;  %3899 = vmatpush3.msra.mxu0 %v1758_v28  ;;  %v1745_v27 = vld [vmem:[%s9084_s3 + $0x10] sm:$0xff]  ;;  %v1760_v28 = vld [vmem:[%s9084_s3 + $0x88] sm:$0xff] }
 0x190   :  { %3900 = vmatprep.subr.mxu0 %v1773_v54  ;;  %3933 = vmatprep.subr.mxu1 %v1806_v43  ;;  %v1242_v54 = vadd.f32 %v6411_v9, %v1171_v25  ;;  %v1794_v9 = vld [vmem:[%s9084_s3 + $0x198] sm:$0xff]  ;;  %v1968_v5 = vld [vmem:[%s9085_s5 + $0x70] sm:$0xff]  ;;  %v1959_v12 = vld [vmem:[%s9085_s5 + $0x28] sm:$0xff]  ;;  %v3974_v25 = vmov 0.0  }
 0x191   :  { %3901 = vmatpush3.msra.mxu0 %v1757_v30  ;;  %3934 = vmatpush3.msra.mxu1 %v1790_v48  ;;  %v1744_v30 = vld [vmem:[%s9084_s3 + $0x8] sm:$0xff]  ;;  %v1778_v48 = vld [vmem:[%s9084_s3 + $0x118] sm:$0xff] }
 0x192   :  { %3902 = vmatprep.subr.mxu0 %v1772_v57  ;;  %3935 = vmatprep.subr.mxu1 %v1805_v31  ;;  %v1743_v57 = vld [vmem:[%s9084_s3] sm:$0xff]  ;;  %v1313_v43 = vadd.f32 %v6422_v15, %v1242_v54  ;;  %v1793_v31 = vld [vmem:[%s9084_s3 + $0x190] sm:$0xff] }
 0x193   :  { %3903 = vmatpush3.msra.mxu0 %v1756_v32  ;;  %3936 = vmatpush3.msra.mxu1 %v1789_v33  ;;  %v1777_v15 = vld [vmem:[%s9084_s3 + $0x110] sm:$0xff]  ;;  %v1792_v32 = vld [vmem:[%s9084_s3 + $0x188] sm:$0xff] }
 0x194   :  { %3904 = vmatprep.subr.mxu0 %v1771_v8  ;;  %3937 = vmatprep.subr.mxu1 %v1804_v34  ;;  %v1776_v33 = vld [vmem:[%s9084_s3 + $0x108] sm:$0xff]  ;;  %v1791_v8 = vld [vmem:[%s9084_s3 + $0x180] sm:$0xff] }
 0x195   :  { %3905 = vmatpush3.msra.mxu0 %v1755_v11  ;;  %3938 = vmatpush3.msra.mxu1 %v1788_v35  ;;  %v1775_v34 = vld [vmem:[%s9084_s3 + $0x100] sm:$0xff]  ;;  %v1967_v11 = vld [vmem:[%s9085_s5 + $0x68] sm:$0xff]  ;;  %v1969_v35 = vld [vmem:[%s9085_s5 + $0x78] sm:$0xff] }
 0x196   :  { %3906 = vmatprep.subr.mxu0 %v1770_v36  ;;  %3939 = vmatprep.subr.mxu1 %v1803_v3  ;;  %v6641_v36 = vsub.s32 2, %v4331_v41  ;;  %v6644_v3 = vsub.s32 3, %v4331_v41 }
 0x197   :  { %3907 = vmatpush3.msra.mxu0 %v1754_v39  ;;  %3940 = vmatpush3.msra.mxu1 %v1787_v40 }
 0x198   :  { %3908 = vmatprep.subr.mxu0 %v1769_v42  ;;  %3941 = vmatprep.subr.mxu1 %v1802_v44  ;;  %v816_v40 = vrot.slane %v6297_v23, %v6641_v36  ;;  %v820_v42 = vrot.slane %v6297_v23, %v6644_v3 }
 0x199   :  { %3909 = vmatpush3.msra.mxu0 %v1753_v45  ;;  %3942 = vmatpush3.msra.mxu1 %v1786_v46 }
 0x19a   :  { %3910 = vmatprep.subr.mxu0 %v1768_v47  ;;  %3943 = vmatprep.subr.mxu1 %v1801_v49 }
 0x19b   :  { %3911 = vmatpush3.msra.mxu0 %v1752_v51  ;;  %3944 = vmatpush3.msra.mxu1 %v1785_v26 }
 0x19c   :  { %3912 = vmatprep.subr.mxu0 %v1767_v55  ;;  %3945 = vmatprep.subr.mxu1 %v1800_v16 }
 0x19d   :  { %3913 = vmatpush3.msra.mxu0 %v1751_v29  ;;  %3946 = vmatpush3.msra.mxu1 %v1784_v56 }
 0x19e   :  { %3914 = vmatprep.subr.mxu0 %v1766_v58  ;;  %3947 = vmatprep.subr.mxu1 %v1799_v21 }
 0x19f   :  { %3915 = vmatpush3.msra.mxu0 %v1750_v60  ;;  %3948 = vmatpush3.msra.mxu1 %v1783_v61 }
 0x1a0   :  { %3916 = vmatprep.subr.mxu0 %v1765_v63  ;;  %3949 = vmatprep.subr.mxu1 %v1798_v24 }
 0x1a1   :  { %3917 = vmatpush3.msra.mxu0 %v1749_v0  ;;  %3950 = vmatpush3.msra.mxu1 %v1782_v1 }
 0x1a2   :  { %3918 = vmatprep.subr.mxu0 %v1764_v2  ;;  %3951 = vmatprep.subr.mxu1 %v1797_v4  ;;  %v1966_v4 = vld [vmem:[%s9085_s5 + $0x60] sm:$0xff] }
 0x1a3   :  { %3919 = vmatpush3.msra.mxu0 %v1748_v6  ;;  %3952 = vmatpush3.msra.mxu1 %v1781_v7  ;;  %v1963_v6 = vld [vmem:[%s9085_s5 + $0x48] sm:$0xff]  ;;  %v1965_v7 = vld [vmem:[%s9085_s5 + $0x58] sm:$0xff] }
 0x1a4   :  { %3920 = vmatprep.subr.mxu0 %v1763_v10  ;;  %3953 = vmatprep.subr.mxu1 %v1796_v62  ;;  %v1962_v10 = vld [vmem:[%s9085_s5 + $0x40] sm:$0xff]  ;;  %v1964_v62 = vld [vmem:[%s9085_s5 + $0x50] sm:$0xff] }
 0x1a5   :  { %3921 = vmatpush3.msra.mxu0 %v1747_v13  ;;  %3954 = vmatpush3.msra.mxu1 %v1780_v14  ;;  %v1961_v13 = vld [vmem:[%s9085_s5 + $0x38] sm:$0xff]  ;;  %v1958_v14 = vld [vmem:[%s9085_s5 + $0x20] sm:$0xff] }
 0x1a6   :  { %3922 = vmatprep.subr.mxu0 %v1762_v17  ;;  %3955 = vmatprep.subr.mxu1 %v1795_v38  ;;  %v1960_v17 = vld [vmem:[%s9085_s5 + $0x30] sm:$0xff]  ;;  %v1955_v38 = vld [vmem:[%s9085_s5 + $0x8] sm:$0xff] }
 0x1a7   :  { %3923 = vmatpush3.msra.mxu0 %v1746_v18  ;;  %3956 = vmatpush3.msra.mxu1 %v1779_v20  ;;  %v1957_v18 = vld [vmem:[%s9085_s5 + $0x18] sm:$0xff]  ;;  %v1954_v20 = vld [vmem:[%s9085_s5] sm:$0xff] }
 0x1a8   :  { %3924 = vmatprep.subr.mxu0 %v1761_v22  ;;  %3957 = vmatprep.subr.mxu1 %v1794_v9  ;;  %v1956_v22 = vld [vmem:[%s9085_s5 + $0x10] sm:$0xff] }
 0x1a9   :  { %3925 = vmatpush3.msra.mxu0 %v1745_v27  ;;  %3958 = vmatpush3.msra.mxu1 %v1778_v48  ;;  %v2319_v27 = vld [vmem:[%s9086_s7 + $0x5a8] sm:$0xff] }
 0x1aa   :  { %3926 = vmatprep.subr.mxu0 %v1760_v28  ;;  %3959 = vmatprep.subr.mxu1 %v1793_v31  ;;  %v2703_v28 = vld [vmem:[%s9086_s7 + $0x11a8] sm:$0xff] }
 0x1ab   :  { %3927 = vmatpush3.msra.mxu0 %v1744_v30  ;;  %3960 = vmatpush3.msra.mxu1 %v1777_v15 }
 0x1ac   :  { %3928 = vmatprep.subr.mxu0 %v1759_v53  ;;  %3961 = vmatprep.subr.mxu1 %v1792_v32  ;;  %v2318_v32 = vld [vmem:[%s9086_s7 + $0x5a0] sm:$0xff] }
 0x1ad   :  { %3929 = vmatpush3.msra.mxu0 %v1743_v57  ;;  %3962 = vmatpush3.msra.mxu1 %v1776_v33  ;;  %v3895_v57 = vld [vmem:[%s9087_s4] ss:$0 sm:$0xff] }
 0x1ae   :  { %1879 = vmatmul.mubr.f32.vlgmr.msra.gmra.mxu0 %v1313_v43  ;;  %3963 = vmatprep.subr.mxu1 %v1791_v8  ;;  %v2702_v33 = vld [vmem:[%s9086_s7 + $0x11a0] sm:$0xff]  ;;  %v2307_v8 = vld [vmem:[%s9086_s7 + $0x548] sm:$0xff] }
 0x1af   :  { %3964 = vmatpush3.msra.mxu1 %v1775_v34  ;;  %2020 = vmatprep.subr.mxu0 %v1967_v11  ;;  %v2691_v34 = vld [vmem:[%s9086_s7 + $0x1148] sm:$0xff]  ;;  %v2306_v11 = vld [vmem:[%s9086_s7 + $0x540] sm:$0xff] }
 0x1b0   :  { %2091 = vmatprep.subr.mxu1 %v1969_v35  ;;  %2021 = vmatpush1.msra.mxu0 %v1966_v4  ;;  %v2690_v35 = vld [vmem:[%s9086_s7 + $0x1140] sm:$0xff] }
 0x1b1   :  { %2022 = vmatprep.subr.mxu0 %v1963_v6  ;;  %2060 = vmatprep.mubr.f32.mxu0 %v3974_v25  ;;  %v2222_v4 = vld [vmem:[%s9086_s7 + $0x2a0] sm:$0xff]  ;;  %v2211_v6 = vld [vmem:[%s9086_s7 + $0x248] sm:$0xff] }
 0x1b2   :  { %2023 = vmatpush1.msra.mxu0 %v1962_v10  ;;  %v2210_v10 = vld [vmem:[%s9086_s7 + $0x240] sm:$0xff] }
 0x1b3   :  { %2024 = vmatprep.subr.mxu0 %v1959_v12  ;;  %v2199_v12 = vld [vmem:[%s9086_s7 + $0x1e8] sm:$0xff] }
 0x1b4   :  { %2025 = vmatpush1.msra.mxu0 %v1958_v14  ;;  %v2198_v14 = vld [vmem:[%s9086_s7 + $0x1e0] sm:$0xff] }
 0x1b5   :  { %2026 = vmatprep.subr.mxu0 %v1955_v38  ;;  %v2187_v38 = vld [vmem:[%s9086_s7 + $0x188] sm:$0xff] }
 0x1b6   :  { %2027 = vmatpush1.msra.mxu0 %v1954_v20  ;;  %v2186_v20 = vld [vmem:[%s9086_s7 + $0x180] sm:$0xff] }
 0x1b7   :  { %2970 = vmatprep.subr.mxu0 %v2319_v27  ;;  %v2559_v27 = vld [vmem:[%s9086_s7 + $0xd28] sm:$0xff] }
 0x1c9   :  { %v1383_v39 = vpop.f32.mrf.mxu0 }
 0x1ca   :  { %v1384_v46 = vadd.f32 %v1383_v39, %v816_v40  ;;  %v2295_v39 = vld [vmem:[%s9086_s7 + $0x4e8] sm:$0xff] }
 0x1cb   :  { %v1454_v44 = vpop.f32.mrf.mxu1  ;;  %v1385_v45 = vpop.f32.mrf.mxu0  ;;  %v2679_v40 = vld [vmem:[%s9086_s7 + $0x10e8] sm:$0xff] }
 0x1cc   :  { %v1386_v49 = vadd.f32 %v1385_v45, %v820_v42  ;;  %v1455_v51 = vadd.f32 %v1454_v44, %v1384_v46  ;;  %v2294_v42 = vld [vmem:[%s9086_s7 + $0x4e0] sm:$0xff]  ;;  %v2283_v45 = vld [vmem:[%s9086_s7 + $0x488] sm:$0xff] }
 0x1cd   :  { %v1456_v50 = vpop.f32.mrf.mxu1  ;;  %v2678_v44 = vld [vmem:[%s9086_s7 + $0x10e0] sm:$0xff]  ;;  %v2667_v46 = vld [vmem:[%s9086_s7 + $0x1088] sm:$0xff] }
 0x1ce   :  { %v1457_v16 = vadd.f32 %v1456_v50, %v1386_v49  ;;  %v2666_v49 = vld [vmem:[%s9086_s7 + $0x1080] sm:$0xff]  ;;  %v2271_v50 = vld [vmem:[%s9086_s7 + $0x428] sm:$0xff] }
 0x20b   :  { %v1525_v47 = vpop.f32.mrf.mxu0 }
 0x20c   :  { %v1526_v29 = vadd.f32 %v1525_v47, %v1455_v51  ;;  %v2282_v47 = vld [vmem:[%s9086_s7 + $0x480] sm:$0xff]  ;;  %v2655_v51 = vld [vmem:[%s9086_s7 + $0x1028] sm:$0xff] }
 0x20d   :  { %v1596_v26 = vpop.f32.mrf.mxu1  ;;  %v1527_v55 = vpop.f32.mrf.mxu0 }
 0x20e   :  { %v1528_v56 = vadd.f32 %v1527_v55, %v1457_v16  ;;  %v1597_v21 = vadd.f32 %v1596_v26, %v1526_v29  ;;  %v2270_v26 = vld [vmem:[%s9086_s7 + $0x420] sm:$0xff]  ;;  %v2259_v16 = vld [vmem:[%s9086_s7 + $0x3c8] sm:$0xff] }
 0x20f   :  { %v1598_v58 = vpop.f32.mrf.mxu1  ;;  %v2654_v55 = vld [vmem:[%s9086_s7 + $0x1020] sm:$0xff]  ;;  %v2643_v29 = vld [vmem:[%s9086_s7 + $0xfc8] sm:$0xff] }
 0x210   :  { %v1599_v61 = vadd.f32 %v1598_v58, %v1528_v56  ;;  %v2258_v56 = vld [vmem:[%s9086_s7 + $0x3c0] sm:$0xff] }
 0x211   :  { %v2642_v58 = vld [vmem:[%s9086_s7 + $0xfc0] sm:$0xff] }
 0x24d   :  { %v1667_v59 = vpop.f32.mrf.mxu0 }
 0x24e   :  { %v1738_v60 = vpop.f32.mrf.mxu1  ;;  %v1668_v63 = vadd.f32 %v1667_v59, %v1597_v21  ;;  %v2247_v21 = vld [vmem:[%s9086_s7 + $0x368] sm:$0xff] }
 0x24f   :  { %v1669_v24 = vpop.f32.mrf.mxu0  ;;  %v2631_v59 = vld [vmem:[%s9086_s7 + $0xf68] sm:$0xff] }
 0x250   :  { %v1670_v23 = vadd.f32 %v1669_v24, %v1599_v61  ;;  %v1740_v0 = vpop.f32.mrf.mxu1  ;;  %v1739_v2 = vadd.f32 %v1738_v60, %v1668_v63  ;;  %v2246_v60 = vld [vmem:[%s9086_s7 + $0x360] sm:$0xff]  ;;  %v2235_v63 = vld [vmem:[%s9086_s7 + $0x308] sm:$0xff] }
 0x251   :  { %v2630_v61 = vld [vmem:[%s9086_s7 + $0xf60] sm:$0xff]  ;;  %v2619_v24 = vld [vmem:[%s9086_s7 + $0xf08] sm:$0xff] }
 0x252   :  { %v1741_v1 = vadd.f32 %v1740_v0, %v1670_v23  ;;  %v2234_v23 = vld [vmem:[%s9086_s7 + $0x300] sm:$0xff] }
 0x253   :  { %v2618_v0 = vld [vmem:[%s9086_s7 + $0xf00] sm:$0xff] }
 0x254   :  { %1948 = vmatprep.mubr.f32.mxu1 %v1741_v1  ;;  %v2223_v1 = vld [vmem:[%s9086_s7 + $0x2a8] sm:$0xff] }
 0x255   :  { %1949 = vmatmul.mubr.f32.vlgmr.msra.gmra.mxu1 %v1739_v2  ;;  %v2607_v2 = vld [vmem:[%s9086_s7 + $0xea8] sm:$0xff] }
 0x256   :  { %2092 = vmatpush1.msra.mxu1 %v1968_v5  ;;  %2131 = vmatprep.mubr.f32.mxu1 %v3974_v25  ;;  %v2606_v5 = vld [vmem:[%s9086_s7 + $0xea0] sm:$0xff]  ;;  %v2175_v25 = vld [vmem:[%s9086_s7 + $0x128] sm:$0xff] }
 0x257   :  { %2093 = vmatprep.subr.mxu1 %v1965_v7  ;;  %v2595_v7 = vld [vmem:[%s9086_s7 + $0xe48] sm:$0xff] }
 0x258   :  { %2094 = vmatpush1.msra.mxu1 %v1964_v62  ;;  %v2594_v62 = vld [vmem:[%s9086_s7 + $0xe40] sm:$0xff] }
 0x259   :  { %2095 = vmatprep.subr.mxu1 %v1961_v13  ;;  %v2583_v13 = vld [vmem:[%s9086_s7 + $0xde8] sm:$0xff] }
 0x25a   :  { %2096 = vmatpush1.msra.mxu1 %v1960_v17  ;;  %v2582_v17 = vld [vmem:[%s9086_s7 + $0xde0] sm:$0xff] }
 0x25b   :  { %2097 = vmatprep.subr.mxu1 %v1957_v18  ;;  %v2571_v18 = vld [vmem:[%s9086_s7 + $0xd88] sm:$0xff] }
 0x25c   :  { %2098 = vmatpush1.msra.mxu1 %v1956_v22  ;;  %v2570_v22 = vld [vmem:[%s9086_s7 + $0xd80] sm:$0xff] }
 0x25d   :  { %3041 = vmatprep.subr.mxu1 %v2703_v28  ;;  %v2174_v28 = vld [vmem:[%s9086_s7 + $0x120] sm:$0xff] }
 0x26e   :  { %v3930_v54 = vpop.f32.mrf.mxu0 }
 0x270   :  { %v3931_v30 = vpop.f32.mrf.mxu0 }
 0x271   :  { %v3932_v53 = vadd.f32 %v3931_v30, %v3930_v54  ;;  %v2558_v54 = vld [vmem:[%s9086_s7 + $0xd20] sm:$0xff]  ;;  %v2163_v30 = vld [vmem:[%s9086_s7 + $0xc8] sm:$0xff] }
 0x273   :  { %v1881_v48 = vadd.f32 %v3932_v53, %v3895_v57  ;;  %v2547_v53 = vld [vmem:[%s9086_s7 + $0xcc8] sm:$0xff]  ;;  %v2162_v57 = vld [vmem:[%s9086_s7 + $0xc0] sm:$0xff] }
 0x315   :  { %v3965_v43 = vpop.f32.mrf.mxu1 }
 0x317   :  { %v3966_v9 = vpop.f32.mrf.mxu1 }
 0x318   :  { %v3967_v31 = vadd.f32 %v3966_v9, %v3965_v43  ;;  %v2546_v43 = vld [vmem:[%s9086_s7 + $0xcc0] sm:$0xff]  ;;  %v2151_v9 = vld [vmem:[%s9086_s7 + $0x68] sm:$0xff] }
 0x31a   :  { %v1951_v15 = vadd.f32 %v3967_v31, %v1881_v48  ;;  %v2535_v48 = vld [vmem:[%s9086_s7 + $0xc68] sm:$0xff]  ;;  %v2150_v31 = vld [vmem:[%s9086_s7 + $0x60] sm:$0xff] }
 0x31c   :  { %3896 = vmatmul.mubr.msk.f32.vlgmr.msra.gmra.mxu0 %vm1992_vm0, %v1951_v15  ;;  %3897 = vmatmul.mubr.msk.f32.vlgmr.msra.gmra.mxu1 %vm1992_vm0, %v1951_v15  ;;  %v2534_v15 = vld [vmem:[%s9086_s7 + $0xc60] sm:$0xff] }
 0x31d   :  { %2971 = vmatpush1.msra.mxu0 %v2318_v32  ;;  %3042 = vmatpush1.msra.mxu1 %v2702_v33  ;;  %v2139_v32 = vld [vmem:[%s9086_s7 + $0x8] sm:$0xff] }
 0x31e   :  { %2972 = vmatprep.subr.mxu0 %v2307_v8  ;;  %3043 = vmatprep.subr.mxu1 %v2691_v34  ;;  %v2523_v33 = vld [vmem:[%s9086_s7 + $0xc08] sm:$0xff]  ;;  %v2138_v8 = vld [vmem:[%s9086_s7] sm:$0xff] }
 0x31f   :  { %2973 = vmatpush1.msra.mxu0 %v2306_v11  ;;  %3044 = vmatpush1.msra.mxu1 %v2690_v35  ;;  %v2522_v34 = vld [vmem:[%s9086_s7 + $0xc00] sm:$0xff]  ;;  %v2511_v11 = vld [vmem:[%s9086_s7 + $0xba8] sm:$0xff] }
 0x320   :  { %2974 = vmatprep.subr.mxu0 %v2295_v39  ;;  %3045 = vmatprep.subr.mxu1 %v2679_v40  ;;  %v2895_v35 = vld [vmem:[%s9086_s7 + $0x17a8] sm:$0xff]  ;;  %v2510_v39 = vld [vmem:[%s9086_s7 + $0xba0] sm:$0xff] }
 0x321   :  { %2975 = vmatpush1.msra.mxu0 %v2294_v42  ;;  %3046 = vmatpush1.msra.mxu1 %v2678_v44  ;;  %v2894_v40 = vld [vmem:[%s9086_s7 + $0x17a0] sm:$0xff]  ;;  %v2499_v42 = vld [vmem:[%s9086_s7 + $0xb48] sm:$0xff] }
 0x322   :  { %2976 = vmatprep.subr.mxu0 %v2283_v45  ;;  %3047 = vmatprep.subr.mxu1 %v2667_v46  ;;  %v2883_v44 = vld [vmem:[%s9086_s7 + $0x1748] sm:$0xff]  ;;  %v2498_v45 = vld [vmem:[%s9086_s7 + $0xb40] sm:$0xff] }
 0x323   :  { %2977 = vmatpush1.msra.mxu0 %v2282_v47  ;;  %3048 = vmatpush1.msra.mxu1 %v2666_v49  ;;  %v2882_v46 = vld [vmem:[%s9086_s7 + $0x1740] sm:$0xff]  ;;  %v2487_v47 = vld [vmem:[%s9086_s7 + $0xae8] sm:$0xff] }
 0x324   :  { %2978 = vmatprep.subr.mxu0 %v2271_v50  ;;  %3049 = vmatprep.subr.mxu1 %v2655_v51  ;;  %v2871_v49 = vld [vmem:[%s9086_s7 + $0x16e8] sm:$0xff]  ;;  %v2486_v50 = vld [vmem:[%s9086_s7 + $0xae0] sm:$0xff] }
 0x325   :  { %2979 = vmatpush1.msra.mxu0 %v2270_v26  ;;  %3050 = vmatpush1.msra.mxu1 %v2654_v55  ;;  %v2870_v51 = vld [vmem:[%s9086_s7 + $0x16e0] sm:$0xff]  ;;  %v2475_v26 = vld [vmem:[%s9086_s7 + $0xa88] sm:$0xff] }
 0x326   :  { %2980 = vmatprep.subr.mxu0 %v2259_v16  ;;  %3051 = vmatprep.subr.mxu1 %v2643_v29  ;;  %v2859_v55 = vld [vmem:[%s9086_s7 + $0x1688] sm:$0xff]  ;;  %v2474_v16 = vld [vmem:[%s9086_s7 + $0xa80] sm:$0xff] }
 0x327   :  { %2981 = vmatpush1.msra.mxu0 %v2258_v56  ;;  %3052 = vmatpush1.msra.mxu1 %v2642_v58  ;;  %v2858_v29 = vld [vmem:[%s9086_s7 + $0x1680] sm:$0xff]  ;;  %v2463_v56 = vld [vmem:[%s9086_s7 + $0xa28] sm:$0xff] }
 0x328   :  { %2982 = vmatprep.subr.mxu0 %v2247_v21  ;;  %3053 = vmatprep.subr.mxu1 %v2631_v59  ;;  %v2847_v58 = vld [vmem:[%s9086_s7 + $0x1628] sm:$0xff]  ;;  %v2462_v21 = vld [vmem:[%s9086_s7 + $0xa20] sm:$0xff] }
 0x329   :  { %2983 = vmatpush1.msra.mxu0 %v2246_v60  ;;  %3054 = vmatpush1.msra.mxu1 %v2630_v61  ;;  %v2846_v59 = vld [vmem:[%s9086_s7 + $0x1620] sm:$0xff]  ;;  %v2451_v60 = vld [vmem:[%s9086_s7 + $0x9c8] sm:$0xff] }
 0x32a   :  { %2984 = vmatprep.subr.mxu0 %v2235_v63  ;;  %3055 = vmatprep.subr.mxu1 %v2619_v24  ;;  %v2835_v61 = vld [vmem:[%s9086_s7 + $0x15c8] sm:$0xff]  ;;  %v2450_v63 = vld [vmem:[%s9086_s7 + $0x9c0] sm:$0xff] }
 0x32b   :  { %2985 = vmatpush1.msra.mxu0 %v2234_v23  ;;  %3056 = vmatpush1.msra.mxu1 %v2618_v0  ;;  %v2834_v24 = vld [vmem:[%s9086_s7 + $0x15c0] sm:$0xff]  ;;  %v2439_v23 = vld [vmem:[%s9086_s7 + $0x968] sm:$0xff] }
 0x32c   :  { %2986 = vmatprep.subr.mxu0 %v2223_v1  ;;  %3057 = vmatprep.subr.mxu1 %v2607_v2  ;;  %v2823_v0 = vld [vmem:[%s9086_s7 + $0x1568] sm:$0xff]  ;;  %v2438_v1 = vld [vmem:[%s9086_s7 + $0x960] sm:$0xff] }
 0x32d   :  { %2987 = vmatpush1.msra.mxu0 %v2222_v4  ;;  %3058 = vmatpush1.msra.mxu1 %v2606_v5  ;;  %v2822_v2 = vld [vmem:[%s9086_s7 + $0x1560] sm:$0xff]  ;;  %v2427_v4 = vld [vmem:[%s9086_s7 + $0x908] sm:$0xff] }
 0x32e   :  { %2988 = vmatprep.subr.mxu0 %v2211_v6  ;;  %3059 = vmatprep.subr.mxu1 %v2595_v7  ;;  %v2811_v5 = vld [vmem:[%s9086_s7 + $0x1508] sm:$0xff]  ;;  %v2426_v6 = vld [vmem:[%s9086_s7 + $0x900] sm:$0xff] }
 0x32f   :  { %2989 = vmatpush1.msra.mxu0 %v2210_v10  ;;  %3060 = vmatpush1.msra.mxu1 %v2594_v62  ;;  %v2810_v7 = vld [vmem:[%s9086_s7 + $0x1500] sm:$0xff]  ;;  %v2415_v10 = vld [vmem:[%s9086_s7 + $0x8a8] sm:$0xff] }
 0x330   :  { %2990 = vmatprep.subr.mxu0 %v2199_v12  ;;  %3061 = vmatprep.subr.mxu1 %v2583_v13  ;;  %v2799_v62 = vld [vmem:[%s9086_s7 + $0x14a8] sm:$0xff]  ;;  %v2414_v12 = vld [vmem:[%s9086_s7 + $0x8a0] sm:$0xff] }
 0x331   :  { %2991 = vmatpush1.msra.mxu0 %v2198_v14  ;;  %3062 = vmatpush1.msra.mxu1 %v2582_v17  ;;  %v2798_v13 = vld [vmem:[%s9086_s7 + $0x14a0] sm:$0xff]  ;;  %v2403_v14 = vld [vmem:[%s9086_s7 + $0x848] sm:$0xff] }
 0x332   :  { %2992 = vmatprep.subr.mxu0 %v2187_v38  ;;  %3063 = vmatprep.subr.mxu1 %v2571_v18  ;;  %v2787_v17 = vld [vmem:[%s9086_s7 + $0x1448] sm:$0xff]  ;;  %v2402_v38 = vld [vmem:[%s9086_s7 + $0x840] sm:$0xff] }
 0x333   :  { %2993 = vmatpush1.msra.mxu0 %v2186_v20  ;;  %3064 = vmatpush1.msra.mxu1 %v2570_v22  ;;  %v2786_v18 = vld [vmem:[%s9086_s7 + $0x1440] sm:$0xff]  ;;  %v2391_v20 = vld [vmem:[%s9086_s7 + $0x7e8] sm:$0xff] }
 0x334   :  { %2994 = vmatprep.subr.mxu0 %v2175_v25  ;;  %3065 = vmatprep.subr.mxu1 %v2559_v27  ;;  %v2775_v22 = vld [vmem:[%s9086_s7 + $0x13e8] sm:$0xff]  ;;  %v2390_v25 = vld [vmem:[%s9086_s7 + $0x7e0] sm:$0xff] }
 0x335   :  { %2995 = vmatpush1.msra.mxu0 %v2174_v28  ;;  %3066 = vmatpush1.msra.mxu1 %v2558_v54  ;;  %v2774_v27 = vld [vmem:[%s9086_s7 + $0x13e0] sm:$0xff]  ;;  %v2379_v28 = vld [vmem:[%s9086_s7 + $0x788] sm:$0xff] }
 0x336   :  { %2996 = vmatprep.subr.mxu0 %v2163_v30  ;;  %3067 = vmatprep.subr.mxu1 %v2547_v53  ;;  %v2763_v54 = vld [vmem:[%s9086_s7 + $0x1388] sm:$0xff]  ;;  %v2378_v30 = vld [vmem:[%s9086_s7 + $0x780] sm:$0xff] }
 0x337   :  { %2997 = vmatpush1.msra.mxu0 %v2162_v57  ;;  %3068 = vmatpush1.msra.mxu1 %v2546_v43  ;;  %v2762_v53 = vld [vmem:[%s9086_s7 + $0x1380] sm:$0xff]  ;;  %v2367_v57 = vld [vmem:[%s9086_s7 + $0x728] sm:$0xff] }
 0x338   :  { %2998 = vmatprep.subr.mxu0 %v2151_v9  ;;  %3069 = vmatprep.subr.mxu1 %v2535_v48  ;;  %v2751_v43 = vld [vmem:[%s9086_s7 + $0x1328] sm:$0xff]  ;;  %v2366_v9 = vld [vmem:[%s9086_s7 + $0x720] sm:$0xff] }
 0x339   :  { %2999 = vmatpush1.msra.mxu0 %v2150_v31  ;;  %3070 = vmatpush1.msra.mxu1 %v2534_v15  ;;  %v2750_v48 = vld [vmem:[%s9086_s7 + $0x1320] sm:$0xff]  ;;  %v2355_v31 = vld [vmem:[%s9086_s7 + $0x6c8] sm:$0xff] }
 0x33a   :  { %3000 = vmatprep.subr.mxu0 %v2139_v32  ;;  %3071 = vmatprep.subr.mxu1 %v2523_v33  ;;  %v2739_v15 = vld [vmem:[%s9086_s7 + $0x12c8] sm:$0xff]  ;;  %v2354_v32 = vld [vmem:[%s9086_s7 + $0x6c0] sm:$0xff] }
 0x33b   :  { %3001 = vmatpush1.msra.mxu0 %v2138_v8  ;;  %3072 = vmatpush1.msra.mxu1 %v2522_v34  ;;  %v2738_v33 = vld [vmem:[%s9086_s7 + $0x12c0] sm:$0xff]  ;;  %v2343_v8 = vld [vmem:[%s9086_s7 + $0x668] sm:$0xff] }
 0x33c   :  { %3002 = vmatprep.subr.mxu0 %v2511_v11  ;;  %3073 = vmatprep.subr.mxu1 %v2895_v35  ;;  %v2727_v34 = vld [vmem:[%s9086_s7 + $0x1268] sm:$0xff]  ;;  %v2342_v11 = vld [vmem:[%s9086_s7 + $0x660] sm:$0xff] }
 0x33d   :  { %3003 = vmatpush2.msra.mxu0 %v2510_v39  ;;  %3074 = vmatpush2.msra.mxu1 %v2894_v40  ;;  %v2726_v35 = vld [vmem:[%s9086_s7 + $0x1260] sm:$0xff]  ;;  %v2331_v39 = vld [vmem:[%s9086_s7 + $0x608] sm:$0xff] }
 0x33e   :  { %3004 = vmatprep.subr.mxu0 %v2499_v42  ;;  %3075 = vmatprep.subr.mxu1 %v2883_v44  ;;  %v2715_v40 = vld [vmem:[%s9086_s7 + $0x1208] sm:$0xff]  ;;  %v2330_v42 = vld [vmem:[%s9086_s7 + $0x600] sm:$0xff] }
 0x33f   :  { %3005 = vmatpush2.msra.mxu0 %v2498_v45  ;;  %3076 = vmatpush2.msra.mxu1 %v2882_v46  ;;  %v2714_v44 = vld [vmem:[%s9086_s7 + $0x1200] sm:$0xff]  ;;  %v2321_v45 = vld [vmem:[%s9086_s7 + $0x5b8] sm:$0xff] }
 0x340   :  { %3006 = vmatprep.subr.mxu0 %v2487_v47  ;;  %3077 = vmatprep.subr.mxu1 %v2871_v49  ;;  %v2705_v46 = vld [vmem:[%s9086_s7 + $0x11b8] sm:$0xff]  ;;  %v1970_v47 = vld [vmem:[%s9088_s6] sm:$0xf] }
 0x341   :  { %3007 = vmatpush2.msra.mxu0 %v2486_v50  ;;  %3078 = vmatpush2.msra.mxu1 %v2870_v51  ;;  %v1979_v49 = vrot.slane %v1970_v47, %v6286_v19  ;;  %v1987_v50 = vrot.slane %v1970_v47, %v6644_v3  ;;  %v1975_v51 = vrot.slane %v1970_v47, %v6480_v37 }
 0x342   :  { %3008 = vmatprep.subr.mxu0 %v2475_v26  ;;  %3079 = vmatprep.subr.mxu1 %v2859_v55  ;;  %v1983_v55 = vrot.slane %v1970_v47, %v6641_v36  ;;  %v2572_v47 = vld [vmem:[%s9086_s7 + $0xd90] sm:$0xff] }
 0x343   :  { %3009 = vmatpush2.msra.mxu0 %v2474_v16  ;;  %3080 = vmatpush2.msra.mxu1 %v2858_v29 }
 0x344   :  { %3010 = vmatprep.subr.mxu0 %v2463_v56  ;;  %3081 = vmatprep.subr.mxu1 %v2847_v58 }
 0x345   :  { %3011 = vmatpush2.msra.mxu0 %v2462_v21  ;;  %3082 = vmatpush2.msra.mxu1 %v2846_v59 }
 0x346   :  { %3012 = vmatprep.subr.mxu0 %v2451_v60  ;;  %3083 = vmatprep.subr.mxu1 %v2835_v61  ;;  %v2320_v61 = vld [vmem:[%s9086_s7 + $0x5b0] sm:$0xff] }
 0x347   :  { %3013 = vmatpush2.msra.mxu0 %v2450_v63  ;;  %3084 = vmatpush2.msra.mxu1 %v2834_v24  ;;  %v2704_v63 = vld [vmem:[%s9086_s7 + $0x11b0] sm:$0xff]  ;;  %v2309_v24 = vld [vmem:[%s9086_s7 + $0x558] sm:$0xff] }
 0x348   :  { %3014 = vmatprep.subr.mxu0 %v2439_v23  ;;  %3085 = vmatprep.subr.mxu1 %v2823_v0  ;;  %v2693_v23 = vld [vmem:[%s9086_s7 + $0x1158] sm:$0xff]  ;;  %v2308_v0 = vld [vmem:[%s9086_s7 + $0x550] sm:$0xff] }
 0x349   :  { %3015 = vmatpush2.msra.mxu0 %v2438_v1  ;;  %3086 = vmatpush2.msra.mxu1 %v2822_v2  ;;  %v2692_v1 = vld [vmem:[%s9086_s7 + $0x1150] sm:$0xff]  ;;  %v2297_v2 = vld [vmem:[%s9086_s7 + $0x4f8] sm:$0xff] }
 0x34a   :  { %3016 = vmatprep.subr.mxu0 %v2427_v4  ;;  %3087 = vmatprep.subr.mxu1 %v2811_v5  ;;  %v2681_v4 = vld [vmem:[%s9086_s7 + $0x10f8] sm:$0xff]  ;;  %v2296_v5 = vld [vmem:[%s9086_s7 + $0x4f0] sm:$0xff] }
 0x34b   :  { %3017 = vmatpush2.msra.mxu0 %v2426_v6  ;;  %3088 = vmatpush2.msra.mxu1 %v2810_v7  ;;  %v2680_v6 = vld [vmem:[%s9086_s7 + $0x10f0] sm:$0xff]  ;;  %v2285_v7 = vld [vmem:[%s9086_s7 + $0x498] sm:$0xff] }
 0x34c   :  { %3018 = vmatprep.subr.mxu0 %v2415_v10  ;;  %3089 = vmatprep.subr.mxu1 %v2799_v62  ;;  %v2669_v10 = vld [vmem:[%s9086_s7 + $0x1098] sm:$0xff]  ;;  %v2284_v62 = vld [vmem:[%s9086_s7 + $0x490] sm:$0xff] }
 0x34d   :  { %3019 = vmatpush2.msra.mxu0 %v2414_v12  ;;  %3090 = vmatpush2.msra.mxu1 %v2798_v13  ;;  %v2668_v12 = vld [vmem:[%s9086_s7 + $0x1090] sm:$0xff]  ;;  %v2273_v13 = vld [vmem:[%s9086_s7 + $0x438] sm:$0xff] }
 0x34e   :  { %3020 = vmatprep.subr.mxu0 %v2403_v14  ;;  %3091 = vmatprep.subr.mxu1 %v2787_v17  ;;  %v2657_v14 = vld [vmem:[%s9086_s7 + $0x1038] sm:$0xff]  ;;  %v2272_v17 = vld [vmem:[%s9086_s7 + $0x430] sm:$0xff] }
 0x34f   :  { %3021 = vmatpush2.msra.mxu0 %v2402_v38  ;;  %3092 = vmatpush2.msra.mxu1 %v2786_v18  ;;  %v2656_v38 = vld [vmem:[%s9086_s7 + $0x1030] sm:$0xff]  ;;  %v2261_v18 = vld [vmem:[%s9086_s7 + $0x3d8] sm:$0xff] }
 0x350   :  { %3022 = vmatprep.subr.mxu0 %v2391_v20  ;;  %3093 = vmatprep.subr.mxu1 %v2775_v22  ;;  %v2645_v20 = vld [vmem:[%s9086_s7 + $0xfd8] sm:$0xff]  ;;  %v2260_v22 = vld [vmem:[%s9086_s7 + $0x3d0] sm:$0xff] }
 0x351   :  { %3023 = vmatpush2.msra.mxu0 %v2390_v25  ;;  %3094 = vmatpush2.msra.mxu1 %v2774_v27  ;;  %v2644_v25 = vld [vmem:[%s9086_s7 + $0xfd0] sm:$0xff]  ;;  %v2249_v27 = vld [vmem:[%s9086_s7 + $0x378] sm:$0xff] }
 0x352   :  { %3024 = vmatprep.subr.mxu0 %v2379_v28  ;;  %3095 = vmatprep.subr.mxu1 %v2763_v54  ;;  %v2633_v28 = vld [vmem:[%s9086_s7 + $0xf78] sm:$0xff]  ;;  %v2248_v54 = vld [vmem:[%s9086_s7 + $0x370] sm:$0xff] }
 0x353   :  { %3025 = vmatpush2.msra.mxu0 %v2378_v30  ;;  %3096 = vmatpush2.msra.mxu1 %v2762_v53  ;;  %v2632_v30 = vld [vmem:[%s9086_s7 + $0xf70] sm:$0xff]  ;;  %v2237_v53 = vld [vmem:[%s9086_s7 + $0x318] sm:$0xff] }
 0x354   :  { %3026 = vmatprep.subr.mxu0 %v2367_v57  ;;  %3097 = vmatprep.subr.mxu1 %v2751_v43  ;;  %v2621_v57 = vld [vmem:[%s9086_s7 + $0xf18] sm:$0xff]  ;;  %v2236_v43 = vld [vmem:[%s9086_s7 + $0x310] sm:$0xff] }
 0x355   :  { %3027 = vmatpush2.msra.mxu0 %v2366_v9  ;;  %3098 = vmatpush2.msra.mxu1 %v2750_v48  ;;  %v2620_v9 = vld [vmem:[%s9086_s7 + $0xf10] sm:$0xff]  ;;  %v2225_v48 = vld [vmem:[%s9086_s7 + $0x2b8] sm:$0xff] }
 0x356   :  { %3028 = vmatprep.subr.mxu0 %v2355_v31  ;;  %3099 = vmatprep.subr.mxu1 %v2739_v15  ;;  %v2609_v31 = vld [vmem:[%s9086_s7 + $0xeb8] sm:$0xff]  ;;  %v2224_v15 = vld [vmem:[%s9086_s7 + $0x2b0] sm:$0xff] }
 0x357   :  { %3029 = vmatpush2.msra.mxu0 %v2354_v32  ;;  %3100 = vmatpush2.msra.mxu1 %v2738_v33  ;;  %v2608_v32 = vld [vmem:[%s9086_s7 + $0xeb0] sm:$0xff]  ;;  %v2213_v33 = vld [vmem:[%s9086_s7 + $0x258] sm:$0xff] }
 0x358   :  { %3030 = vmatprep.subr.mxu0 %v2343_v8  ;;  %3101 = vmatprep.subr.mxu1 %v2727_v34  ;;  %v2597_v8 = vld [vmem:[%s9086_s7 + $0xe58] sm:$0xff]  ;;  %v2212_v34 = vld [vmem:[%s9086_s7 + $0x250] sm:$0xff] }
 0x359   :  { %3031 = vmatpush2.msra.mxu0 %v2342_v11  ;;  %3102 = vmatpush2.msra.mxu1 %v2726_v35  ;;  %v2596_v11 = vld [vmem:[%s9086_s7 + $0xe50] sm:$0xff]  ;;  %v2201_v35 = vld [vmem:[%s9086_s7 + $0x1f8] sm:$0xff] }
 0x35a   :  { %3032 = vmatprep.subr.mxu0 %v2331_v39  ;;  %3103 = vmatprep.subr.mxu1 %v2715_v40  ;;  %v2585_v39 = vld [vmem:[%s9086_s7 + $0xdf8] sm:$0xff]  ;;  %v2200_v40 = vld [vmem:[%s9086_s7 + $0x1f0] sm:$0xff] }
 0x35b   :  { %3033 = vmatpush2.msra.mxu0 %v2330_v42  ;;  %3104 = vmatpush2.msra.mxu1 %v2714_v44  ;;  %v2584_v42 = vld [vmem:[%s9086_s7 + $0xdf0] sm:$0xff]  ;;  %v2189_v44 = vld [vmem:[%s9086_s7 + $0x198] sm:$0xff] }
 0x35c   :  { %3112 = vmatprep.subr.mxu0 %v2321_v45  ;;  %3183 = vmatprep.subr.mxu1 %v2705_v46  ;;  %v2573_v45 = vld [vmem:[%s9086_s7 + $0xd98] sm:$0xff]  ;;  %v2188_v46 = vld [vmem:[%s9086_s7 + $0x190] sm:$0xff] }
 0x3dc   :  { %v2062_v26 = vpop.f32.mrf.mxu0  ;;  %v2133_v16 = vpop.f32.mrf.mxu1 }
 0x3dd   :  { %v7096_v59 = vadd.f32 %v2062_v26, %v1975_v51  ;;  %v7098_v60 = vadd.f32 %v2133_v16, %v1983_v55  ;;  %v2176_v51 = vld [vmem:[%s9086_s7 + $0x130] sm:$0xff]  ;;  %v2165_v55 = vld [vmem:[%s9086_s7 + $0xd8] sm:$0xff] }
 0x3de   :  { %v2064_v29 = vpop.f32.mrf.mxu0  ;;  %v2135_v56 = vpop.f32.mrf.mxu1  ;;  %v2560_v26 = vld [vmem:[%s9086_s7 + $0xd30] sm:$0xff]  ;;  %v2549_v16 = vld [vmem:[%s9086_s7 + $0xcd8] sm:$0xff] }
 0x3df   :  { %v7092_v58 = vadd.f32 %v2064_v29, %v1979_v49  ;;  %v7094_v21 = vadd.f32 %v2135_v56, %v1987_v50  ;;  %v2177_v49 = vld [vmem:[%s9086_s7 + $0x138] sm:$0xff]  ;;  %v2164_v29 = vld [vmem:[%s9086_s7 + $0xd0] sm:$0xff] }
 0x3e0   :  { %v2561_v50 = vld [vmem:[%s9086_s7 + $0xd38] sm:$0xff]  ;;  %v2548_v56 = vld [vmem:[%s9086_s7 + $0xcd0] sm:$0xff] }
 0x3e1   :  { %3034 = vmatprep.mubr.f32.mxu0 %v7092_v58  ;;  %3105 = vmatprep.mubr.f32.mxu1 %v7094_v21 }
 0x3e2   :  { %3035 = vmatmul.mubr.f32.vlgmr.msra.gmra.mxu0 %v7096_v59  ;;  %3106 = vmatmul.mubr.f32.vlgmr.msra.gmra.mxu1 %v7098_v60 }
 0x3e3   :  { %3113 = vmatpush1.msra.mxu0 %v2320_v61  ;;  %3184 = vmatpush1.msra.mxu1 %v2704_v63  ;;  %v2153_v61 = vld [vmem:[%s9086_s7 + $0x78] sm:$0xff] }
 0x3e4   :  { %3114 = vmatprep.subr.mxu0 %v2309_v24  ;;  %3176 = vmatprep.mubr.f32.mxu0 %v7092_v58  ;;  %v2537_v63 = vld [vmem:[%s9086_s7 + $0xc78] sm:$0xff]  ;;  %v2152_v24 = vld [vmem:[%s9086_s7 + $0x70] sm:$0xff] }
 0x3e5   :  { %3185 = vmatprep.subr.mxu1 %v2693_v23  ;;  %3247 = vmatprep.mubr.f32.mxu1 %v7094_v21  ;;  %v2536_v23 = vld [vmem:[%s9086_s7 + $0xc70] sm:$0xff] }
 0x3e6   :  { %3115 = vmatpush1.msra.mxu0 %v2308_v0  ;;  %3186 = vmatpush1.msra.mxu1 %v2692_v1  ;;  %v2141_v0 = vld [vmem:[%s9086_s7 + $0x18] sm:$0xff] }
 0x3e7   :  { %3116 = vmatprep.subr.mxu0 %v2297_v2  ;;  %3187 = vmatprep.subr.mxu1 %v2681_v4  ;;  %v2525_v1 = vld [vmem:[%s9086_s7 + $0xc18] sm:$0xff]  ;;  %v2140_v2 = vld [vmem:[%s9086_s7 + $0x10] sm:$0xff] }
 0x3e8   :  { %3117 = vmatpush1.msra.mxu0 %v2296_v5  ;;  %3188 = vmatpush1.msra.mxu1 %v2680_v6  ;;  %v2524_v4 = vld [vmem:[%s9086_s7 + $0xc10] sm:$0xff]  ;;  %v2513_v5 = vld [vmem:[%s9086_s7 + $0xbb8] sm:$0xff] }
 0x3e9   :  { %3118 = vmatprep.subr.mxu0 %v2285_v7  ;;  %3189 = vmatprep.subr.mxu1 %v2669_v10  ;;  %v2897_v6 = vld [vmem:[%s9086_s7 + $0x17b8] sm:$0xff]  ;;  %v2512_v7 = vld [vmem:[%s9086_s7 + $0xbb0] sm:$0xff] }
 0x3ea   :  { %3119 = vmatpush1.msra.mxu0 %v2284_v62  ;;  %3190 = vmatpush1.msra.mxu1 %v2668_v12  ;;  %v2896_v10 = vld [vmem:[%s9086_s7 + $0x17b0] sm:$0xff]  ;;  %v2501_v62 = vld [vmem:[%s9086_s7 + $0xb58] sm:$0xff] }
 0x3eb   :  { %3120 = vmatprep.subr.mxu0 %v2273_v13  ;;  %3191 = vmatprep.subr.mxu1 %v2657_v14  ;;  %v2885_v12 = vld [vmem:[%s9086_s7 + $0x1758] sm:$0xff]  ;;  %v2500_v13 = vld [vmem:[%s9086_s7 + $0xb50] sm:$0xff] }
 0x3ec   :  { %3121 = vmatpush1.msra.mxu0 %v2272_v17  ;;  %3192 = vmatpush1.msra.mxu1 %v2656_v38  ;;  %v2884_v14 = vld [vmem:[%s9086_s7 + $0x1750] sm:$0xff]  ;;  %v2489_v17 = vld [vmem:[%s9086_s7 + $0xaf8] sm:$0xff] }
 0x3ed   :  { %3122 = vmatprep.subr.mxu0 %v2261_v18  ;;  %3193 = vmatprep.subr.mxu1 %v2645_v20  ;;  %v2873_v38 = vld [vmem:[%s9086_s7 + $0x16f8] sm:$0xff]  ;;  %v2488_v18 = vld [vmem:[%s9086_s7 + $0xaf0] sm:$0xff] }
 0x3ee   :  { %3123 = vmatpush1.msra.mxu0 %v2260_v22  ;;  %3194 = vmatpush1.msra.mxu1 %v2644_v25  ;;  %v2872_v20 = vld [vmem:[%s9086_s7 + $0x16f0] sm:$0xff]  ;;  %v2477_v22 = vld [vmem:[%s9086_s7 + $0xa98] sm:$0xff] }
 0x3ef   :  { %3124 = vmatprep.subr.mxu0 %v2249_v27  ;;  %3195 = vmatprep.subr.mxu1 %v2633_v28  ;;  %v2861_v25 = vld [vmem:[%s9086_s7 + $0x1698] sm:$0xff]  ;;  %v2476_v27 = vld [vmem:[%s9086_s7 + $0xa90] sm:$0xff] }
 0x3f0   :  { %3125 = vmatpush1.msra.mxu0 %v2248_v54  ;;  %3196 = vmatpush1.msra.mxu1 %v2632_v30  ;;  %v2860_v28 = vld [vmem:[%s9086_s7 + $0x1690] sm:$0xff]  ;;  %v2465_v54 = vld [vmem:[%s9086_s7 + $0xa38] sm:$0xff] }
 0x3f1   :  { %3126 = vmatprep.subr.mxu0 %v2237_v53  ;;  %3197 = vmatprep.subr.mxu1 %v2621_v57  ;;  %v2849_v30 = vld [vmem:[%s9086_s7 + $0x1638] sm:$0xff]  ;;  %v2464_v53 = vld [vmem:[%s9086_s7 + $0xa30] sm:$0xff] }
 0x3f2   :  { %3127 = vmatpush1.msra.mxu0 %v2236_v43  ;;  %3198 = vmatpush1.msra.mxu1 %v2620_v9  ;;  %v2848_v57 = vld [vmem:[%s9086_s7 + $0x1630] sm:$0xff]  ;;  %v2453_v43 = vld [vmem:[%s9086_s7 + $0x9d8] sm:$0xff] }
 0x3f3   :  { %3128 = vmatprep.subr.mxu0 %v2225_v48  ;;  %3199 = vmatprep.subr.mxu1 %v2609_v31  ;;  %v2837_v9 = vld [vmem:[%s9086_s7 + $0x15d8] sm:$0xff]  ;;  %v2452_v48 = vld [vmem:[%s9086_s7 + $0x9d0] sm:$0xff] }
 0x3f4   :  { %3129 = vmatpush1.msra.mxu0 %v2224_v15  ;;  %3200 = vmatpush1.msra.mxu1 %v2608_v32  ;;  %v2836_v31 = vld [vmem:[%s9086_s7 + $0x15d0] sm:$0xff]  ;;  %v2441_v15 = vld [vmem:[%s9086_s7 + $0x978] sm:$0xff] }
 0x3f5   :  { %3130 = vmatprep.subr.mxu0 %v2213_v33  ;;  %3201 = vmatprep.subr.mxu1 %v2597_v8  ;;  %v2825_v32 = vld [vmem:[%s9086_s7 + $0x1578] sm:$0xff]  ;;  %v2440_v33 = vld [vmem:[%s9086_s7 + $0x970] sm:$0xff] }
 0x3f6   :  { %3131 = vmatpush1.msra.mxu0 %v2212_v34  ;;  %3202 = vmatpush1.msra.mxu1 %v2596_v11  ;;  %v2824_v8 = vld [vmem:[%s9086_s7 + $0x1570] sm:$0xff]  ;;  %v2429_v34 = vld [vmem:[%s9086_s7 + $0x918] sm:$0xff] }
 0x3f7   :  { %3132 = vmatprep.subr.mxu0 %v2201_v35  ;;  %3203 = vmatprep.subr.mxu1 %v2585_v39  ;;  %v2813_v11 = vld [vmem:[%s9086_s7 + $0x1518] sm:$0xff]  ;;  %v2428_v35 = vld [vmem:[%s9086_s7 + $0x910] sm:$0xff] }
 0x3f8   :  { %3133 = vmatpush1.msra.mxu0 %v2200_v40  ;;  %3204 = vmatpush1.msra.mxu1 %v2584_v42  ;;  %v2812_v39 = vld [vmem:[%s9086_s7 + $0x1510] sm:$0xff]  ;;  %v2417_v40 = vld [vmem:[%s9086_s7 + $0x8b8] sm:$0xff] }
 0x3f9   :  { %3134 = vmatprep.subr.mxu0 %v2189_v44  ;;  %3205 = vmatprep.subr.mxu1 %v2573_v45  ;;  %v2801_v42 = vld [vmem:[%s9086_s7 + $0x14b8] sm:$0xff]  ;;  %v2416_v44 = vld [vmem:[%s9086_s7 + $0x8b0] sm:$0xff] }
 0x3fa   :  { %3135 = vmatpush1.msra.mxu0 %v2188_v46  ;;  %3206 = vmatpush1.msra.mxu1 %v2572_v47  ;;  %v2800_v45 = vld [vmem:[%s9086_s7 + $0x14b0] sm:$0xff]  ;;  %v2405_v46 = vld [vmem:[%s9086_s7 + $0x858] sm:$0xff] }
 0x3fb   :  { %3136 = vmatprep.subr.mxu0 %v2177_v49  ;;  %3207 = vmatprep.subr.mxu1 %v2561_v50  ;;  %v2789_v47 = vld [vmem:[%s9086_s7 + $0x1458] sm:$0xff]  ;;  %v2404_v49 = vld [vmem:[%s9086_s7 + $0x850] sm:$0xff] }
 0x3fc   :  { %3137 = vmatpush1.msra.mxu0 %v2176_v51  ;;  %3208 = vmatpush1.msra.mxu1 %v2560_v26  ;;  %v2788_v50 = vld [vmem:[%s9086_s7 + $0x1450] sm:$0xff]  ;;  %v2393_v51 = vld [vmem:[%s9086_s7 + $0x7f8] sm:$0xff] }
 0x3fd   :  { %3138 = vmatprep.subr.mxu0 %v2165_v55  ;;  %3209 = vmatprep.subr.mxu1 %v2549_v16  ;;  %v2777_v26 = vld [vmem:[%s9086_s7 + $0x13f8] sm:$0xff]  ;;  %v2392_v55 = vld [vmem:[%s9086_s7 + $0x7f0] sm:$0xff] }
 0x3fe   :  { %3139 = vmatpush1.msra.mxu0 %v2164_v29  ;;  %3210 = vmatpush1.msra.mxu1 %v2548_v56  ;;  %v2776_v16 = vld [vmem:[%s9086_s7 + $0x13f0] sm:$0xff]  ;;  %v2381_v29 = vld [vmem:[%s9086_s7 + $0x798] sm:$0xff] }
 0x3ff   :  { %3140 = vmatprep.subr.mxu0 %v2153_v61  ;;  %3211 = vmatprep.subr.mxu1 %v2537_v63  ;;  %v2765_v56 = vld [vmem:[%s9086_s7 + $0x1398] sm:$0xff]  ;;  %v2380_v61 = vld [vmem:[%s9086_s7 + $0x790] sm:$0xff] }
 0x400   :  { %3141 = vmatpush1.msra.mxu0 %v2152_v24  ;;  %3212 = vmatpush1.msra.mxu1 %v2536_v23  ;;  %v2764_v63 = vld [vmem:[%s9086_s7 + $0x1390] sm:$0xff]  ;;  %v2369_v24 = vld [vmem:[%s9086_s7 + $0x738] sm:$0xff] }
 0x401   :  { %3142 = vmatprep.subr.mxu0 %v2141_v0  ;;  %3213 = vmatprep.subr.mxu1 %v2525_v1  ;;  %v2753_v23 = vld [vmem:[%s9086_s7 + $0x1338] sm:$0xff]  ;;  %v2368_v0 = vld [vmem:[%s9086_s7 + $0x730] sm:$0xff] }
 0x402   :  { %3143 = vmatpush1.msra.mxu0 %v2140_v2  ;;  %3214 = vmatpush1.msra.mxu1 %v2524_v4  ;;  %v2752_v1 = vld [vmem:[%s9086_s7 + $0x1330] sm:$0xff]  ;;  %v2357_v2 = vld [vmem:[%s9086_s7 + $0x6d8] sm:$0xff] }
 0x403   :  { %3144 = vmatprep.subr.mxu0 %v2513_v5  ;;  %3215 = vmatprep.subr.mxu1 %v2897_v6  ;;  %v2741_v4 = vld [vmem:[%s9086_s7 + $0x12d8] sm:$0xff]  ;;  %v2356_v5 = vld [vmem:[%s9086_s7 + $0x6d0] sm:$0xff] }
 0x404   :  { %3145 = vmatpush2.msra.mxu0 %v2512_v7  ;;  %3216 = vmatpush2.msra.mxu1 %v2896_v10  ;;  %v2740_v6 = vld [vmem:[%s9086_s7 + $0x12d0] sm:$0xff]  ;;  %v2345_v7 = vld [vmem:[%s9086_s7 + $0x678] sm:$0xff] }
 0x405   :  { %3146 = vmatprep.subr.mxu0 %v2501_v62  ;;  %3217 = vmatprep.subr.mxu1 %v2885_v12  ;;  %v2729_v10 = vld [vmem:[%s9086_s7 + $0x1278] sm:$0xff]  ;;  %v2344_v62 = vld [vmem:[%s9086_s7 + $0x670] sm:$0xff] }
 0x406   :  { %3147 = vmatpush2.msra.mxu0 %v2500_v13  ;;  %3218 = vmatpush2.msra.mxu1 %v2884_v14  ;;  %v2728_v12 = vld [vmem:[%s9086_s7 + $0x1270] sm:$0xff]  ;;  %v2333_v13 = vld [vmem:[%s9086_s7 + $0x618] sm:$0xff] }
 0x407   :  { %3148 = vmatprep.subr.mxu0 %v2489_v17  ;;  %3219 = vmatprep.subr.mxu1 %v2873_v38  ;;  %v2717_v14 = vld [vmem:[%s9086_s7 + $0x1218] sm:$0xff]  ;;  %v2332_v17 = vld [vmem:[%s9086_s7 + $0x610] sm:$0xff] }
 0x408   :  { %3149 = vmatpush2.msra.mxu0 %v2488_v18  ;;  %3220 = vmatpush2.msra.mxu1 %v2872_v20  ;;  %v2716_v38 = vld [vmem:[%s9086_s7 + $0x1210] sm:$0xff]  ;;  %v2323_v18 = vld [vmem:[%s9086_s7 + $0x5c8] sm:$0xff] }
 0x409   :  { %3150 = vmatprep.subr.mxu0 %v2477_v22  ;;  %3221 = vmatprep.subr.mxu1 %v2861_v25  ;;  %v2707_v20 = vld [vmem:[%s9086_s7 + $0x11c8] sm:$0xff]  ;;  %v2322_v22 = vld [vmem:[%s9086_s7 + $0x5c0] sm:$0xff] }
 0x40a   :  { %3151 = vmatpush2.msra.mxu0 %v2476_v27  ;;  %3222 = vmatpush2.msra.mxu1 %v2860_v28  ;;  %v2706_v25 = vld [vmem:[%s9086_s7 + $0x11c0] sm:$0xff]  ;;  %v2311_v27 = vld [vmem:[%s9086_s7 + $0x568] sm:$0xff] }
 0x40b   :  { %3152 = vmatprep.subr.mxu0 %v2465_v54  ;;  %3223 = vmatprep.subr.mxu1 %v2849_v30  ;;  %v2695_v28 = vld [vmem:[%s9086_s7 + $0x1168] sm:$0xff]  ;;  %v2310_v54 = vld [vmem:[%s9086_s7 + $0x560] sm:$0xff] }
 0x40c   :  { %3153 = vmatpush2.msra.mxu0 %v2464_v53  ;;  %3224 = vmatpush2.msra.mxu1 %v2848_v57  ;;  %v2694_v30 = vld [vmem:[%s9086_s7 + $0x1160] sm:$0xff]  ;;  %v2299_v53 = vld [vmem:[%s9086_s7 + $0x508] sm:$0xff] }
 0x40d   :  { %3154 = vmatprep.subr.mxu0 %v2453_v43  ;;  %3225 = vmatprep.subr.mxu1 %v2837_v9  ;;  %v2683_v57 = vld [vmem:[%s9086_s7 + $0x1108] sm:$0xff]  ;;  %v2298_v43 = vld [vmem:[%s9086_s7 + $0x500] sm:$0xff] }
 0x40e   :  { %3155 = vmatpush2.msra.mxu0 %v2452_v48  ;;  %3226 = vmatpush2.msra.mxu1 %v2836_v31  ;;  %v2682_v9 = vld [vmem:[%s9086_s7 + $0x1100] sm:$0xff]  ;;  %v2287_v48 = vld [vmem:[%s9086_s7 + $0x4a8] sm:$0xff] }
 0x40f   :  { %3156 = vmatprep.subr.mxu0 %v2441_v15  ;;  %3227 = vmatprep.subr.mxu1 %v2825_v32  ;;  %v2671_v31 = vld [vmem:[%s9086_s7 + $0x10a8] sm:$0xff]  ;;  %v2286_v15 = vld [vmem:[%s9086_s7 + $0x4a0] sm:$0xff] }
 0x410   :  { %3157 = vmatpush2.msra.mxu0 %v2440_v33  ;;  %3228 = vmatpush2.msra.mxu1 %v2824_v8  ;;  %v2670_v32 = vld [vmem:[%s9086_s7 + $0x10a0] sm:$0xff]  ;;  %v2275_v33 = vld [vmem:[%s9086_s7 + $0x448] sm:$0xff] }
 0x411   :  { %3158 = vmatprep.subr.mxu0 %v2429_v34  ;;  %3229 = vmatprep.subr.mxu1 %v2813_v11  ;;  %v2659_v8 = vld [vmem:[%s9086_s7 + $0x1048] sm:$0xff]  ;;  %v2274_v34 = vld [vmem:[%s9086_s7 + $0x440] sm:$0xff] }
 0x412   :  { %3159 = vmatpush2.msra.mxu0 %v2428_v35  ;;  %3230 = vmatpush2.msra.mxu1 %v2812_v39  ;;  %v2658_v11 = vld [vmem:[%s9086_s7 + $0x1040] sm:$0xff]  ;;  %v2263_v35 = vld [vmem:[%s9086_s7 + $0x3e8] sm:$0xff] }
 0x413   :  { %3160 = vmatprep.subr.mxu0 %v2417_v40  ;;  %3231 = vmatprep.subr.mxu1 %v2801_v42  ;;  %v2647_v39 = vld [vmem:[%s9086_s7 + $0xfe8] sm:$0xff]  ;;  %v2262_v40 = vld [vmem:[%s9086_s7 + $0x3e0] sm:$0xff] }
 0x414   :  { %3161 = vmatpush2.msra.mxu0 %v2416_v44  ;;  %3232 = vmatpush2.msra.mxu1 %v2800_v45  ;;  %v2646_v42 = vld [vmem:[%s9086_s7 + $0xfe0] sm:$0xff]  ;;  %v2251_v44 = vld [vmem:[%s9086_s7 + $0x388] sm:$0xff] }
 0x415   :  { %3162 = vmatprep.subr.mxu0 %v2405_v46  ;;  %3233 = vmatprep.subr.mxu1 %v2789_v47  ;;  %v2635_v45 = vld [vmem:[%s9086_s7 + $0xf88] sm:$0xff]  ;;  %v2250_v46 = vld [vmem:[%s9086_s7 + $0x380] sm:$0xff] }
 0x416   :  { %3163 = vmatpush2.msra.mxu0 %v2404_v49  ;;  %3234 = vmatpush2.msra.mxu1 %v2788_v50  ;;  %v2634_v47 = vld [vmem:[%s9086_s7 + $0xf80] sm:$0xff]  ;;  %v2239_v49 = vld [vmem:[%s9086_s7 + $0x328] sm:$0xff] }
 0x417   :  { %3164 = vmatprep.subr.mxu0 %v2393_v51  ;;  %3235 = vmatprep.subr.mxu1 %v2777_v26  ;;  %v2623_v50 = vld [vmem:[%s9086_s7 + $0xf28] sm:$0xff]  ;;  %v2238_v51 = vld [vmem:[%s9086_s7 + $0x320] sm:$0xff] }
 0x418   :  { %3165 = vmatpush2.msra.mxu0 %v2392_v55  ;;  %3236 = vmatpush2.msra.mxu1 %v2776_v16  ;;  %v2622_v26 = vld [vmem:[%s9086_s7 + $0xf20] sm:$0xff]  ;;  %v2227_v55 = vld [vmem:[%s9086_s7 + $0x2c8] sm:$0xff] }
 0x419   :  { %3166 = vmatprep.subr.mxu0 %v2381_v29  ;;  %3237 = vmatprep.subr.mxu1 %v2765_v56  ;;  %v2611_v16 = vld [vmem:[%s9086_s7 + $0xec8] sm:$0xff]  ;;  %v2226_v29 = vld [vmem:[%s9086_s7 + $0x2c0] sm:$0xff] }
 0x41a   :  { %3167 = vmatpush2.msra.mxu0 %v2380_v61  ;;  %3238 = vmatpush2.msra.mxu1 %v2764_v63  ;;  %v2610_v56 = vld [vmem:[%s9086_s7 + $0xec0] sm:$0xff]  ;;  %v2215_v61 = vld [vmem:[%s9086_s7 + $0x268] sm:$0xff] }
 0x41b   :  { %3168 = vmatprep.subr.mxu0 %v2369_v24  ;;  %3239 = vmatprep.subr.mxu1 %v2753_v23  ;;  %v2599_v63 = vld [vmem:[%s9086_s7 + $0xe68] sm:$0xff]  ;;  %v2214_v24 = vld [vmem:[%s9086_s7 + $0x260] sm:$0xff] }
 0x41c   :  { %3169 = vmatpush2.msra.mxu0 %v2368_v0  ;;  %3240 = vmatpush2.msra.mxu1 %v2752_v1  ;;  %v2598_v23 = vld [vmem:[%s9086_s7 + $0xe60] sm:$0xff]  ;;  %v2203_v0 = vld [vmem:[%s9086_s7 + $0x208] sm:$0xff] }
 0x41d   :  { %3170 = vmatprep.subr.mxu0 %v2357_v2  ;;  %3241 = vmatprep.subr.mxu1 %v2741_v4  ;;  %v2587_v1 = vld [vmem:[%s9086_s7 + $0xe08] sm:$0xff]  ;;  %v2202_v2 = vld [vmem:[%s9086_s7 + $0x200] sm:$0xff] }
 0x41e   :  { %3171 = vmatpush2.msra.mxu0 %v2356_v5  ;;  %3242 = vmatpush2.msra.mxu1 %v2740_v6  ;;  %v2586_v4 = vld [vmem:[%s9086_s7 + $0xe00] sm:$0xff]  ;;  %v2191_v5 = vld [vmem:[%s9086_s7 + $0x1a8] sm:$0xff] }
 0x41f   :  { %3172 = vmatprep.subr.mxu0 %v2345_v7  ;;  %3243 = vmatprep.subr.mxu1 %v2729_v10  ;;  %v2575_v6 = vld [vmem:[%s9086_s7 + $0xda8] sm:$0xff]  ;;  %v2190_v7 = vld [vmem:[%s9086_s7 + $0x1a0] sm:$0xff] }
 0x420   :  { %3173 = vmatpush2.msra.mxu0 %v2344_v62  ;;  %3244 = vmatpush2.msra.mxu1 %v2728_v12  ;;  %v2574_v10 = vld [vmem:[%s9086_s7 + $0xda0] sm:$0xff]  ;;  %v2179_v62 = vld [vmem:[%s9086_s7 + $0x148] sm:$0xff] }
 0x421   :  { %3174 = vmatprep.subr.mxu0 %v2333_v13  ;;  %3245 = vmatprep.subr.mxu1 %v2717_v14  ;;  %v2563_v12 = vld [vmem:[%s9086_s7 + $0xd48] sm:$0xff]  ;;  %v2178_v13 = vld [vmem:[%s9086_s7 + $0x140] sm:$0xff] }
 0x422   :  { %3175 = vmatpush2.msra.mxu0 %v2332_v17  ;;  %3246 = vmatpush2.msra.mxu1 %v2716_v38  ;;  %v2562_v14 = vld [vmem:[%s9086_s7 + $0xd40] sm:$0xff]  ;;  %v2167_v17 = vld [vmem:[%s9086_s7 + $0xe8] sm:$0xff] }
 0x423   :  { %3177 = vmatmul.mubr.f32.vlgmr.msra.gmra.mxu0 %v7096_v59  ;;  %3248 = vmatmul.mubr.f32.vlgmr.msra.gmra.mxu1 %v7098_v60  ;;  %v2551_v38 = vld [vmem:[%s9086_s7 + $0xce8] sm:$0xff] }
 0x424   :  { %3254 = vmatprep.subr.mxu0 %v2323_v18  ;;  %3325 = vmatprep.subr.mxu1 %v2707_v20  ;;  %v2166_v18 = vld [vmem:[%s9086_s7 + $0xe0] sm:$0xff] }
 0x425   :  { %3255 = vmatpush1.msra.mxu0 %v2322_v22  ;;  %3318 = vmatprep.mubr.f32.mxu0 %v7092_v58  ;;  %v2550_v20 = vld [vmem:[%s9086_s7 + $0xce0] sm:$0xff]  ;;  %v2155_v22 = vld [vmem:[%s9086_s7 + $0x88] sm:$0xff] }
 0x426   :  { %3326 = vmatpush1.msra.mxu1 %v2706_v25  ;;  %3389 = vmatprep.mubr.f32.mxu1 %v7094_v21  ;;  %v2539_v25 = vld [vmem:[%s9086_s7 + $0xc88] sm:$0xff] }
 0x427   :  { %3256 = vmatprep.subr.mxu0 %v2311_v27  ;;  %3327 = vmatprep.subr.mxu1 %v2695_v28  ;;  %v2154_v27 = vld [vmem:[%s9086_s7 + $0x80] sm:$0xff] }
 0x428   :  { %3257 = vmatpush1.msra.mxu0 %v2310_v54  ;;  %3328 = vmatpush1.msra.mxu1 %v2694_v30  ;;  %v2538_v28 = vld [vmem:[%s9086_s7 + $0xc80] sm:$0xff]  ;;  %v2143_v54 = vld [vmem:[%s9086_s7 + $0x28] sm:$0xff] }
 0x429   :  { %3258 = vmatprep.subr.mxu0 %v2299_v53  ;;  %3329 = vmatprep.subr.mxu1 %v2683_v57  ;;  %v2527_v30 = vld [vmem:[%s9086_s7 + $0xc28] sm:$0xff]  ;;  %v2142_v53 = vld [vmem:[%s9086_s7 + $0x20] sm:$0xff] }
 0x42a   :  { %3259 = vmatpush1.msra.mxu0 %v2298_v43  ;;  %3330 = vmatpush1.msra.mxu1 %v2682_v9  ;;  %v2526_v57 = vld [vmem:[%s9086_s7 + $0xc20] sm:$0xff]  ;;  %v2515_v43 = vld [vmem:[%s9086_s7 + $0xbc8] sm:$0xff] }
 0x42b   :  { %3260 = vmatprep.subr.mxu0 %v2287_v48  ;;  %3331 = vmatprep.subr.mxu1 %v2671_v31  ;;  %v2899_v9 = vld [vmem:[%s9086_s7 + $0x17c8] sm:$0xff]  ;;  %v2514_v48 = vld [vmem:[%s9086_s7 + $0xbc0] sm:$0xff] }
 0x42c   :  { %3261 = vmatpush1.msra.mxu0 %v2286_v15  ;;  %3332 = vmatpush1.msra.mxu1 %v2670_v32  ;;  %v2898_v31 = vld [vmem:[%s9086_s7 + $0x17c0] sm:$0xff]  ;;  %v2503_v15 = vld [vmem:[%s9086_s7 + $0xb68] sm:$0xff] }
 0x42d   :  { %3262 = vmatprep.subr.mxu0 %v2275_v33  ;;  %3333 = vmatprep.subr.mxu1 %v2659_v8  ;;  %v2887_v32 = vld [vmem:[%s9086_s7 + $0x1768] sm:$0xff]  ;;  %v2502_v33 = vld [vmem:[%s9086_s7 + $0xb60] sm:$0xff] }
 0x42e   :  { %3263 = vmatpush1.msra.mxu0 %v2274_v34  ;;  %3334 = vmatpush1.msra.mxu1 %v2658_v11  ;;  %v2886_v8 = vld [vmem:[%s9086_s7 + $0x1760] sm:$0xff]  ;;  %v2491_v34 = vld [vmem:[%s9086_s7 + $0xb08] sm:$0xff] }
 0x42f   :  { %3264 = vmatprep.subr.mxu0 %v2263_v35  ;;  %3335 = vmatprep.subr.mxu1 %v2647_v39  ;;  %v2875_v11 = vld [vmem:[%s9086_s7 + $0x1708] sm:$0xff]  ;;  %v2490_v35 = vld [vmem:[%s9086_s7 + $0xb00] sm:$0xff] }
 0x430   :  { %3265 = vmatpush1.msra.mxu0 %v2262_v40  ;;  %3336 = vmatpush1.msra.mxu1 %v2646_v42  ;;  %v2874_v39 = vld [vmem:[%s9086_s7 + $0x1700] sm:$0xff]  ;;  %v2479_v40 = vld [vmem:[%s9086_s7 + $0xaa8] sm:$0xff] }
 0x431   :  { %3266 = vmatprep.subr.mxu0 %v2251_v44  ;;  %3337 = vmatprep.subr.mxu1 %v2635_v45  ;;  %v2863_v42 = vld [vmem:[%s9086_s7 + $0x16a8] sm:$0xff]  ;;  %v2478_v44 = vld [vmem:[%s9086_s7 + $0xaa0] sm:$0xff] }
 0x432   :  { %3267 = vmatpush1.msra.mxu0 %v2250_v46  ;;  %3338 = vmatpush1.msra.mxu1 %v2634_v47  ;;  %v2862_v45 = vld [vmem:[%s9086_s7 + $0x16a0] sm:$0xff]  ;;  %v2467_v46 = vld [vmem:[%s9086_s7 + $0xa48] sm:$0xff] }
 0x433   :  { %3268 = vmatprep.subr.mxu0 %v2239_v49  ;;  %3339 = vmatprep.subr.mxu1 %v2623_v50  ;;  %v2851_v47 = vld [vmem:[%s9086_s7 + $0x1648] sm:$0xff]  ;;  %v2466_v49 = vld [vmem:[%s9086_s7 + $0xa40] sm:$0xff] }
 0x434   :  { %3269 = vmatpush1.msra.mxu0 %v2238_v51  ;;  %3340 = vmatpush1.msra.mxu1 %v2622_v26  ;;  %v2850_v50 = vld [vmem:[%s9086_s7 + $0x1640] sm:$0xff]  ;;  %v2455_v51 = vld [vmem:[%s9086_s7 + $0x9e8] sm:$0xff] }
 0x435   :  { %3270 = vmatprep.subr.mxu0 %v2227_v55  ;;  %3341 = vmatprep.subr.mxu1 %v2611_v16  ;;  %v2839_v26 = vld [vmem:[%s9086_s7 + $0x15e8] sm:$0xff]  ;;  %v2454_v55 = vld [vmem:[%s9086_s7 + $0x9e0] sm:$0xff] }
 0x436   :  { %3271 = vmatpush1.msra.mxu0 %v2226_v29  ;;  %3342 = vmatpush1.msra.mxu1 %v2610_v56  ;;  %v2838_v16 = vld [vmem:[%s9086_s7 + $0x15e0] sm:$0xff]  ;;  %v2443_v29 = vld [vmem:[%s9086_s7 + $0x988] sm:$0xff] }
 0x437   :  { %3272 = vmatprep.subr.mxu0 %v2215_v61  ;;  %3343 = vmatprep.subr.mxu1 %v2599_v63  ;;  %v2827_v56 = vld [vmem:[%s9086_s7 + $0x1588] sm:$0xff]  ;;  %v2442_v61 = vld [vmem:[%s9086_s7 + $0x980] sm:$0xff] }
 0x438   :  { %3273 = vmatpush1.msra.mxu0 %v2214_v24  ;;  %3344 = vmatpush1.msra.mxu1 %v2598_v23  ;;  %v2826_v63 = vld [vmem:[%s9086_s7 + $0x1580] sm:$0xff]  ;;  %v2431_v24 = vld [vmem:[%s9086_s7 + $0x928] sm:$0xff] }
 0x439   :  { %3274 = vmatprep.subr.mxu0 %v2203_v0  ;;  %3345 = vmatprep.subr.mxu1 %v2587_v1  ;;  %v2815_v23 = vld [vmem:[%s9086_s7 + $0x1528] sm:$0xff]  ;;  %v2430_v0 = vld [vmem:[%s9086_s7 + $0x920] sm:$0xff] }
 0x43a   :  { %3275 = vmatpush1.msra.mxu0 %v2202_v2  ;;  %3346 = vmatpush1.msra.mxu1 %v2586_v4  ;;  %v2814_v1 = vld [vmem:[%s9086_s7 + $0x1520] sm:$0xff]  ;;  %v2419_v2 = vld [vmem:[%s9086_s7 + $0x8c8] sm:$0xff] }
 0x43b   :  { %3276 = vmatprep.subr.mxu0 %v2191_v5  ;;  %3347 = vmatprep.subr.mxu1 %v2575_v6  ;;  %v2803_v4 = vld [vmem:[%s9086_s7 + $0x14c8] sm:$0xff]  ;;  %v2418_v5 = vld [vmem:[%s9086_s7 + $0x8c0] sm:$0xff] }
 0x43c   :  { %3277 = vmatpush1.msra.mxu0 %v2190_v7  ;;  %3348 = vmatpush1.msra.mxu1 %v2574_v10  ;;  %v2802_v6 = vld [vmem:[%s9086_s7 + $0x14c0] sm:$0xff]  ;;  %v2407_v7 = vld [vmem:[%s9086_s7 + $0x868] sm:$0xff] }
 0x43d   :  { %3278 = vmatprep.subr.mxu0 %v2179_v62  ;;  %3349 = vmatprep.subr.mxu1 %v2563_v12  ;;  %v2791_v10 = vld [vmem:[%s9086_s7 + $0x1468] sm:$0xff]  ;;  %v2406_v62 = vld [vmem:[%s9086_s7 + $0x860] sm:$0xff] }
 0x43e   :  { %3279 = vmatpush1.msra.mxu0 %v2178_v13  ;;  %3350 = vmatpush1.msra.mxu1 %v2562_v14  ;;  %v2790_v12 = vld [vmem:[%s9086_s7 + $0x1460] sm:$0xff]  ;;  %v2395_v13 = vld [vmem:[%s9086_s7 + $0x808] sm:$0xff] }
 0x43f   :  { %3280 = vmatprep.subr.mxu0 %v2167_v17  ;;  %3351 = vmatprep.subr.mxu1 %v2551_v38  ;;  %v2779_v14 = vld [vmem:[%s9086_s7 + $0x1408] sm:$0xff]  ;;  %v2394_v17 = vld [vmem:[%s9086_s7 + $0x800] sm:$0xff] }
 0x440   :  { %3281 = vmatpush1.msra.mxu0 %v2166_v18  ;;  %3352 = vmatpush1.msra.mxu1 %v2550_v20  ;;  %v2778_v38 = vld [vmem:[%s9086_s7 + $0x1400] sm:$0xff]  ;;  %v2383_v18 = vld [vmem:[%s9086_s7 + $0x7a8] sm:$0xff] }
 0x441   :  { %3282 = vmatprep.subr.mxu0 %v2155_v22  ;;  %3353 = vmatprep.subr.mxu1 %v2539_v25  ;;  %v2767_v20 = vld [vmem:[%s9086_s7 + $0x13a8] sm:$0xff]  ;;  %v2382_v22 = vld [vmem:[%s9086_s7 + $0x7a0] sm:$0xff] }
 0x442   :  { %3283 = vmatpush1.msra.mxu0 %v2154_v27  ;;  %3354 = vmatpush1.msra.mxu1 %v2538_v28  ;;  %v2766_v25 = vld [vmem:[%s9086_s7 + $0x13a0] sm:$0xff]  ;;  %v2371_v27 = vld [vmem:[%s9086_s7 + $0x748] sm:$0xff] }
 0x443   :  { %3284 = vmatprep.subr.mxu0 %v2143_v54  ;;  %3355 = vmatprep.subr.mxu1 %v2527_v30  ;;  %v2755_v28 = vld [vmem:[%s9086_s7 + $0x1348] sm:$0xff]  ;;  %v2370_v54 = vld [vmem:[%s9086_s7 + $0x740] sm:$0xff] }
 0x444   :  { %3285 = vmatpush1.msra.mxu0 %v2142_v53  ;;  %3356 = vmatpush1.msra.mxu1 %v2526_v57  ;;  %v2754_v30 = vld [vmem:[%s9086_s7 + $0x1340] sm:$0xff]  ;;  %v2359_v53 = vld [vmem:[%s9086_s7 + $0x6e8] sm:$0xff] }
 0x445   :  { %3286 = vmatprep.subr.mxu0 %v2515_v43  ;;  %3357 = vmatprep.subr.mxu1 %v2899_v9  ;;  %v2743_v57 = vld [vmem:[%s9086_s7 + $0x12e8] sm:$0xff]  ;;  %v2358_v43 = vld [vmem:[%s9086_s7 + $0x6e0] sm:$0xff] }
 0x446   :  { %3287 = vmatpush2.msra.mxu0 %v2514_v48  ;;  %3358 = vmatpush2.msra.mxu1 %v2898_v31  ;;  %v2742_v9 = vld [vmem:[%s9086_s7 + $0x12e0] sm:$0xff]  ;;  %v2347_v48 = vld [vmem:[%s9086_s7 + $0x688] sm:$0xff] }
 0x447   :  { %3288 = vmatprep.subr.mxu0 %v2503_v15  ;;  %3359 = vmatprep.subr.mxu1 %v2887_v32  ;;  %v2731_v31 = vld [vmem:[%s9086_s7 + $0x1288] sm:$0xff]  ;;  %v2346_v15 = vld [vmem:[%s9086_s7 + $0x680] sm:$0xff] }
 0x448   :  { %3289 = vmatpush2.msra.mxu0 %v2502_v33  ;;  %3360 = vmatpush2.msra.mxu1 %v2886_v8  ;;  %v2730_v32 = vld [vmem:[%s9086_s7 + $0x1280] sm:$0xff]  ;;  %v2335_v33 = vld [vmem:[%s9086_s7 + $0x628] sm:$0xff] }
 0x449   :  { %3290 = vmatprep.subr.mxu0 %v2491_v34  ;;  %3361 = vmatprep.subr.mxu1 %v2875_v11  ;;  %v2719_v8 = vld [vmem:[%s9086_s7 + $0x1228] sm:$0xff]  ;;  %v2334_v34 = vld [vmem:[%s9086_s7 + $0x620] sm:$0xff] }
 0x44a   :  { %3291 = vmatpush2.msra.mxu0 %v2490_v35  ;;  %3362 = vmatpush2.msra.mxu1 %v2874_v39  ;;  %v2718_v11 = vld [vmem:[%s9086_s7 + $0x1220] sm:$0xff]  ;;  %v2325_v35 = vld [vmem:[%s9086_s7 + $0x5d8] sm:$0xff] }
 0x44b   :  { %3292 = vmatprep.subr.mxu0 %v2479_v40  ;;  %3363 = vmatprep.subr.mxu1 %v2863_v42  ;;  %v2709_v39 = vld [vmem:[%s9086_s7 + $0x11d8] sm:$0xff]  ;;  %v2324_v40 = vld [vmem:[%s9086_s7 + $0x5d0] sm:$0xff] }
 0x44c   :  { %3293 = vmatpush2.msra.mxu0 %v2478_v44  ;;  %3364 = vmatpush2.msra.mxu1 %v2862_v45  ;;  %v2708_v42 = vld [vmem:[%s9086_s7 + $0x11d0] sm:$0xff]  ;;  %v2313_v44 = vld [vmem:[%s9086_s7 + $0x578] sm:$0xff] }
 0x44d   :  { %3294 = vmatprep.subr.mxu0 %v2467_v46  ;;  %3365 = vmatprep.subr.mxu1 %v2851_v47  ;;  %v2697_v45 = vld [vmem:[%s9086_s7 + $0x1178] sm:$0xff]  ;;  %v2312_v46 = vld [vmem:[%s9086_s7 + $0x570] sm:$0xff] }
 0x44e   :  { %3295 = vmatpush2.msra.mxu0 %v2466_v49  ;;  %3366 = vmatpush2.msra.mxu1 %v2850_v50  ;;  %v2696_v47 = vld [vmem:[%s9086_s7 + $0x1170] sm:$0xff]  ;;  %v2301_v49 = vld [vmem:[%s9086_s7 + $0x518] sm:$0xff] }
 0x44f   :  { %3296 = vmatprep.subr.mxu0 %v2455_v51  ;;  %3367 = vmatprep.subr.mxu1 %v2839_v26  ;;  %v2685_v50 = vld [vmem:[%s9086_s7 + $0x1118] sm:$0xff]  ;;  %v2300_v51 = vld [vmem:[%s9086_s7 + $0x510] sm:$0xff] }
 0x450   :  { %3297 = vmatpush2.msra.mxu0 %v2454_v55  ;;  %3368 = vmatpush2.msra.mxu1 %v2838_v16  ;;  %v2684_v26 = vld [vmem:[%s9086_s7 + $0x1110] sm:$0xff]  ;;  %v2289_v55 = vld [vmem:[%s9086_s7 + $0x4b8] sm:$0xff] }
 0x451   :  { %3298 = vmatprep.subr.mxu0 %v2443_v29  ;;  %3369 = vmatprep.subr.mxu1 %v2827_v56  ;;  %v2673_v16 = vld [vmem:[%s9086_s7 + $0x10b8] sm:$0xff]  ;;  %v2288_v29 = vld [vmem:[%s9086_s7 + $0x4b0] sm:$0xff] }
 0x452   :  { %3299 = vmatpush2.msra.mxu0 %v2442_v61  ;;  %3370 = vmatpush2.msra.mxu1 %v2826_v63  ;;  %v2672_v56 = vld [vmem:[%s9086_s7 + $0x10b0] sm:$0xff]  ;;  %v2277_v61 = vld [vmem:[%s9086_s7 + $0x458] sm:$0xff] }
 0x453   :  { %3300 = vmatprep.subr.mxu0 %v2431_v24  ;;  %3371 = vmatprep.subr.mxu1 %v2815_v23  ;;  %v2661_v63 = vld [vmem:[%s9086_s7 + $0x1058] sm:$0xff]  ;;  %v2276_v24 = vld [vmem:[%s9086_s7 + $0x450] sm:$0xff] }
 0x454   :  { %3301 = vmatpush2.msra.mxu0 %v2430_v0  ;;  %3372 = vmatpush2.msra.mxu1 %v2814_v1  ;;  %v2660_v23 = vld [vmem:[%s9086_s7 + $0x1050] sm:$0xff]  ;;  %v2265_v0 = vld [vmem:[%s9086_s7 + $0x3f8] sm:$0xff] }
 0x455   :  { %3302 = vmatprep.subr.mxu0 %v2419_v2  ;;  %3373 = vmatprep.subr.mxu1 %v2803_v4  ;;  %v2649_v1 = vld [vmem:[%s9086_s7 + $0xff8] sm:$0xff]  ;;  %v2264_v2 = vld [vmem:[%s9086_s7 + $0x3f0] sm:$0xff] }
 0x456   :  { %3303 = vmatpush2.msra.mxu0 %v2418_v5  ;;  %3374 = vmatpush2.msra.mxu1 %v2802_v6  ;;  %v2648_v4 = vld [vmem:[%s9086_s7 + $0xff0] sm:$0xff]  ;;  %v2253_v5 = vld [vmem:[%s9086_s7 + $0x398] sm:$0xff] }
 0x457   :  { %3304 = vmatprep.subr.mxu0 %v2407_v7  ;;  %3375 = vmatprep.subr.mxu1 %v2791_v10  ;;  %v2637_v6 = vld [vmem:[%s9086_s7 + $0xf98] sm:$0xff]  ;;  %v2252_v7 = vld [vmem:[%s9086_s7 + $0x390] sm:$0xff] }
 0x458   :  { %3305 = vmatpush2.msra.mxu0 %v2406_v62  ;;  %3376 = vmatpush2.msra.mxu1 %v2790_v12  ;;  %v2636_v10 = vld [vmem:[%s9086_s7 + $0xf90] sm:$0xff]  ;;  %v2241_v62 = vld [vmem:[%s9086_s7 + $0x338] sm:$0xff] }
 0x459   :  { %3306 = vmatprep.subr.mxu0 %v2395_v13  ;;  %3377 = vmatprep.subr.mxu1 %v2779_v14  ;;  %v2625_v12 = vld [vmem:[%s9086_s7 + $0xf38] sm:$0xff]  ;;  %v2240_v13 = vld [vmem:[%s9086_s7 + $0x330] sm:$0xff] }
 0x45a   :  { %3307 = vmatpush2.msra.mxu0 %v2394_v17  ;;  %3378 = vmatpush2.msra.mxu1 %v2778_v38  ;;  %v2624_v14 = vld [vmem:[%s9086_s7 + $0xf30] sm:$0xff]  ;;  %v2229_v17 = vld [vmem:[%s9086_s7 + $0x2d8] sm:$0xff] }
 0x45b   :  { %3308 = vmatprep.subr.mxu0 %v2383_v18  ;;  %3379 = vmatprep.subr.mxu1 %v2767_v20  ;;  %v2613_v38 = vld [vmem:[%s9086_s7 + $0xed8] sm:$0xff]  ;;  %v2228_v18 = vld [vmem:[%s9086_s7 + $0x2d0] sm:$0xff] }
 0x45c   :  { %3309 = vmatpush2.msra.mxu0 %v2382_v22  ;;  %3380 = vmatpush2.msra.mxu1 %v2766_v25  ;;  %v2612_v20 = vld [vmem:[%s9086_s7 + $0xed0] sm:$0xff]  ;;  %v2217_v22 = vld [vmem:[%s9086_s7 + $0x278] sm:$0xff] }
 0x45d   :  { %3310 = vmatprep.subr.mxu0 %v2371_v27  ;;  %3381 = vmatprep.subr.mxu1 %v2755_v28  ;;  %v2601_v25 = vld [vmem:[%s9086_s7 + $0xe78] sm:$0xff]  ;;  %v2216_v27 = vld [vmem:[%s9086_s7 + $0x270] sm:$0xff] }
 0x45e   :  { %3311 = vmatpush2.msra.mxu0 %v2370_v54  ;;  %3382 = vmatpush2.msra.mxu1 %v2754_v30  ;;  %v2600_v28 = vld [vmem:[%s9086_s7 + $0xe70] sm:$0xff]  ;;  %v2205_v54 = vld [vmem:[%s9086_s7 + $0x218] sm:$0xff] }
 0x45f   :  { %3312 = vmatprep.subr.mxu0 %v2359_v53  ;;  %3383 = vmatprep.subr.mxu1 %v2743_v57  ;;  %v2589_v30 = vld [vmem:[%s9086_s7 + $0xe18] sm:$0xff]  ;;  %v2204_v53 = vld [vmem:[%s9086_s7 + $0x210] sm:$0xff] }
 0x460   :  { %3313 = vmatpush2.msra.mxu0 %v2358_v43  ;;  %3384 = vmatpush2.msra.mxu1 %v2742_v9  ;;  %v2588_v57 = vld [vmem:[%s9086_s7 + $0xe10] sm:$0xff]  ;;  %v2193_v43 = vld [vmem:[%s9086_s7 + $0x1b8] sm:$0xff] }
 0x461   :  { %3314 = vmatprep.subr.mxu0 %v2347_v48  ;;  %3385 = vmatprep.subr.mxu1 %v2731_v31  ;;  %v2577_v9 = vld [vmem:[%s9086_s7 + $0xdb8] sm:$0xff]  ;;  %v2192_v48 = vld [vmem:[%s9086_s7 + $0x1b0] sm:$0xff] }
 0x462   :  { %3315 = vmatpush2.msra.mxu0 %v2346_v15  ;;  %3386 = vmatpush2.msra.mxu1 %v2730_v32  ;;  %v2576_v31 = vld [vmem:[%s9086_s7 + $0xdb0] sm:$0xff]  ;;  %v2181_v15 = vld [vmem:[%s9086_s7 + $0x158] sm:$0xff] }
 0x463   :  { %3316 = vmatprep.subr.mxu0 %v2335_v33  ;;  %3387 = vmatprep.subr.mxu1 %v2719_v8  ;;  %v2565_v32 = vld [vmem:[%s9086_s7 + $0xd58] sm:$0xff]  ;;  %v2180_v33 = vld [vmem:[%s9086_s7 + $0x150] sm:$0xff] }
 0x464   :  { %3317 = vmatpush2.msra.mxu0 %v2334_v34  ;;  %3388 = vmatpush2.msra.mxu1 %v2718_v11  ;;  %v2564_v8 = vld [vmem:[%s9086_s7 + $0xd50] sm:$0xff]  ;;  %v2169_v34 = vld [vmem:[%s9086_s7 + $0xf8] sm:$0xff] }
 0x465   :  { %3319 = vmatmul.mubr.f32.vlgmr.msra.gmra.mxu0 %v7096_v59  ;;  %3390 = vmatmul.mubr.f32.vlgmr.msra.gmra.mxu1 %v7098_v60  ;;  %v2553_v11 = vld [vmem:[%s9086_s7 + $0xcf8] sm:$0xff] }
 0x466   :  { %3396 = vmatprep.subr.mxu0 %v2325_v35  ;;  %3467 = vmatprep.subr.mxu1 %v2709_v39  ;;  %v2168_v35 = vld [vmem:[%s9086_s7 + $0xf0] sm:$0xff] }
 0x467   :  { %3397 = vmatpush1.msra.mxu0 %v2324_v40  ;;  %3460 = vmatprep.mubr.f32.mxu0 %v7092_v58  ;;  %v2552_v39 = vld [vmem:[%s9086_s7 + $0xcf0] sm:$0xff]  ;;  %v2157_v40 = vld [vmem:[%s9086_s7 + $0x98] sm:$0xff] }
 0x468   :  { %3468 = vmatpush1.msra.mxu1 %v2708_v42  ;;  %3531 = vmatprep.mubr.f32.mxu1 %v7094_v21  ;;  %v2541_v42 = vld [vmem:[%s9086_s7 + $0xc98] sm:$0xff] }
 0x469   :  { %3398 = vmatprep.subr.mxu0 %v2313_v44  ;;  %3469 = vmatprep.subr.mxu1 %v2697_v45  ;;  %v2156_v44 = vld [vmem:[%s9086_s7 + $0x90] sm:$0xff] }
 0x46a   :  { %3399 = vmatpush1.msra.mxu0 %v2312_v46  ;;  %3470 = vmatpush1.msra.mxu1 %v2696_v47  ;;  %v2540_v45 = vld [vmem:[%s9086_s7 + $0xc90] sm:$0xff]  ;;  %v2145_v46 = vld [vmem:[%s9086_s7 + $0x38] sm:$0xff] }
 0x46b   :  { %3400 = vmatprep.subr.mxu0 %v2301_v49  ;;  %3471 = vmatprep.subr.mxu1 %v2685_v50  ;;  %v2529_v47 = vld [vmem:[%s9086_s7 + $0xc38] sm:$0xff]  ;;  %v2144_v49 = vld [vmem:[%s9086_s7 + $0x30] sm:$0xff] }
 0x46c   :  { %3401 = vmatpush1.msra.mxu0 %v2300_v51  ;;  %3472 = vmatpush1.msra.mxu1 %v2684_v26  ;;  %v2528_v50 = vld [vmem:[%s9086_s7 + $0xc30] sm:$0xff]  ;;  %v2517_v51 = vld [vmem:[%s9086_s7 + $0xbd8] sm:$0xff] }
 0x46d   :  { %3402 = vmatprep.subr.mxu0 %v2289_v55  ;;  %3473 = vmatprep.subr.mxu1 %v2673_v16  ;;  %v2901_v26 = vld [vmem:[%s9086_s7 + $0x17d8] sm:$0xff]  ;;  %v2516_v55 = vld [vmem:[%s9086_s7 + $0xbd0] sm:$0xff] }
 0x46e   :  { %3403 = vmatpush1.msra.mxu0 %v2288_v29  ;;  %3474 = vmatpush1.msra.mxu1 %v2672_v56  ;;  %v2900_v16 = vld [vmem:[%s9086_s7 + $0x17d0] sm:$0xff]  ;;  %v2505_v29 = vld [vmem:[%s9086_s7 + $0xb78] sm:$0xff] }
 0x46f   :  { %3404 = vmatprep.subr.mxu0 %v2277_v61  ;;  %3475 = vmatprep.subr.mxu1 %v2661_v63  ;;  %v2889_v56 = vld [vmem:[%s9086_s7 + $0x1778] sm:$0xff]  ;;  %v2504_v61 = vld [vmem:[%s9086_s7 + $0xb70] sm:$0xff] }
 0x470   :  { %3405 = vmatpush1.msra.mxu0 %v2276_v24  ;;  %3476 = vmatpush1.msra.mxu1 %v2660_v23  ;;  %v2888_v63 = vld [vmem:[%s9086_s7 + $0x1770] sm:$0xff]  ;;  %v2493_v24 = vld [vmem:[%s9086_s7 + $0xb18] sm:$0xff] }
 0x471   :  { %3406 = vmatprep.subr.mxu0 %v2265_v0  ;;  %3477 = vmatprep.subr.mxu1 %v2649_v1  ;;  %v2877_v23 = vld [vmem:[%s9086_s7 + $0x1718] sm:$0xff]  ;;  %v2492_v0 = vld [vmem:[%s9086_s7 + $0xb10] sm:$0xff] }
 0x472   :  { %3407 = vmatpush1.msra.mxu0 %v2264_v2  ;;  %3478 = vmatpush1.msra.mxu1 %v2648_v4  ;;  %v2876_v1 = vld [vmem:[%s9086_s7 + $0x1710] sm:$0xff]  ;;  %v2481_v2 = vld [vmem:[%s9086_s7 + $0xab8] sm:$0xff] }
 0x473   :  { %3408 = vmatprep.subr.mxu0 %v2253_v5  ;;  %3479 = vmatprep.subr.mxu1 %v2637_v6  ;;  %v2865_v4 = vld [vmem:[%s9086_s7 + $0x16b8] sm:$0xff]  ;;  %v2480_v5 = vld [vmem:[%s9086_s7 + $0xab0] sm:$0xff] }
 0x474   :  { %3409 = vmatpush1.msra.mxu0 %v2252_v7  ;;  %3480 = vmatpush1.msra.mxu1 %v2636_v10  ;;  %v2864_v6 = vld [vmem:[%s9086_s7 + $0x16b0] sm:$0xff]  ;;  %v2469_v7 = vld [vmem:[%s9086_s7 + $0xa58] sm:$0xff] }
 0x475   :  { %3410 = vmatprep.subr.mxu0 %v2241_v62  ;;  %3481 = vmatprep.subr.mxu1 %v2625_v12  ;;  %v2853_v10 = vld [vmem:[%s9086_s7 + $0x1658] sm:$0xff]  ;;  %v2468_v62 = vld [vmem:[%s9086_s7 + $0xa50] sm:$0xff] }
 0x476   :  { %3411 = vmatpush1.msra.mxu0 %v2240_v13  ;;  %3482 = vmatpush1.msra.mxu1 %v2624_v14  ;;  %v2852_v12 = vld [vmem:[%s9086_s7 + $0x1650] sm:$0xff]  ;;  %v2457_v13 = vld [vmem:[%s9086_s7 + $0x9f8] sm:$0xff] }
 0x477   :  { %3412 = vmatprep.subr.mxu0 %v2229_v17  ;;  %3483 = vmatprep.subr.mxu1 %v2613_v38  ;;  %v2841_v14 = vld [vmem:[%s9086_s7 + $0x15f8] sm:$0xff]  ;;  %v2456_v17 = vld [vmem:[%s9086_s7 + $0x9f0] sm:$0xff] }
 0x478   :  { %3413 = vmatpush1.msra.mxu0 %v2228_v18  ;;  %3484 = vmatpush1.msra.mxu1 %v2612_v20  ;;  %v2840_v38 = vld [vmem:[%s9086_s7 + $0x15f0] sm:$0xff]  ;;  %v2445_v18 = vld [vmem:[%s9086_s7 + $0x998] sm:$0xff] }
 0x479   :  { %3414 = vmatprep.subr.mxu0 %v2217_v22  ;;  %3485 = vmatprep.subr.mxu1 %v2601_v25  ;;  %v2829_v20 = vld [vmem:[%s9086_s7 + $0x1598] sm:$0xff]  ;;  %v2444_v22 = vld [vmem:[%s9086_s7 + $0x990] sm:$0xff] }
 0x47a   :  { %3415 = vmatpush1.msra.mxu0 %v2216_v27  ;;  %3486 = vmatpush1.msra.mxu1 %v2600_v28  ;;  %v2828_v25 = vld [vmem:[%s9086_s7 + $0x1590] sm:$0xff]  ;;  %v2433_v27 = vld [vmem:[%s9086_s7 + $0x938] sm:$0xff] }
 0x47b   :  { %3416 = vmatprep.subr.mxu0 %v2205_v54  ;;  %3487 = vmatprep.subr.mxu1 %v2589_v30  ;;  %v2817_v28 = vld [vmem:[%s9086_s7 + $0x1538] sm:$0xff]  ;;  %v2432_v54 = vld [vmem:[%s9086_s7 + $0x930] sm:$0xff] }
 0x47c   :  { %3417 = vmatpush1.msra.mxu0 %v2204_v53  ;;  %3488 = vmatpush1.msra.mxu1 %v2588_v57  ;;  %v2816_v30 = vld [vmem:[%s9086_s7 + $0x1530] sm:$0xff]  ;;  %v2421_v53 = vld [vmem:[%s9086_s7 + $0x8d8] sm:$0xff] }
 0x47d   :  { %3418 = vmatprep.subr.mxu0 %v2193_v43  ;;  %3489 = vmatprep.subr.mxu1 %v2577_v9  ;;  %v2805_v57 = vld [vmem:[%s9086_s7 + $0x14d8] sm:$0xff]  ;;  %v2420_v43 = vld [vmem:[%s9086_s7 + $0x8d0] sm:$0xff] }
 0x47e   :  { %3419 = vmatpush1.msra.mxu0 %v2192_v48  ;;  %3490 = vmatpush1.msra.mxu1 %v2576_v31  ;;  %v2804_v9 = vld [vmem:[%s9086_s7 + $0x14d0] sm:$0xff]  ;;  %v2409_v48 = vld [vmem:[%s9086_s7 + $0x878] sm:$0xff] }
 0x47f   :  { %3420 = vmatprep.subr.mxu0 %v2181_v15  ;;  %3491 = vmatprep.subr.mxu1 %v2565_v32  ;;  %v2793_v31 = vld [vmem:[%s9086_s7 + $0x1478] sm:$0xff]  ;;  %v2408_v15 = vld [vmem:[%s9086_s7 + $0x870] sm:$0xff] }
 0x480   :  { %3421 = vmatpush1.msra.mxu0 %v2180_v33  ;;  %3492 = vmatpush1.msra.mxu1 %v2564_v8  ;;  %v2792_v32 = vld [vmem:[%s9086_s7 + $0x1470] sm:$0xff]  ;;  %v2397_v33 = vld [vmem:[%s9086_s7 + $0x818] sm:$0xff] }
 0x481   :  { %3422 = vmatprep.subr.mxu0 %v2169_v34  ;;  %3493 = vmatprep.subr.mxu1 %v2553_v11  ;;  %v2781_v8 = vld [vmem:[%s9086_s7 + $0x1418] sm:$0xff]  ;;  %v2396_v34 = vld [vmem:[%s9086_s7 + $0x810] sm:$0xff] }
 0x482   :  { %3423 = vmatpush1.msra.mxu0 %v2168_v35  ;;  %3494 = vmatpush1.msra.mxu1 %v2552_v39  ;;  %v2780_v11 = vld [vmem:[%s9086_s7 + $0x1410] sm:$0xff]  ;;  %v2385_v35 = vld [vmem:[%s9086_s7 + $0x7b8] sm:$0xff] }
 0x483   :  { %3424 = vmatprep.subr.mxu0 %v2157_v40  ;;  %3495 = vmatprep.subr.mxu1 %v2541_v42  ;;  %v2769_v39 = vld [vmem:[%s9086_s7 + $0x13b8] sm:$0xff]  ;;  %v2384_v40 = vld [vmem:[%s9086_s7 + $0x7b0] sm:$0xff] }
 0x484   :  { %3425 = vmatpush1.msra.mxu0 %v2156_v44  ;;  %3496 = vmatpush1.msra.mxu1 %v2540_v45  ;;  %v2768_v42 = vld [vmem:[%s9086_s7 + $0x13b0] sm:$0xff]  ;;  %v2373_v44 = vld [vmem:[%s9086_s7 + $0x758] sm:$0xff] }
 0x485   :  { %3426 = vmatprep.subr.mxu0 %v2145_v46  ;;  %3497 = vmatprep.subr.mxu1 %v2529_v47  ;;  %v2757_v45 = vld [vmem:[%s9086_s7 + $0x1358] sm:$0xff]  ;;  %v2372_v46 = vld [vmem:[%s9086_s7 + $0x750] sm:$0xff] }
 0x486   :  { %3427 = vmatpush1.msra.mxu0 %v2144_v49  ;;  %3498 = vmatpush1.msra.mxu1 %v2528_v50  ;;  %v2756_v47 = vld [vmem:[%s9086_s7 + $0x1350] sm:$0xff]  ;;  %v2361_v49 = vld [vmem:[%s9086_s7 + $0x6f8] sm:$0xff] }
 0x487   :  { %3428 = vmatprep.subr.mxu0 %v2517_v51  ;;  %3499 = vmatprep.subr.mxu1 %v2901_v26  ;;  %v2745_v50 = vld [vmem:[%s9086_s7 + $0x12f8] sm:$0xff]  ;;  %v2360_v51 = vld [vmem:[%s9086_s7 + $0x6f0] sm:$0xff] }
 0x488   :  { %3429 = vmatpush2.msra.mxu0 %v2516_v55  ;;  %3500 = vmatpush2.msra.mxu1 %v2900_v16  ;;  %v2744_v26 = vld [vmem:[%s9086_s7 + $0x12f0] sm:$0xff]  ;;  %v2349_v55 = vld [vmem:[%s9086_s7 + $0x698] sm:$0xff] }
 0x489   :  { %3430 = vmatprep.subr.mxu0 %v2505_v29  ;;  %3501 = vmatprep.subr.mxu1 %v2889_v56  ;;  %v2733_v16 = vld [vmem:[%s9086_s7 + $0x1298] sm:$0xff]  ;;  %v2348_v29 = vld [vmem:[%s9086_s7 + $0x690] sm:$0xff] }
 0x48a   :  { %3431 = vmatpush2.msra.mxu0 %v2504_v61  ;;  %3502 = vmatpush2.msra.mxu1 %v2888_v63  ;;  %v2732_v56 = vld [vmem:[%s9086_s7 + $0x1290] sm:$0xff]  ;;  %v2337_v61 = vld [vmem:[%s9086_s7 + $0x638] sm:$0xff] }
 0x48b   :  { %3432 = vmatprep.subr.mxu0 %v2493_v24  ;;  %3503 = vmatprep.subr.mxu1 %v2877_v23  ;;  %v2721_v63 = vld [vmem:[%s9086_s7 + $0x1238] sm:$0xff]  ;;  %v2336_v24 = vld [vmem:[%s9086_s7 + $0x630] sm:$0xff] }
 0x48c   :  { %3433 = vmatpush2.msra.mxu0 %v2492_v0  ;;  %3504 = vmatpush2.msra.mxu1 %v2876_v1  ;;  %v2720_v23 = vld [vmem:[%s9086_s7 + $0x1230] sm:$0xff]  ;;  %v2327_v0 = vld [vmem:[%s9086_s7 + $0x5e8] sm:$0xff] }
 0x48d   :  { %3434 = vmatprep.subr.mxu0 %v2481_v2  ;;  %3505 = vmatprep.subr.mxu1 %v2865_v4  ;;  %v2711_v1 = vld [vmem:[%s9086_s7 + $0x11e8] sm:$0xff]  ;;  %v2326_v2 = vld [vmem:[%s9086_s7 + $0x5e0] sm:$0xff] }
 0x48e   :  { %3435 = vmatpush2.msra.mxu0 %v2480_v5  ;;  %3506 = vmatpush2.msra.mxu1 %v2864_v6  ;;  %v2710_v4 = vld [vmem:[%s9086_s7 + $0x11e0] sm:$0xff]  ;;  %v2315_v5 = vld [vmem:[%s9086_s7 + $0x588] sm:$0xff] }
 0x48f   :  { %3436 = vmatprep.subr.mxu0 %v2469_v7  ;;  %3507 = vmatprep.subr.mxu1 %v2853_v10  ;;  %v2699_v6 = vld [vmem:[%s9086_s7 + $0x1188] sm:$0xff]  ;;  %v2314_v7 = vld [vmem:[%s9086_s7 + $0x580] sm:$0xff] }
 0x490   :  { %3437 = vmatpush2.msra.mxu0 %v2468_v62  ;;  %3508 = vmatpush2.msra.mxu1 %v2852_v12  ;;  %v2698_v10 = vld [vmem:[%s9086_s7 + $0x1180] sm:$0xff]  ;;  %v2303_v62 = vld [vmem:[%s9086_s7 + $0x528] sm:$0xff] }
 0x491   :  { %3438 = vmatprep.subr.mxu0 %v2457_v13  ;;  %3509 = vmatprep.subr.mxu1 %v2841_v14  ;;  %v2687_v12 = vld [vmem:[%s9086_s7 + $0x1128] sm:$0xff]  ;;  %v2302_v13 = vld [vmem:[%s9086_s7 + $0x520] sm:$0xff] }
 0x492   :  { %3439 = vmatpush2.msra.mxu0 %v2456_v17  ;;  %3510 = vmatpush2.msra.mxu1 %v2840_v38  ;;  %v2686_v14 = vld [vmem:[%s9086_s7 + $0x1120] sm:$0xff]  ;;  %v2291_v17 = vld [vmem:[%s9086_s7 + $0x4c8] sm:$0xff] }
 0x493   :  { %3440 = vmatprep.subr.mxu0 %v2445_v18  ;;  %3511 = vmatprep.subr.mxu1 %v2829_v20  ;;  %v2675_v38 = vld [vmem:[%s9086_s7 + $0x10c8] sm:$0xff]  ;;  %v2290_v18 = vld [vmem:[%s9086_s7 + $0x4c0] sm:$0xff] }
 0x494   :  { %3441 = vmatpush2.msra.mxu0 %v2444_v22  ;;  %3512 = vmatpush2.msra.mxu1 %v2828_v25  ;;  %v2674_v20 = vld [vmem:[%s9086_s7 + $0x10c0] sm:$0xff]  ;;  %v2279_v22 = vld [vmem:[%s9086_s7 + $0x468] sm:$0xff] }
 0x495   :  { %3442 = vmatprep.subr.mxu0 %v2433_v27  ;;  %3513 = vmatprep.subr.mxu1 %v2817_v28  ;;  %v2663_v25 = vld [vmem:[%s9086_s7 + $0x1068] sm:$0xff]  ;;  %v2278_v27 = vld [vmem:[%s9086_s7 + $0x460] sm:$0xff] }
 0x496   :  { %3443 = vmatpush2.msra.mxu0 %v2432_v54  ;;  %3514 = vmatpush2.msra.mxu1 %v2816_v30  ;;  %v2662_v28 = vld [vmem:[%s9086_s7 + $0x1060] sm:$0xff]  ;;  %v2267_v54 = vld [vmem:[%s9086_s7 + $0x408] sm:$0xff] }
 0x497   :  { %3444 = vmatprep.subr.mxu0 %v2421_v53  ;;  %3515 = vmatprep.subr.mxu1 %v2805_v57  ;;  %v2651_v30 = vld [vmem:[%s9086_s7 + $0x1008] sm:$0xff]  ;;  %v2266_v53 = vld [vmem:[%s9086_s7 + $0x400] sm:$0xff] }
 0x498   :  { %3445 = vmatpush2.msra.mxu0 %v2420_v43  ;;  %3516 = vmatpush2.msra.mxu1 %v2804_v9  ;;  %v2650_v57 = vld [vmem:[%s9086_s7 + $0x1000] sm:$0xff]  ;;  %v2255_v43 = vld [vmem:[%s9086_s7 + $0x3a8] sm:$0xff] }
 0x499   :  { %3446 = vmatprep.subr.mxu0 %v2409_v48  ;;  %3517 = vmatprep.subr.mxu1 %v2793_v31  ;;  %v2639_v9 = vld [vmem:[%s9086_s7 + $0xfa8] sm:$0xff]  ;;  %v2254_v48 = vld [vmem:[%s9086_s7 + $0x3a0] sm:$0xff] }
 0x49a   :  { %3447 = vmatpush2.msra.mxu0 %v2408_v15  ;;  %3518 = vmatpush2.msra.mxu1 %v2792_v32  ;;  %v2638_v31 = vld [vmem:[%s9086_s7 + $0xfa0] sm:$0xff]  ;;  %v2243_v15 = vld [vmem:[%s9086_s7 + $0x348] sm:$0xff] }
 0x49b   :  { %3448 = vmatprep.subr.mxu0 %v2397_v33  ;;  %3519 = vmatprep.subr.mxu1 %v2781_v8  ;;  %v2627_v32 = vld [vmem:[%s9086_s7 + $0xf48] sm:$0xff]  ;;  %v2242_v33 = vld [vmem:[%s9086_s7 + $0x340] sm:$0xff] }
 0x49c   :  { %3449 = vmatpush2.msra.mxu0 %v2396_v34  ;;  %3520 = vmatpush2.msra.mxu1 %v2780_v11  ;;  %v2626_v8 = vld [vmem:[%s9086_s7 + $0xf40] sm:$0xff]  ;;  %v2231_v34 = vld [vmem:[%s9086_s7 + $0x2e8] sm:$0xff] }
 0x49d   :  { %3450 = vmatprep.subr.mxu0 %v2385_v35  ;;  %3521 = vmatprep.subr.mxu1 %v2769_v39  ;;  %v2615_v11 = vld [vmem:[%s9086_s7 + $0xee8] sm:$0xff]  ;;  %v2230_v35 = vld [vmem:[%s9086_s7 + $0x2e0] sm:$0xff] }
 0x49e   :  { %3451 = vmatpush2.msra.mxu0 %v2384_v40  ;;  %3522 = vmatpush2.msra.mxu1 %v2768_v42  ;;  %v2614_v39 = vld [vmem:[%s9086_s7 + $0xee0] sm:$0xff]  ;;  %v2219_v40 = vld [vmem:[%s9086_s7 + $0x288] sm:$0xff] }
 0x49f   :  { %3452 = vmatprep.subr.mxu0 %v2373_v44  ;;  %3523 = vmatprep.subr.mxu1 %v2757_v45  ;;  %v2603_v42 = vld [vmem:[%s9086_s7 + $0xe88] sm:$0xff]  ;;  %v2218_v44 = vld [vmem:[%s9086_s7 + $0x280] sm:$0xff] }
 0x4a0   :  { %3453 = vmatpush2.msra.mxu0 %v2372_v46  ;;  %3524 = vmatpush2.msra.mxu1 %v2756_v47  ;;  %v2602_v45 = vld [vmem:[%s9086_s7 + $0xe80] sm:$0xff]  ;;  %v2207_v46 = vld [vmem:[%s9086_s7 + $0x228] sm:$0xff] }
 0x4a1   :  { %3454 = vmatprep.subr.mxu0 %v2361_v49  ;;  %3525 = vmatprep.subr.mxu1 %v2745_v50  ;;  %v2591_v47 = vld [vmem:[%s9086_s7 + $0xe28] sm:$0xff]  ;;  %v2206_v49 = vld [vmem:[%s9086_s7 + $0x220] sm:$0xff] }
 0x4a2   :  { %3455 = vmatpush2.msra.mxu0 %v2360_v51  ;;  %3526 = vmatpush2.msra.mxu1 %v2744_v26  ;;  %v2590_v50 = vld [vmem:[%s9086_s7 + $0xe20] sm:$0xff]  ;;  %v2195_v51 = vld [vmem:[%s9086_s7 + $0x1c8] sm:$0xff] }
 0x4a3   :  { %3456 = vmatprep.subr.mxu0 %v2349_v55  ;;  %3527 = vmatprep.subr.mxu1 %v2733_v16  ;;  %v2579_v26 = vld [vmem:[%s9086_s7 + $0xdc8] sm:$0xff]  ;;  %v2194_v55 = vld [vmem:[%s9086_s7 + $0x1c0] sm:$0xff] }
 0x4a4   :  { %3457 = vmatpush2.msra.mxu0 %v2348_v29  ;;  %3528 = vmatpush2.msra.mxu1 %v2732_v56  ;;  %v2578_v16 = vld [vmem:[%s9086_s7 + $0xdc0] sm:$0xff]  ;;  %v2183_v29 = vld [vmem:[%s9086_s7 + $0x168] sm:$0xff] }
 0x4a5   :  { %3458 = vmatprep.subr.mxu0 %v2337_v61  ;;  %3529 = vmatprep.subr.mxu1 %v2721_v63  ;;  %v2567_v56 = vld [vmem:[%s9086_s7 + $0xd68] sm:$0xff]  ;;  %v2182_v61 = vld [vmem:[%s9086_s7 + $0x160] sm:$0xff] }
 0x4a6   :  { %3459 = vmatpush2.msra.mxu0 %v2336_v24  ;;  %3530 = vmatpush2.msra.mxu1 %v2720_v23  ;;  %v2566_v63 = vld [vmem:[%s9086_s7 + $0xd60] sm:$0xff]  ;;  %v2171_v24 = vld [vmem:[%s9086_s7 + $0x108] sm:$0xff] }
 0x4a7   :  { %3461 = vmatmul.mubr.f32.vlgmr.msra.gmra.mxu0 %v7096_v59  ;;  %3532 = vmatmul.mubr.f32.vlgmr.msra.gmra.mxu1 %v7098_v60  ;;  %v2555_v23 = vld [vmem:[%s9086_s7 + $0xd08] sm:$0xff] }
 0x4a8   :  { %3538 = vmatprep.subr.mxu0 %v2327_v0  ;;  %3609 = vmatprep.subr.mxu1 %v2711_v1  ;;  %v2170_v0 = vld [vmem:[%s9086_s7 + $0x100] sm:$0xff] }
 0x4a9   :  { %3539 = vmatpush1.msra.mxu0 %v2326_v2  ;;  %3602 = vmatprep.mubr.f32.mxu0 %v7092_v58  ;;  %v2554_v1 = vld [vmem:[%s9086_s7 + $0xd00] sm:$0xff]  ;;  %v2159_v2 = vld [vmem:[%s9086_s7 + $0xa8] sm:$0xff] }
 0x4aa   :  { %3610 = vmatpush1.msra.mxu1 %v2710_v4  ;;  %3673 = vmatprep.mubr.f32.mxu1 %v7094_v21  ;;  %v2543_v4 = vld [vmem:[%s9086_s7 + $0xca8] sm:$0xff] }
 0x4ab   :  { %3540 = vmatprep.subr.mxu0 %v2315_v5  ;;  %3611 = vmatprep.subr.mxu1 %v2699_v6  ;;  %v2158_v5 = vld [vmem:[%s9086_s7 + $0xa0] sm:$0xff] }
 0x4ac   :  { %3541 = vmatpush1.msra.mxu0 %v2314_v7  ;;  %3612 = vmatpush1.msra.mxu1 %v2698_v10  ;;  %v2542_v6 = vld [vmem:[%s9086_s7 + $0xca0] sm:$0xff]  ;;  %v2147_v7 = vld [vmem:[%s9086_s7 + $0x48] sm:$0xff] }
 0x4ad   :  { %3542 = vmatprep.subr.mxu0 %v2303_v62  ;;  %3613 = vmatprep.subr.mxu1 %v2687_v12  ;;  %v2531_v10 = vld [vmem:[%s9086_s7 + $0xc48] sm:$0xff]  ;;  %v2146_v62 = vld [vmem:[%s9086_s7 + $0x40] sm:$0xff] }
 0x4ae   :  { %3543 = vmatpush1.msra.mxu0 %v2302_v13  ;;  %3614 = vmatpush1.msra.mxu1 %v2686_v14  ;;  %v2530_v12 = vld [vmem:[%s9086_s7 + $0xc40] sm:$0xff]  ;;  %v2519_v13 = vld [vmem:[%s9086_s7 + $0xbe8] sm:$0xff] }
 0x4af   :  { %3544 = vmatprep.subr.mxu0 %v2291_v17  ;;  %3615 = vmatprep.subr.mxu1 %v2675_v38  ;;  %v2903_v14 = vld [vmem:[%s9086_s7 + $0x17e8] sm:$0xff]  ;;  %v2518_v17 = vld [vmem:[%s9086_s7 + $0xbe0] sm:$0xff] }
 0x4b0   :  { %3545 = vmatpush1.msra.mxu0 %v2290_v18  ;;  %3616 = vmatpush1.msra.mxu1 %v2674_v20  ;;  %v2902_v38 = vld [vmem:[%s9086_s7 + $0x17e0] sm:$0xff]  ;;  %v2507_v18 = vld [vmem:[%s9086_s7 + $0xb88] sm:$0xff] }
 0x4b1   :  { %3546 = vmatprep.subr.mxu0 %v2279_v22  ;;  %3617 = vmatprep.subr.mxu1 %v2663_v25  ;;  %v2891_v20 = vld [vmem:[%s9086_s7 + $0x1788] sm:$0xff]  ;;  %v2506_v22 = vld [vmem:[%s9086_s7 + $0xb80] sm:$0xff] }
 0x4b2   :  { %3547 = vmatpush1.msra.mxu0 %v2278_v27  ;;  %3618 = vmatpush1.msra.mxu1 %v2662_v28  ;;  %v2890_v25 = vld [vmem:[%s9086_s7 + $0x1780] sm:$0xff]  ;;  %v2495_v27 = vld [vmem:[%s9086_s7 + $0xb28] sm:$0xff] }
 0x4b3   :  { %3548 = vmatprep.subr.mxu0 %v2267_v54  ;;  %3619 = vmatprep.subr.mxu1 %v2651_v30  ;;  %v2879_v28 = vld [vmem:[%s9086_s7 + $0x1728] sm:$0xff]  ;;  %v2494_v54 = vld [vmem:[%s9086_s7 + $0xb20] sm:$0xff] }
 0x4b4   :  { %3549 = vmatpush1.msra.mxu0 %v2266_v53  ;;  %3620 = vmatpush1.msra.mxu1 %v2650_v57  ;;  %v2878_v30 = vld [vmem:[%s9086_s7 + $0x1720] sm:$0xff]  ;;  %v2483_v53 = vld [vmem:[%s9086_s7 + $0xac8] sm:$0xff] }
 0x4b5   :  { %3550 = vmatprep.subr.mxu0 %v2255_v43  ;;  %3621 = vmatprep.subr.mxu1 %v2639_v9  ;;  %v2867_v57 = vld [vmem:[%s9086_s7 + $0x16c8] sm:$0xff]  ;;  %v2482_v43 = vld [vmem:[%s9086_s7 + $0xac0] sm:$0xff] }
 0x4b6   :  { %3551 = vmatpush1.msra.mxu0 %v2254_v48  ;;  %3622 = vmatpush1.msra.mxu1 %v2638_v31  ;;  %v2866_v9 = vld [vmem:[%s9086_s7 + $0x16c0] sm:$0xff]  ;;  %v2471_v48 = vld [vmem:[%s9086_s7 + $0xa68] sm:$0xff] }
 0x4b7   :  { %3552 = vmatprep.subr.mxu0 %v2243_v15  ;;  %3623 = vmatprep.subr.mxu1 %v2627_v32  ;;  %v2855_v31 = vld [vmem:[%s9086_s7 + $0x1668] sm:$0xff]  ;;  %v2470_v15 = vld [vmem:[%s9086_s7 + $0xa60] sm:$0xff] }
 0x4b8   :  { %3553 = vmatpush1.msra.mxu0 %v2242_v33  ;;  %3624 = vmatpush1.msra.mxu1 %v2626_v8  ;;  %v2854_v32 = vld [vmem:[%s9086_s7 + $0x1660] sm:$0xff]  ;;  %v2459_v33 = vld [vmem:[%s9086_s7 + $0xa08] sm:$0xff] }
 0x4b9   :  { %3554 = vmatprep.subr.mxu0 %v2231_v34  ;;  %3625 = vmatprep.subr.mxu1 %v2615_v11  ;;  %v2843_v8 = vld [vmem:[%s9086_s7 + $0x1608] sm:$0xff]  ;;  %v2458_v34 = vld [vmem:[%s9086_s7 + $0xa00] sm:$0xff] }
 0x4ba   :  { %3555 = vmatpush1.msra.mxu0 %v2230_v35  ;;  %3626 = vmatpush1.msra.mxu1 %v2614_v39  ;;  %v2842_v11 = vld [vmem:[%s9086_s7 + $0x1600] sm:$0xff]  ;;  %v2447_v35 = vld [vmem:[%s9086_s7 + $0x9a8] sm:$0xff] }
 0x4bb   :  { %3556 = vmatprep.subr.mxu0 %v2219_v40  ;;  %3627 = vmatprep.subr.mxu1 %v2603_v42  ;;  %v2831_v39 = vld [vmem:[%s9086_s7 + $0x15a8] sm:$0xff]  ;;  %v2446_v40 = vld [vmem:[%s9086_s7 + $0x9a0] sm:$0xff] }
 0x4bc   :  { %3557 = vmatpush1.msra.mxu0 %v2218_v44  ;;  %3628 = vmatpush1.msra.mxu1 %v2602_v45  ;;  %v2830_v42 = vld [vmem:[%s9086_s7 + $0x15a0] sm:$0xff]  ;;  %v2435_v44 = vld [vmem:[%s9086_s7 + $0x948] sm:$0xff] }
 0x4bd   :  { %3558 = vmatprep.subr.mxu0 %v2207_v46  ;;  %3629 = vmatprep.subr.mxu1 %v2591_v47  ;;  %v2819_v45 = vld [vmem:[%s9086_s7 + $0x1548] sm:$0xff]  ;;  %v2434_v46 = vld [vmem:[%s9086_s7 + $0x940] sm:$0xff] }
 0x4be   :  { %3559 = vmatpush1.msra.mxu0 %v2206_v49  ;;  %3630 = vmatpush1.msra.mxu1 %v2590_v50  ;;  %v2818_v47 = vld [vmem:[%s9086_s7 + $0x1540] sm:$0xff]  ;;  %v2423_v49 = vld [vmem:[%s9086_s7 + $0x8e8] sm:$0xff] }
 0x4bf   :  { %3560 = vmatprep.subr.mxu0 %v2195_v51  ;;  %3631 = vmatprep.subr.mxu1 %v2579_v26  ;;  %v2807_v50 = vld [vmem:[%s9086_s7 + $0x14e8] sm:$0xff]  ;;  %v2422_v51 = vld [vmem:[%s9086_s7 + $0x8e0] sm:$0xff] }
 0x4c0   :  { %3561 = vmatpush1.msra.mxu0 %v2194_v55  ;;  %3632 = vmatpush1.msra.mxu1 %v2578_v16  ;;  %v2806_v26 = vld [vmem:[%s9086_s7 + $0x14e0] sm:$0xff]  ;;  %v2411_v55 = vld [vmem:[%s9086_s7 + $0x888] sm:$0xff] }
 0x4c1   :  { %3562 = vmatprep.subr.mxu0 %v2183_v29  ;;  %3633 = vmatprep.subr.mxu1 %v2567_v56  ;;  %v2795_v16 = vld [vmem:[%s9086_s7 + $0x1488] sm:$0xff]  ;;  %v3036_v29 = vpop.f32.mrf.mxu0  ;;  %v2410_v56 = vld [vmem:[%s9086_s7 + $0x880] sm:$0xff] }
 0x4c2   :  { %3563 = vmatpush1.msra.mxu0 %v2182_v61  ;;  %3634 = vmatpush1.msra.mxu1 %v2566_v63  ;;  %v2794_v61 = vld [vmem:[%s9086_s7 + $0x1480] sm:$0xff]  ;;  %v2399_v63 = vld [vmem:[%s9086_s7 + $0x828] sm:$0xff] }
 0x4c3   :  { %3564 = vmatprep.subr.mxu0 %v2171_v24  ;;  %3635 = vmatprep.subr.mxu1 %v2555_v23  ;;  %v2783_v24 = vld [vmem:[%s9086_s7 + $0x1428] sm:$0xff]  ;;  %v8585_v23 = vld [vmem:[%s9089_s8] sm:$0xff] }
 0x4c4   :  { %3565 = vmatpush1.msra.mxu0 %v2170_v0  ;;  %3636 = vmatpush1.msra.mxu1 %v2554_v1  ;;  %v2398_v0 = vld [vmem:[%s9086_s7 + $0x820] sm:$0xff] }
 0x4c5   :  { %3566 = vmatprep.subr.mxu0 %v2159_v2  ;;  %3637 = vmatprep.subr.mxu1 %v2543_v4  ;;  %v2782_v1 = vld [vmem:[%s9086_s7 + $0x1420] sm:$0xff]  ;;  %v2917_v2 = vrot.slane %v8585_v23, %v6286_v19  ;;  %v2387_v4 = vld [vmem:[%s9086_s7 + $0x7c8] sm:$0xff] }
 0x4c6   :  { %3567 = vmatpush1.msra.mxu0 %v2158_v5  ;;  %3638 = vmatpush1.msra.mxu1 %v2542_v6  ;;  %v2771_v5 = vld [vmem:[%s9086_s7 + $0x13c8] sm:$0xff]  ;;  %v3107_v6 = vpop.f32.mrf.mxu1 }
 0x4c7   :  { %3568 = vmatprep.subr.mxu0 %v2147_v7  ;;  %3639 = vmatprep.subr.mxu1 %v2531_v10  ;;  %v3038_v7 = vpop.f32.mrf.mxu0  ;;  %v2386_v10 = vld [vmem:[%s9086_s7 + $0x7c0] sm:$0xff] }
 0x4c8   :  { %3569 = vmatpush1.msra.mxu0 %v2146_v62  ;;  %3640 = vmatpush1.msra.mxu1 %v2530_v12  ;;  %v2770_v62 = vld [vmem:[%s9086_s7 + $0x13c0] sm:$0xff]  ;;  %v2913_v12 = vrot.slane %v8585_v23, %v6480_v37 }
 0x4c9   :  { %3570 = vmatprep.subr.mxu0 %v2519_v13  ;;  %3641 = vmatprep.subr.mxu1 %v2903_v14  ;;  %v2375_v13 = vld [vmem:[%s9086_s7 + $0x768] sm:$0xff] }
 0x4ca   :  { %3571 = vmatpush2.msra.mxu0 %v2518_v17  ;;  %3642 = vmatpush2.msra.mxu1 %v2902_v38  ;;  %v2759_v14 = vld [vmem:[%s9086_s7 + $0x1368] sm:$0xff]  ;;  %v2374_v17 = vld [vmem:[%s9086_s7 + $0x760] sm:$0xff] }
 0x4cb   :  { %3572 = vmatprep.subr.mxu0 %v2507_v18  ;;  %3643 = vmatprep.subr.mxu1 %v2891_v20  ;;  %v2758_v38 = vld [vmem:[%s9086_s7 + $0x1360] sm:$0xff]  ;;  %v3039_v18 = vadd.f32 %v3038_v7, %v2917_v2  ;;  %v2363_v20 = vld [vmem:[%s9086_s7 + $0x708] sm:$0xff]  ;;  %v2676_v7 = vld [vmem:[%s9086_s7 + $0x10d0] sm:$0xff] }
 0x4cc   :  { %3573 = vmatpush2.msra.mxu0 %v2506_v22  ;;  %3644 = vmatpush2.msra.mxu1 %v2890_v25  ;;  %v2747_v22 = vld [vmem:[%s9086_s7 + $0x1308] sm:$0xff]  ;;  %v2921_v25 = vrot.slane %v8585_v23, %v6641_v36 }
 0x4cd   :  { %3574 = vmatprep.subr.mxu0 %v2495_v27  ;;  %3645 = vmatprep.subr.mxu1 %v2879_v28  ;;  %v3109_v27 = vpop.f32.mrf.mxu1  ;;  %v2362_v28 = vld [vmem:[%s9086_s7 + $0x700] sm:$0xff] }
 0x4ce   :  { %3575 = vmatpush2.msra.mxu0 %v2494_v54  ;;  %3646 = vmatpush2.msra.mxu1 %v2878_v30  ;;  %v2746_v54 = vld [vmem:[%s9086_s7 + $0x1300] sm:$0xff]  ;;  %v3037_v30 = vadd.f32 %v3036_v29, %v2913_v12  ;;  %v2701_v29 = vld [vmem:[%s9086_s7 + $0x1198] sm:$0xff]  ;;  %v2280_v12 = vld [vmem:[%s9086_s7 + $0x470] sm:$0xff] }
 0x4cf   :  { %3576 = vmatprep.subr.mxu0 %v2483_v53  ;;  %3647 = vmatprep.subr.mxu1 %v2867_v57  ;;  %v2351_v53 = vld [vmem:[%s9086_s7 + $0x6a8] sm:$0xff] }
 0x4d0   :  { %3577 = vmatpush2.msra.mxu0 %v2482_v43  ;;  %3648 = vmatpush2.msra.mxu1 %v2866_v9  ;;  %v2735_v57 = vld [vmem:[%s9086_s7 + $0x12a8] sm:$0xff]  ;;  %v2925_v43 = vrot.slane %v8585_v23, %v6644_v3  ;;  %v2350_v9 = vld [vmem:[%s9086_s7 + $0x6a0] sm:$0xff] }
 0x4d1   :  { %3578 = vmatprep.subr.mxu0 %v2471_v48  ;;  %3649 = vmatprep.subr.mxu1 %v2855_v31  ;;  %v2734_v48 = vld [vmem:[%s9086_s7 + $0x12a0] sm:$0xff] }
 0x4d2   :  { %3579 = vmatpush2.msra.mxu0 %v2470_v15  ;;  %3650 = vmatpush2.msra.mxu1 %v2854_v32  ;;  %v3110_v32 = vadd.f32 %v3109_v27, %v3039_v18  ;;  %v2652_v18 = vld [vmem:[%s9086_s7 + $0x1010] sm:$0xff] }
 0x4d3   :  { %3580 = vmatprep.subr.mxu0 %v2459_v33  ;;  %3651 = vmatprep.subr.mxu1 %v2843_v8  ;;  %v2339_v33 = vld [vmem:[%s9086_s7 + $0x648] sm:$0xff]  ;;  %v2640_v27 = vld [vmem:[%s9086_s7 + $0xfb0] sm:$0xff] }
 0x4d4   :  { %3581 = vmatpush2.msra.mxu0 %v2458_v34  ;;  %3652 = vmatpush2.msra.mxu1 %v2842_v11  ;;  %v2723_v8 = vld [vmem:[%s9086_s7 + $0x1248] sm:$0xff]  ;;  %v2338_v11 = vld [vmem:[%s9086_s7 + $0x640] sm:$0xff] }
 0x4d5   :  { %3582 = vmatprep.subr.mxu0 %v2447_v35  ;;  %3653 = vmatprep.subr.mxu1 %v2831_v39  ;;  %v2722_v35 = vld [vmem:[%s9086_s7 + $0x1240] sm:$0xff] }
 0x4d6   :  { %3583 = vmatpush2.msra.mxu0 %v2446_v40  ;;  %3654 = vmatpush2.msra.mxu1 %v2830_v42  ;;  %v3108_v40 = vadd.f32 %v3107_v6, %v3037_v30  ;;  %v2292_v6 = vld [vmem:[%s9086_s7 + $0x4d0] sm:$0xff] }
 0x4d7   :  { %3584 = vmatprep.subr.mxu0 %v2435_v44  ;;  %3655 = vmatprep.subr.mxu1 %v2819_v45  ;;  %v2329_v44 = vld [vmem:[%s9086_s7 + $0x5f8] sm:$0xff]  ;;  %v2244_v30 = vld [vmem:[%s9086_s7 + $0x350] sm:$0xff] }
 0x4d8   :  { %3585 = vmatpush2.msra.mxu0 %v2434_v46  ;;  %3656 = vmatpush2.msra.mxu1 %v2818_v47  ;;  %v2713_v45 = vld [vmem:[%s9086_s7 + $0x11f8] sm:$0xff]  ;;  %v3834_v47 = vcombine.low %v3108_v40, %v3110_v32  ;;  %v2220_v32 = vld [vmem:[%s9086_s7 + $0x290] sm:$0xff] }
 0x4d9   :  { %3586 = vmatprep.subr.mxu0 %v2423_v49  ;;  %3657 = vmatprep.subr.mxu1 %v2807_v50  ;;  %v2328_v50 = vld [vmem:[%s9086_s7 + $0x5f0] sm:$0xff]  ;;  %v2581_v40 = vld [vmem:[%s9086_s7 + $0xdd8] sm:$0xff] }
 0x4da   :  { %3587 = vmatpush2.msra.mxu0 %v2422_v51  ;;  %3658 = vmatpush2.msra.mxu1 %v2806_v26  ;;  %v2712_v26 = vld [vmem:[%s9086_s7 + $0x11f0] sm:$0xff] }
 0x4db   :  { %3588 = vmatprep.subr.mxu0 %v2411_v55  ;;  %3659 = vmatprep.subr.mxu1 %v2795_v16  ;;  %v2317_v16 = vld [vmem:[%s9086_s7 + $0x598] sm:$0xff] }
 0x4dc   :  { %3589 = vmatpush2.msra.mxu0 %v2410_v56  ;;  %3660 = vmatpush2.msra.mxu1 %v2794_v61  ;;  %v2316_v56 = vld [vmem:[%s9086_s7 + $0x590] sm:$0xff] }
 0x4dd   :  { %3590 = vmatprep.subr.mxu0 %v2399_v63  ;;  %3661 = vmatprep.subr.mxu1 %v2783_v24  ;;  %v2700_v61 = vld [vmem:[%s9086_s7 + $0x1190] sm:$0xff]  ;;  %v3842_v63 = vrot.slane %v3834_v47, %v4361_v52 }
 0x4de   :  { %3591 = vmatpush2.msra.mxu0 %v2398_v0  ;;  %3662 = vmatpush2.msra.mxu1 %v2782_v1  ;;  %v2305_v0 = vld [vmem:[%s9086_s7 + $0x538] sm:$0xff]  ;;  %v2304_v1 = vld [vmem:[%s9086_s7 + $0x530] sm:$0xff] }
 0x4df   :  { %3592 = vmatprep.subr.mxu0 %v2387_v4  ;;  %3663 = vmatprep.subr.mxu1 %v2771_v5  ;;  %v2293_v4 = vld [vmem:[%s9086_s7 + $0x4d8] sm:$0xff]  ;;  %v2184_v47 = vld [vmem:[%s9086_s7 + $0x170] sm:$0xff] }
 0x4e0   :  { %3593 = vmatpush2.msra.mxu0 %v2386_v10  ;;  %3664 = vmatpush2.msra.mxu1 %v2770_v62  ;;  %v2677_v5 = vld [vmem:[%s9086_s7 + $0x10d8] sm:$0xff] }
 0x4e1   :  { %3594 = vmatprep.subr.mxu0 %v2375_v13  ;;  %3665 = vmatprep.subr.mxu1 %v2759_v14  ;;  %v2281_v10 = vld [vmem:[%s9086_s7 + $0x478] sm:$0xff]  ;;  %v2664_v13 = vld [vmem:[%s9086_s7 + $0x1070] sm:$0xff] }
 0x4e2   :  { %3595 = vmatpush2.msra.mxu0 %v2374_v17  ;;  %3666 = vmatpush2.msra.mxu1 %v2758_v38  ;;  %v2665_v62 = vld [vmem:[%s9086_s7 + $0x1078] sm:$0xff]  ;;  %v2268_v38 = vld [vmem:[%s9086_s7 + $0x410] sm:$0xff] }
 0x4e3   :  { %3596 = vmatprep.subr.mxu0 %v2363_v20  ;;  %3667 = vmatprep.subr.mxu1 %v2747_v22  ;;  %v3178_v31 = vpop.f32.mrf.mxu0  ;;  %v3249_v15 = vpop.f32.mrf.mxu1  ;;  %v2269_v14 = vld [vmem:[%s9086_s7 + $0x418] sm:$0xff] }
 0x4e4   :  { %3597 = vmatpush2.msra.mxu0 %v2362_v28  ;;  %3668 = vmatpush2.msra.mxu1 %v2746_v54  ;;  %v3179_v34 = vadd.f32 %v3178_v31, %v2921_v25  ;;  %v2653_v17 = vld [vmem:[%s9086_s7 + $0x1018] sm:$0xff]  ;;  %v2256_v25 = vld [vmem:[%s9086_s7 + $0x3b0] sm:$0xff] }
 0x4e5   :  { %3598 = vmatprep.subr.mxu0 %v2351_v53  ;;  %3669 = vmatprep.subr.mxu1 %v2735_v57  ;;  %v3180_v39 = vpop.f32.mrf.mxu0  ;;  %v3251_v46 = vpop.f32.mrf.mxu1  ;;  %v2257_v20 = vld [vmem:[%s9086_s7 + $0x3b8] sm:$0xff]  ;;  %v2628_v53 = vld [vmem:[%s9086_s7 + $0xf50] sm:$0xff] }
 0x4e6   :  { %3599 = vmatpush2.msra.mxu0 %v2350_v9  ;;  %3670 = vmatpush2.msra.mxu1 %v2734_v48  ;;  %v3181_v42 = vadd.f32 %v3180_v39, %v2925_v43  ;;  %v3250_v49 = vadd.f32 %v3249_v15, %v3179_v34  ;;  %v2641_v22 = vld [vmem:[%s9086_s7 + $0xfb8] sm:$0xff]  ;;  %v2232_v9 = vld [vmem:[%s9086_s7 + $0x2f0] sm:$0xff] }
 0x4e7   :  { %3600 = vmatprep.subr.mxu0 %v2339_v33  ;;  %3671 = vmatprep.subr.mxu1 %v2723_v8  ;;  %v2245_v28 = vld [vmem:[%s9086_s7 + $0x358] sm:$0xff]  ;;  %v2616_v48 = vld [vmem:[%s9086_s7 + $0xef0] sm:$0xff] }
 0x4e8   :  { %3601 = vmatpush2.msra.mxu0 %v2338_v11  ;;  %3672 = vmatpush2.msra.mxu1 %v2722_v35  ;;  %v3252_v51 = vadd.f32 %v3251_v46, %v3181_v42  ;;  %v2629_v54 = vld [vmem:[%s9086_s7 + $0xf58] sm:$0xff]  ;;  %v2604_v33 = vld [vmem:[%s9086_s7 + $0xe90] sm:$0xff] }
 0x4e9   :  { %3603 = vmatmul.mubr.f32.vlgmr.msra.gmra.mxu0 %v7096_v59  ;;  %3674 = vmatmul.mubr.f32.vlgmr.msra.gmra.mxu1 %v7098_v60  ;;  %v2233_v57 = vld [vmem:[%s9086_s7 + $0x2f8] sm:$0xff]  ;;  %v2208_v11 = vld [vmem:[%s9086_s7 + $0x230] sm:$0xff] }
 0x4ea   :  { %3680 = vmatprep.subr.mxu0 %v2329_v44  ;;  %3751 = vmatprep.subr.mxu1 %v2713_v45  ;;  %v3835_v55 = vcombine.low %v3250_v49, %v3252_v51  ;;  %v2617_v43 = vld [vmem:[%s9086_s7 + $0xef8] sm:$0xff]  ;;  %v2592_v35 = vld [vmem:[%s9086_s7 + $0xe30] sm:$0xff] }
 0x4eb   :  { %3681 = vmatpush1.msra.mxu0 %v2328_v50  ;;  %3744 = vmatprep.mubr.f32.mxu0 %v7092_v58  ;;  %v2689_v58 = vld [vmem:[%s9086_s7 + $0x1138] sm:$0xff]  ;;  %v2196_v42 = vld [vmem:[%s9086_s7 + $0x1d0] sm:$0xff] }
 0x4ec   :  { %3752 = vmatpush1.msra.mxu1 %v2712_v26  ;;  %3815 = vmatprep.mubr.f32.mxu1 %v7094_v21  ;;  %v3849_v24 = vrot.slane %v3835_v55, %v4361_v52  ;;  %v2688_v21 = vld [vmem:[%s9086_s7 + $0x1130] sm:$0xff]  ;;  %v2221_v31 = vld [vmem:[%s9086_s7 + $0x298] sm:$0xff] }
 0x4ed   :  { %3682 = vmatprep.subr.mxu0 %v2317_v16  ;;  %3753 = vmatprep.subr.mxu1 %v2701_v29  ;;  %v2605_v15 = vld [vmem:[%s9086_s7 + $0xe98] sm:$0xff]  ;;  %v2580_v44 = vld [vmem:[%s9086_s7 + $0xdd0] sm:$0xff] }
 0x4ee   :  { %v3850_v2 = vcombine.low %v3842_v63, %v3849_v24  ;;  %3683 = vmatpush1.msra.mxu0 %v2316_v56  ;;  %3754 = vmatpush1.msra.mxu1 %v2700_v61  ;;  %v2209_v8 = vld [vmem:[%s9086_s7 + $0x238] sm:$0xff]  ;;  %v2568_v49 = vld [vmem:[%s9086_s7 + $0xd70] sm:$0xff] }
 0x4ef   :  { %3684 = vmatprep.subr.mxu0 %v2305_v0  ;;  %3755 = vmatprep.subr.mxu1 %v2689_v58  ;;  %v2593_v34 = vld [vmem:[%s9086_s7 + $0xe38] sm:$0xff]  ;;  %v2172_v26 = vld [vmem:[%s9086_s7 + $0x110] sm:$0xff] }
 0x4f0   :  { %3888 = vst [vmem:[%s9090_s9] sm:$0xff] %v3850_v2  ;;  %3685 = vmatpush1.msra.mxu0 %v2304_v1  ;;  %3756 = vmatpush1.msra.mxu1 %v2688_v21  ;;  %v2197_v39 = vld [vmem:[%s9086_s7 + $0x1d8] sm:$0xff]  ;;  %v2556_v55 = vld [vmem:[%s9086_s7 + $0xd10] sm:$0xff] }
 0x4f1   :  { %3686 = vmatprep.subr.mxu0 %v2293_v4  ;;  %3757 = vmatprep.subr.mxu1 %v2677_v5  ;;  %v2185_v45 = vld [vmem:[%s9086_s7 + $0x178] sm:$0xff]  ;;  %v2160_v56 = vld [vmem:[%s9086_s7 + $0xb0] sm:$0xff] }
 0x4f2   :  { %3687 = vmatpush1.msra.mxu0 %v2292_v6  ;;  %3758 = vmatpush1.msra.mxu1 %v2676_v7  ;;  %v2569_v46 = vld [vmem:[%s9086_s7 + $0xd78] sm:$0xff]  ;;  %v2544_v61 = vld [vmem:[%s9086_s7 + $0xcb0] sm:$0xff] }
 0x4f3   :  { %3688 = vmatprep.subr.mxu0 %v2281_v10  ;;  %3759 = vmatprep.subr.mxu1 %v2665_v62  ;;  %v2173_v50 = vld [vmem:[%s9086_s7 + $0x118] sm:$0xff]  ;;  %v2148_v0 = vld [vmem:[%s9086_s7 + $0x50] sm:$0xff] }
 0x4f4   :  { %3689 = vmatpush1.msra.mxu0 %v2280_v12  ;;  %3760 = vmatpush1.msra.mxu1 %v2664_v13  ;;  %v2557_v51 = vld [vmem:[%s9086_s7 + $0xd18] sm:$0xff]  ;;  %v2532_v58 = vld [vmem:[%s9086_s7 + $0xc50] sm:$0xff] }
 0x4f5   :  { %3690 = vmatprep.subr.mxu0 %v2269_v14  ;;  %3761 = vmatprep.subr.mxu1 %v2653_v17  ;;  %v2161_v16 = vld [vmem:[%s9086_s7 + $0xb8] sm:$0xff]  ;;  %v2520_v2 = vld [vmem:[%s9086_s7 + $0xbf0] sm:$0xff] }
 0x4f6   :  { %3691 = vmatpush1.msra.mxu0 %v2268_v38  ;;  %3762 = vmatpush1.msra.mxu1 %v2652_v18  ;;  %v2545_v29 = vld [vmem:[%s9086_s7 + $0xcb8] sm:$0xff]  ;;  %v2904_v4 = vld [vmem:[%s9086_s7 + $0x17f0] sm:$0xff] }
 0x4f7   :  { %3692 = vmatprep.subr.mxu0 %v2257_v20  ;;  %3763 = vmatprep.subr.mxu1 %v2641_v22  ;;  %v2149_v63 = vld [vmem:[%s9086_s7 + $0x58] sm:$0xff]  ;;  %v2508_v7 = vld [vmem:[%s9086_s7 + $0xb90] sm:$0xff] }
 0x4f8   :  { %3693 = vmatpush1.msra.mxu0 %v2256_v25  ;;  %3764 = vmatpush1.msra.mxu1 %v2640_v27  ;;  %v2533_v24 = vld [vmem:[%s9086_s7 + $0xc58] sm:$0xff]  ;;  %v2892_v10 = vld [vmem:[%s9086_s7 + $0x1790] sm:$0xff] }
 0x4f9   :  { %3694 = vmatprep.subr.mxu0 %v2245_v28  ;;  %3765 = vmatprep.subr.mxu1 %v2629_v54  ;;  %v2521_v1 = vld [vmem:[%s9086_s7 + $0xbf8] sm:$0xff]  ;;  %v2496_v13 = vld [vmem:[%s9086_s7 + $0xb30] sm:$0xff] }
 0x4fa   :  { %3695 = vmatpush1.msra.mxu0 %v2244_v30  ;;  %3766 = vmatpush1.msra.mxu1 %v2628_v53  ;;  %v2905_v21 = vld [vmem:[%s9086_s7 + $0x17f8] sm:$0xff]  ;;  %v2880_v14 = vld [vmem:[%s9086_s7 + $0x1730] sm:$0xff] }
 0x4fb   :  { %3696 = vmatprep.subr.mxu0 %v2233_v57  ;;  %3767 = vmatprep.subr.mxu1 %v2617_v43  ;;  %v2509_v5 = vld [vmem:[%s9086_s7 + $0xb98] sm:$0xff]  ;;  %v2484_v18 = vld [vmem:[%s9086_s7 + $0xad0] sm:$0xff] }
 0x4fc   :  { %3697 = vmatpush1.msra.mxu0 %v2232_v9  ;;  %3768 = vmatpush1.msra.mxu1 %v2616_v48  ;;  %v2893_v6 = vld [vmem:[%s9086_s7 + $0x1798] sm:$0xff]  ;;  %v2868_v20 = vld [vmem:[%s9086_s7 + $0x16d0] sm:$0xff] }
 0x4fd   :  { %3698 = vmatprep.subr.mxu0 %v2221_v31  ;;  %3769 = vmatprep.subr.mxu1 %v2605_v15  ;;  %v2497_v62 = vld [vmem:[%s9086_s7 + $0xb38] sm:$0xff]  ;;  %v2472_v27 = vld [vmem:[%s9086_s7 + $0xa70] sm:$0xff] }
 0x4fe   :  { %3699 = vmatpush1.msra.mxu0 %v2220_v32  ;;  %3770 = vmatpush1.msra.mxu1 %v2604_v33  ;;  %v2881_v12 = vld [vmem:[%s9086_s7 + $0x1738] sm:$0xff]  ;;  %v2856_v28 = vld [vmem:[%s9086_s7 + $0x1670] sm:$0xff] }
 0x4ff   :  { %3700 = vmatprep.subr.mxu0 %v2209_v8  ;;  %3771 = vmatprep.subr.mxu1 %v2593_v34  ;;  %v2485_v17 = vld [vmem:[%s9086_s7 + $0xad8] sm:$0xff]  ;;  %v2460_v53 = vld [vmem:[%s9086_s7 + $0xa10] sm:$0xff] }
 0x500   :  { %3701 = vmatpush1.msra.mxu0 %v2208_v11  ;;  %3772 = vmatpush1.msra.mxu1 %v2592_v35  ;;  %v2869_v38 = vld [vmem:[%s9086_s7 + $0x16d8] sm:$0xff]  ;;  %v2844_v57 = vld [vmem:[%s9086_s7 + $0x1610] sm:$0xff] }
 0x501   :  { %3702 = vmatprep.subr.mxu0 %v2197_v39  ;;  %3773 = vmatprep.subr.mxu1 %v2581_v40  ;;  %v2473_v22 = vld [vmem:[%s9086_s7 + $0xa78] sm:$0xff]  ;;  %v2448_v48 = vld [vmem:[%s9086_s7 + $0x9b0] sm:$0xff] }
 0x502   :  { %3703 = vmatpush1.msra.mxu0 %v2196_v42  ;;  %3774 = vmatpush1.msra.mxu1 %v2580_v44  ;;  %v2857_v25 = vld [vmem:[%s9086_s7 + $0x1678] sm:$0xff]  ;;  %v2832_v31 = vld [vmem:[%s9086_s7 + $0x15b0] sm:$0xff] }
 0x503   :  { %3704 = vmatprep.subr.mxu0 %v2185_v45  ;;  %3775 = vmatprep.subr.mxu1 %v2569_v46  ;;  %v2461_v54 = vld [vmem:[%s9086_s7 + $0xa18] sm:$0xff]  ;;  %v2436_v33 = vld [vmem:[%s9086_s7 + $0x950] sm:$0xff] }
 0x504   :  { %3705 = vmatpush1.msra.mxu0 %v2184_v47  ;;  %3776 = vmatpush1.msra.mxu1 %v2568_v49  ;;  %v2845_v30 = vld [vmem:[%s9086_s7 + $0x1618] sm:$0xff]  ;;  %v2820_v8 = vld [vmem:[%s9086_s7 + $0x1550] sm:$0xff] }
 0x505   :  { %3706 = vmatprep.subr.mxu0 %v2173_v50  ;;  %3777 = vmatprep.subr.mxu1 %v2557_v51  ;;  %v2449_v43 = vld [vmem:[%s9086_s7 + $0x9b8] sm:$0xff]  ;;  %v2424_v35 = vld [vmem:[%s9086_s7 + $0x8f0] sm:$0xff] }
 0x506   :  { %3707 = vmatpush1.msra.mxu0 %v2172_v26  ;;  %3778 = vmatpush1.msra.mxu1 %v2556_v55  ;;  %v2833_v9 = vld [vmem:[%s9086_s7 + $0x15b8] sm:$0xff]  ;;  %v2808_v39 = vld [vmem:[%s9086_s7 + $0x14f0] sm:$0xff] }
 0x507   :  { %3708 = vmatprep.subr.mxu0 %v2161_v16  ;;  %3779 = vmatprep.subr.mxu1 %v2545_v29  ;;  %v2437_v15 = vld [vmem:[%s9086_s7 + $0x958] sm:$0xff]  ;;  %v2412_v44 = vld [vmem:[%s9086_s7 + $0x890] sm:$0xff] }
 0x508   :  { %3709 = vmatpush1.msra.mxu0 %v2160_v56  ;;  %3780 = vmatpush1.msra.mxu1 %v2544_v61  ;;  %v2821_v32 = vld [vmem:[%s9086_s7 + $0x1558] sm:$0xff]  ;;  %v2796_v45 = vld [vmem:[%s9086_s7 + $0x1490] sm:$0xff] }
 0x509   :  { %3710 = vmatprep.subr.mxu0 %v2149_v63  ;;  %3781 = vmatprep.subr.mxu1 %v2533_v24  ;;  %v2425_v34 = vld [vmem:[%s9086_s7 + $0x8f8] sm:$0xff]  ;;  %v2400_v49 = vld [vmem:[%s9086_s7 + $0x830] sm:$0xff] }
 0x50a   :  { %3711 = vmatpush1.msra.mxu0 %v2148_v0  ;;  %3782 = vmatpush1.msra.mxu1 %v2532_v58  ;;  %v2809_v11 = vld [vmem:[%s9086_s7 + $0x14f8] sm:$0xff]  ;;  %v2784_v50 = vld [vmem:[%s9086_s7 + $0x1430] sm:$0xff] }
 0x50b   :  { %3712 = vmatprep.subr.mxu0 %v2521_v1  ;;  %3783 = vmatprep.subr.mxu1 %v2905_v21  ;;  %v2413_v40 = vld [vmem:[%s9086_s7 + $0x898] sm:$0xff]  ;;  %v2388_v55 = vld [vmem:[%s9086_s7 + $0x7d0] sm:$0xff] }
 0x50c   :  { %3713 = vmatpush2.msra.mxu0 %v2520_v2  ;;  %3784 = vmatpush2.msra.mxu1 %v2904_v4  ;;  %v2797_v42 = vld [vmem:[%s9086_s7 + $0x1498] sm:$0xff]  ;;  %v2772_v16 = vld [vmem:[%s9086_s7 + $0x13d0] sm:$0xff] }
 0x50d   :  { %3714 = vmatprep.subr.mxu0 %v2509_v5  ;;  %3785 = vmatprep.subr.mxu1 %v2893_v6  ;;  %v2401_v46 = vld [vmem:[%s9086_s7 + $0x838] sm:$0xff]  ;;  %v2376_v61 = vld [vmem:[%s9086_s7 + $0x770] sm:$0xff] }
 0x50e   :  { %3715 = vmatpush2.msra.mxu0 %v2508_v7  ;;  %3786 = vmatpush2.msra.mxu1 %v2892_v10  ;;  %v2785_v47 = vld [vmem:[%s9086_s7 + $0x1438] sm:$0xff]  ;;  %v2760_v63 = vld [vmem:[%s9086_s7 + $0x1370] sm:$0xff] }
 0x50f   :  { %3716 = vmatprep.subr.mxu0 %v2497_v62  ;;  %3787 = vmatprep.subr.mxu1 %v2881_v12  ;;  %v2389_v51 = vld [vmem:[%s9086_s7 + $0x7d8] sm:$0xff]  ;;  %v2364_v58 = vld [vmem:[%s9086_s7 + $0x710] sm:$0xff]  ;;  %v2932_v12 = vsub.s32 5, %v4331_v41 }
 0x510   :  { %3717 = vmatpush2.msra.mxu0 %v2496_v13  ;;  %3788 = vmatpush2.msra.mxu1 %v2880_v14  ;;  %v2773_v26 = vld [vmem:[%s9086_s7 + $0x13d8] sm:$0xff]  ;;  %v2748_v1 = vld [vmem:[%s9086_s7 + $0x1310] sm:$0xff]  ;;  %v2928_v14 = vsub.s32 4, %v4331_v41 }
 0x511   :  { %3718 = vmatprep.subr.mxu0 %v2485_v17  ;;  %3789 = vmatprep.subr.mxu1 %v2869_v38  ;;  %v2377_v29 = vld [vmem:[%s9086_s7 + $0x778] sm:$0xff]  ;;  %v2352_v4 = vld [vmem:[%s9086_s7 + $0x6b0] sm:$0xff]  ;;  %v2933_v17 = vrot.slane %v8585_v23, %v2932_v12  ;;  %v2936_v38 = vsub.s32 6, %v4331_v41 }
 0x512   :  { %3719 = vmatpush2.msra.mxu0 %v2484_v18  ;;  %3790 = vmatpush2.msra.mxu1 %v2868_v20  ;;  %v2761_v56 = vld [vmem:[%s9086_s7 + $0x1378] sm:$0xff]  ;;  %v2736_v5 = vld [vmem:[%s9086_s7 + $0x12b0] sm:$0xff] }
 0x513   :  { %3720 = vmatprep.subr.mxu0 %v2473_v22  ;;  %3791 = vmatprep.subr.mxu1 %v2857_v25  ;;  %v2365_v24 = vld [vmem:[%s9086_s7 + $0x718] sm:$0xff]  ;;  %v2340_v10 = vld [vmem:[%s9086_s7 + $0x650] sm:$0xff]  ;;  %v2929_v22 = vrot.slane %v8585_v23, %v2928_v14  ;;  %v2940_v25 = vsub.s32 7, %v4331_v41 }
 0x514   :  { %3721 = vmatpush2.msra.mxu0 %v2472_v27  ;;  %3792 = vmatpush2.msra.mxu1 %v2856_v28  ;;  %v2749_v0 = vld [vmem:[%s9086_s7 + $0x1318] sm:$0xff]  ;;  %v2724_v62 = vld [vmem:[%s9086_s7 + $0x1250] sm:$0xff] }
 0x515   :  { %3722 = vmatprep.subr.mxu0 %v2461_v54  ;;  %3793 = vmatprep.subr.mxu1 %v2845_v30  ;;  %v2353_v21 = vld [vmem:[%s9086_s7 + $0x6b8] sm:$0xff]  ;;  %v2941_v54 = vrot.slane %v8585_v23, %v2940_v25 }
 0x516   :  { %3723 = vmatpush2.msra.mxu0 %v2460_v53  ;;  %3794 = vmatpush2.msra.mxu1 %v2844_v57  ;;  %v2737_v2 = vld [vmem:[%s9086_s7 + $0x12b8] sm:$0xff] }
 0x517   :  { %3724 = vmatprep.subr.mxu0 %v2449_v43  ;;  %3795 = vmatprep.subr.mxu1 %v2833_v9  ;;  %v2341_v6 = vld [vmem:[%s9086_s7 + $0x658] sm:$0xff] }
 0x518   :  { %3725 = vmatpush2.msra.mxu0 %v2448_v48  ;;  %3796 = vmatpush2.msra.mxu1 %v2832_v31  ;;  %v2725_v7 = vld [vmem:[%s9086_s7 + $0x1258] sm:$0xff] }
 0x519   :  { %3726 = vmatprep.subr.mxu0 %v2437_v15  ;;  %3797 = vmatprep.subr.mxu1 %v2821_v32 }
 0x51a   :  { %3727 = vmatpush2.msra.mxu0 %v2436_v33  ;;  %3798 = vmatpush2.msra.mxu1 %v2820_v8 }
 0x51b   :  { %3728 = vmatprep.subr.mxu0 %v2425_v34  ;;  %3799 = vmatprep.subr.mxu1 %v2809_v11 }
 0x51c   :  { %3729 = vmatpush2.msra.mxu0 %v2424_v35  ;;  %3800 = vmatpush2.msra.mxu1 %v2808_v39  ;;  %v2907_v39 = vld [vmem:[%s9089_s8 + $0x8] sm:$0xf] }
 0x51d   :  { %3730 = vmatprep.subr.mxu0 %v2413_v40  ;;  %3801 = vmatprep.subr.mxu1 %v2797_v42  ;;  %v2949_v40 = vrot.slane %v2907_v39, %v6286_v19 }
 0x51e   :  { %3731 = vmatpush2.msra.mxu0 %v2412_v44  ;;  %3802 = vmatpush2.msra.mxu1 %v2796_v45  ;;  %v2945_v45 = vrot.slane %v2907_v39, %v6480_v37 }
 0x51f   :  { %3732 = vmatprep.subr.mxu0 %v2401_v46  ;;  %3803 = vmatprep.subr.mxu1 %v2785_v47  ;;  %v2953_v47 = vrot.slane %v2907_v39, %v6641_v36 }
 0x520   :  { %3733 = vmatpush2.msra.mxu0 %v2400_v49  ;;  %3804 = vmatpush2.msra.mxu1 %v2784_v50 }
 0x521   :  { %3734 = vmatprep.subr.mxu0 %v2389_v51  ;;  %3805 = vmatprep.subr.mxu1 %v2773_v26  ;;  %v2957_v51 = vrot.slane %v2907_v39, %v6644_v3 }
 0x522   :  { %3735 = vmatpush2.msra.mxu0 %v2388_v55  ;;  %3806 = vmatpush2.msra.mxu1 %v2772_v16 }
 0x523   :  { %3736 = vmatprep.subr.mxu0 %v2377_v29  ;;  %3807 = vmatprep.subr.mxu1 %v2761_v56 }
 0x524   :  { %3737 = vmatpush2.msra.mxu0 %v2376_v61  ;;  %3808 = vmatpush2.msra.mxu1 %v2760_v63 }
 0x525   :  { %3738 = vmatprep.subr.mxu0 %v2365_v24  ;;  %3809 = vmatprep.subr.mxu1 %v2749_v0  ;;  %v3320_v13 = vpop.f32.mrf.mxu0  ;;  %v3391_v18 = vpop.f32.mrf.mxu1 }
 0x526   :  { %3739 = vmatpush2.msra.mxu0 %v2364_v58  ;;  %3810 = vmatpush2.msra.mxu1 %v2748_v1 }
 0x527   :  { %3740 = vmatprep.subr.mxu0 %v2353_v21  ;;  %3811 = vmatprep.subr.mxu1 %v2737_v2  ;;  %v3322_v20 = vpop.f32.mrf.mxu0  ;;  %v3393_v28 = vpop.f32.mrf.mxu1 }
 0x528   :  { %3741 = vmatpush2.msra.mxu0 %v2352_v4  ;;  %3812 = vmatpush2.msra.mxu1 %v2736_v5  ;;  %v3323_v27 = vadd.f32 %v3322_v20, %v2933_v17 }
 0x529   :  { %3742 = vmatprep.subr.mxu0 %v2341_v6  ;;  %3813 = vmatprep.subr.mxu1 %v2725_v7 }
 0x52a   :  { %3743 = vmatpush2.msra.mxu0 %v2340_v10  ;;  %3814 = vmatpush2.msra.mxu1 %v2724_v62  ;;  %v3394_v57 = vadd.f32 %v3393_v28, %v3323_v27 }
 0x52b   :  { %3745 = vmatmul.mubr.f32.vlgmr.msra.gmra.mxu0 %v7096_v59  ;;  %3816 = vmatmul.mubr.f32.vlgmr.msra.gmra.mxu1 %v7098_v60  ;;  %v2937_v59 = vrot.slane %v8585_v23, %v2936_v38  ;;  %v3321_v60 = vadd.f32 %v3320_v13, %v2929_v22 }
 0x52d   :  { %v3392_v48 = vadd.f32 %v3391_v18, %v3321_v60 }
 0x52f   :  { %v3851_v32 = vcombine.low %v3392_v48, %v3394_v57 }
 0x531   :  { %v3859_v41 = vrot.slane %v3851_v32, %v4361_v52 }
 0x567   :  { %v3462_v30 = vpop.f32.mrf.mxu0  ;;  %v3533_v53 = vpop.f32.mrf.mxu1 }
 0x568   :  { %v3463_v43 = vadd.f32 %v3462_v30, %v2937_v59 }
 0x569   :  { %v3464_v9 = vpop.f32.mrf.mxu0  ;;  %v3535_v15 = vpop.f32.mrf.mxu1 }
 0x56a   :  { %v3465_v31 = vadd.f32 %v3464_v9, %v2941_v54  ;;  %v3534_v33 = vadd.f32 %v3533_v53, %v3463_v43 }
 0x56c   :  { %v3536_v8 = vadd.f32 %v3535_v15, %v3465_v31 }
 0x56e   :  { %v3852_v34 = vcombine.low %v3534_v33, %v3536_v8 }
 0x570   :  { %v3866_v11 = vrot.slane %v3852_v34, %v4361_v52 }
 0x572   :  { %v3867_v35 = vcombine.low %v3859_v41, %v3866_v11 }
 0x574   :  { %3889 = vst [vmem:[%s9090_s9 + $0x8] sm:$0xff] %v3867_v35 }
 0x5a9   :  { %v3604_v23 = vpop.f32.mrf.mxu0  ;;  %v3675_v42 = vpop.f32.mrf.mxu1 }
 0x5aa   :  { %v3605_v50 = vadd.f32 %v3604_v23, %v2945_v45 }
 0x5ab   :  { %v3606_v44 = vpop.f32.mrf.mxu0  ;;  %v3677_v49 = vpop.f32.mrf.mxu1 }
 0x5ac   :  { %v3607_v46 = vadd.f32 %v3606_v44, %v2949_v40  ;;  %v3676_v61 = vadd.f32 %v3675_v42, %v3605_v50 }
 0x5ae   :  { %v3678_v16 = vadd.f32 %v3677_v49, %v3607_v46 }
 0x5b0   :  { %v3868_v19 = vcombine.low %v3676_v61, %v3678_v16 }
 0x5b2   :  { %v3876_v37 = vrot.slane %v3868_v19, %v4361_v52 }
 0x5eb   :  { %v3746_v26 = vpop.f32.mrf.mxu0  ;;  %v3817_v55 = vpop.f32.mrf.mxu1 }
 0x5ec   :  { %v3747_v29 = vadd.f32 %v3746_v26, %v2953_v47 }
 0x5ed   :  { %v3748_v56 = vpop.f32.mrf.mxu0  ;;  %v3819_v24 = vpop.f32.mrf.mxu1 }
 0x5ee   :  { %v3749_v63 = vadd.f32 %v3748_v56, %v2957_v51  ;;  %v3818_v0 = vadd.f32 %v3817_v55, %v3747_v29 }
 0x5f0   :  { %v3820_v58 = vadd.f32 %v3819_v24, %v3749_v63 }
 0x5f2   :  { %v3869_v1 = vcombine.low %v3818_v0, %v3820_v58 }
 0x5f4   :  { %v3883_v36 = vrot.slane %v3869_v1, %v4361_v52 }
 0x5f6   :  { %v3884_v21 = vcombine.low %v3876_v37, %v3883_v36 }
 0x5f8   :  { %3890 = vst [vmem:[%s9090_s9 + $0x10] sm:$0xff] %v3884_v21 }

// kernel: autoencoder_forward.11
= control target key start
LH: loop header
LB: loop body
LE: loop exit
PB: predicated region body
PF: predicated region fallthrough
CT: control target
= control target key end

     0   :  { %v511_v3 = vmov 0.0   ;;  %v512_v4 = vmov 0   ;;  %vm176_vm0 = vcmask 261120   ;;  %vm494_vm1 = vcmask 539648   ;;  %s1025_s1 = inlined_call_operand.vmem [shape: f32[288,450], index: 1, kind: input, shape index: {}]   ;;  %s1026_s0 = inlined_call_operand.vmem [shape: f32[16,288], index: 0, kind: input, shape index: {}]   ;;  %s1027_s2 = inlined_call_operand.vmem [shape: f32[16,1], index: 2, kind: input, shape index: {}]   ;;  %s1028_s3 = inlined_call_operand.vmem [shape: f32[16,450], index: 3, kind: output, shape index: {}]  }
   0x1   :  { %v81_v0 = vld [vmem:[%s1025_s1 + $0x1e8] sm:$0xff]  ;;  %v80_v2 = vld [vmem:[%s1025_s1 + $0x1e0] sm:$0xff]  ;;  %324 = vmatprep.mubr.f32.mxu1 %v511_v3  ;;  %510 = vset.pattern.permute.xlu0 %v512_v4  ;;  %v588_v19 = vld [vmem:[%s1026_s0 + $0x10] sm:$0xff] }
   0x2   :  { %v161_v1 = vld [vmem:[%s1025_s1 + $0x468] sm:$0xff]  ;;  %183 = vmatprep.subr.mxu0 %v81_v0  ;;  %v160_v5 = vld [vmem:[%s1025_s1 + $0x460] sm:$0xff]  ;;  %v83_v20 = vld [vmem:[%s1025_s1 + $0x1f8] sm:$0xff] }
   0x3   :  { %284 = vmatprep.subr.mxu1 %v161_v1  ;;  %v77_v6 = vld [vmem:[%s1025_s1 + $0x1c8] sm:$0xff]  ;;  %184 = vmatpush1.msra.mxu0 %v80_v2  ;;  %v76_v8 = vld [vmem:[%s1025_s1 + $0x1c0] sm:$0xff]  ;;  %v82_v22 = vld [vmem:[%s1025_s1 + $0x1f0] sm:$0xff] }
   0x4   :  { %v157_v7 = vld [vmem:[%s1025_s1 + $0x448] sm:$0xff]  ;;  %285 = vmatpush1.msra.mxu1 %v160_v5  ;;  %v156_v9 = vld [vmem:[%s1025_s1 + $0x440] sm:$0xff]  ;;  %185 = vmatprep.subr.mxu0 %v77_v6  ;;  %v79_v24 = vld [vmem:[%s1025_s1 + $0x1d8] sm:$0xff] }
   0x5   :  { %v73_v10 = vld [vmem:[%s1025_s1 + $0x1a8] sm:$0xff]  ;;  %286 = vmatprep.subr.mxu1 %v157_v7  ;;  %v72_v12 = vld [vmem:[%s1025_s1 + $0x1a0] sm:$0xff]  ;;  %186 = vmatpush1.msra.mxu0 %v76_v8  ;;  %v78_v26 = vld [vmem:[%s1025_s1 + $0x1d0] sm:$0xff] }
   0x6   :  { %v153_v11 = vld [vmem:[%s1025_s1 + $0x428] sm:$0xff]  ;;  %v152_v13 = vld [vmem:[%s1025_s1 + $0x420] sm:$0xff]  ;;  %287 = vmatpush1.msra.mxu1 %v156_v9  ;;  %187 = vmatprep.subr.mxu0 %v73_v10  ;;  %v75_v28 = vld [vmem:[%s1025_s1 + $0x1b8] sm:$0xff] }
   0x7   :  { %v69_v14 = vld [vmem:[%s1025_s1 + $0x188] sm:$0xff]  ;;  %288 = vmatprep.subr.mxu1 %v153_v11  ;;  %v68_v16 = vld [vmem:[%s1025_s1 + $0x180] sm:$0xff]  ;;  %188 = vmatpush1.msra.mxu0 %v72_v12  ;;  %v74_v30 = vld [vmem:[%s1025_s1 + $0x1b0] sm:$0xff] }
   0x8   :  { %v149_v15 = vld [vmem:[%s1025_s1 + $0x408] sm:$0xff]  ;;  %v148_v17 = vld [vmem:[%s1025_s1 + $0x400] sm:$0xff]  ;;  %289 = vmatpush1.msra.mxu1 %v152_v13  ;;  %189 = vmatprep.subr.mxu0 %v69_v14  ;;  %v71_v32 = vld [vmem:[%s1025_s1 + $0x198] sm:$0xff] }
   0x9   :  { %v65_v18 = vld [vmem:[%s1025_s1 + $0x168] sm:$0xff]  ;;  %290 = vmatprep.subr.mxu1 %v149_v15  ;;  %v64_v21 = vld [vmem:[%s1025_s1 + $0x160] sm:$0xff]  ;;  %190 = vmatpush1.msra.mxu0 %v68_v16  ;;  %v70_v34 = vld [vmem:[%s1025_s1 + $0x190] sm:$0xff] }
   0xa   :  { %291 = vmatpush1.msra.mxu1 %v148_v17  ;;  %v61_v23 = vld [vmem:[%s1025_s1 + $0x148] sm:$0xff]  ;;  %191 = vmatprep.subr.mxu0 %v65_v18  ;;  %v60_v25 = vld [vmem:[%s1025_s1 + $0x140] sm:$0xff]  ;;  %v67_v36 = vld [vmem:[%s1025_s1 + $0x178] sm:$0xff] }
   0xb   :  { %504 = vmatmul.mubr.msk.f32.vlgmr.msra.gmra.mxu1 %vm176_vm0, %v588_v19  ;;  %337 = vmatprep.subr.mxu1 %v83_v20  ;;  %v57_v27 = vld [vmem:[%s1025_s1 + $0x128] sm:$0xff]  ;;  %v56_v29 = vld [vmem:[%s1025_s1 + $0x120] sm:$0xff]  ;;  %v66_v38 = vld [vmem:[%s1025_s1 + $0x170] sm:$0xff] }
   0xc   :  { %192 = vmatpush1.msra.mxu0 %v64_v21  ;;  %338 = vmatpush1.msra.mxu1 %v82_v22  ;;  %v53_v31 = vld [vmem:[%s1025_s1 + $0x108] sm:$0xff]  ;;  %v52_v33 = vld [vmem:[%s1025_s1 + $0x100] sm:$0xff]  ;;  %v63_v40 = vld [vmem:[%s1025_s1 + $0x158] sm:$0xff] }
   0xd   :  { %193 = vmatprep.subr.mxu0 %v61_v23  ;;  %339 = vmatprep.subr.mxu1 %v79_v24  ;;  %v49_v35 = vld [vmem:[%s1025_s1 + $0xe8] sm:$0xff]  ;;  %v48_v37 = vld [vmem:[%s1025_s1 + $0xe0] sm:$0xff]  ;;  %v62_v42 = vld [vmem:[%s1025_s1 + $0x150] sm:$0xff] }
   0xe   :  { %194 = vmatpush1.msra.mxu0 %v60_v25  ;;  %340 = vmatpush1.msra.mxu1 %v78_v26  ;;  %v45_v39 = vld [vmem:[%s1025_s1 + $0xc8] sm:$0xff]  ;;  %v44_v41 = vld [vmem:[%s1025_s1 + $0xc0] sm:$0xff]  ;;  %v59_v44 = vld [vmem:[%s1025_s1 + $0x138] sm:$0xff] }
   0xf   :  { %195 = vmatprep.subr.mxu0 %v57_v27  ;;  %341 = vmatprep.subr.mxu1 %v75_v28  ;;  %v41_v43 = vld [vmem:[%s1025_s1 + $0xa8] sm:$0xff]  ;;  %v40_v45 = vld [vmem:[%s1025_s1 + $0xa0] sm:$0xff]  ;;  %v58_v46 = vld [vmem:[%s1025_s1 + $0x130] sm:$0xff] }
  0x10   :  { %196 = vmatpush1.msra.mxu0 %v56_v29  ;;  %342 = vmatpush1.msra.mxu1 %v74_v30  ;;  %v37_v47 = vld [vmem:[%s1025_s1 + $0x88] sm:$0xff]  ;;  %v55_v48 = vld [vmem:[%s1025_s1 + $0x118] sm:$0xff]  ;;  %v36_v49 = vld [vmem:[%s1025_s1 + $0x80] sm:$0xff] }
  0x11   :  { %197 = vmatprep.subr.mxu0 %v53_v31  ;;  %343 = vmatprep.subr.mxu1 %v71_v32  ;;  %v54_v50 = vld [vmem:[%s1025_s1 + $0x110] sm:$0xff]  ;;  %v33_v51 = vld [vmem:[%s1025_s1 + $0x68] sm:$0xff]  ;;  %v51_v52 = vld [vmem:[%s1025_s1 + $0xf8] sm:$0xff] }
  0x12   :  { %198 = vmatpush1.msra.mxu0 %v52_v33  ;;  %344 = vmatpush1.msra.mxu1 %v70_v34  ;;  %v32_v53 = vld [vmem:[%s1025_s1 + $0x60] sm:$0xff]  ;;  %v50_v54 = vld [vmem:[%s1025_s1 + $0xf0] sm:$0xff]  ;;  %v29_v55 = vld [vmem:[%s1025_s1 + $0x48] sm:$0xff] }
  0x13   :  { %199 = vmatprep.subr.mxu0 %v49_v35  ;;  %345 = vmatprep.subr.mxu1 %v67_v36  ;;  %v47_v56 = vld [vmem:[%s1025_s1 + $0xd8] sm:$0xff]  ;;  %v28_v57 = vld [vmem:[%s1025_s1 + $0x40] sm:$0xff]  ;;  %v46_v58 = vld [vmem:[%s1025_s1 + $0xd0] sm:$0xff] }
  0x14   :  { %200 = vmatpush1.msra.mxu0 %v48_v37  ;;  %346 = vmatpush1.msra.mxu1 %v66_v38  ;;  %v25_v59 = vld [vmem:[%s1025_s1 + $0x28] sm:$0xff]  ;;  %v43_v60 = vld [vmem:[%s1025_s1 + $0xb8] sm:$0xff]  ;;  %v24_v61 = vld [vmem:[%s1025_s1 + $0x20] sm:$0xff] }
  0x15   :  { %201 = vmatprep.subr.mxu0 %v45_v39  ;;  %347 = vmatprep.subr.mxu1 %v63_v40  ;;  %v42_v62 = vld [vmem:[%s1025_s1 + $0xb0] sm:$0xff]  ;;  %v21_v63 = vld [vmem:[%s1025_s1 + $0x8] sm:$0xff]  ;;  %v39_v0 = vld [vmem:[%s1025_s1 + $0x98] sm:$0xff] }
  0x16   :  { %202 = vmatpush1.msra.mxu0 %v44_v41  ;;  %348 = vmatpush1.msra.mxu1 %v62_v42  ;;  %v20_v1 = vld [vmem:[%s1025_s1] sm:$0xff]  ;;  %v38_v2 = vld [vmem:[%s1025_s1 + $0x90] sm:$0xff]  ;;  %v145_v4 = vld [vmem:[%s1025_s1 + $0x3e8] sm:$0xff] }
  0x17   :  { %203 = vmatprep.subr.mxu0 %v41_v43  ;;  %349 = vmatprep.subr.mxu1 %v59_v44  ;;  %v35_v5 = vld [vmem:[%s1025_s1 + $0x78] sm:$0xff]  ;;  %v144_v6 = vld [vmem:[%s1025_s1 + $0x3e0] sm:$0xff]  ;;  %v34_v7 = vld [vmem:[%s1025_s1 + $0x70] sm:$0xff] }
  0x18   :  { %204 = vmatpush1.msra.mxu0 %v40_v45  ;;  %350 = vmatpush1.msra.mxu1 %v58_v46  ;;  %v141_v8 = vld [vmem:[%s1025_s1 + $0x3c8] sm:$0xff]  ;;  %v31_v9 = vld [vmem:[%s1025_s1 + $0x58] sm:$0xff]  ;;  %v140_v10 = vld [vmem:[%s1025_s1 + $0x3c0] sm:$0xff] }
  0x19   :  { %205 = vmatprep.subr.mxu0 %v37_v47  ;;  %351 = vmatprep.subr.mxu1 %v55_v48  ;;  %v30_v11 = vld [vmem:[%s1025_s1 + $0x50] sm:$0xff]  ;;  %v137_v12 = vld [vmem:[%s1025_s1 + $0x3a8] sm:$0xff]  ;;  %v27_v13 = vld [vmem:[%s1025_s1 + $0x38] sm:$0xff] }
  0x1a   :  { %206 = vmatpush1.msra.mxu0 %v36_v49  ;;  %352 = vmatpush1.msra.mxu1 %v54_v50  ;;  %v136_v14 = vld [vmem:[%s1025_s1 + $0x3a0] sm:$0xff]  ;;  %v26_v15 = vld [vmem:[%s1025_s1 + $0x30] sm:$0xff]  ;;  %v133_v16 = vld [vmem:[%s1025_s1 + $0x388] sm:$0xff] }
  0x1b   :  { %207 = vmatprep.subr.mxu0 %v33_v51  ;;  %353 = vmatprep.subr.mxu1 %v51_v52  ;;  %v23_v17 = vld [vmem:[%s1025_s1 + $0x18] sm:$0xff]  ;;  %v132_v18 = vld [vmem:[%s1025_s1 + $0x380] sm:$0xff]  ;;  %v22_v20 = vld [vmem:[%s1025_s1 + $0x10] sm:$0xff] }
  0x1c   :  { %208 = vmatpush1.msra.mxu0 %v32_v53  ;;  %354 = vmatpush1.msra.mxu1 %v50_v54  ;;  %v129_v21 = vld [vmem:[%s1025_s1 + $0x368] sm:$0xff]  ;;  %v147_v22 = vld [vmem:[%s1025_s1 + $0x3f8] sm:$0xff]  ;;  %v128_v23 = vld [vmem:[%s1025_s1 + $0x360] sm:$0xff] }
  0x1d   :  { %209 = vmatprep.subr.mxu0 %v29_v55  ;;  %355 = vmatprep.subr.mxu1 %v47_v56  ;;  %v146_v24 = vld [vmem:[%s1025_s1 + $0x3f0] sm:$0xff]  ;;  %v125_v25 = vld [vmem:[%s1025_s1 + $0x348] sm:$0xff]  ;;  %v143_v26 = vld [vmem:[%s1025_s1 + $0x3d8] sm:$0xff] }
  0x1e   :  { %210 = vmatpush1.msra.mxu0 %v28_v57  ;;  %356 = vmatpush1.msra.mxu1 %v46_v58  ;;  %v124_v27 = vld [vmem:[%s1025_s1 + $0x340] sm:$0xff]  ;;  %v142_v28 = vld [vmem:[%s1025_s1 + $0x3d0] sm:$0xff]  ;;  %v121_v29 = vld [vmem:[%s1025_s1 + $0x328] sm:$0xff] }
  0x1f   :  { %211 = vmatprep.subr.mxu0 %v25_v59  ;;  %357 = vmatprep.subr.mxu1 %v43_v60  ;;  %v139_v30 = vld [vmem:[%s1025_s1 + $0x3b8] sm:$0xff]  ;;  %v120_v31 = vld [vmem:[%s1025_s1 + $0x320] sm:$0xff]  ;;  %v138_v32 = vld [vmem:[%s1025_s1 + $0x3b0] sm:$0xff] }
  0x20   :  { %212 = vmatpush1.msra.mxu0 %v24_v61  ;;  %358 = vmatpush1.msra.mxu1 %v42_v62  ;;  %v117_v33 = vld [vmem:[%s1025_s1 + $0x308] sm:$0xff]  ;;  %v135_v34 = vld [vmem:[%s1025_s1 + $0x398] sm:$0xff]  ;;  %v116_v35 = vld [vmem:[%s1025_s1 + $0x300] sm:$0xff] }
  0x21   :  { %213 = vmatprep.subr.mxu0 %v21_v63  ;;  %359 = vmatprep.subr.mxu1 %v39_v0  ;;  %v134_v36 = vld [vmem:[%s1025_s1 + $0x390] sm:$0xff]  ;;  %v113_v37 = vld [vmem:[%s1025_s1 + $0x2e8] sm:$0xff]  ;;  %v131_v38 = vld [vmem:[%s1025_s1 + $0x378] sm:$0xff] }
  0x22   :  { %214 = vmatpush1.msra.mxu0 %v20_v1  ;;  %360 = vmatpush1.msra.mxu1 %v38_v2  ;;  %v112_v39 = vld [vmem:[%s1025_s1 + $0x2e0] sm:$0xff]  ;;  %v130_v40 = vld [vmem:[%s1025_s1 + $0x370] sm:$0xff]  ;;  %v109_v41 = vld [vmem:[%s1025_s1 + $0x2c8] sm:$0xff] }
  0x23   :  { %215 = vmatprep.subr.mxu0 %v145_v4  ;;  %361 = vmatprep.subr.mxu1 %v35_v5  ;;  %v127_v42 = vld [vmem:[%s1025_s1 + $0x358] sm:$0xff]  ;;  %v108_v43 = vld [vmem:[%s1025_s1 + $0x2c0] sm:$0xff]  ;;  %v126_v44 = vld [vmem:[%s1025_s1 + $0x350] sm:$0xff] }
  0x24   :  { %216 = vmatpush2.msra.mxu0 %v144_v6  ;;  %362 = vmatpush1.msra.mxu1 %v34_v7  ;;  %v105_v45 = vld [vmem:[%s1025_s1 + $0x2a8] sm:$0xff]  ;;  %v123_v46 = vld [vmem:[%s1025_s1 + $0x338] sm:$0xff]  ;;  %v104_v47 = vld [vmem:[%s1025_s1 + $0x2a0] sm:$0xff] }
  0x25   :  { %217 = vmatprep.subr.mxu0 %v141_v8  ;;  %363 = vmatprep.subr.mxu1 %v31_v9  ;;  %v122_v48 = vld [vmem:[%s1025_s1 + $0x330] sm:$0xff]  ;;  %v101_v49 = vld [vmem:[%s1025_s1 + $0x288] sm:$0xff]  ;;  %v119_v50 = vld [vmem:[%s1025_s1 + $0x318] sm:$0xff] }
  0x26   :  { %218 = vmatpush2.msra.mxu0 %v140_v10  ;;  %364 = vmatpush1.msra.mxu1 %v30_v11  ;;  %v100_v51 = vld [vmem:[%s1025_s1 + $0x280] sm:$0xff]  ;;  %v118_v52 = vld [vmem:[%s1025_s1 + $0x310] sm:$0xff]  ;;  %v97_v53 = vld [vmem:[%s1025_s1 + $0x268] sm:$0xff] }
  0x27   :  { %219 = vmatprep.subr.mxu0 %v137_v12  ;;  %365 = vmatprep.subr.mxu1 %v27_v13  ;;  %v115_v54 = vld [vmem:[%s1025_s1 + $0x2f8] sm:$0xff]  ;;  %v96_v55 = vld [vmem:[%s1025_s1 + $0x260] sm:$0xff]  ;;  %v114_v56 = vld [vmem:[%s1025_s1 + $0x2f0] sm:$0xff] }
  0x28   :  { %220 = vmatpush2.msra.mxu0 %v136_v14  ;;  %366 = vmatpush1.msra.mxu1 %v26_v15  ;;  %v93_v57 = vld [vmem:[%s1025_s1 + $0x248] sm:$0xff]  ;;  %v111_v58 = vld [vmem:[%s1025_s1 + $0x2d8] sm:$0xff]  ;;  %v92_v59 = vld [vmem:[%s1025_s1 + $0x240] sm:$0xff] }
  0x29   :  { %221 = vmatprep.subr.mxu0 %v133_v16  ;;  %367 = vmatprep.subr.mxu1 %v23_v17  ;;  %v110_v60 = vld [vmem:[%s1025_s1 + $0x2d0] sm:$0xff]  ;;  %v89_v61 = vld [vmem:[%s1025_s1 + $0x228] sm:$0xff]  ;;  %v107_v62 = vld [vmem:[%s1025_s1 + $0x2b8] sm:$0xff] }
  0x2a   :  { %222 = vmatpush2.msra.mxu0 %v132_v18  ;;  %368 = vmatpush1.msra.mxu1 %v22_v20  ;;  %v88_v63 = vld [vmem:[%s1025_s1 + $0x220] sm:$0xff]  ;;  %v106_v0 = vld [vmem:[%s1025_s1 + $0x2b0] sm:$0xff]  ;;  %v85_v1 = vld [vmem:[%s1025_s1 + $0x208] sm:$0xff] }
  0x2b   :  { %223 = vmatprep.subr.mxu0 %v129_v21  ;;  %369 = vmatprep.subr.mxu1 %v147_v22  ;;  %v103_v2 = vld [vmem:[%s1025_s1 + $0x298] sm:$0xff]  ;;  %v84_v4 = vld [vmem:[%s1025_s1 + $0x200] sm:$0xff]  ;;  %v15_v5 = vld [vmem:[%s1026_s0 + $0x8] sm:$0xff] }
  0x2c   :  { %224 = vmatpush2.msra.mxu0 %v128_v23  ;;  %370 = vmatpush2.msra.mxu1 %v146_v24  ;;  %v102_v6 = vld [vmem:[%s1025_s1 + $0x290] sm:$0xff]  ;;  %v14_v7 = vld [vmem:[%s1026_s0] sm:$0xff]  ;;  %v99_v8 = vld [vmem:[%s1025_s1 + $0x278] sm:$0xff] }
  0x2d   :  { %225 = vmatprep.subr.mxu0 %v125_v25  ;;  %371 = vmatprep.subr.mxu1 %v143_v26  ;;  %v163_v9 = vld [vmem:[%s1025_s1 + $0x478] sm:$0xff]  ;;  %v98_v10 = vld [vmem:[%s1025_s1 + $0x270] sm:$0xff]  ;;  %v19_v12 = vld [vmem:[%s1026_s0 + $0x28] sm:$0xff] }
  0x2e   :  { %226 = vmatpush2.msra.mxu0 %v124_v27  ;;  %372 = vmatpush2.msra.mxu1 %v142_v28  ;;  %v162_v11 = vld [vmem:[%s1025_s1 + $0x470] sm:$0xff]  ;;  %v95_v13 = vld [vmem:[%s1025_s1 + $0x258] sm:$0xff]  ;;  %v18_v15 = vld [vmem:[%s1026_s0 + $0x20] sm:$0xff] }
  0x2f   :  { %227 = vmatprep.subr.mxu0 %v121_v29  ;;  %373 = vmatprep.subr.mxu1 %v139_v30  ;;  %v159_v14 = vld [vmem:[%s1025_s1 + $0x458] sm:$0xff]  ;;  %v94_v16 = vld [vmem:[%s1025_s1 + $0x250] sm:$0xff]  ;;  %v164_v28 = vld [vmem:[%s1027_s2] sm:$0xff] }
  0x30   :  { %228 = vmatpush2.msra.mxu0 %v120_v31  ;;  %374 = vmatpush2.msra.mxu1 %v138_v32  ;;  %v158_v17 = vld [vmem:[%s1025_s1 + $0x450] sm:$0xff]  ;;  %v17_v18 = vld [vmem:[%s1026_s0 + $0x18] sm:$0xff]  ;;  %v165_v29 = vld [vmem:[%s1027_s2 + $0x8] sm:$0xff] }
  0x31   :  { %229 = vmatprep.subr.mxu0 %v117_v33  ;;  %375 = vmatprep.subr.mxu1 %v135_v34  ;;  %v91_v20 = vld [vmem:[%s1025_s1 + $0x238] sm:$0xff]  ;;  %v90_v22 = vld [vmem:[%s1025_s1 + $0x230] sm:$0xff] }
  0x32   :  { %230 = vmatpush2.msra.mxu0 %v116_v35  ;;  %376 = vmatpush2.msra.mxu1 %v134_v36  ;;  %v155_v21 = vld [vmem:[%s1025_s1 + $0x438] sm:$0xff]  ;;  %v154_v23 = vld [vmem:[%s1025_s1 + $0x430] sm:$0xff] }
  0x33   :  { %231 = vmatprep.subr.mxu0 %v113_v37  ;;  %377 = vmatprep.subr.mxu1 %v131_v38  ;;  %v87_v24 = vld [vmem:[%s1025_s1 + $0x218] sm:$0xff]  ;;  %v86_v26 = vld [vmem:[%s1025_s1 + $0x210] sm:$0xff] }
  0x34   :  { %232 = vmatpush2.msra.mxu0 %v112_v39  ;;  %378 = vmatpush2.msra.mxu1 %v130_v40  ;;  %v151_v25 = vld [vmem:[%s1025_s1 + $0x418] sm:$0xff]  ;;  %v150_v27 = vld [vmem:[%s1025_s1 + $0x410] sm:$0xff] }
  0x35   :  { %233 = vmatprep.subr.mxu0 %v109_v41  ;;  %379 = vmatprep.subr.mxu1 %v127_v42 }
  0x36   :  { %234 = vmatpush2.msra.mxu0 %v108_v43  ;;  %380 = vmatpush2.msra.mxu1 %v126_v44 }
  0x37   :  { %235 = vmatprep.subr.mxu0 %v105_v45  ;;  %381 = vmatprep.subr.mxu1 %v123_v46 }
  0x38   :  { %236 = vmatpush2.msra.mxu0 %v104_v47  ;;  %382 = vmatpush2.msra.mxu1 %v122_v48 }
  0x39   :  { %237 = vmatprep.subr.mxu0 %v101_v49  ;;  %383 = vmatprep.subr.mxu1 %v119_v50 }
  0x3a   :  { %238 = vmatpush2.msra.mxu0 %v100_v51  ;;  %384 = vmatpush2.msra.mxu1 %v118_v52 }
  0x3b   :  { %239 = vmatprep.subr.mxu0 %v97_v53  ;;  %385 = vmatprep.subr.mxu1 %v115_v54 }
  0x3c   :  { %240 = vmatpush2.msra.mxu0 %v96_v55  ;;  %386 = vmatpush2.msra.mxu1 %v114_v56 }
  0x3d   :  { %241 = vmatprep.subr.mxu0 %v93_v57  ;;  %387 = vmatprep.subr.mxu1 %v111_v58 }
  0x3e   :  { %242 = vmatpush2.msra.mxu0 %v92_v59  ;;  %388 = vmatpush2.msra.mxu1 %v110_v60 }
  0x3f   :  { %243 = vmatprep.subr.mxu0 %v89_v61  ;;  %389 = vmatprep.subr.mxu1 %v107_v62 }
  0x40   :  { %244 = vmatpush2.msra.mxu0 %v88_v63  ;;  %390 = vmatpush2.msra.mxu1 %v106_v0 }
  0x41   :  { %245 = vmatprep.subr.mxu0 %v85_v1  ;;  %391 = vmatprep.subr.mxu1 %v103_v2 }
  0x42   :  { %246 = vmatpush2.msra.mxu0 %v84_v4  ;;  %247 = vmatprep.mubr.f32.mxu0 %v15_v5 }
  0x43   :  { %392 = vmatpush2.msra.mxu1 %v102_v6  ;;  %248 = vmatmul.mubr.f32.vlgmr.msra.gmra.mxu0 %v14_v7 }
  0x44   :  { %393 = vmatprep.subr.mxu1 %v99_v8  ;;  %438 = vmatprep.subr.mxu0 %v163_v9 }
  0x45   :  { %330 = vmatprep.mubr.f32.mxu1 %v511_v3  ;;  %394 = vmatpush2.msra.mxu1 %v98_v10 }
  0x46   :  { %439 = vmatpush1.msra.mxu0 %v162_v11  ;;  %505 = vmatmul.mubr.msk.f32.gmra.mxu1 %vm176_vm0, %v19_v12 }
  0x47   :  { %395 = vmatprep.subr.mxu1 %v95_v13  ;;  %440 = vmatprep.subr.mxu0 %v159_v14 }
  0x48   :  { %253 = vmatprep.mubr.f32.mxu0 %v18_v15  ;;  %396 = vmatpush2.msra.mxu1 %v94_v16 }
  0x49   :  { %441 = vmatpush1.msra.mxu0 %v158_v17  ;;  %397 = vmatprep.subr.mxu1 %v91_v20 }
  0x4a   :  { %254 = vmatmul.mubr.f32.gmra.mxu0 %v17_v18  ;;  %442 = vmatprep.subr.mxu0 %v155_v21 }
  0x4b   :  { %398 = vmatpush2.msra.mxu1 %v90_v22  ;;  %443 = vmatpush1.msra.mxu0 %v154_v23 }
  0x4c   :  { %399 = vmatprep.subr.mxu1 %v87_v24  ;;  %444 = vmatprep.subr.mxu0 %v151_v25 }
  0x4d   :  { %400 = vmatpush2.msra.mxu1 %v86_v26  ;;  %401 = vmatprep.mubr.f32.mxu1 %v15_v5 }
  0x4e   :  { %445 = vmatpush1.msra.mxu0 %v150_v27  ;;  %478 = vmatprep.mubr.f32.mxu0 %v511_v3 }
  0x4f   :  { %402 = vmatmul.mubr.f32.vlgmr.msra.gmra.mxu1 %v14_v7  ;;  %506 = vmatmul.mubr.msk.f32.vlgmr.msra.gmra.mxu0 %vm176_vm0, %v588_v19 }
  0x50   :  { %407 = vmatprep.mubr.f32.mxu1 %v18_v15  ;;  %484 = vmatprep.mubr.f32.mxu0 %v511_v3 }
  0x51   :  { %168 = vperm.xlu0 %510, %v164_v28  }
  0x53   :  { %408 = vmatmul.mubr.f32.gmra.mxu1 %v17_v18  ;;  %507 = vmatmul.mubr.msk.f32.gmra.mxu0 %vm176_vm0, %v19_v12 }
  0x55   :  { %173 = vperm.xlu0 %510, %v165_v29  }
  0xcb   :  { %v326_v31 = vpop.f32.mrf.mxu1 }
  0xcc   :  { %v169_v30 = vpop.permute.xlu0 %168 }
  0xcd   :  { %v328_v35 = vpop.f32.mrf.mxu1 }
  0xd0   :  { %v174_v37 = vpop.permute.xlu0 %173 }
 0x103   :  { %v249_v32 = vpop.f32.mrf.mxu0 }
 0x104   :  { %v250_v33 = vadd.f32 %v249_v32, %v169_v30 }
 0x105   :  { %v251_v34 = vpop.f32.mrf.mxu0 }
 0x106   :  { %v327_v36 = vadd.f32 %v326_v31, %v250_v33  ;;  %v252_v19 = vadd.f32 %v251_v34, %v169_v30  ;;  %v332_v38 = vpop.f32.mrf.mxu1 }
 0x108   :  { %491 = vst [vmem:[%s1028_s3] sm:$0xff] %v327_v36  ;;  %v329_v3 = vadd.f32 %v328_v35, %v252_v19  ;;  %v334_v43 = vpop.f32.mrf.mxu1 }
 0x10a   :  { %v255_v39 = vpop.f32.mrf.mxu0  ;;  %492 = vst [vmem:[%s1028_s3 + $0x8] sm:$0xff] %v329_v3 }
 0x10b   :  { %v256_v40 = vadd.f32 %v255_v39, %v174_v37 }
 0x10c   :  { %v257_v41 = vpop.f32.mrf.mxu0 }
 0x10d   :  { %v333_v42 = vadd.f32 %v332_v38, %v256_v40  ;;  %v258_v44 = vadd.f32 %v257_v41, %v174_v37 }
 0x10f   :  { %496 = vst [vmem:[%s1028_s3 + $0x20] sm:$0xff] %v333_v42  ;;  %v335_v45 = vadd.f32 %v334_v43, %v258_v44  ;;  %v403_v46 = vpop.f32.mrf.mxu1  ;;  %v480_v48 = vpop.f32.mrf.mxu0 }
 0x110   :  { %v404_v47 = vadd.f32 %v403_v46, %v169_v30 }
 0x111   :  { %497 = vst [vmem:[%s1028_s3 + $0x28] sm:$0xff] %v335_v45  ;;  %v405_v49 = vpop.f32.mrf.mxu1  ;;  %v482_v52 = vpop.f32.mrf.mxu0 }
 0x112   :  { %v481_v50 = vadd.f32 %v480_v48, %v404_v47  ;;  %v406_v51 = vadd.f32 %v405_v49, %v169_v30 }
 0x113   :  { %v409_v53 = vpop.f32.mrf.mxu1  ;;  %v486_v56 = vpop.f32.mrf.mxu0 }
 0x114   :  { %493 = vst [vmem:[%s1028_s3 + $0x10] sm:$0xff] %v481_v50  ;;  %v483_v54 = vadd.f32 %v482_v52, %v406_v51  ;;  %v410_v55 = vadd.f32 %v409_v53, %v174_v37 }
 0x115   :  { %v411_v57 = vpop.f32.mrf.mxu1  ;;  %v488_v60 = vpop.f32.mrf.mxu0 }
 0x116   :  { %495 = vst.msk [vmem:[%s1028_s3 + $0x18] sm:$0xff] %vm494_vm1, %v483_v54  ;;  %v487_v58 = vadd.f32 %v486_v56, %v410_v55  ;;  %v412_v59 = vadd.f32 %v411_v57, %v174_v37 }
 0x118   :  { %498 = vst [vmem:[%s1028_s3 + $0x30] sm:$0xff] %v487_v58  ;;  %v489_v61 = vadd.f32 %v488_v60, %v412_v59 }
 0x11a   :  { %499 = vst.msk [vmem:[%s1028_s3 + $0x38] sm:$0xff] %vm494_vm1, %v489_v61 }

// kernel: autoencoder_forward.12
= control target key start
LH: loop header
LB: loop body
LE: loop exit
PB: predicated region body
PF: predicated region fallthrough
CT: control target
= control target key end

     0   :  { %v894_v3 = vmov 0   ;;  %vm292_vm0 = vcmask 130048   ;;  %vm877_vm1 = vcmask 64512   ;;  %s1826_s1 = inlined_call_operand.vmem [shape: f32[144,1800], index: 1, kind: input, shape index: {}]   ;;  %s1827_s0 = inlined_call_operand.vmem [shape: f32[8,144], index: 0, kind: input, shape index: {}]   ;;  %s1828_s2 = inlined_call_operand.vmem [shape: f32[8,1], index: 2, kind: input, shape index: {}]   ;;  %s1829_s3 = inlined_call_operand.vmem [shape: f32[8,1800], index: 3, kind: output, shape index: {}]  }
   0x1   :  { %v242_v0 = vld [vmem:[%s1826_s1 + $0x710] sm:$0xff]  ;;  %v244_v1 = vld [vmem:[%s1826_s1 + $0x720] sm:$0xff]  ;;  %v241_v2 = vld [vmem:[%s1826_s1 + $0x708] sm:$0xff]  ;;  %893 = vset.pattern.permute.xlu0 %v894_v3 }
   0x2   :  { %296 = vmatprep.subr.mxu0 %v242_v0  ;;  %367 = vmatprep.subr.mxu1 %v244_v1  ;;  %v243_v4 = vld [vmem:[%s1826_s1 + $0x718] sm:$0xff]  ;;  %v229_v6 = vld [vmem:[%s1826_s1 + $0x6a8] sm:$0xff]  ;;  %v226_v7 = vld [vmem:[%s1826_s1 + $0x690] sm:$0xff] }
   0x3   :  { %v227_v5 = vld [vmem:[%s1826_s1 + $0x698] sm:$0xff]  ;;  %297 = vmatpush1.msra.mxu0 %v241_v2  ;;  %368 = vmatpush1.msra.mxu1 %v243_v4  ;;  %v228_v8 = vld [vmem:[%s1826_s1 + $0x6a0] sm:$0xff]  ;;  %v214_v10 = vld [vmem:[%s1826_s1 + $0x630] sm:$0xff] }
   0x4   :  { %v212_v9 = vld [vmem:[%s1826_s1 + $0x620] sm:$0xff]  ;;  %298 = vmatprep.subr.mxu0 %v227_v5  ;;  %369 = vmatprep.subr.mxu1 %v229_v6  ;;  %v211_v11 = vld [vmem:[%s1826_s1 + $0x618] sm:$0xff]  ;;  %v213_v12 = vld [vmem:[%s1826_s1 + $0x628] sm:$0xff] }
   0x5   :  { %299 = vmatpush1.msra.mxu0 %v226_v7  ;;  %370 = vmatpush1.msra.mxu1 %v228_v8  ;;  %v197_v13 = vld [vmem:[%s1826_s1 + $0x5a8] sm:$0xff]  ;;  %v199_v14 = vld [vmem:[%s1826_s1 + $0x5b8] sm:$0xff]  ;;  %v196_v15 = vld [vmem:[%s1826_s1 + $0x5a0] sm:$0xff] }
   0x6   :  { %300 = vmatprep.subr.mxu0 %v212_v9  ;;  %371 = vmatprep.subr.mxu1 %v214_v10  ;;  %v198_v16 = vld [vmem:[%s1826_s1 + $0x5b0] sm:$0xff]  ;;  %v184_v18 = vld [vmem:[%s1826_s1 + $0x540] sm:$0xff]  ;;  %v181_v19 = vld [vmem:[%s1826_s1 + $0x528] sm:$0xff] }
   0x7   :  { %301 = vmatpush1.msra.mxu0 %v211_v11  ;;  %372 = vmatpush1.msra.mxu1 %v213_v12  ;;  %v182_v17 = vld [vmem:[%s1826_s1 + $0x530] sm:$0xff]  ;;  %v183_v20 = vld [vmem:[%s1826_s1 + $0x538] sm:$0xff]  ;;  %v169_v22 = vld [vmem:[%s1826_s1 + $0x4c8] sm:$0xff] }
   0x8   :  { %302 = vmatprep.subr.mxu0 %v197_v13  ;;  %373 = vmatprep.subr.mxu1 %v199_v14  ;;  %v167_v21 = vld [vmem:[%s1826_s1 + $0x4b8] sm:$0xff]  ;;  %v166_v23 = vld [vmem:[%s1826_s1 + $0x4b0] sm:$0xff]  ;;  %v168_v24 = vld [vmem:[%s1826_s1 + $0x4c0] sm:$0xff] }
   0x9   :  { %303 = vmatpush1.msra.mxu0 %v196_v15  ;;  %374 = vmatpush1.msra.mxu1 %v198_v16  ;;  %v152_v25 = vld [vmem:[%s1826_s1 + $0x440] sm:$0xff]  ;;  %v154_v26 = vld [vmem:[%s1826_s1 + $0x450] sm:$0xff]  ;;  %v151_v27 = vld [vmem:[%s1826_s1 + $0x438] sm:$0xff] }
   0xa   :  { %304 = vmatprep.subr.mxu0 %v182_v17  ;;  %375 = vmatprep.subr.mxu1 %v184_v18  ;;  %v153_v28 = vld [vmem:[%s1826_s1 + $0x448] sm:$0xff]  ;;  %v139_v30 = vld [vmem:[%s1826_s1 + $0x3d8] sm:$0xff]  ;;  %v136_v31 = vld [vmem:[%s1826_s1 + $0x3c0] sm:$0xff] }
   0xb   :  { %305 = vmatpush1.msra.mxu0 %v181_v19  ;;  %376 = vmatpush1.msra.mxu1 %v183_v20  ;;  %v137_v29 = vld [vmem:[%s1826_s1 + $0x3c8] sm:$0xff]  ;;  %v138_v32 = vld [vmem:[%s1826_s1 + $0x3d0] sm:$0xff]  ;;  %v124_v34 = vld [vmem:[%s1826_s1 + $0x360] sm:$0xff] }
   0xc   :  { %306 = vmatprep.subr.mxu0 %v167_v21  ;;  %377 = vmatprep.subr.mxu1 %v169_v22  ;;  %v122_v33 = vld [vmem:[%s1826_s1 + $0x350] sm:$0xff]  ;;  %v121_v35 = vld [vmem:[%s1826_s1 + $0x348] sm:$0xff]  ;;  %v123_v36 = vld [vmem:[%s1826_s1 + $0x358] sm:$0xff] }
   0xd   :  { %307 = vmatpush1.msra.mxu0 %v166_v23  ;;  %378 = vmatpush1.msra.mxu1 %v168_v24  ;;  %v107_v37 = vld [vmem:[%s1826_s1 + $0x2d8] sm:$0xff]  ;;  %v109_v38 = vld [vmem:[%s1826_s1 + $0x2e8] sm:$0xff]  ;;  %v106_v39 = vld [vmem:[%s1826_s1 + $0x2d0] sm:$0xff] }
   0xe   :  { %308 = vmatprep.subr.mxu0 %v152_v25  ;;  %379 = vmatprep.subr.mxu1 %v154_v26  ;;  %v108_v40 = vld [vmem:[%s1826_s1 + $0x2e0] sm:$0xff]  ;;  %v94_v42 = vld [vmem:[%s1826_s1 + $0x270] sm:$0xff]  ;;  %v91_v43 = vld [vmem:[%s1826_s1 + $0x258] sm:$0xff] }
   0xf   :  { %309 = vmatpush1.msra.mxu0 %v151_v27  ;;  %380 = vmatpush1.msra.mxu1 %v153_v28  ;;  %v92_v41 = vld [vmem:[%s1826_s1 + $0x260] sm:$0xff]  ;;  %v93_v44 = vld [vmem:[%s1826_s1 + $0x268] sm:$0xff]  ;;  %v79_v46 = vld [vmem:[%s1826_s1 + $0x1f8] sm:$0xff] }
  0x10   :  { %310 = vmatprep.subr.mxu0 %v137_v29  ;;  %381 = vmatprep.subr.mxu1 %v139_v30  ;;  %v77_v45 = vld [vmem:[%s1826_s1 + $0x1e8] sm:$0xff]  ;;  %v76_v47 = vld [vmem:[%s1826_s1 + $0x1e0] sm:$0xff]  ;;  %v78_v48 = vld [vmem:[%s1826_s1 + $0x1f0] sm:$0xff] }
  0x11   :  { %311 = vmatpush1.msra.mxu0 %v136_v31  ;;  %382 = vmatpush1.msra.mxu1 %v138_v32  ;;  %v62_v49 = vld [vmem:[%s1826_s1 + $0x170] sm:$0xff]  ;;  %v64_v50 = vld [vmem:[%s1826_s1 + $0x180] sm:$0xff]  ;;  %v61_v51 = vld [vmem:[%s1826_s1 + $0x168] sm:$0xff] }
  0x12   :  { %312 = vmatprep.subr.mxu0 %v122_v33  ;;  %383 = vmatprep.subr.mxu1 %v124_v34  ;;  %v63_v52 = vld [vmem:[%s1826_s1 + $0x178] sm:$0xff]  ;;  %v49_v54 = vld [vmem:[%s1826_s1 + $0x108] sm:$0xff]  ;;  %v46_v55 = vld [vmem:[%s1826_s1 + $0xf0] sm:$0xff] }
  0x13   :  { %313 = vmatpush1.msra.mxu0 %v121_v35  ;;  %384 = vmatpush1.msra.mxu1 %v123_v36  ;;  %v47_v53 = vld [vmem:[%s1826_s1 + $0xf8] sm:$0xff]  ;;  %v48_v56 = vld [vmem:[%s1826_s1 + $0x100] sm:$0xff]  ;;  %v34_v58 = vld [vmem:[%s1826_s1 + $0x90] sm:$0xff] }
  0x14   :  { %314 = vmatprep.subr.mxu0 %v107_v37  ;;  %385 = vmatprep.subr.mxu1 %v109_v38  ;;  %v32_v57 = vld [vmem:[%s1826_s1 + $0x80] sm:$0xff]  ;;  %v31_v59 = vld [vmem:[%s1826_s1 + $0x78] sm:$0xff]  ;;  %v33_v60 = vld [vmem:[%s1826_s1 + $0x88] sm:$0xff] }
  0x15   :  { %315 = vmatpush1.msra.mxu0 %v106_v39  ;;  %386 = vmatpush1.msra.mxu1 %v108_v40  ;;  %v17_v61 = vld [vmem:[%s1826_s1 + $0x8] sm:$0xff]  ;;  %v19_v62 = vld [vmem:[%s1826_s1 + $0x18] sm:$0xff]  ;;  %v16_v63 = vld [vmem:[%s1826_s1] sm:$0xff] }
  0x16   :  { %316 = vmatprep.subr.mxu0 %v92_v41  ;;  %387 = vmatprep.subr.mxu1 %v94_v42  ;;  %v18_v0 = vld [vmem:[%s1826_s1 + $0x10] sm:$0xff]  ;;  %v272_v1 = vld [vmem:[%s1826_s1 + $0x800] sm:$0xff]  ;;  %v271_v3 = vld [vmem:[%s1826_s1 + $0x7f8] sm:$0xff] }
  0x17   :  { %317 = vmatpush1.msra.mxu0 %v91_v43  ;;  %388 = vmatpush1.msra.mxu1 %v93_v44  ;;  %v274_v2 = vld [vmem:[%s1826_s1 + $0x810] sm:$0xff]  ;;  %v273_v4 = vld [vmem:[%s1826_s1 + $0x808] sm:$0xff]  ;;  %v259_v6 = vld [vmem:[%s1826_s1 + $0x798] sm:$0xff] }
  0x18   :  { %318 = vmatprep.subr.mxu0 %v77_v45  ;;  %389 = vmatprep.subr.mxu1 %v79_v46  ;;  %v257_v5 = vld [vmem:[%s1826_s1 + $0x788] sm:$0xff]  ;;  %v256_v7 = vld [vmem:[%s1826_s1 + $0x780] sm:$0xff]  ;;  %v258_v9 = vld [vmem:[%s1826_s1 + $0x790] sm:$0xff] }
  0x19   :  { %319 = vmatpush1.msra.mxu0 %v76_v47  ;;  %390 = vmatpush1.msra.mxu1 %v78_v48  ;;  %v1132_v8 = vld [vmem:[%s1827_s0 + $0x8] sm:$0xff]  ;;  %v1140_v10 = vld [vmem:[%s1827_s0] sm:$0xff]  ;;  %v246_v11 = vld [vmem:[%s1826_s1 + $0x730] sm:$0xff] }
  0x1a   :  { %320 = vmatprep.subr.mxu0 %v62_v49  ;;  %391 = vmatprep.subr.mxu1 %v64_v50  ;;  %v248_v12 = vld [vmem:[%s1826_s1 + $0x740] sm:$0xff]  ;;  %v245_v13 = vld [vmem:[%s1826_s1 + $0x728] sm:$0xff]  ;;  %v247_v14 = vld [vmem:[%s1826_s1 + $0x738] sm:$0xff] }
  0x1b   :  { %321 = vmatpush1.msra.mxu0 %v61_v51  ;;  %392 = vmatpush1.msra.mxu1 %v63_v52  ;;  %v231_v15 = vld [vmem:[%s1826_s1 + $0x6b8] sm:$0xff]  ;;  %v233_v16 = vld [vmem:[%s1826_s1 + $0x6c8] sm:$0xff]  ;;  %v230_v17 = vld [vmem:[%s1826_s1 + $0x6b0] sm:$0xff] }
  0x1c   :  { %322 = vmatprep.subr.mxu0 %v47_v53  ;;  %393 = vmatprep.subr.mxu1 %v49_v54  ;;  %v232_v18 = vld [vmem:[%s1826_s1 + $0x6c0] sm:$0xff]  ;;  %v218_v20 = vld [vmem:[%s1826_s1 + $0x650] sm:$0xff]  ;;  %v215_v21 = vld [vmem:[%s1826_s1 + $0x638] sm:$0xff] }
  0x1d   :  { %323 = vmatpush1.msra.mxu0 %v46_v55  ;;  %394 = vmatpush1.msra.mxu1 %v48_v56  ;;  %v216_v19 = vld [vmem:[%s1826_s1 + $0x640] sm:$0xff]  ;;  %v217_v22 = vld [vmem:[%s1826_s1 + $0x648] sm:$0xff]  ;;  %v203_v24 = vld [vmem:[%s1826_s1 + $0x5d8] sm:$0xff] }
  0x1e   :  { %324 = vmatprep.subr.mxu0 %v32_v57  ;;  %395 = vmatprep.subr.mxu1 %v34_v58  ;;  %v201_v23 = vld [vmem:[%s1826_s1 + $0x5c8] sm:$0xff]  ;;  %v200_v25 = vld [vmem:[%s1826_s1 + $0x5c0] sm:$0xff]  ;;  %v202_v26 = vld [vmem:[%s1826_s1 + $0x5d0] sm:$0xff] }
  0x1f   :  { %325 = vmatpush1.msra.mxu0 %v31_v59  ;;  %396 = vmatpush1.msra.mxu1 %v33_v60  ;;  %v186_v27 = vld [vmem:[%s1826_s1 + $0x550] sm:$0xff]  ;;  %v188_v28 = vld [vmem:[%s1826_s1 + $0x560] sm:$0xff]  ;;  %v185_v29 = vld [vmem:[%s1826_s1 + $0x548] sm:$0xff] }
  0x20   :  { %326 = vmatprep.subr.mxu0 %v17_v61  ;;  %397 = vmatprep.subr.mxu1 %v19_v62  ;;  %v187_v30 = vld [vmem:[%s1826_s1 + $0x558] sm:$0xff]  ;;  %v173_v32 = vld [vmem:[%s1826_s1 + $0x4e8] sm:$0xff]  ;;  %v170_v33 = vld [vmem:[%s1826_s1 + $0x4d0] sm:$0xff] }
  0x21   :  { %327 = vmatpush1.msra.mxu0 %v16_v63  ;;  %398 = vmatpush1.msra.mxu1 %v18_v0  ;;  %v171_v31 = vld [vmem:[%s1826_s1 + $0x4d8] sm:$0xff]  ;;  %v172_v34 = vld [vmem:[%s1826_s1 + $0x4e0] sm:$0xff]  ;;  %v158_v36 = vld [vmem:[%s1826_s1 + $0x470] sm:$0xff] }
  0x22   :  { %356 = vmatprep.subr.mxu0 %v272_v1  ;;  %427 = vmatprep.subr.mxu1 %v274_v2  ;;  %v156_v35 = vld [vmem:[%s1826_s1 + $0x460] sm:$0xff]  ;;  %v155_v37 = vld [vmem:[%s1826_s1 + $0x458] sm:$0xff]  ;;  %v157_v38 = vld [vmem:[%s1826_s1 + $0x468] sm:$0xff] }
  0x23   :  { %357 = vmatpush2.msra.mxu0 %v271_v3  ;;  %428 = vmatpush2.msra.mxu1 %v273_v4  ;;  %v141_v39 = vld [vmem:[%s1826_s1 + $0x3e8] sm:$0xff]  ;;  %v143_v40 = vld [vmem:[%s1826_s1 + $0x3f8] sm:$0xff]  ;;  %v140_v41 = vld [vmem:[%s1826_s1 + $0x3e0] sm:$0xff] }
  0x24   :  { %358 = vmatprep.subr.mxu0 %v257_v5  ;;  %429 = vmatprep.subr.mxu1 %v259_v6  ;;  %v142_v42 = vld [vmem:[%s1826_s1 + $0x3f0] sm:$0xff]  ;;  %v128_v44 = vld [vmem:[%s1826_s1 + $0x380] sm:$0xff]  ;;  %v125_v45 = vld [vmem:[%s1826_s1 + $0x368] sm:$0xff] }
  0x25   :  { %359 = vmatpush2.msra.mxu0 %v256_v7  ;;  %883 = vmatprep.mubr.msk.f32.mxu0 %vm292_vm0, %v1132_v8  ;;  %v126_v43 = vld [vmem:[%s1826_s1 + $0x370] sm:$0xff]  ;;  %v127_v46 = vld [vmem:[%s1826_s1 + $0x378] sm:$0xff]  ;;  %v113_v48 = vld [vmem:[%s1826_s1 + $0x308] sm:$0xff] }
  0x26   :  { %430 = vmatpush2.msra.mxu1 %v258_v9  ;;  %361 = vmatmul.mubr.f32.vlgmr.msra.gmra.mxu0 %v1140_v10  ;;  %v111_v47 = vld [vmem:[%s1826_s1 + $0x2f8] sm:$0xff]  ;;  %v110_v49 = vld [vmem:[%s1826_s1 + $0x2f0] sm:$0xff]  ;;  %v112_v50 = vld [vmem:[%s1826_s1 + $0x300] sm:$0xff] }
  0x27   :  { %884 = vmatprep.mubr.msk.f32.mxu1 %vm292_vm0, %v1132_v8  ;;  %438 = vmatprep.subr.mxu0 %v246_v11  ;;  %v96_v51 = vld [vmem:[%s1826_s1 + $0x280] sm:$0xff]  ;;  %v98_v52 = vld [vmem:[%s1826_s1 + $0x290] sm:$0xff]  ;;  %v95_v53 = vld [vmem:[%s1826_s1 + $0x278] sm:$0xff] }
  0x28   :  { %509 = vmatprep.subr.mxu1 %v248_v12  ;;  %432 = vmatmul.mubr.f32.vlgmr.msra.gmra.mxu1 %v1140_v10  ;;  %v97_v54 = vld [vmem:[%s1826_s1 + $0x288] sm:$0xff]  ;;  %v83_v56 = vld [vmem:[%s1826_s1 + $0x218] sm:$0xff]  ;;  %v80_v57 = vld [vmem:[%s1826_s1 + $0x200] sm:$0xff] }
  0x29   :  { %439 = vmatpush1.msra.mxu0 %v245_v13  ;;  %510 = vmatpush1.msra.mxu1 %v247_v14  ;;  %v81_v55 = vld [vmem:[%s1826_s1 + $0x208] sm:$0xff]  ;;  %v82_v58 = vld [vmem:[%s1826_s1 + $0x210] sm:$0xff]  ;;  %v68_v60 = vld [vmem:[%s1826_s1 + $0x1a0] sm:$0xff] }
  0x2a   :  { %440 = vmatprep.subr.mxu0 %v231_v15  ;;  %511 = vmatprep.subr.mxu1 %v233_v16  ;;  %v66_v59 = vld [vmem:[%s1826_s1 + $0x190] sm:$0xff]  ;;  %v65_v61 = vld [vmem:[%s1826_s1 + $0x188] sm:$0xff]  ;;  %v67_v62 = vld [vmem:[%s1826_s1 + $0x198] sm:$0xff] }
  0x2b   :  { %441 = vmatpush1.msra.mxu0 %v230_v17  ;;  %512 = vmatpush1.msra.mxu1 %v232_v18  ;;  %v51_v63 = vld [vmem:[%s1826_s1 + $0x118] sm:$0xff]  ;;  %v53_v0 = vld [vmem:[%s1826_s1 + $0x128] sm:$0xff]  ;;  %v50_v1 = vld [vmem:[%s1826_s1 + $0x110] sm:$0xff] }
  0x2c   :  { %442 = vmatprep.subr.mxu0 %v216_v19  ;;  %513 = vmatprep.subr.mxu1 %v218_v20  ;;  %v52_v2 = vld [vmem:[%s1826_s1 + $0x120] sm:$0xff]  ;;  %v38_v4 = vld [vmem:[%s1826_s1 + $0xb0] sm:$0xff]  ;;  %v35_v5 = vld [vmem:[%s1826_s1 + $0x98] sm:$0xff] }
  0x2d   :  { %443 = vmatpush1.msra.mxu0 %v215_v21  ;;  %514 = vmatpush1.msra.mxu1 %v217_v22  ;;  %v36_v3 = vld [vmem:[%s1826_s1 + $0xa0] sm:$0xff]  ;;  %v37_v6 = vld [vmem:[%s1826_s1 + $0xa8] sm:$0xff]  ;;  %v23_v9 = vld [vmem:[%s1826_s1 + $0x38] sm:$0xff] }
  0x2e   :  { %444 = vmatprep.subr.mxu0 %v201_v23  ;;  %515 = vmatprep.subr.mxu1 %v203_v24  ;;  %v21_v7 = vld [vmem:[%s1826_s1 + $0x28] sm:$0xff]  ;;  %v20_v11 = vld [vmem:[%s1826_s1 + $0x20] sm:$0xff]  ;;  %v22_v12 = vld [vmem:[%s1826_s1 + $0x30] sm:$0xff] }
  0x2f   :  { %445 = vmatpush1.msra.mxu0 %v200_v25  ;;  %516 = vmatpush1.msra.mxu1 %v202_v26  ;;  %v276_v13 = vld [vmem:[%s1826_s1 + $0x820] sm:$0xff]  ;;  %v278_v14 = vld [vmem:[%s1826_s1 + $0x830] sm:$0xff]  ;;  %v275_v15 = vld [vmem:[%s1826_s1 + $0x818] sm:$0xff] }
  0x30   :  { %446 = vmatprep.subr.mxu0 %v186_v27  ;;  %517 = vmatprep.subr.mxu1 %v188_v28  ;;  %v277_v16 = vld [vmem:[%s1826_s1 + $0x828] sm:$0xff]  ;;  %v263_v18 = vld [vmem:[%s1826_s1 + $0x7b8] sm:$0xff]  ;;  %v260_v19 = vld [vmem:[%s1826_s1 + $0x7a0] sm:$0xff] }
  0x31   :  { %447 = vmatpush1.msra.mxu0 %v185_v29  ;;  %518 = vmatpush1.msra.mxu1 %v187_v30  ;;  %v261_v17 = vld [vmem:[%s1826_s1 + $0x7a8] sm:$0xff]  ;;  %v262_v20 = vld [vmem:[%s1826_s1 + $0x7b0] sm:$0xff]  ;;  %v252_v22 = vld [vmem:[%s1826_s1 + $0x760] sm:$0xff] }
  0x32   :  { %448 = vmatprep.subr.mxu0 %v171_v31  ;;  %519 = vmatprep.subr.mxu1 %v173_v32  ;;  %v250_v21 = vld [vmem:[%s1826_s1 + $0x750] sm:$0xff]  ;;  %v249_v23 = vld [vmem:[%s1826_s1 + $0x748] sm:$0xff]  ;;  %v251_v24 = vld [vmem:[%s1826_s1 + $0x758] sm:$0xff] }
  0x33   :  { %449 = vmatpush1.msra.mxu0 %v170_v33  ;;  %520 = vmatpush1.msra.mxu1 %v172_v34  ;;  %v235_v25 = vld [vmem:[%s1826_s1 + $0x6d8] sm:$0xff]  ;;  %v237_v26 = vld [vmem:[%s1826_s1 + $0x6e8] sm:$0xff]  ;;  %v234_v27 = vld [vmem:[%s1826_s1 + $0x6d0] sm:$0xff] }
  0x34   :  { %450 = vmatprep.subr.mxu0 %v156_v35  ;;  %521 = vmatprep.subr.mxu1 %v158_v36  ;;  %v236_v28 = vld [vmem:[%s1826_s1 + $0x6e0] sm:$0xff]  ;;  %v222_v30 = vld [vmem:[%s1826_s1 + $0x670] sm:$0xff]  ;;  %v219_v31 = vld [vmem:[%s1826_s1 + $0x658] sm:$0xff] }
  0x35   :  { %451 = vmatpush1.msra.mxu0 %v155_v37  ;;  %522 = vmatpush1.msra.mxu1 %v157_v38  ;;  %v220_v29 = vld [vmem:[%s1826_s1 + $0x660] sm:$0xff]  ;;  %v221_v32 = vld [vmem:[%s1826_s1 + $0x668] sm:$0xff]  ;;  %v207_v34 = vld [vmem:[%s1826_s1 + $0x5f8] sm:$0xff] }
  0x36   :  { %452 = vmatprep.subr.mxu0 %v141_v39  ;;  %523 = vmatprep.subr.mxu1 %v143_v40  ;;  %v205_v33 = vld [vmem:[%s1826_s1 + $0x5e8] sm:$0xff]  ;;  %v204_v35 = vld [vmem:[%s1826_s1 + $0x5e0] sm:$0xff]  ;;  %v206_v36 = vld [vmem:[%s1826_s1 + $0x5f0] sm:$0xff] }
  0x37   :  { %453 = vmatpush1.msra.mxu0 %v140_v41  ;;  %524 = vmatpush1.msra.mxu1 %v142_v42  ;;  %v190_v37 = vld [vmem:[%s1826_s1 + $0x570] sm:$0xff]  ;;  %v192_v38 = vld [vmem:[%s1826_s1 + $0x580] sm:$0xff]  ;;  %v189_v39 = vld [vmem:[%s1826_s1 + $0x568] sm:$0xff] }
  0x38   :  { %454 = vmatprep.subr.mxu0 %v126_v43  ;;  %525 = vmatprep.subr.mxu1 %v128_v44  ;;  %v191_v40 = vld [vmem:[%s1826_s1 + $0x578] sm:$0xff]  ;;  %v177_v42 = vld [vmem:[%s1826_s1 + $0x508] sm:$0xff]  ;;  %v174_v43 = vld [vmem:[%s1826_s1 + $0x4f0] sm:$0xff] }
  0x39   :  { %455 = vmatpush1.msra.mxu0 %v125_v45  ;;  %526 = vmatpush1.msra.mxu1 %v127_v46  ;;  %v175_v41 = vld [vmem:[%s1826_s1 + $0x4f8] sm:$0xff]  ;;  %v176_v44 = vld [vmem:[%s1826_s1 + $0x500] sm:$0xff]  ;;  %v162_v46 = vld [vmem:[%s1826_s1 + $0x490] sm:$0xff] }
  0x3a   :  { %456 = vmatprep.subr.mxu0 %v111_v47  ;;  %527 = vmatprep.subr.mxu1 %v113_v48  ;;  %v160_v45 = vld [vmem:[%s1826_s1 + $0x480] sm:$0xff]  ;;  %v159_v47 = vld [vmem:[%s1826_s1 + $0x478] sm:$0xff]  ;;  %v161_v48 = vld [vmem:[%s1826_s1 + $0x488] sm:$0xff] }
  0x3b   :  { %457 = vmatpush1.msra.mxu0 %v110_v49  ;;  %528 = vmatpush1.msra.mxu1 %v112_v50  ;;  %v145_v49 = vld [vmem:[%s1826_s1 + $0x408] sm:$0xff]  ;;  %v147_v50 = vld [vmem:[%s1826_s1 + $0x418] sm:$0xff] }
  0x3c   :  { %458 = vmatprep.subr.mxu0 %v96_v51  ;;  %529 = vmatprep.subr.mxu1 %v98_v52  ;;  %v144_v51 = vld [vmem:[%s1826_s1 + $0x400] sm:$0xff]  ;;  %v146_v52 = vld [vmem:[%s1826_s1 + $0x410] sm:$0xff] }
  0x3d   :  { %459 = vmatpush1.msra.mxu0 %v95_v53  ;;  %530 = vmatpush1.msra.mxu1 %v97_v54  ;;  %v130_v53 = vld [vmem:[%s1826_s1 + $0x390] sm:$0xff]  ;;  %v132_v54 = vld [vmem:[%s1826_s1 + $0x3a0] sm:$0xff] }
  0x3e   :  { %460 = vmatprep.subr.mxu0 %v81_v55  ;;  %531 = vmatprep.subr.mxu1 %v83_v56  ;;  %v129_v55 = vld [vmem:[%s1826_s1 + $0x388] sm:$0xff]  ;;  %v131_v56 = vld [vmem:[%s1826_s1 + $0x398] sm:$0xff] }
  0x3f   :  { %461 = vmatpush1.msra.mxu0 %v80_v57  ;;  %532 = vmatpush1.msra.mxu1 %v82_v58  ;;  %v115_v57 = vld [vmem:[%s1826_s1 + $0x318] sm:$0xff]  ;;  %v117_v58 = vld [vmem:[%s1826_s1 + $0x328] sm:$0xff] }
  0x40   :  { %462 = vmatprep.subr.mxu0 %v66_v59  ;;  %533 = vmatprep.subr.mxu1 %v68_v60  ;;  %v114_v59 = vld [vmem:[%s1826_s1 + $0x310] sm:$0xff]  ;;  %v116_v60 = vld [vmem:[%s1826_s1 + $0x320] sm:$0xff] }
  0x41   :  { %463 = vmatpush1.msra.mxu0 %v65_v61  ;;  %534 = vmatpush1.msra.mxu1 %v67_v62  ;;  %v100_v61 = vld [vmem:[%s1826_s1 + $0x2a0] sm:$0xff]  ;;  %v102_v62 = vld [vmem:[%s1826_s1 + $0x2b0] sm:$0xff] }
  0x42   :  { %464 = vmatprep.subr.mxu0 %v51_v63  ;;  %535 = vmatprep.subr.mxu1 %v53_v0  ;;  %v99_v63 = vld [vmem:[%s1826_s1 + $0x298] sm:$0xff]  ;;  %v101_v0 = vld [vmem:[%s1826_s1 + $0x2a8] sm:$0xff] }
  0x43   :  { %465 = vmatpush1.msra.mxu0 %v50_v1  ;;  %536 = vmatpush1.msra.mxu1 %v52_v2  ;;  %v85_v1 = vld [vmem:[%s1826_s1 + $0x228] sm:$0xff]  ;;  %v87_v2 = vld [vmem:[%s1826_s1 + $0x238] sm:$0xff] }
  0x44   :  { %466 = vmatprep.subr.mxu0 %v36_v3  ;;  %537 = vmatprep.subr.mxu1 %v38_v4  ;;  %v84_v3 = vld [vmem:[%s1826_s1 + $0x220] sm:$0xff]  ;;  %v86_v4 = vld [vmem:[%s1826_s1 + $0x230] sm:$0xff] }
  0x45   :  { %467 = vmatpush1.msra.mxu0 %v35_v5  ;;  %538 = vmatpush1.msra.mxu1 %v37_v6  ;;  %v70_v5 = vld [vmem:[%s1826_s1 + $0x1b0] sm:$0xff]  ;;  %v72_v6 = vld [vmem:[%s1826_s1 + $0x1c0] sm:$0xff] }
  0x46   :  { %468 = vmatprep.subr.mxu0 %v21_v7  ;;  %539 = vmatprep.subr.mxu1 %v23_v9  ;;  %v69_v7 = vld [vmem:[%s1826_s1 + $0x1a8] sm:$0xff]  ;;  %v71_v9 = vld [vmem:[%s1826_s1 + $0x1b8] sm:$0xff] }
  0x47   :  { %469 = vmatpush1.msra.mxu0 %v20_v11  ;;  %540 = vmatpush1.msra.mxu1 %v22_v12  ;;  %v55_v11 = vld [vmem:[%s1826_s1 + $0x138] sm:$0xff]  ;;  %v57_v12 = vld [vmem:[%s1826_s1 + $0x148] sm:$0xff] }
  0x48   :  { %498 = vmatprep.subr.mxu0 %v276_v13  ;;  %569 = vmatprep.subr.mxu1 %v278_v14  ;;  %v54_v13 = vld [vmem:[%s1826_s1 + $0x130] sm:$0xff]  ;;  %v56_v14 = vld [vmem:[%s1826_s1 + $0x140] sm:$0xff] }
  0x49   :  { %499 = vmatpush2.msra.mxu0 %v275_v15  ;;  %570 = vmatpush2.msra.mxu1 %v277_v16  ;;  %v40_v15 = vld [vmem:[%s1826_s1 + $0xc0] sm:$0xff]  ;;  %v42_v16 = vld [vmem:[%s1826_s1 + $0xd0] sm:$0xff] }
  0x4a   :  { %500 = vmatprep.subr.mxu0 %v261_v17  ;;  %571 = vmatprep.subr.mxu1 %v263_v18  ;;  %v39_v17 = vld [vmem:[%s1826_s1 + $0xb8] sm:$0xff]  ;;  %v41_v18 = vld [vmem:[%s1826_s1 + $0xc8] sm:$0xff] }
  0x4b   :  { %501 = vmatpush2.msra.mxu0 %v260_v19  ;;  %885 = vmatprep.mubr.msk.f32.mxu0 %vm292_vm0, %v1132_v8  ;;  %v25_v19 = vld [vmem:[%s1826_s1 + $0x48] sm:$0xff] }
  0x4c   :  { %572 = vmatpush2.msra.mxu1 %v262_v20  ;;  %503 = vmatmul.mubr.f32.vlgmr.msra.gmra.mxu0 %v1140_v10  ;;  %v27_v20 = vld [vmem:[%s1826_s1 + $0x58] sm:$0xff] }
  0x4d   :  { %886 = vmatprep.mubr.msk.f32.mxu1 %vm292_vm0, %v1132_v8  ;;  %580 = vmatprep.subr.mxu0 %v250_v21  ;;  %v24_v21 = vld [vmem:[%s1826_s1 + $0x40] sm:$0xff] }
  0x4e   :  { %651 = vmatprep.subr.mxu1 %v252_v22  ;;  %574 = vmatmul.mubr.f32.vlgmr.msra.gmra.mxu1 %v1140_v10  ;;  %v26_v22 = vld [vmem:[%s1826_s1 + $0x50] sm:$0xff] }
  0x4f   :  { %581 = vmatpush1.msra.mxu0 %v249_v23  ;;  %652 = vmatpush1.msra.mxu1 %v251_v24  ;;  %v280_v23 = vld [vmem:[%s1826_s1 + $0x840] sm:$0xff]  ;;  %v282_v24 = vld [vmem:[%s1826_s1 + $0x850] sm:$0xff] }
  0x50   :  { %582 = vmatprep.subr.mxu0 %v235_v25  ;;  %653 = vmatprep.subr.mxu1 %v237_v26  ;;  %v279_v25 = vld [vmem:[%s1826_s1 + $0x838] sm:$0xff]  ;;  %v281_v26 = vld [vmem:[%s1826_s1 + $0x848] sm:$0xff] }
  0x51   :  { %583 = vmatpush1.msra.mxu0 %v234_v27  ;;  %654 = vmatpush1.msra.mxu1 %v236_v28  ;;  %v286_v27 = vld [vmem:[%s1828_s2] sm:$0xff]  ;;  %v265_v28 = vld [vmem:[%s1826_s1 + $0x7c8] sm:$0xff] }
  0x52   :  { %584 = vmatprep.subr.mxu0 %v220_v29  ;;  %655 = vmatprep.subr.mxu1 %v222_v30  ;;  %v267_v29 = vld [vmem:[%s1826_s1 + $0x7d8] sm:$0xff]  ;;  %v264_v30 = vld [vmem:[%s1826_s1 + $0x7c0] sm:$0xff] }
  0x53   :  { %585 = vmatpush1.msra.mxu0 %v219_v31  ;;  %656 = vmatpush1.msra.mxu1 %v221_v32  ;;  %v266_v31 = vld [vmem:[%s1826_s1 + $0x7d0] sm:$0xff] }
  0x54   :  { %586 = vmatprep.subr.mxu0 %v205_v33  ;;  %657 = vmatprep.subr.mxu1 %v207_v34  ;;  %v254_v32 = vld [vmem:[%s1826_s1 + $0x770] sm:$0xff]  ;;  %v253_v33 = vld [vmem:[%s1826_s1 + $0x768] sm:$0xff]  ;;  %v255_v34 = vld [vmem:[%s1826_s1 + $0x778] sm:$0xff] }
  0x55   :  { %587 = vmatpush1.msra.mxu0 %v204_v35  ;;  %658 = vmatpush1.msra.mxu1 %v206_v36  ;;  %v239_v35 = vld [vmem:[%s1826_s1 + $0x6f8] sm:$0xff]  ;;  %v895_v36 = vmov 0.0  }
  0x56   :  { %588 = vmatprep.subr.mxu0 %v190_v37  ;;  %659 = vmatprep.subr.mxu1 %v192_v38  ;;  %v238_v37 = vld [vmem:[%s1826_s1 + $0x6f0] sm:$0xff]  ;;  %v240_v38 = vld [vmem:[%s1826_s1 + $0x700] sm:$0xff] }
  0x57   :  { %589 = vmatpush1.msra.mxu0 %v189_v39  ;;  %660 = vmatpush1.msra.mxu1 %v191_v40  ;;  %v224_v39 = vld [vmem:[%s1826_s1 + $0x680] sm:$0xff]  ;;  %v223_v40 = vld [vmem:[%s1826_s1 + $0x678] sm:$0xff] }
  0x58   :  { %590 = vmatprep.subr.mxu0 %v175_v41  ;;  %661 = vmatprep.subr.mxu1 %v177_v42  ;;  %v225_v41 = vld [vmem:[%s1826_s1 + $0x688] sm:$0xff] }
  0x59   :  { %591 = vmatpush1.msra.mxu0 %v174_v43  ;;  %662 = vmatpush1.msra.mxu1 %v176_v44  ;;  %v209_v42 = vld [vmem:[%s1826_s1 + $0x608] sm:$0xff]  ;;  %v208_v43 = vld [vmem:[%s1826_s1 + $0x600] sm:$0xff]  ;;  %v210_v44 = vld [vmem:[%s1826_s1 + $0x610] sm:$0xff] }
  0x5a   :  { %592 = vmatprep.subr.mxu0 %v160_v45  ;;  %663 = vmatprep.subr.mxu1 %v162_v46  ;;  %v194_v45 = vld [vmem:[%s1826_s1 + $0x590] sm:$0xff]  ;;  %v193_v46 = vld [vmem:[%s1826_s1 + $0x588] sm:$0xff] }
  0x5b   :  { %593 = vmatpush1.msra.mxu0 %v159_v47  ;;  %664 = vmatpush1.msra.mxu1 %v161_v48  ;;  %v195_v47 = vld [vmem:[%s1826_s1 + $0x598] sm:$0xff] }
  0x5c   :  { %594 = vmatprep.subr.mxu0 %v145_v49  ;;  %665 = vmatprep.subr.mxu1 %v147_v50  ;;  %v179_v48 = vld [vmem:[%s1826_s1 + $0x518] sm:$0xff]  ;;  %v178_v49 = vld [vmem:[%s1826_s1 + $0x510] sm:$0xff]  ;;  %v180_v50 = vld [vmem:[%s1826_s1 + $0x520] sm:$0xff] }
  0x5d   :  { %595 = vmatpush1.msra.mxu0 %v144_v51  ;;  %666 = vmatpush1.msra.mxu1 %v146_v52  ;;  %v164_v51 = vld [vmem:[%s1826_s1 + $0x4a0] sm:$0xff]  ;;  %v163_v52 = vld [vmem:[%s1826_s1 + $0x498] sm:$0xff] }
  0x5e   :  { %596 = vmatprep.subr.mxu0 %v130_v53  ;;  %667 = vmatprep.subr.mxu1 %v132_v54  ;;  %v165_v53 = vld [vmem:[%s1826_s1 + $0x4a8] sm:$0xff] }
  0x5f   :  { %597 = vmatpush1.msra.mxu0 %v129_v55  ;;  %668 = vmatpush1.msra.mxu1 %v131_v56  ;;  %v149_v54 = vld [vmem:[%s1826_s1 + $0x428] sm:$0xff]  ;;  %v148_v55 = vld [vmem:[%s1826_s1 + $0x420] sm:$0xff]  ;;  %v150_v56 = vld [vmem:[%s1826_s1 + $0x430] sm:$0xff] }
  0x60   :  { %598 = vmatprep.subr.mxu0 %v115_v57  ;;  %669 = vmatprep.subr.mxu1 %v117_v58  ;;  %v134_v57 = vld [vmem:[%s1826_s1 + $0x3b0] sm:$0xff]  ;;  %v133_v58 = vld [vmem:[%s1826_s1 + $0x3a8] sm:$0xff] }
  0x61   :  { %599 = vmatpush1.msra.mxu0 %v114_v59  ;;  %670 = vmatpush1.msra.mxu1 %v116_v60  ;;  %v135_v59 = vld [vmem:[%s1826_s1 + $0x3b8] sm:$0xff] }
  0x62   :  { %600 = vmatprep.subr.mxu0 %v100_v61  ;;  %671 = vmatprep.subr.mxu1 %v102_v62  ;;  %v119_v60 = vld [vmem:[%s1826_s1 + $0x338] sm:$0xff]  ;;  %v118_v61 = vld [vmem:[%s1826_s1 + $0x330] sm:$0xff]  ;;  %v120_v62 = vld [vmem:[%s1826_s1 + $0x340] sm:$0xff] }
  0x63   :  { %601 = vmatpush1.msra.mxu0 %v99_v63  ;;  %672 = vmatpush1.msra.mxu1 %v101_v0  ;;  %v104_v63 = vld [vmem:[%s1826_s1 + $0x2c0] sm:$0xff]  ;;  %v103_v0 = vld [vmem:[%s1826_s1 + $0x2b8] sm:$0xff] }
  0x64   :  { %602 = vmatprep.subr.mxu0 %v85_v1  ;;  %673 = vmatprep.subr.mxu1 %v87_v2  ;;  %v105_v1 = vld [vmem:[%s1826_s1 + $0x2c8] sm:$0xff] }
  0x65   :  { %603 = vmatpush1.msra.mxu0 %v84_v3  ;;  %674 = vmatpush1.msra.mxu1 %v86_v4  ;;  %v89_v2 = vld [vmem:[%s1826_s1 + $0x248] sm:$0xff]  ;;  %v88_v3 = vld [vmem:[%s1826_s1 + $0x240] sm:$0xff]  ;;  %v90_v4 = vld [vmem:[%s1826_s1 + $0x250] sm:$0xff] }
  0x66   :  { %604 = vmatprep.subr.mxu0 %v70_v5  ;;  %675 = vmatprep.subr.mxu1 %v72_v6  ;;  %v74_v5 = vld [vmem:[%s1826_s1 + $0x1d0] sm:$0xff]  ;;  %v73_v6 = vld [vmem:[%s1826_s1 + $0x1c8] sm:$0xff] }
  0x67   :  { %605 = vmatpush1.msra.mxu0 %v69_v7  ;;  %676 = vmatpush1.msra.mxu1 %v71_v9  ;;  %v75_v7 = vld [vmem:[%s1826_s1 + $0x1d8] sm:$0xff] }
  0x68   :  { %606 = vmatprep.subr.mxu0 %v55_v11  ;;  %677 = vmatprep.subr.mxu1 %v57_v12  ;;  %v59_v9 = vld [vmem:[%s1826_s1 + $0x158] sm:$0xff]  ;;  %v58_v11 = vld [vmem:[%s1826_s1 + $0x150] sm:$0xff]  ;;  %v60_v12 = vld [vmem:[%s1826_s1 + $0x160] sm:$0xff] }
  0x69   :  { %607 = vmatpush1.msra.mxu0 %v54_v13  ;;  %678 = vmatpush1.msra.mxu1 %v56_v14  ;;  %v44_v13 = vld [vmem:[%s1826_s1 + $0xe0] sm:$0xff]  ;;  %v43_v14 = vld [vmem:[%s1826_s1 + $0xd8] sm:$0xff] }
  0x6a   :  { %608 = vmatprep.subr.mxu0 %v40_v15  ;;  %679 = vmatprep.subr.mxu1 %v42_v16  ;;  %v45_v15 = vld [vmem:[%s1826_s1 + $0xe8] sm:$0xff] }
  0x6b   :  { %609 = vmatpush1.msra.mxu0 %v39_v17  ;;  %680 = vmatpush1.msra.mxu1 %v41_v18  ;;  %v29_v16 = vld [vmem:[%s1826_s1 + $0x68] sm:$0xff]  ;;  %v28_v17 = vld [vmem:[%s1826_s1 + $0x60] sm:$0xff]  ;;  %v30_v18 = vld [vmem:[%s1826_s1 + $0x70] sm:$0xff] }
  0x6c   :  { %610 = vmatprep.subr.mxu0 %v25_v19  ;;  %681 = vmatprep.subr.mxu1 %v27_v20  ;;  %v284_v19 = vld [vmem:[%s1826_s1 + $0x860] sm:$0xff]  ;;  %v283_v20 = vld [vmem:[%s1826_s1 + $0x858] sm:$0xff] }
  0x6d   :  { %611 = vmatpush1.msra.mxu0 %v24_v21  ;;  %682 = vmatpush1.msra.mxu1 %v26_v22  ;;  %v285_v21 = vld [vmem:[%s1826_s1 + $0x868] sm:$0xff] }
  0x6e   :  { %640 = vmatprep.subr.mxu0 %v280_v23  ;;  %711 = vmatprep.subr.mxu1 %v282_v24  ;;  %v269_v22 = vld [vmem:[%s1826_s1 + $0x7e8] sm:$0xff]  ;;  %v268_v23 = vld [vmem:[%s1826_s1 + $0x7e0] sm:$0xff]  ;;  %v270_v24 = vld [vmem:[%s1826_s1 + $0x7f0] sm:$0xff] }
  0x6f   :  { %641 = vmatpush2.msra.mxu0 %v279_v25  ;;  %712 = vmatpush2.msra.mxu1 %v281_v26 }
  0x70   :  { %289 = vperm.xlu0 %893, %v286_v27   ;;  %642 = vmatprep.subr.mxu0 %v265_v28 }
  0x71   :  { %713 = vmatprep.subr.mxu1 %v267_v29  ;;  %643 = vmatpush2.msra.mxu0 %v264_v30 }
  0x72   :  { %887 = vmatprep.mubr.msk.f32.mxu0 %vm292_vm0, %v1132_v8  ;;  %714 = vmatpush2.msra.mxu1 %v266_v31 }
  0x73   :  { %645 = vmatmul.mubr.f32.vlgmr.msra.gmra.mxu0 %v1140_v10  ;;  %888 = vmatprep.mubr.msk.f32.mxu1 %vm292_vm0, %v1132_v8 }
  0x74   :  { %722 = vmatprep.subr.mxu0 %v254_v32  ;;  %793 = vmatprep.subr.mxu1 %v895_v36 }
  0x75   :  { %716 = vmatmul.mubr.f32.vlgmr.msra.gmra.mxu1 %v1140_v10  ;;  %723 = vmatpush1.msra.mxu0 %v253_v33 }
  0x76   :  { %794 = vmatpush1.msra.mxu1 %v255_v34  ;;  %724 = vmatprep.subr.mxu0 %v239_v35 }
  0x77   :  { %795 = vmatprep.subr.mxu1 %v895_v36  ;;  %725 = vmatpush1.msra.mxu0 %v238_v37 }
  0x78   :  { %796 = vmatpush1.msra.mxu1 %v240_v38  ;;  %726 = vmatprep.subr.mxu0 %v224_v39 }
  0x79   :  { %797 = vmatprep.subr.mxu1 %v895_v36  ;;  %727 = vmatpush1.msra.mxu0 %v223_v40 }
  0x7a   :  { %798 = vmatpush1.msra.mxu1 %v225_v41  ;;  %728 = vmatprep.subr.mxu0 %v209_v42 }
  0x7b   :  { %799 = vmatprep.subr.mxu1 %v895_v36  ;;  %729 = vmatpush1.msra.mxu0 %v208_v43 }
  0x7c   :  { %800 = vmatpush1.msra.mxu1 %v210_v44  ;;  %730 = vmatprep.subr.mxu0 %v194_v45 }
  0x7d   :  { %801 = vmatprep.subr.mxu1 %v895_v36  ;;  %731 = vmatpush1.msra.mxu0 %v193_v46 }
  0x7e   :  { %802 = vmatpush1.msra.mxu1 %v195_v47  ;;  %732 = vmatprep.subr.mxu0 %v179_v48 }
  0x7f   :  { %803 = vmatprep.subr.mxu1 %v895_v36  ;;  %733 = vmatpush1.msra.mxu0 %v178_v49 }
  0x80   :  { %804 = vmatpush1.msra.mxu1 %v180_v50  ;;  %734 = vmatprep.subr.mxu0 %v164_v51 }
  0x81   :  { %805 = vmatprep.subr.mxu1 %v895_v36  ;;  %735 = vmatpush1.msra.mxu0 %v163_v52 }
  0x82   :  { %806 = vmatpush1.msra.mxu1 %v165_v53  ;;  %736 = vmatprep.subr.mxu0 %v149_v54 }
  0x83   :  { %807 = vmatprep.subr.mxu1 %v895_v36  ;;  %737 = vmatpush1.msra.mxu0 %v148_v55 }
  0x84   :  { %808 = vmatpush1.msra.mxu1 %v150_v56  ;;  %738 = vmatprep.subr.mxu0 %v134_v57 }
  0x85   :  { %809 = vmatprep.subr.mxu1 %v895_v36  ;;  %739 = vmatpush1.msra.mxu0 %v133_v58 }
  0x86   :  { %810 = vmatpush1.msra.mxu1 %v135_v59  ;;  %740 = vmatprep.subr.mxu0 %v119_v60 }
  0x87   :  { %811 = vmatprep.subr.mxu1 %v895_v36  ;;  %741 = vmatpush1.msra.mxu0 %v118_v61 }
  0x88   :  { %812 = vmatpush1.msra.mxu1 %v120_v62  ;;  %742 = vmatprep.subr.mxu0 %v104_v63 }
  0x89   :  { %813 = vmatprep.subr.mxu1 %v895_v36  ;;  %743 = vmatpush1.msra.mxu0 %v103_v0 }
  0x8a   :  { %814 = vmatpush1.msra.mxu1 %v105_v1  ;;  %744 = vmatprep.subr.mxu0 %v89_v2 }
  0x8b   :  { %815 = vmatprep.subr.mxu1 %v895_v36  ;;  %745 = vmatpush1.msra.mxu0 %v88_v3 }
  0x8c   :  { %816 = vmatpush1.msra.mxu1 %v90_v4  ;;  %746 = vmatprep.subr.mxu0 %v74_v5 }
  0x8d   :  { %817 = vmatprep.subr.mxu1 %v895_v36  ;;  %747 = vmatpush1.msra.mxu0 %v73_v6 }
  0x8e   :  { %818 = vmatpush1.msra.mxu1 %v75_v7  ;;  %748 = vmatprep.subr.mxu0 %v59_v9 }
  0x8f   :  { %819 = vmatprep.subr.mxu1 %v895_v36  ;;  %749 = vmatpush1.msra.mxu0 %v58_v11 }
  0x90   :  { %820 = vmatpush1.msra.mxu1 %v60_v12  ;;  %750 = vmatprep.subr.mxu0 %v44_v13 }
  0x91   :  { %821 = vmatprep.subr.mxu1 %v895_v36  ;;  %751 = vmatpush1.msra.mxu0 %v43_v14 }
  0x92   :  { %822 = vmatpush1.msra.mxu1 %v45_v15  ;;  %752 = vmatprep.subr.mxu0 %v29_v16 }
  0x93   :  { %823 = vmatprep.subr.mxu1 %v895_v36  ;;  %753 = vmatpush1.msra.mxu0 %v28_v17 }
  0x94   :  { %824 = vmatpush1.msra.mxu1 %v30_v18  ;;  %782 = vmatprep.subr.mxu0 %v284_v19 }
  0x95   :  { %853 = vmatprep.subr.mxu1 %v895_v36  ;;  %783 = vmatpush2.msra.mxu0 %v283_v20 }
  0x96   :  { %854 = vmatpush2.msra.mxu1 %v285_v21  ;;  %784 = vmatprep.subr.mxu0 %v269_v22 }
  0x97   :  { %855 = vmatprep.subr.mxu1 %v895_v36  ;;  %785 = vmatpush2.msra.mxu0 %v268_v23 }
  0x98   :  { %889 = vmatprep.mubr.msk.f32.mxu0 %vm292_vm0, %v1132_v8  ;;  %856 = vmatpush2.msra.mxu1 %v270_v24 }
  0x99   :  { %890 = vmatprep.mubr.msk.f32.mxu1 %vm292_vm0, %v1132_v8  ;;  %787 = vmatmul.mubr.f32.vlgmr.msra.gmra.mxu0 %v1140_v10 }
  0x9a   :  { %858 = vmatmul.mubr.f32.vlgmr.msra.gmra.mxu1 %v1140_v10 }
  0xe6   :  { %v362_v25 = vpop.f32.mrf.mxu0 }
  0xe8   :  { %v433_v26 = vpop.f32.mrf.mxu1  ;;  %v364_v27 = vpop.f32.mrf.mxu0 }
  0xea   :  { %v435_v28 = vpop.f32.mrf.mxu1 }
  0xeb   :  { %v290_v29 = vpop.permute.xlu0 %289 }
  0xec   :  { %v363_v30 = vadd.f32 %v362_v25, %v290_v29  ;;  %v434_v31 = vadd.f32 %v433_v26, %v290_v29  ;;  %v365_v32 = vadd.f32 %v364_v27, %v290_v29  ;;  %v436_v33 = vadd.f32 %v435_v28, %v290_v29 }
  0xee   :  { %863 = vst [vmem:[%s1829_s3] sm:$0xff] %v363_v30  ;;  %865 = vst [vmem:[%s1829_s3 + $0x10] sm:$0xff] %v434_v31 }
  0xef   :  { %864 = vst [vmem:[%s1829_s3 + $0x8] sm:$0xff] %v365_v32  ;;  %866 = vst [vmem:[%s1829_s3 + $0x18] sm:$0xff] %v436_v33 }
 0x10c   :  { %v504_v8 = vpop.f32.mrf.mxu0 }
 0x10d   :  { %v505_v10 = vadd.f32 %v504_v8, %v290_v29 }
 0x10e   :  { %v575_v34 = vpop.f32.mrf.mxu1  ;;  %v506_v35 = vpop.f32.mrf.mxu0 }
 0x10f   :  { %867 = vst [vmem:[%s1829_s3 + $0x20] sm:$0xff] %v505_v10  ;;  %v576_v36 = vadd.f32 %v575_v34, %v290_v29  ;;  %v507_v37 = vadd.f32 %v506_v35, %v290_v29 }
 0x110   :  { %v577_v38 = vpop.f32.mrf.mxu1 }
 0x111   :  { %869 = vst [vmem:[%s1829_s3 + $0x30] sm:$0xff] %v576_v36  ;;  %868 = vst [vmem:[%s1829_s3 + $0x28] sm:$0xff] %v507_v37  ;;  %v578_v39 = vadd.f32 %v577_v38, %v290_v29 }
 0x113   :  { %870 = vst [vmem:[%s1829_s3 + $0x38] sm:$0xff] %v578_v39 }
 0x133   :  { %v646_v40 = vpop.f32.mrf.mxu0 }
 0x134   :  { %v647_v41 = vadd.f32 %v646_v40, %v290_v29 }
 0x135   :  { %v717_v42 = vpop.f32.mrf.mxu1  ;;  %v648_v43 = vpop.f32.mrf.mxu0 }
 0x136   :  { %871 = vst [vmem:[%s1829_s3 + $0x40] sm:$0xff] %v647_v41  ;;  %v718_v44 = vadd.f32 %v717_v42, %v290_v29  ;;  %v649_v45 = vadd.f32 %v648_v43, %v290_v29 }
 0x137   :  { %v719_v46 = vpop.f32.mrf.mxu1 }
 0x138   :  { %873 = vst [vmem:[%s1829_s3 + $0x50] sm:$0xff] %v718_v44  ;;  %872 = vst [vmem:[%s1829_s3 + $0x48] sm:$0xff] %v649_v45  ;;  %v720_v47 = vadd.f32 %v719_v46, %v290_v29 }
 0x13a   :  { %874 = vst [vmem:[%s1829_s3 + $0x58] sm:$0xff] %v720_v47 }
 0x159   :  { %v788_v48 = vpop.f32.mrf.mxu0 }
 0x15a   :  { %v789_v49 = vadd.f32 %v788_v48, %v290_v29  ;;  %v859_v50 = vpop.f32.mrf.mxu1 }
 0x15b   :  { %v860_v51 = vadd.f32 %v859_v50, %v290_v29  ;;  %v790_v52 = vpop.f32.mrf.mxu0 }
 0x15c   :  { %875 = vst [vmem:[%s1829_s3 + $0x60] sm:$0xff] %v789_v49  ;;  %v791_v53 = vadd.f32 %v790_v52, %v290_v29  ;;  %v861_v54 = vpop.f32.mrf.mxu1 }
 0x15d   :  { %878 = vst.msk [vmem:[%s1829_s3 + $0x70] sm:$0xff] %vm877_vm1, %v860_v51 }
 0x15e   :  { %876 = vst [vmem:[%s1829_s3 + $0x68] sm:$0xff] %v791_v53 }

// kernel: autoencoder_forward.13
= control target key start
LH: loop header
LB: loop body
LE: loop exit
PB: predicated region body
PF: predicated region fallthrough
CT: control target
= control target key end

     0   :  { %v2978_v3 = vmov 0.0   ;;  %vm531_vm0 = vcmask 588800   ;;  %s4740_s1 = inlined_call_operand.vmem [shape: f32[72,7128], index: 1, kind: input, shape index: {}]   ;;  %s4741_s2 = inlined_call_operand.<no memory space> [shape: f32[1,1], index: 2, kind: input, shape index: {}]   ;;  %s4742_s0 = inlined_call_operand.vmem [shape: f32[1,72], index: 0, kind: input, shape index: {}]   ;;  %s4743_s3 = inlined_call_operand.vmem [shape: f32[1,7128], index: 3, kind: output, shape index: {}]  }
   0x1   :  { %v466_v0 = vld [vmem:[%s4740_s1 + $0xe08] sm:$0xff]  ;;  %v468_v1 = vld [vmem:[%s4740_s1 + $0xe18] sm:$0xff]  ;;  %v465_v2 = vld [vmem:[%s4740_s1 + $0xe00] sm:$0xff]  ;;  %599 = vmatprep.mubr.f32.mxu0 %v2978_v3  ;;  %670 = vmatprep.mubr.f32.mxu1 %v2978_v3  ;;  %v8_v4 = vstv %s4741_s2 }
   0x2   :  { %549 = vmatprep.subr.mxu0 %v466_v0  ;;  %620 = vmatprep.subr.mxu1 %v468_v1  ;;  %v467_v5 = vld [vmem:[%s4740_s1 + $0xe10] sm:$0xff]  ;;  %v410_v6 = vld [vmem:[%s4740_s1 + $0xc48] sm:$0xff]  ;;  %v412_v7 = vld [vmem:[%s4740_s1 + $0xc58] sm:$0xff]  ;;  %9 = vst [vmem:[#allocation2] sm:$0x1] %v8_v4 }
   0x3   :  { %550 = vmatpush1.msra.mxu0 %v465_v2  ;;  %621 = vmatpush1.msra.mxu1 %v467_v5  ;;  %v409_v8 = vld [vmem:[%s4740_s1 + $0xc40] sm:$0xff]  ;;  %v411_v9 = vld [vmem:[%s4740_s1 + $0xc50] sm:$0xff]  ;;  %v354_v10 = vld [vmem:[%s4740_s1 + $0xa88] sm:$0xff] }
   0x4   :  { %551 = vmatprep.subr.mxu0 %v410_v6  ;;  %622 = vmatprep.subr.mxu1 %v412_v7  ;;  %v356_v11 = vld [vmem:[%s4740_s1 + $0xa98] sm:$0xff]  ;;  %v353_v12 = vld [vmem:[%s4740_s1 + $0xa80] sm:$0xff]  ;;  %v355_v13 = vld [vmem:[%s4740_s1 + $0xa90] sm:$0xff] }
   0x5   :  { %552 = vmatpush1.msra.mxu0 %v409_v8  ;;  %623 = vmatpush1.msra.mxu1 %v411_v9  ;;  %v298_v14 = vld [vmem:[%s4740_s1 + $0x8c8] sm:$0xff]  ;;  %v300_v15 = vld [vmem:[%s4740_s1 + $0x8d8] sm:$0xff]  ;;  %v297_v16 = vld [vmem:[%s4740_s1 + $0x8c0] sm:$0xff] }
   0x6   :  { %553 = vmatprep.subr.mxu0 %v354_v10  ;;  %624 = vmatprep.subr.mxu1 %v356_v11  ;;  %v299_v17 = vld [vmem:[%s4740_s1 + $0x8d0] sm:$0xff]  ;;  %v242_v18 = vld [vmem:[%s4740_s1 + $0x708] sm:$0xff]  ;;  %v244_v19 = vld [vmem:[%s4740_s1 + $0x718] sm:$0xff] }
   0x7   :  { %554 = vmatpush1.msra.mxu0 %v353_v12  ;;  %625 = vmatpush1.msra.mxu1 %v355_v13  ;;  %v241_v20 = vld [vmem:[%s4740_s1 + $0x700] sm:$0xff]  ;;  %v243_v21 = vld [vmem:[%s4740_s1 + $0x710] sm:$0xff]  ;;  %v186_v22 = vld [vmem:[%s4740_s1 + $0x548] sm:$0xff] }
   0x8   :  { %555 = vmatprep.subr.mxu0 %v298_v14  ;;  %626 = vmatprep.subr.mxu1 %v300_v15  ;;  %v188_v23 = vld [vmem:[%s4740_s1 + $0x558] sm:$0xff]  ;;  %v185_v24 = vld [vmem:[%s4740_s1 + $0x540] sm:$0xff]  ;;  %v187_v25 = vld [vmem:[%s4740_s1 + $0x550] sm:$0xff] }
   0x9   :  { %556 = vmatpush1.msra.mxu0 %v297_v16  ;;  %627 = vmatpush1.msra.mxu1 %v299_v17  ;;  %v130_v26 = vld [vmem:[%s4740_s1 + $0x388] sm:$0xff]  ;;  %v132_v27 = vld [vmem:[%s4740_s1 + $0x398] sm:$0xff]  ;;  %v129_v28 = vld [vmem:[%s4740_s1 + $0x380] sm:$0xff] }
   0xa   :  { %557 = vmatprep.subr.mxu0 %v242_v18  ;;  %628 = vmatprep.subr.mxu1 %v244_v19  ;;  %v131_v29 = vld [vmem:[%s4740_s1 + $0x390] sm:$0xff]  ;;  %v74_v30 = vld [vmem:[%s4740_s1 + $0x1c8] sm:$0xff]  ;;  %v76_v31 = vld [vmem:[%s4740_s1 + $0x1d8] sm:$0xff] }
   0xb   :  { %558 = vmatpush1.msra.mxu0 %v241_v20  ;;  %629 = vmatpush1.msra.mxu1 %v243_v21  ;;  %v73_v32 = vld [vmem:[%s4740_s1 + $0x1c0] sm:$0xff]  ;;  %v75_v33 = vld [vmem:[%s4740_s1 + $0x1d0] sm:$0xff]  ;;  %v18_v34 = vld [vmem:[%s4740_s1 + $0x8] sm:$0xff] }
   0xc   :  { %559 = vmatprep.subr.mxu0 %v186_v22  ;;  %630 = vmatprep.subr.mxu1 %v188_v23  ;;  %v20_v35 = vld [vmem:[%s4740_s1 + $0x18] sm:$0xff]  ;;  %v17_v36 = vld [vmem:[%s4740_s1] sm:$0xff]  ;;  %v19_v37 = vld [vmem:[%s4740_s1 + $0x10] sm:$0xff] }
   0xd   :  { %560 = vmatpush1.msra.mxu0 %v185_v24  ;;  %631 = vmatpush1.msra.mxu1 %v187_v25  ;;  %v3117_v38 = vld [vmem:[%s4742_s0] sm:$0x1]  ;;  %v470_v39 = vld [vmem:[%s4740_s1 + $0xe28] sm:$0xff]  ;;  %v472_v40 = vld [vmem:[%s4740_s1 + $0xe38] sm:$0xff] }
   0xe   :  { %561 = vmatprep.subr.mxu0 %v130_v26  ;;  %632 = vmatprep.subr.mxu1 %v132_v27  ;;  %v469_v41 = vld [vmem:[%s4740_s1 + $0xe20] sm:$0xff]  ;;  %v471_v42 = vld [vmem:[%s4740_s1 + $0xe30] sm:$0xff]  ;;  %v414_v43 = vld [vmem:[%s4740_s1 + $0xc68] sm:$0xff] }
   0xf   :  { %562 = vmatpush1.msra.mxu0 %v129_v28  ;;  %633 = vmatpush1.msra.mxu1 %v131_v29  ;;  %v416_v44 = vld [vmem:[%s4740_s1 + $0xc78] sm:$0xff]  ;;  %v413_v45 = vld [vmem:[%s4740_s1 + $0xc60] sm:$0xff]  ;;  %v415_v46 = vld [vmem:[%s4740_s1 + $0xc70] sm:$0xff] }
  0x10   :  { %563 = vmatprep.subr.mxu0 %v74_v30  ;;  %634 = vmatprep.subr.mxu1 %v76_v31  ;;  %v358_v47 = vld [vmem:[%s4740_s1 + $0xaa8] sm:$0xff]  ;;  %v360_v48 = vld [vmem:[%s4740_s1 + $0xab8] sm:$0xff]  ;;  %v357_v49 = vld [vmem:[%s4740_s1 + $0xaa0] sm:$0xff] }
  0x11   :  { %564 = vmatpush1.msra.mxu0 %v73_v32  ;;  %635 = vmatpush1.msra.mxu1 %v75_v33  ;;  %v359_v50 = vld [vmem:[%s4740_s1 + $0xab0] sm:$0xff]  ;;  %v302_v51 = vld [vmem:[%s4740_s1 + $0x8e8] sm:$0xff]  ;;  %v304_v52 = vld [vmem:[%s4740_s1 + $0x8f8] sm:$0xff] }
  0x12   :  { %565 = vmatprep.subr.mxu0 %v18_v34  ;;  %636 = vmatprep.subr.mxu1 %v20_v35  ;;  %v301_v53 = vld [vmem:[%s4740_s1 + $0x8e0] sm:$0xff]  ;;  %v303_v54 = vld [vmem:[%s4740_s1 + $0x8f0] sm:$0xff]  ;;  %v246_v55 = vld [vmem:[%s4740_s1 + $0x728] sm:$0xff] }
  0x13   :  { %566 = vmatpush1.msra.mxu0 %v17_v36  ;;  %637 = vmatpush1.msra.mxu1 %v19_v37  ;;  %v248_v56 = vld [vmem:[%s4740_s1 + $0x738] sm:$0xff]  ;;  %v245_v57 = vld [vmem:[%s4740_s1 + $0x720] sm:$0xff]  ;;  %v247_v58 = vld [vmem:[%s4740_s1 + $0x730] sm:$0xff] }
  0x14   :  { %2944 = vmatmul.mubr.msk.f32.vlgmr.msra.gmra.mxu0 %vm531_vm0, %v3117_v38  ;;  %2945 = vmatmul.mubr.msk.f32.vlgmr.msra.gmra.mxu1 %vm531_vm0, %v3117_v38  ;;  %v190_v59 = vld [vmem:[%s4740_s1 + $0x568] sm:$0xff]  ;;  %v192_v60 = vld [vmem:[%s4740_s1 + $0x578] sm:$0xff]  ;;  %v189_v61 = vld [vmem:[%s4740_s1 + $0x560] sm:$0xff] }
  0x15   :  { %691 = vmatprep.subr.mxu0 %v470_v39  ;;  %762 = vmatprep.subr.mxu1 %v472_v40  ;;  %v191_v62 = vld [vmem:[%s4740_s1 + $0x570] sm:$0xff]  ;;  %v134_v63 = vld [vmem:[%s4740_s1 + $0x3a8] sm:$0xff]  ;;  %v136_v0 = vld [vmem:[%s4740_s1 + $0x3b8] sm:$0xff] }
  0x16   :  { %692 = vmatpush1.msra.mxu0 %v469_v41  ;;  %763 = vmatpush1.msra.mxu1 %v471_v42  ;;  %v133_v1 = vld [vmem:[%s4740_s1 + $0x3a0] sm:$0xff]  ;;  %v135_v2 = vld [vmem:[%s4740_s1 + $0x3b0] sm:$0xff]  ;;  %v78_v4 = vld [vmem:[%s4740_s1 + $0x1e8] sm:$0xff] }
  0x17   :  { %693 = vmatprep.subr.mxu0 %v414_v43  ;;  %764 = vmatprep.subr.mxu1 %v416_v44  ;;  %v80_v5 = vld [vmem:[%s4740_s1 + $0x1f8] sm:$0xff]  ;;  %v77_v6 = vld [vmem:[%s4740_s1 + $0x1e0] sm:$0xff]  ;;  %v79_v7 = vld [vmem:[%s4740_s1 + $0x1f0] sm:$0xff] }
  0x18   :  { %694 = vmatpush1.msra.mxu0 %v413_v45  ;;  %765 = vmatpush1.msra.mxu1 %v415_v46  ;;  %v22_v8 = vld [vmem:[%s4740_s1 + $0x28] sm:$0xff]  ;;  %v24_v9 = vld [vmem:[%s4740_s1 + $0x38] sm:$0xff]  ;;  %v21_v10 = vld [vmem:[%s4740_s1 + $0x20] sm:$0xff] }
  0x19   :  { %695 = vmatprep.subr.mxu0 %v358_v47  ;;  %766 = vmatprep.subr.mxu1 %v360_v48  ;;  %v23_v11 = vld [vmem:[%s4740_s1 + $0x30] sm:$0xff]  ;;  %v474_v12 = vld [vmem:[%s4740_s1 + $0xe48] sm:$0xff]  ;;  %v476_v13 = vld [vmem:[%s4740_s1 + $0xe58] sm:$0xff] }
  0x1a   :  { %696 = vmatpush1.msra.mxu0 %v357_v49  ;;  %767 = vmatpush1.msra.mxu1 %v359_v50  ;;  %v473_v14 = vld [vmem:[%s4740_s1 + $0xe40] sm:$0xff]  ;;  %v475_v15 = vld [vmem:[%s4740_s1 + $0xe50] sm:$0xff]  ;;  %v418_v16 = vld [vmem:[%s4740_s1 + $0xc88] sm:$0xff] }
  0x1b   :  { %697 = vmatprep.subr.mxu0 %v302_v51  ;;  %768 = vmatprep.subr.mxu1 %v304_v52  ;;  %v420_v17 = vld [vmem:[%s4740_s1 + $0xc98] sm:$0xff]  ;;  %v417_v18 = vld [vmem:[%s4740_s1 + $0xc80] sm:$0xff]  ;;  %v419_v19 = vld [vmem:[%s4740_s1 + $0xc90] sm:$0xff] }
  0x1c   :  { %698 = vmatpush1.msra.mxu0 %v301_v53  ;;  %769 = vmatpush1.msra.mxu1 %v303_v54  ;;  %v362_v20 = vld [vmem:[%s4740_s1 + $0xac8] sm:$0xff]  ;;  %v364_v21 = vld [vmem:[%s4740_s1 + $0xad8] sm:$0xff]  ;;  %v361_v22 = vld [vmem:[%s4740_s1 + $0xac0] sm:$0xff] }
  0x1d   :  { %699 = vmatprep.subr.mxu0 %v246_v55  ;;  %770 = vmatprep.subr.mxu1 %v248_v56  ;;  %v363_v23 = vld [vmem:[%s4740_s1 + $0xad0] sm:$0xff]  ;;  %v306_v24 = vld [vmem:[%s4740_s1 + $0x908] sm:$0xff]  ;;  %v308_v25 = vld [vmem:[%s4740_s1 + $0x918] sm:$0xff] }
  0x1e   :  { %700 = vmatpush1.msra.mxu0 %v245_v57  ;;  %771 = vmatpush1.msra.mxu1 %v247_v58  ;;  %v305_v26 = vld [vmem:[%s4740_s1 + $0x900] sm:$0xff]  ;;  %v307_v27 = vld [vmem:[%s4740_s1 + $0x910] sm:$0xff]  ;;  %v250_v28 = vld [vmem:[%s4740_s1 + $0x748] sm:$0xff] }
  0x1f   :  { %701 = vmatprep.subr.mxu0 %v190_v59  ;;  %772 = vmatprep.subr.mxu1 %v192_v60  ;;  %v252_v29 = vld [vmem:[%s4740_s1 + $0x758] sm:$0xff]  ;;  %v249_v30 = vld [vmem:[%s4740_s1 + $0x740] sm:$0xff]  ;;  %v251_v31 = vld [vmem:[%s4740_s1 + $0x750] sm:$0xff] }
  0x20   :  { %702 = vmatpush1.msra.mxu0 %v189_v61  ;;  %773 = vmatpush1.msra.mxu1 %v191_v62  ;;  %v194_v32 = vld [vmem:[%s4740_s1 + $0x588] sm:$0xff]  ;;  %v196_v33 = vld [vmem:[%s4740_s1 + $0x598] sm:$0xff]  ;;  %v193_v34 = vld [vmem:[%s4740_s1 + $0x580] sm:$0xff] }
  0x21   :  { %703 = vmatprep.subr.mxu0 %v134_v63  ;;  %774 = vmatprep.subr.mxu1 %v136_v0  ;;  %v195_v35 = vld [vmem:[%s4740_s1 + $0x590] sm:$0xff]  ;;  %v138_v36 = vld [vmem:[%s4740_s1 + $0x3c8] sm:$0xff]  ;;  %v140_v37 = vld [vmem:[%s4740_s1 + $0x3d8] sm:$0xff] }
  0x22   :  { %704 = vmatpush1.msra.mxu0 %v133_v1  ;;  %775 = vmatpush1.msra.mxu1 %v135_v2  ;;  %v137_v39 = vld [vmem:[%s4740_s1 + $0x3c0] sm:$0xff]  ;;  %v139_v40 = vld [vmem:[%s4740_s1 + $0x3d0] sm:$0xff]  ;;  %v82_v41 = vld [vmem:[%s4740_s1 + $0x208] sm:$0xff] }
  0x23   :  { %705 = vmatprep.subr.mxu0 %v78_v4  ;;  %776 = vmatprep.subr.mxu1 %v80_v5  ;;  %v84_v42 = vld [vmem:[%s4740_s1 + $0x218] sm:$0xff]  ;;  %v81_v43 = vld [vmem:[%s4740_s1 + $0x200] sm:$0xff]  ;;  %v83_v44 = vld [vmem:[%s4740_s1 + $0x210] sm:$0xff] }
  0x24   :  { %706 = vmatpush1.msra.mxu0 %v77_v6  ;;  %777 = vmatpush1.msra.mxu1 %v79_v7  ;;  %v26_v45 = vld [vmem:[%s4740_s1 + $0x48] sm:$0xff]  ;;  %v28_v46 = vld [vmem:[%s4740_s1 + $0x58] sm:$0xff]  ;;  %v25_v47 = vld [vmem:[%s4740_s1 + $0x40] sm:$0xff] }
  0x25   :  { %707 = vmatprep.subr.mxu0 %v22_v8  ;;  %778 = vmatprep.subr.mxu1 %v24_v9  ;;  %v27_v48 = vld [vmem:[%s4740_s1 + $0x50] sm:$0xff]  ;;  %v478_v49 = vld [vmem:[%s4740_s1 + $0xe68] sm:$0xff]  ;;  %v480_v50 = vld [vmem:[%s4740_s1 + $0xe78] sm:$0xff] }
  0x26   :  { %708 = vmatpush1.msra.mxu0 %v21_v10  ;;  %741 = vmatprep.mubr.f32.mxu0 %v2978_v3  ;;  %v477_v51 = vld [vmem:[%s4740_s1 + $0xe60] sm:$0xff]  ;;  %v479_v52 = vld [vmem:[%s4740_s1 + $0xe70] sm:$0xff]  ;;  %v422_v53 = vld [vmem:[%s4740_s1 + $0xca8] sm:$0xff] }
  0x27   :  { %779 = vmatpush1.msra.mxu1 %v23_v11  ;;  %812 = vmatprep.mubr.f32.mxu1 %v2978_v3  ;;  %v424_v54 = vld [vmem:[%s4740_s1 + $0xcb8] sm:$0xff]  ;;  %v421_v55 = vld [vmem:[%s4740_s1 + $0xca0] sm:$0xff]  ;;  %v423_v56 = vld [vmem:[%s4740_s1 + $0xcb0] sm:$0xff] }
  0x28   :  { %2946 = vmatmul.mubr.msk.f32.vlgmr.msra.gmra.mxu0 %vm531_vm0, %v3117_v38  ;;  %2947 = vmatmul.mubr.msk.f32.vlgmr.msra.gmra.mxu1 %vm531_vm0, %v3117_v38  ;;  %v366_v57 = vld [vmem:[%s4740_s1 + $0xae8] sm:$0xff]  ;;  %v368_v58 = vld [vmem:[%s4740_s1 + $0xaf8] sm:$0xff]  ;;  %v365_v59 = vld [vmem:[%s4740_s1 + $0xae0] sm:$0xff] }
  0x29   :  { %833 = vmatprep.subr.mxu0 %v474_v12  ;;  %904 = vmatprep.subr.mxu1 %v476_v13  ;;  %v367_v60 = vld [vmem:[%s4740_s1 + $0xaf0] sm:$0xff]  ;;  %v310_v61 = vld [vmem:[%s4740_s1 + $0x928] sm:$0xff]  ;;  %v312_v62 = vld [vmem:[%s4740_s1 + $0x938] sm:$0xff] }
  0x2a   :  { %834 = vmatpush1.msra.mxu0 %v473_v14  ;;  %905 = vmatpush1.msra.mxu1 %v475_v15  ;;  %v309_v63 = vld [vmem:[%s4740_s1 + $0x920] sm:$0xff]  ;;  %v311_v0 = vld [vmem:[%s4740_s1 + $0x930] sm:$0xff]  ;;  %v254_v1 = vld [vmem:[%s4740_s1 + $0x768] sm:$0xff] }
  0x2b   :  { %835 = vmatprep.subr.mxu0 %v418_v16  ;;  %906 = vmatprep.subr.mxu1 %v420_v17  ;;  %v256_v2 = vld [vmem:[%s4740_s1 + $0x778] sm:$0xff]  ;;  %v253_v4 = vld [vmem:[%s4740_s1 + $0x760] sm:$0xff]  ;;  %v255_v5 = vld [vmem:[%s4740_s1 + $0x770] sm:$0xff] }
  0x2c   :  { %836 = vmatpush1.msra.mxu0 %v417_v18  ;;  %907 = vmatpush1.msra.mxu1 %v419_v19  ;;  %v198_v6 = vld [vmem:[%s4740_s1 + $0x5a8] sm:$0xff]  ;;  %v200_v7 = vld [vmem:[%s4740_s1 + $0x5b8] sm:$0xff]  ;;  %v197_v8 = vld [vmem:[%s4740_s1 + $0x5a0] sm:$0xff] }
  0x2d   :  { %837 = vmatprep.subr.mxu0 %v362_v20  ;;  %908 = vmatprep.subr.mxu1 %v364_v21  ;;  %v199_v9 = vld [vmem:[%s4740_s1 + $0x5b0] sm:$0xff]  ;;  %v142_v10 = vld [vmem:[%s4740_s1 + $0x3e8] sm:$0xff]  ;;  %v144_v11 = vld [vmem:[%s4740_s1 + $0x3f8] sm:$0xff] }
  0x2e   :  { %838 = vmatpush1.msra.mxu0 %v361_v22  ;;  %909 = vmatpush1.msra.mxu1 %v363_v23  ;;  %v141_v12 = vld [vmem:[%s4740_s1 + $0x3e0] sm:$0xff]  ;;  %v143_v13 = vld [vmem:[%s4740_s1 + $0x3f0] sm:$0xff]  ;;  %v86_v14 = vld [vmem:[%s4740_s1 + $0x228] sm:$0xff] }
  0x2f   :  { %839 = vmatprep.subr.mxu0 %v306_v24  ;;  %910 = vmatprep.subr.mxu1 %v308_v25  ;;  %v88_v15 = vld [vmem:[%s4740_s1 + $0x238] sm:$0xff]  ;;  %v85_v16 = vld [vmem:[%s4740_s1 + $0x220] sm:$0xff]  ;;  %v87_v17 = vld [vmem:[%s4740_s1 + $0x230] sm:$0xff] }
  0x30   :  { %840 = vmatpush1.msra.mxu0 %v305_v26  ;;  %911 = vmatpush1.msra.mxu1 %v307_v27  ;;  %v30_v18 = vld [vmem:[%s4740_s1 + $0x68] sm:$0xff]  ;;  %v32_v19 = vld [vmem:[%s4740_s1 + $0x78] sm:$0xff]  ;;  %v29_v20 = vld [vmem:[%s4740_s1 + $0x60] sm:$0xff] }
  0x31   :  { %841 = vmatprep.subr.mxu0 %v250_v28  ;;  %912 = vmatprep.subr.mxu1 %v252_v29  ;;  %v31_v21 = vld [vmem:[%s4740_s1 + $0x70] sm:$0xff]  ;;  %v482_v22 = vld [vmem:[%s4740_s1 + $0xe88] sm:$0xff]  ;;  %v484_v23 = vld [vmem:[%s4740_s1 + $0xe98] sm:$0xff] }
  0x32   :  { %842 = vmatpush1.msra.mxu0 %v249_v30  ;;  %913 = vmatpush1.msra.mxu1 %v251_v31  ;;  %v481_v24 = vld [vmem:[%s4740_s1 + $0xe80] sm:$0xff]  ;;  %v483_v25 = vld [vmem:[%s4740_s1 + $0xe90] sm:$0xff]  ;;  %v426_v26 = vld [vmem:[%s4740_s1 + $0xcc8] sm:$0xff] }
  0x33   :  { %843 = vmatprep.subr.mxu0 %v194_v32  ;;  %914 = vmatprep.subr.mxu1 %v196_v33  ;;  %v428_v27 = vld [vmem:[%s4740_s1 + $0xcd8] sm:$0xff]  ;;  %v425_v28 = vld [vmem:[%s4740_s1 + $0xcc0] sm:$0xff]  ;;  %v427_v29 = vld [vmem:[%s4740_s1 + $0xcd0] sm:$0xff] }
  0x34   :  { %844 = vmatpush1.msra.mxu0 %v193_v34  ;;  %915 = vmatpush1.msra.mxu1 %v195_v35  ;;  %v370_v30 = vld [vmem:[%s4740_s1 + $0xb08] sm:$0xff]  ;;  %v372_v31 = vld [vmem:[%s4740_s1 + $0xb18] sm:$0xff]  ;;  %v369_v32 = vld [vmem:[%s4740_s1 + $0xb00] sm:$0xff] }
  0x35   :  { %845 = vmatprep.subr.mxu0 %v138_v36  ;;  %916 = vmatprep.subr.mxu1 %v140_v37  ;;  %v371_v33 = vld [vmem:[%s4740_s1 + $0xb10] sm:$0xff]  ;;  %v314_v34 = vld [vmem:[%s4740_s1 + $0x948] sm:$0xff]  ;;  %v316_v35 = vld [vmem:[%s4740_s1 + $0x958] sm:$0xff] }
  0x36   :  { %846 = vmatpush1.msra.mxu0 %v137_v39  ;;  %917 = vmatpush1.msra.mxu1 %v139_v40  ;;  %v313_v36 = vld [vmem:[%s4740_s1 + $0x940] sm:$0xff]  ;;  %v315_v37 = vld [vmem:[%s4740_s1 + $0x950] sm:$0xff]  ;;  %v258_v39 = vld [vmem:[%s4740_s1 + $0x788] sm:$0xff] }
  0x37   :  { %847 = vmatprep.subr.mxu0 %v82_v41  ;;  %918 = vmatprep.subr.mxu1 %v84_v42  ;;  %v260_v40 = vld [vmem:[%s4740_s1 + $0x798] sm:$0xff]  ;;  %v257_v41 = vld [vmem:[%s4740_s1 + $0x780] sm:$0xff]  ;;  %v259_v42 = vld [vmem:[%s4740_s1 + $0x790] sm:$0xff] }
  0x38   :  { %848 = vmatpush1.msra.mxu0 %v81_v43  ;;  %919 = vmatpush1.msra.mxu1 %v83_v44  ;;  %v202_v43 = vld [vmem:[%s4740_s1 + $0x5c8] sm:$0xff]  ;;  %v204_v44 = vld [vmem:[%s4740_s1 + $0x5d8] sm:$0xff] }
  0x39   :  { %849 = vmatprep.subr.mxu0 %v26_v45  ;;  %920 = vmatprep.subr.mxu1 %v28_v46  ;;  %v201_v45 = vld [vmem:[%s4740_s1 + $0x5c0] sm:$0xff]  ;;  %v203_v46 = vld [vmem:[%s4740_s1 + $0x5d0] sm:$0xff] }
  0x3a   :  { %850 = vmatpush1.msra.mxu0 %v25_v47  ;;  %883 = vmatprep.mubr.f32.mxu0 %v2978_v3  ;;  %v146_v47 = vld [vmem:[%s4740_s1 + $0x408] sm:$0xff] }
  0x3b   :  { %921 = vmatpush1.msra.mxu1 %v27_v48  ;;  %954 = vmatprep.mubr.f32.mxu1 %v2978_v3  ;;  %v148_v48 = vld [vmem:[%s4740_s1 + $0x418] sm:$0xff] }
  0x3c   :  { %2948 = vmatmul.mubr.msk.f32.vlgmr.msra.gmra.mxu0 %vm531_vm0, %v3117_v38  ;;  %2949 = vmatmul.mubr.msk.f32.vlgmr.msra.gmra.mxu1 %vm531_vm0, %v3117_v38 }
  0x3d   :  { %975 = vmatprep.subr.mxu0 %v478_v49  ;;  %1046 = vmatprep.subr.mxu1 %v480_v50  ;;  %v145_v49 = vld [vmem:[%s4740_s1 + $0x400] sm:$0xff]  ;;  %v147_v50 = vld [vmem:[%s4740_s1 + $0x410] sm:$0xff] }
  0x3e   :  { %976 = vmatpush1.msra.mxu0 %v477_v51  ;;  %1047 = vmatpush1.msra.mxu1 %v479_v52  ;;  %v521_v51 = vld [vmem:[#allocation2] sm:$0x1]  ;;  %v90_v52 = vld [vmem:[%s4740_s1 + $0x248] sm:$0xff] }
  0x3f   :  { %977 = vmatprep.subr.mxu0 %v422_v53  ;;  %1048 = vmatprep.subr.mxu1 %v424_v54  ;;  %v92_v53 = vld [vmem:[%s4740_s1 + $0x258] sm:$0xff]  ;;  %v2979_v54 = vmov 0  }
  0x40   :  { %978 = vmatpush1.msra.mxu0 %v421_v55  ;;  %1049 = vmatpush1.msra.mxu1 %v423_v56  ;;  %v89_v55 = vld [vmem:[%s4740_s1 + $0x240] sm:$0xff]  ;;  %v91_v56 = vld [vmem:[%s4740_s1 + $0x250] sm:$0xff] }
  0x41   :  { %979 = vmatprep.subr.mxu0 %v366_v57  ;;  %1050 = vmatprep.subr.mxu1 %v368_v58  ;;  %v34_v57 = vld [vmem:[%s4740_s1 + $0x88] sm:$0xff]  ;;  %v36_v58 = vld [vmem:[%s4740_s1 + $0x98] sm:$0xff] }
  0x42   :  { %980 = vmatpush1.msra.mxu0 %v365_v59  ;;  %1051 = vmatpush1.msra.mxu1 %v367_v60  ;;  %v33_v59 = vld [vmem:[%s4740_s1 + $0x80] sm:$0xff]  ;;  %v35_v60 = vld [vmem:[%s4740_s1 + $0x90] sm:$0xff] }
  0x43   :  { %981 = vmatprep.subr.mxu0 %v310_v61  ;;  %1052 = vmatprep.subr.mxu1 %v312_v62  ;;  %v486_v61 = vld [vmem:[%s4740_s1 + $0xea8] sm:$0xff]  ;;  %v488_v62 = vld [vmem:[%s4740_s1 + $0xeb8] sm:$0xff] }
  0x44   :  { %982 = vmatpush1.msra.mxu0 %v309_v63  ;;  %1053 = vmatpush1.msra.mxu1 %v311_v0  ;;  %v485_v63 = vld [vmem:[%s4740_s1 + $0xea0] sm:$0xff]  ;;  %v487_v0 = vld [vmem:[%s4740_s1 + $0xeb0] sm:$0xff] }
  0x45   :  { %983 = vmatprep.subr.mxu0 %v254_v1  ;;  %1054 = vmatprep.subr.mxu1 %v256_v2  ;;  %v430_v1 = vld [vmem:[%s4740_s1 + $0xce8] sm:$0xff]  ;;  %v432_v2 = vld [vmem:[%s4740_s1 + $0xcf8] sm:$0xff] }
  0x46   :  { %984 = vmatpush1.msra.mxu0 %v253_v4  ;;  %1055 = vmatpush1.msra.mxu1 %v255_v5  ;;  %v429_v4 = vld [vmem:[%s4740_s1 + $0xce0] sm:$0xff]  ;;  %v431_v5 = vld [vmem:[%s4740_s1 + $0xcf0] sm:$0xff] }
  0x47   :  { %985 = vmatprep.subr.mxu0 %v198_v6  ;;  %1056 = vmatprep.subr.mxu1 %v200_v7  ;;  %v374_v6 = vld [vmem:[%s4740_s1 + $0xb28] sm:$0xff]  ;;  %v376_v7 = vld [vmem:[%s4740_s1 + $0xb38] sm:$0xff] }
  0x48   :  { %986 = vmatpush1.msra.mxu0 %v197_v8  ;;  %1057 = vmatpush1.msra.mxu1 %v199_v9  ;;  %v373_v8 = vld [vmem:[%s4740_s1 + $0xb20] sm:$0xff]  ;;  %v375_v9 = vld [vmem:[%s4740_s1 + $0xb30] sm:$0xff] }
  0x49   :  { %987 = vmatprep.subr.mxu0 %v142_v10  ;;  %1058 = vmatprep.subr.mxu1 %v144_v11  ;;  %v318_v10 = vld [vmem:[%s4740_s1 + $0x968] sm:$0xff]  ;;  %v320_v11 = vld [vmem:[%s4740_s1 + $0x978] sm:$0xff] }
  0x4a   :  { %988 = vmatpush1.msra.mxu0 %v141_v12  ;;  %1059 = vmatpush1.msra.mxu1 %v143_v13  ;;  %v317_v12 = vld [vmem:[%s4740_s1 + $0x960] sm:$0xff]  ;;  %v319_v13 = vld [vmem:[%s4740_s1 + $0x970] sm:$0xff] }
  0x4b   :  { %989 = vmatprep.subr.mxu0 %v86_v14  ;;  %1060 = vmatprep.subr.mxu1 %v88_v15  ;;  %v262_v14 = vld [vmem:[%s4740_s1 + $0x7a8] sm:$0xff]  ;;  %v264_v15 = vld [vmem:[%s4740_s1 + $0x7b8] sm:$0xff] }
  0x4c   :  { %990 = vmatpush1.msra.mxu0 %v85_v16  ;;  %1061 = vmatpush1.msra.mxu1 %v87_v17  ;;  %v261_v16 = vld [vmem:[%s4740_s1 + $0x7a0] sm:$0xff]  ;;  %v263_v17 = vld [vmem:[%s4740_s1 + $0x7b0] sm:$0xff] }
  0x4d   :  { %991 = vmatprep.subr.mxu0 %v30_v18  ;;  %1062 = vmatprep.subr.mxu1 %v32_v19  ;;  %v206_v18 = vld [vmem:[%s4740_s1 + $0x5e8] sm:$0xff]  ;;  %v208_v19 = vld [vmem:[%s4740_s1 + $0x5f8] sm:$0xff] }
  0x4e   :  { %992 = vmatpush1.msra.mxu0 %v29_v20  ;;  %1025 = vmatprep.mubr.f32.mxu0 %v2978_v3  ;;  %v205_v20 = vld [vmem:[%s4740_s1 + $0x5e0] sm:$0xff] }
  0x4f   :  { %1063 = vmatpush1.msra.mxu1 %v31_v21  ;;  %1096 = vmatprep.mubr.f32.mxu1 %v2978_v3  ;;  %v207_v21 = vld [vmem:[%s4740_s1 + $0x5f0] sm:$0xff] }
  0x50   :  { %2950 = vmatmul.mubr.msk.f32.vlgmr.msra.gmra.mxu0 %vm531_vm0, %v3117_v38  ;;  %2951 = vmatmul.mubr.msk.f32.vlgmr.msra.gmra.mxu1 %vm531_vm0, %v3117_v38 }
  0x51   :  { %1117 = vmatprep.subr.mxu0 %v482_v22  ;;  %1188 = vmatprep.subr.mxu1 %v484_v23  ;;  %v150_v22 = vld [vmem:[%s4740_s1 + $0x428] sm:$0xff]  ;;  %v152_v23 = vld [vmem:[%s4740_s1 + $0x438] sm:$0xff] }
  0x52   :  { %1118 = vmatpush1.msra.mxu0 %v481_v24  ;;  %1189 = vmatpush1.msra.mxu1 %v483_v25  ;;  %v149_v24 = vld [vmem:[%s4740_s1 + $0x420] sm:$0xff]  ;;  %v151_v25 = vld [vmem:[%s4740_s1 + $0x430] sm:$0xff] }
  0x53   :  { %1119 = vmatprep.subr.mxu0 %v426_v26  ;;  %1190 = vmatprep.subr.mxu1 %v428_v27  ;;  %v94_v26 = vld [vmem:[%s4740_s1 + $0x268] sm:$0xff]  ;;  %v96_v27 = vld [vmem:[%s4740_s1 + $0x278] sm:$0xff] }
  0x54   :  { %1120 = vmatpush1.msra.mxu0 %v425_v28  ;;  %1191 = vmatpush1.msra.mxu1 %v427_v29  ;;  %v93_v28 = vld [vmem:[%s4740_s1 + $0x260] sm:$0xff]  ;;  %v95_v29 = vld [vmem:[%s4740_s1 + $0x270] sm:$0xff] }
  0x55   :  { %1121 = vmatprep.subr.mxu0 %v370_v30  ;;  %1192 = vmatprep.subr.mxu1 %v372_v31  ;;  %v38_v30 = vld [vmem:[%s4740_s1 + $0xa8] sm:$0xff]  ;;  %v40_v31 = vld [vmem:[%s4740_s1 + $0xb8] sm:$0xff] }
  0x56   :  { %1122 = vmatpush1.msra.mxu0 %v369_v32  ;;  %1193 = vmatpush1.msra.mxu1 %v371_v33  ;;  %v37_v32 = vld [vmem:[%s4740_s1 + $0xa0] sm:$0xff]  ;;  %v39_v33 = vld [vmem:[%s4740_s1 + $0xb0] sm:$0xff] }
  0x57   :  { %1123 = vmatprep.subr.mxu0 %v314_v34  ;;  %1194 = vmatprep.subr.mxu1 %v316_v35  ;;  %v490_v34 = vld [vmem:[%s4740_s1 + $0xec8] sm:$0xff]  ;;  %v492_v35 = vld [vmem:[%s4740_s1 + $0xed8] sm:$0xff] }
  0x58   :  { %1124 = vmatpush1.msra.mxu0 %v313_v36  ;;  %1195 = vmatpush1.msra.mxu1 %v315_v37  ;;  %v489_v36 = vld [vmem:[%s4740_s1 + $0xec0] sm:$0xff]  ;;  %v491_v37 = vld [vmem:[%s4740_s1 + $0xed0] sm:$0xff] }
  0x59   :  { %1125 = vmatprep.subr.mxu0 %v258_v39  ;;  %1196 = vmatprep.subr.mxu1 %v260_v40  ;;  %v434_v39 = vld [vmem:[%s4740_s1 + $0xd08] sm:$0xff]  ;;  %v436_v40 = vld [vmem:[%s4740_s1 + $0xd18] sm:$0xff] }
  0x5a   :  { %1126 = vmatpush1.msra.mxu0 %v257_v41  ;;  %1197 = vmatpush1.msra.mxu1 %v259_v42  ;;  %v433_v41 = vld [vmem:[%s4740_s1 + $0xd00] sm:$0xff]  ;;  %v435_v42 = vld [vmem:[%s4740_s1 + $0xd10] sm:$0xff] }
  0x5b   :  { %1127 = vmatprep.subr.mxu0 %v202_v43  ;;  %1198 = vmatprep.subr.mxu1 %v204_v44  ;;  %v378_v43 = vld [vmem:[%s4740_s1 + $0xb48] sm:$0xff]  ;;  %v380_v44 = vld [vmem:[%s4740_s1 + $0xb58] sm:$0xff] }
  0x5c   :  { %1128 = vmatpush1.msra.mxu0 %v201_v45  ;;  %1199 = vmatpush1.msra.mxu1 %v203_v46  ;;  %v377_v45 = vld [vmem:[%s4740_s1 + $0xb40] sm:$0xff]  ;;  %v379_v46 = vld [vmem:[%s4740_s1 + $0xb50] sm:$0xff] }
  0x5d   :  { %1129 = vmatprep.subr.mxu0 %v146_v47  ;;  %1200 = vmatprep.subr.mxu1 %v148_v48  ;;  %v322_v47 = vld [vmem:[%s4740_s1 + $0x988] sm:$0xff]  ;;  %v324_v48 = vld [vmem:[%s4740_s1 + $0x998] sm:$0xff] }
  0x5e   :  { %2975 = vset.pattern.permute.xlu0 %v2979_v54  ;;  %1130 = vmatpush1.msra.mxu0 %v145_v49  ;;  %v321_v49 = vld [vmem:[%s4740_s1 + $0x980] sm:$0xff]  ;;  %v267_v54 = vld [vmem:[%s4740_s1 + $0x7d0] sm:$0xff] }
  0x5f   :  { %1201 = vmatpush1.msra.mxu1 %v147_v50  ;;  %524 = vperm.xlu0 %2975, %v521_v51   ;;  %v323_v50 = vld [vmem:[%s4740_s1 + $0x990] sm:$0xff]  ;;  %v266_v51 = vld [vmem:[%s4740_s1 + $0x7c8] sm:$0xff] }
  0x60   :  { %1131 = vmatprep.subr.mxu0 %v90_v52  ;;  %1202 = vmatprep.subr.mxu1 %v92_v53  ;;  %v268_v52 = vld [vmem:[%s4740_s1 + $0x7d8] sm:$0xff]  ;;  %v265_v53 = vld [vmem:[%s4740_s1 + $0x7c0] sm:$0xff] }
  0x61   :  { %1132 = vmatpush1.msra.mxu0 %v89_v55  ;;  %1203 = vmatpush1.msra.mxu1 %v91_v56  ;;  %v210_v55 = vld [vmem:[%s4740_s1 + $0x608] sm:$0xff]  ;;  %v212_v56 = vld [vmem:[%s4740_s1 + $0x618] sm:$0xff] }
  0x62   :  { %1133 = vmatprep.subr.mxu0 %v34_v57  ;;  %1204 = vmatprep.subr.mxu1 %v36_v58  ;;  %v209_v57 = vld [vmem:[%s4740_s1 + $0x600] sm:$0xff]  ;;  %v211_v58 = vld [vmem:[%s4740_s1 + $0x610] sm:$0xff] }
  0x63   :  { %1134 = vmatpush1.msra.mxu0 %v33_v59  ;;  %1167 = vmatprep.mubr.f32.mxu0 %v2978_v3  ;;  %v154_v59 = vld [vmem:[%s4740_s1 + $0x448] sm:$0xff] }
  0x64   :  { %1205 = vmatpush1.msra.mxu1 %v35_v60  ;;  %1238 = vmatprep.mubr.f32.mxu1 %v2978_v3  ;;  %v156_v60 = vld [vmem:[%s4740_s1 + $0x458] sm:$0xff] }
  0x65   :  { %2952 = vmatmul.mubr.msk.f32.vlgmr.msra.gmra.mxu0 %vm531_vm0, %v3117_v38  ;;  %2953 = vmatmul.mubr.msk.f32.vlgmr.msra.gmra.mxu1 %vm531_vm0, %v3117_v38 }
  0x66   :  { %1259 = vmatprep.subr.mxu0 %v486_v61  ;;  %1330 = vmatprep.subr.mxu1 %v488_v62  ;;  %v153_v61 = vld [vmem:[%s4740_s1 + $0x440] sm:$0xff]  ;;  %v155_v62 = vld [vmem:[%s4740_s1 + $0x450] sm:$0xff] }
  0x67   :  { %1260 = vmatpush1.msra.mxu0 %v485_v63  ;;  %1331 = vmatpush1.msra.mxu1 %v487_v0  ;;  %v98_v63 = vld [vmem:[%s4740_s1 + $0x288] sm:$0xff]  ;;  %v100_v0 = vld [vmem:[%s4740_s1 + $0x298] sm:$0xff] }
  0x68   :  { %1261 = vmatprep.subr.mxu0 %v430_v1  ;;  %1332 = vmatprep.subr.mxu1 %v432_v2  ;;  %v97_v1 = vld [vmem:[%s4740_s1 + $0x280] sm:$0xff]  ;;  %v99_v2 = vld [vmem:[%s4740_s1 + $0x290] sm:$0xff] }
  0x69   :  { %1262 = vmatpush1.msra.mxu0 %v429_v4  ;;  %1333 = vmatpush1.msra.mxu1 %v431_v5  ;;  %v42_v4 = vld [vmem:[%s4740_s1 + $0xc8] sm:$0xff]  ;;  %v44_v5 = vld [vmem:[%s4740_s1 + $0xd8] sm:$0xff] }
  0x6a   :  { %1263 = vmatprep.subr.mxu0 %v374_v6  ;;  %1334 = vmatprep.subr.mxu1 %v376_v7  ;;  %v41_v6 = vld [vmem:[%s4740_s1 + $0xc0] sm:$0xff]  ;;  %v43_v7 = vld [vmem:[%s4740_s1 + $0xd0] sm:$0xff] }
  0x6b   :  { %1264 = vmatpush1.msra.mxu0 %v373_v8  ;;  %1335 = vmatpush1.msra.mxu1 %v375_v9  ;;  %v494_v8 = vld [vmem:[%s4740_s1 + $0xee8] sm:$0xff]  ;;  %v496_v9 = vld [vmem:[%s4740_s1 + $0xef8] sm:$0xff] }
  0x6c   :  { %1265 = vmatprep.subr.mxu0 %v318_v10  ;;  %1336 = vmatprep.subr.mxu1 %v320_v11  ;;  %v493_v10 = vld [vmem:[%s4740_s1 + $0xee0] sm:$0xff]  ;;  %v495_v11 = vld [vmem:[%s4740_s1 + $0xef0] sm:$0xff] }
  0x6d   :  { %1266 = vmatpush1.msra.mxu0 %v317_v12  ;;  %1337 = vmatpush1.msra.mxu1 %v319_v13  ;;  %v438_v12 = vld [vmem:[%s4740_s1 + $0xd28] sm:$0xff]  ;;  %v440_v13 = vld [vmem:[%s4740_s1 + $0xd38] sm:$0xff] }
  0x6e   :  { %1267 = vmatprep.subr.mxu0 %v262_v14  ;;  %1338 = vmatprep.subr.mxu1 %v264_v15  ;;  %v437_v14 = vld [vmem:[%s4740_s1 + $0xd20] sm:$0xff]  ;;  %v439_v15 = vld [vmem:[%s4740_s1 + $0xd30] sm:$0xff] }
  0x6f   :  { %1268 = vmatpush1.msra.mxu0 %v261_v16  ;;  %1339 = vmatpush1.msra.mxu1 %v263_v17  ;;  %v384_v16 = vld [vmem:[%s4740_s1 + $0xb78] sm:$0xff]  ;;  %v381_v17 = vld [vmem:[%s4740_s1 + $0xb60] sm:$0xff] }
  0x70   :  { %1269 = vmatprep.subr.mxu0 %v206_v18  ;;  %1340 = vmatprep.subr.mxu1 %v208_v19  ;;  %v383_v18 = vld [vmem:[%s4740_s1 + $0xb70] sm:$0xff]  ;;  %v326_v19 = vld [vmem:[%s4740_s1 + $0x9a8] sm:$0xff] }
  0x71   :  { %1270 = vmatpush1.msra.mxu0 %v205_v20  ;;  %1341 = vmatpush1.msra.mxu1 %v207_v21  ;;  %v328_v20 = vld [vmem:[%s4740_s1 + $0x9b8] sm:$0xff]  ;;  %v325_v21 = vld [vmem:[%s4740_s1 + $0x9a0] sm:$0xff] }
  0x72   :  { %1271 = vmatprep.subr.mxu0 %v150_v22  ;;  %1342 = vmatprep.subr.mxu1 %v152_v23  ;;  %v327_v22 = vld [vmem:[%s4740_s1 + $0x9b0] sm:$0xff]  ;;  %v270_v23 = vld [vmem:[%s4740_s1 + $0x7e8] sm:$0xff] }
  0x73   :  { %1272 = vmatpush1.msra.mxu0 %v149_v24  ;;  %1343 = vmatpush1.msra.mxu1 %v151_v25  ;;  %v272_v24 = vld [vmem:[%s4740_s1 + $0x7f8] sm:$0xff]  ;;  %v269_v25 = vld [vmem:[%s4740_s1 + $0x7e0] sm:$0xff] }
  0x74   :  { %1273 = vmatprep.subr.mxu0 %v94_v26  ;;  %1344 = vmatprep.subr.mxu1 %v96_v27  ;;  %v271_v26 = vld [vmem:[%s4740_s1 + $0x7f0] sm:$0xff]  ;;  %v214_v27 = vld [vmem:[%s4740_s1 + $0x628] sm:$0xff] }
  0x75   :  { %1274 = vmatpush1.msra.mxu0 %v93_v28  ;;  %1345 = vmatpush1.msra.mxu1 %v95_v29  ;;  %v216_v28 = vld [vmem:[%s4740_s1 + $0x638] sm:$0xff]  ;;  %v213_v29 = vld [vmem:[%s4740_s1 + $0x620] sm:$0xff] }
  0x76   :  { %1275 = vmatprep.subr.mxu0 %v38_v30  ;;  %1346 = vmatprep.subr.mxu1 %v40_v31  ;;  %v215_v30 = vld [vmem:[%s4740_s1 + $0x630] sm:$0xff]  ;;  %v158_v31 = vld [vmem:[%s4740_s1 + $0x468] sm:$0xff] }
  0x77   :  { %1276 = vmatpush1.msra.mxu0 %v37_v32  ;;  %1309 = vmatprep.mubr.f32.mxu0 %v2978_v3  ;;  %v160_v32 = vld [vmem:[%s4740_s1 + $0x478] sm:$0xff] }
  0x78   :  { %1347 = vmatpush1.msra.mxu1 %v39_v33  ;;  %1380 = vmatprep.mubr.f32.mxu1 %v2978_v3  ;;  %v157_v33 = vld [vmem:[%s4740_s1 + $0x460] sm:$0xff] }
  0x79   :  { %2954 = vmatmul.mubr.msk.f32.vlgmr.msra.gmra.mxu0 %vm531_vm0, %v3117_v38  ;;  %2955 = vmatmul.mubr.msk.f32.vlgmr.msra.gmra.mxu1 %vm531_vm0, %v3117_v38 }
  0x7a   :  { %1401 = vmatprep.subr.mxu0 %v490_v34  ;;  %1472 = vmatprep.subr.mxu1 %v492_v35  ;;  %v159_v34 = vld [vmem:[%s4740_s1 + $0x470] sm:$0xff]  ;;  %v102_v35 = vld [vmem:[%s4740_s1 + $0x2a8] sm:$0xff] }
  0x7b   :  { %1402 = vmatpush1.msra.mxu0 %v489_v36  ;;  %1473 = vmatpush1.msra.mxu1 %v491_v37  ;;  %v104_v36 = vld [vmem:[%s4740_s1 + $0x2b8] sm:$0xff]  ;;  %v101_v37 = vld [vmem:[%s4740_s1 + $0x2a0] sm:$0xff] }
  0x7c   :  { %1403 = vmatprep.subr.mxu0 %v434_v39  ;;  %1474 = vmatprep.subr.mxu1 %v436_v40  ;;  %v103_v39 = vld [vmem:[%s4740_s1 + $0x2b0] sm:$0xff]  ;;  %v46_v40 = vld [vmem:[%s4740_s1 + $0xe8] sm:$0xff] }
  0x7d   :  { %1404 = vmatpush1.msra.mxu0 %v433_v41  ;;  %1475 = vmatpush1.msra.mxu1 %v435_v42  ;;  %v48_v41 = vld [vmem:[%s4740_s1 + $0xf8] sm:$0xff]  ;;  %v45_v42 = vld [vmem:[%s4740_s1 + $0xe0] sm:$0xff] }
  0x7e   :  { %1405 = vmatprep.subr.mxu0 %v378_v43  ;;  %1476 = vmatprep.subr.mxu1 %v380_v44  ;;  %v47_v43 = vld [vmem:[%s4740_s1 + $0xf0] sm:$0xff]  ;;  %v498_v44 = vld [vmem:[%s4740_s1 + $0xf08] sm:$0xff] }
  0x7f   :  { %1406 = vmatpush1.msra.mxu0 %v377_v45  ;;  %1477 = vmatpush1.msra.mxu1 %v379_v46  ;;  %v500_v45 = vld [vmem:[%s4740_s1 + $0xf18] sm:$0xff]  ;;  %v497_v46 = vld [vmem:[%s4740_s1 + $0xf00] sm:$0xff] }
  0x80   :  { %1407 = vmatprep.subr.mxu0 %v322_v47  ;;  %1478 = vmatprep.subr.mxu1 %v324_v48  ;;  %v499_v47 = vld [vmem:[%s4740_s1 + $0xf10] sm:$0xff]  ;;  %v3932_v48 = vld [vmem:[%s4742_s0] sm:$0x1] }
  0x81   :  { %1408 = vmatpush1.msra.mxu0 %v321_v49  ;;  %1479 = vmatpush1.msra.mxu1 %v323_v50  ;;  %v442_v49 = vld [vmem:[%s4740_s1 + $0xd48] sm:$0xff]  ;;  %v444_v50 = vld [vmem:[%s4740_s1 + $0xd58] sm:$0xff] }
  0x82   :  { %1409 = vmatprep.subr.mxu0 %v266_v51  ;;  %1480 = vmatprep.subr.mxu1 %v268_v52  ;;  %v441_v51 = vld [vmem:[%s4740_s1 + $0xd40] sm:$0xff]  ;;  %v443_v52 = vld [vmem:[%s4740_s1 + $0xd50] sm:$0xff] }
  0x83   :  { %1410 = vmatpush1.msra.mxu0 %v265_v53  ;;  %1481 = vmatpush1.msra.mxu1 %v267_v54  ;;  %v386_v53 = vld [vmem:[%s4740_s1 + $0xb88] sm:$0xff]  ;;  %v388_v54 = vld [vmem:[%s4740_s1 + $0xb98] sm:$0xff] }
  0x84   :  { %1411 = vmatprep.subr.mxu0 %v210_v55  ;;  %1482 = vmatprep.subr.mxu1 %v212_v56  ;;  %v385_v55 = vld [vmem:[%s4740_s1 + $0xb80] sm:$0xff]  ;;  %v387_v56 = vld [vmem:[%s4740_s1 + $0xb90] sm:$0xff] }
  0x85   :  { %1412 = vmatpush1.msra.mxu0 %v209_v57  ;;  %1483 = vmatpush1.msra.mxu1 %v211_v58  ;;  %v330_v57 = vld [vmem:[%s4740_s1 + $0x9c8] sm:$0xff]  ;;  %v332_v58 = vld [vmem:[%s4740_s1 + $0x9d8] sm:$0xff] }
  0x86   :  { %1413 = vmatprep.subr.mxu0 %v154_v59  ;;  %1484 = vmatprep.subr.mxu1 %v156_v60  ;;  %v329_v59 = vld [vmem:[%s4740_s1 + $0x9c0] sm:$0xff]  ;;  %v331_v60 = vld [vmem:[%s4740_s1 + $0x9d0] sm:$0xff] }
  0x87   :  { %1414 = vmatpush1.msra.mxu0 %v153_v61  ;;  %1485 = vmatpush1.msra.mxu1 %v155_v62  ;;  %v274_v61 = vld [vmem:[%s4740_s1 + $0x808] sm:$0xff]  ;;  %v276_v62 = vld [vmem:[%s4740_s1 + $0x818] sm:$0xff] }
  0x88   :  { %1415 = vmatprep.subr.mxu0 %v98_v63  ;;  %1486 = vmatprep.subr.mxu1 %v100_v0  ;;  %v273_v63 = vld [vmem:[%s4740_s1 + $0x800] sm:$0xff]  ;;  %v275_v0 = vld [vmem:[%s4740_s1 + $0x810] sm:$0xff] }
  0x89   :  { %1416 = vmatpush1.msra.mxu0 %v97_v1  ;;  %1487 = vmatpush1.msra.mxu1 %v99_v2  ;;  %v218_v1 = vld [vmem:[%s4740_s1 + $0x648] sm:$0xff]  ;;  %v220_v2 = vld [vmem:[%s4740_s1 + $0x658] sm:$0xff] }
  0x8a   :  { %1417 = vmatprep.subr.mxu0 %v42_v4  ;;  %1488 = vmatprep.subr.mxu1 %v44_v5  ;;  %v217_v4 = vld [vmem:[%s4740_s1 + $0x640] sm:$0xff]  ;;  %v219_v5 = vld [vmem:[%s4740_s1 + $0x650] sm:$0xff] }
  0x8b   :  { %1418 = vmatpush1.msra.mxu0 %v41_v6  ;;  %1451 = vmatprep.mubr.f32.mxu0 %v2978_v3  ;;  %v162_v6 = vld [vmem:[%s4740_s1 + $0x488] sm:$0xff] }
  0x8c   :  { %1489 = vmatpush1.msra.mxu1 %v43_v7  ;;  %1522 = vmatprep.mubr.f32.mxu1 %v2978_v3  ;;  %v164_v7 = vld [vmem:[%s4740_s1 + $0x498] sm:$0xff] }
  0x8d   :  { %2956 = vmatmul.mubr.msk.f32.vlgmr.msra.gmra.mxu0 %vm531_vm0, %v3117_v38  ;;  %2957 = vmatmul.mubr.msk.f32.vlgmr.msra.gmra.mxu1 %vm531_vm0, %v3117_v38  ;;  %v382_v38 = vld [vmem:[%s4740_s1 + $0xb68] sm:$0xff] }
  0x8e   :  { %1543 = vmatprep.subr.mxu0 %v494_v8  ;;  %1614 = vmatprep.subr.mxu1 %v496_v9  ;;  %v161_v8 = vld [vmem:[%s4740_s1 + $0x480] sm:$0xff]  ;;  %v163_v9 = vld [vmem:[%s4740_s1 + $0x490] sm:$0xff] }
  0x8f   :  { %1544 = vmatpush1.msra.mxu0 %v493_v10  ;;  %1615 = vmatpush1.msra.mxu1 %v495_v11  ;;  %v106_v10 = vld [vmem:[%s4740_s1 + $0x2c8] sm:$0xff]  ;;  %v108_v11 = vld [vmem:[%s4740_s1 + $0x2d8] sm:$0xff] }
  0x90   :  { %1545 = vmatprep.subr.mxu0 %v438_v12  ;;  %1616 = vmatprep.subr.mxu1 %v440_v13  ;;  %v105_v12 = vld [vmem:[%s4740_s1 + $0x2c0] sm:$0xff]  ;;  %v107_v13 = vld [vmem:[%s4740_s1 + $0x2d0] sm:$0xff] }
  0x91   :  { %1546 = vmatpush1.msra.mxu0 %v437_v14  ;;  %1617 = vmatpush1.msra.mxu1 %v439_v15  ;;  %v50_v14 = vld [vmem:[%s4740_s1 + $0x108] sm:$0xff]  ;;  %v52_v15 = vld [vmem:[%s4740_s1 + $0x118] sm:$0xff] }
  0x92   :  { %1547 = vmatprep.subr.mxu0 %v382_v38  ;;  %1618 = vmatprep.subr.mxu1 %v384_v16  ;;  %v49_v38 = vld [vmem:[%s4740_s1 + $0x100] sm:$0xff]  ;;  %v51_v16 = vld [vmem:[%s4740_s1 + $0x110] sm:$0xff] }
  0x93   :  { %1548 = vmatpush1.msra.mxu0 %v381_v17  ;;  %1619 = vmatpush1.msra.mxu1 %v383_v18  ;;  %v502_v17 = vld [vmem:[%s4740_s1 + $0xf28] sm:$0xff]  ;;  %v504_v18 = vld [vmem:[%s4740_s1 + $0xf38] sm:$0xff] }
  0x94   :  { %1549 = vmatprep.subr.mxu0 %v326_v19  ;;  %1620 = vmatprep.subr.mxu1 %v328_v20  ;;  %v501_v19 = vld [vmem:[%s4740_s1 + $0xf20] sm:$0xff]  ;;  %v503_v20 = vld [vmem:[%s4740_s1 + $0xf30] sm:$0xff] }
  0x95   :  { %1550 = vmatpush1.msra.mxu0 %v325_v21  ;;  %1621 = vmatpush1.msra.mxu1 %v327_v22  ;;  %v446_v21 = vld [vmem:[%s4740_s1 + $0xd68] sm:$0xff]  ;;  %v448_v22 = vld [vmem:[%s4740_s1 + $0xd78] sm:$0xff] }
  0x96   :  { %1551 = vmatprep.subr.mxu0 %v270_v23  ;;  %1622 = vmatprep.subr.mxu1 %v272_v24  ;;  %v445_v23 = vld [vmem:[%s4740_s1 + $0xd60] sm:$0xff]  ;;  %v447_v24 = vld [vmem:[%s4740_s1 + $0xd70] sm:$0xff] }
  0x97   :  { %1552 = vmatpush1.msra.mxu0 %v269_v25  ;;  %1623 = vmatpush1.msra.mxu1 %v271_v26  ;;  %v390_v25 = vld [vmem:[%s4740_s1 + $0xba8] sm:$0xff]  ;;  %v392_v26 = vld [vmem:[%s4740_s1 + $0xbb8] sm:$0xff] }
  0x98   :  { %1553 = vmatprep.subr.mxu0 %v214_v27  ;;  %1624 = vmatprep.subr.mxu1 %v216_v28  ;;  %v389_v27 = vld [vmem:[%s4740_s1 + $0xba0] sm:$0xff]  ;;  %v391_v28 = vld [vmem:[%s4740_s1 + $0xbb0] sm:$0xff] }
  0x99   :  { %1554 = vmatpush1.msra.mxu0 %v213_v29  ;;  %1625 = vmatpush1.msra.mxu1 %v215_v30  ;;  %v334_v29 = vld [vmem:[%s4740_s1 + $0x9e8] sm:$0xff]  ;;  %v336_v30 = vld [vmem:[%s4740_s1 + $0x9f8] sm:$0xff] }
  0x9a   :  { %1555 = vmatprep.subr.mxu0 %v158_v31  ;;  %1626 = vmatprep.subr.mxu1 %v160_v32  ;;  %v333_v31 = vld [vmem:[%s4740_s1 + $0x9e0] sm:$0xff]  ;;  %v335_v32 = vld [vmem:[%s4740_s1 + $0x9f0] sm:$0xff] }
  0x9b   :  { %1556 = vmatpush1.msra.mxu0 %v157_v33  ;;  %1627 = vmatpush1.msra.mxu1 %v159_v34  ;;  %v278_v33 = vld [vmem:[%s4740_s1 + $0x828] sm:$0xff]  ;;  %v280_v34 = vld [vmem:[%s4740_s1 + $0x838] sm:$0xff] }
  0x9c   :  { %1557 = vmatprep.subr.mxu0 %v102_v35  ;;  %1628 = vmatprep.subr.mxu1 %v104_v36  ;;  %v277_v35 = vld [vmem:[%s4740_s1 + $0x820] sm:$0xff]  ;;  %v279_v36 = vld [vmem:[%s4740_s1 + $0x830] sm:$0xff] }
  0x9d   :  { %1558 = vmatpush1.msra.mxu0 %v101_v37  ;;  %1629 = vmatpush1.msra.mxu1 %v103_v39  ;;  %v222_v37 = vld [vmem:[%s4740_s1 + $0x668] sm:$0xff]  ;;  %v224_v39 = vld [vmem:[%s4740_s1 + $0x678] sm:$0xff] }
  0x9e   :  { %1559 = vmatprep.subr.mxu0 %v46_v40  ;;  %1630 = vmatprep.subr.mxu1 %v48_v41  ;;  %v221_v40 = vld [vmem:[%s4740_s1 + $0x660] sm:$0xff]  ;;  %v223_v41 = vld [vmem:[%s4740_s1 + $0x670] sm:$0xff] }
  0x9f   :  { %1560 = vmatpush1.msra.mxu0 %v45_v42  ;;  %1593 = vmatprep.mubr.f32.mxu0 %v2978_v3  ;;  %v166_v42 = vld [vmem:[%s4740_s1 + $0x4a8] sm:$0xff] }
  0xa0   :  { %1631 = vmatpush1.msra.mxu1 %v47_v43  ;;  %1664 = vmatprep.mubr.f32.mxu1 %v2978_v3  ;;  %v168_v43 = vld [vmem:[%s4740_s1 + $0x4b8] sm:$0xff] }
  0xa1   :  { %2958 = vmatmul.mubr.msk.f32.vlgmr.msra.gmra.mxu0 %vm531_vm0, %v3932_v48  ;;  %2959 = vmatmul.mubr.msk.f32.vlgmr.msra.gmra.mxu1 %vm531_vm0, %v3932_v48 }
  0xa2   :  { %1685 = vmatprep.subr.mxu0 %v498_v44  ;;  %1756 = vmatprep.subr.mxu1 %v500_v45  ;;  %v165_v44 = vld [vmem:[%s4740_s1 + $0x4a0] sm:$0xff]  ;;  %v167_v45 = vld [vmem:[%s4740_s1 + $0x4b0] sm:$0xff] }
  0xa3   :  { %1686 = vmatpush1.msra.mxu0 %v497_v46  ;;  %1757 = vmatpush1.msra.mxu1 %v499_v47  ;;  %v110_v46 = vld [vmem:[%s4740_s1 + $0x2e8] sm:$0xff]  ;;  %v112_v47 = vld [vmem:[%s4740_s1 + $0x2f8] sm:$0xff] }
  0xa4   :  { %1687 = vmatprep.subr.mxu0 %v442_v49  ;;  %1758 = vmatprep.subr.mxu1 %v444_v50  ;;  %v109_v49 = vld [vmem:[%s4740_s1 + $0x2e0] sm:$0xff]  ;;  %v111_v50 = vld [vmem:[%s4740_s1 + $0x2f0] sm:$0xff] }
  0xa5   :  { %1688 = vmatpush1.msra.mxu0 %v441_v51  ;;  %1759 = vmatpush1.msra.mxu1 %v443_v52  ;;  %v54_v51 = vld [vmem:[%s4740_s1 + $0x128] sm:$0xff]  ;;  %v56_v52 = vld [vmem:[%s4740_s1 + $0x138] sm:$0xff] }
  0xa6   :  { %1689 = vmatprep.subr.mxu0 %v386_v53  ;;  %1760 = vmatprep.subr.mxu1 %v388_v54  ;;  %v53_v53 = vld [vmem:[%s4740_s1 + $0x120] sm:$0xff]  ;;  %v55_v54 = vld [vmem:[%s4740_s1 + $0x130] sm:$0xff] }
  0xa7   :  { %1690 = vmatpush1.msra.mxu0 %v385_v55  ;;  %1761 = vmatpush1.msra.mxu1 %v387_v56  ;;  %v506_v55 = vld [vmem:[%s4740_s1 + $0xf48] sm:$0xff]  ;;  %v508_v56 = vld [vmem:[%s4740_s1 + $0xf58] sm:$0xff] }
  0xa8   :  { %1691 = vmatprep.subr.mxu0 %v330_v57  ;;  %1762 = vmatprep.subr.mxu1 %v332_v58  ;;  %v505_v57 = vld [vmem:[%s4740_s1 + $0xf40] sm:$0xff]  ;;  %v507_v58 = vld [vmem:[%s4740_s1 + $0xf50] sm:$0xff] }
  0xa9   :  { %1692 = vmatpush1.msra.mxu0 %v329_v59  ;;  %1763 = vmatpush1.msra.mxu1 %v331_v60  ;;  %v450_v59 = vld [vmem:[%s4740_s1 + $0xd88] sm:$0xff]  ;;  %v452_v60 = vld [vmem:[%s4740_s1 + $0xd98] sm:$0xff] }
  0xaa   :  { %1693 = vmatprep.subr.mxu0 %v274_v61  ;;  %1764 = vmatprep.subr.mxu1 %v276_v62  ;;  %v449_v61 = vld [vmem:[%s4740_s1 + $0xd80] sm:$0xff]  ;;  %v451_v62 = vld [vmem:[%s4740_s1 + $0xd90] sm:$0xff] }
  0xab   :  { %1694 = vmatpush1.msra.mxu0 %v273_v63  ;;  %1765 = vmatpush1.msra.mxu1 %v275_v0  ;;  %v394_v63 = vld [vmem:[%s4740_s1 + $0xbc8] sm:$0xff]  ;;  %v396_v0 = vld [vmem:[%s4740_s1 + $0xbd8] sm:$0xff] }
  0xac   :  { %1695 = vmatprep.subr.mxu0 %v218_v1  ;;  %1766 = vmatprep.subr.mxu1 %v220_v2  ;;  %v393_v1 = vld [vmem:[%s4740_s1 + $0xbc0] sm:$0xff]  ;;  %v395_v2 = vld [vmem:[%s4740_s1 + $0xbd0] sm:$0xff] }
  0xad   :  { %1696 = vmatpush1.msra.mxu0 %v217_v4  ;;  %1767 = vmatpush1.msra.mxu1 %v219_v5  ;;  %v338_v4 = vld [vmem:[%s4740_s1 + $0xa08] sm:$0xff]  ;;  %v340_v5 = vld [vmem:[%s4740_s1 + $0xa18] sm:$0xff] }
  0xae   :  { %1697 = vmatprep.subr.mxu0 %v162_v6  ;;  %1768 = vmatprep.subr.mxu1 %v164_v7  ;;  %v337_v6 = vld [vmem:[%s4740_s1 + $0xa00] sm:$0xff]  ;;  %v339_v7 = vld [vmem:[%s4740_s1 + $0xa10] sm:$0xff] }
  0xaf   :  { %1698 = vmatpush1.msra.mxu0 %v161_v8  ;;  %1769 = vmatpush1.msra.mxu1 %v163_v9  ;;  %v282_v8 = vld [vmem:[%s4740_s1 + $0x848] sm:$0xff]  ;;  %v284_v9 = vld [vmem:[%s4740_s1 + $0x858] sm:$0xff] }
  0xb0   :  { %1699 = vmatprep.subr.mxu0 %v106_v10  ;;  %1770 = vmatprep.subr.mxu1 %v108_v11  ;;  %v281_v10 = vld [vmem:[%s4740_s1 + $0x840] sm:$0xff]  ;;  %v283_v11 = vld [vmem:[%s4740_s1 + $0x850] sm:$0xff] }
  0xb1   :  { %1700 = vmatpush1.msra.mxu0 %v105_v12  ;;  %1771 = vmatpush1.msra.mxu1 %v107_v13  ;;  %v226_v12 = vld [vmem:[%s4740_s1 + $0x688] sm:$0xff]  ;;  %v228_v13 = vld [vmem:[%s4740_s1 + $0x698] sm:$0xff] }
  0xb2   :  { %1701 = vmatprep.subr.mxu0 %v50_v14  ;;  %1772 = vmatprep.subr.mxu1 %v52_v15  ;;  %v225_v14 = vld [vmem:[%s4740_s1 + $0x680] sm:$0xff]  ;;  %v227_v15 = vld [vmem:[%s4740_s1 + $0x690] sm:$0xff] }
  0xb3   :  { %1702 = vmatpush1.msra.mxu0 %v49_v38  ;;  %1735 = vmatprep.mubr.f32.mxu0 %v2978_v3  ;;  %v527_v38 = vlaneseq }
  0xb4   :  { %1773 = vmatpush1.msra.mxu1 %v51_v16  ;;  %1806 = vmatprep.mubr.f32.mxu1 %v2978_v3  ;;  %v170_v16 = vld [vmem:[%s4740_s1 + $0x4c8] sm:$0xff] }
  0xb5   :  { %2960 = vmatmul.mubr.msk.f32.vlgmr.msra.gmra.mxu0 %vm531_vm0, %v3932_v48  ;;  %2961 = vmatmul.mubr.msk.f32.vlgmr.msra.gmra.mxu1 %vm531_vm0, %v3932_v48  ;;  %vm2937_vm1 = vcmp.lt.s32.totalorder %v527_v38, 984 }
  0xb6   :  { %1827 = vmatprep.subr.mxu0 %v502_v17  ;;  %1898 = vmatprep.subr.mxu1 %v504_v18  ;;  %v172_v17 = vld [vmem:[%s4740_s1 + $0x4d8] sm:$0xff]  ;;  %v169_v18 = vld [vmem:[%s4740_s1 + $0x4c0] sm:$0xff] }
  0xb7   :  { %1828 = vmatpush1.msra.mxu0 %v501_v19  ;;  %1899 = vmatpush1.msra.mxu1 %v503_v20  ;;  %v171_v19 = vld [vmem:[%s4740_s1 + $0x4d0] sm:$0xff]  ;;  %v114_v20 = vld [vmem:[%s4740_s1 + $0x308] sm:$0xff] }
  0xb8   :  { %1829 = vmatprep.subr.mxu0 %v446_v21  ;;  %1900 = vmatprep.subr.mxu1 %v448_v22  ;;  %v116_v21 = vld [vmem:[%s4740_s1 + $0x318] sm:$0xff]  ;;  %v113_v22 = vld [vmem:[%s4740_s1 + $0x300] sm:$0xff] }
  0xb9   :  { %1830 = vmatpush1.msra.mxu0 %v445_v23  ;;  %1901 = vmatpush1.msra.mxu1 %v447_v24  ;;  %v115_v23 = vld [vmem:[%s4740_s1 + $0x310] sm:$0xff]  ;;  %v4251_v24 = vshrl.u32 %v527_v38, 7 }
  0xba   :  { %1831 = vmatprep.subr.mxu0 %v390_v25  ;;  %1902 = vmatprep.subr.mxu1 %v392_v26  ;;  %v58_v25 = vld [vmem:[%s4740_s1 + $0x148] sm:$0xff]  ;;  %v60_v26 = vld [vmem:[%s4740_s1 + $0x158] sm:$0xff] }
  0xbb   :  { %1832 = vmatpush1.msra.mxu0 %v389_v27  ;;  %1903 = vmatpush1.msra.mxu1 %v391_v28  ;;  %v57_v27 = vld [vmem:[%s4740_s1 + $0x140] sm:$0xff]  ;;  %v59_v28 = vld [vmem:[%s4740_s1 + $0x150] sm:$0xff] }
  0xbc   :  { %1833 = vmatprep.subr.mxu0 %v334_v29  ;;  %1904 = vmatprep.subr.mxu1 %v336_v30  ;;  %v529_v29 = vsub.s32 0, %v4251_v24  ;;  %v510_v30 = vld [vmem:[%s4740_s1 + $0xf68] sm:$0xff] }
  0xbd   :  { %1834 = vmatpush1.msra.mxu0 %v333_v31  ;;  %1905 = vmatpush1.msra.mxu1 %v335_v32  ;;  %v512_v31 = vld [vmem:[%s4740_s1 + $0xf78] sm:$0xff] }
  0xbe   :  { %1835 = vmatprep.subr.mxu0 %v278_v33  ;;  %1906 = vmatprep.subr.mxu1 %v280_v34  ;;  %v509_v34 = vld [vmem:[%s4740_s1 + $0xf60] sm:$0xff] }
  0xbf   :  { %1836 = vmatpush1.msra.mxu0 %v277_v35  ;;  %1907 = vmatpush1.msra.mxu1 %v279_v36  ;;  %v511_v35 = vld [vmem:[%s4740_s1 + $0xf70] sm:$0xff] }
  0xc0   :  { %1837 = vmatprep.subr.mxu0 %v222_v37  ;;  %1908 = vmatprep.subr.mxu1 %v224_v39  ;;  %v454_v37 = vld [vmem:[%s4740_s1 + $0xda8] sm:$0xff]  ;;  %v456_v39 = vld [vmem:[%s4740_s1 + $0xdb8] sm:$0xff] }
  0xc1   :  { %1838 = vmatpush1.msra.mxu0 %v221_v40  ;;  %1909 = vmatpush1.msra.mxu1 %v223_v41  ;;  %v453_v40 = vld [vmem:[%s4740_s1 + $0xda0] sm:$0xff]  ;;  %v455_v41 = vld [vmem:[%s4740_s1 + $0xdb0] sm:$0xff] }
  0xc2   :  { %1839 = vmatprep.subr.mxu0 %v166_v42  ;;  %1910 = vmatprep.subr.mxu1 %v168_v43  ;;  %v2980_v43 = vmov 1966171168  }
  0xc3   :  { %1840 = vmatpush1.msra.mxu0 %v165_v44  ;;  %1911 = vmatpush1.msra.mxu1 %v167_v45  ;;  %v2584_v44 = vunpack.c.l.s4 %v2980_v43  ;;  %v398_v45 = vld [vmem:[%s4740_s1 + $0xbe8] sm:$0xff]  ;;  %v460_v43 = vld [vmem:[%s4740_s1 + $0xdd8] sm:$0xff] }
  0xc4   :  { %1841 = vmatprep.subr.mxu0 %v110_v46  ;;  %1912 = vmatprep.subr.mxu1 %v112_v47  ;;  %v400_v46 = vld [vmem:[%s4740_s1 + $0xbf8] sm:$0xff] }
  0xc5   :  { %1842 = vmatpush1.msra.mxu0 %v109_v49  ;;  %1913 = vmatpush1.msra.mxu1 %v111_v50  ;;  %v397_v49 = vld [vmem:[%s4740_s1 + $0xbe0] sm:$0xff]  ;;  %v399_v50 = vld [vmem:[%s4740_s1 + $0xbf0] sm:$0xff] }
  0xc6   :  { %1843 = vmatprep.subr.mxu0 %v54_v51  ;;  %1914 = vmatprep.subr.mxu1 %v56_v52  ;;  %v342_v52 = vld [vmem:[%s4740_s1 + $0xa28] sm:$0xff] }
  0xc7   :  { %1844 = vmatpush1.msra.mxu0 %v53_v53  ;;  %1877 = vmatprep.mubr.f32.mxu0 %v2978_v3  ;;  %v344_v53 = vld [vmem:[%s4740_s1 + $0xa38] sm:$0xff] }
  0xc8   :  { %1915 = vmatpush1.msra.mxu1 %v55_v54  ;;  %1948 = vmatprep.mubr.f32.mxu1 %v2978_v3  ;;  %v341_v54 = vld [vmem:[%s4740_s1 + $0xa20] sm:$0xff] }
  0xc9   :  { %2962 = vmatmul.mubr.msk.f32.vlgmr.msra.gmra.mxu0 %vm531_vm0, %v3932_v48  ;;  %2963 = vmatmul.mubr.msk.f32.vlgmr.msra.gmra.mxu1 %vm531_vm0, %v3932_v48 }
  0xca   :  { %1969 = vmatprep.subr.mxu0 %v506_v55  ;;  %2040 = vmatprep.subr.mxu1 %v508_v56  ;;  %v343_v55 = vld [vmem:[%s4740_s1 + $0xa30] sm:$0xff] }
  0xcb   :  { %1970 = vmatpush1.msra.mxu0 %v505_v57  ;;  %2041 = vmatpush1.msra.mxu1 %v507_v58  ;;  %v2585_v58 = vunpack.c.0.s8 %v2584_v44 }
  0xcc   :  { %1971 = vmatprep.subr.mxu0 %v450_v59  ;;  %2042 = vmatprep.subr.mxu1 %v452_v60  ;;  %v286_v59 = vld [vmem:[%s4740_s1 + $0x868] sm:$0xff]  ;;  %v288_v60 = vld [vmem:[%s4740_s1 + $0x878] sm:$0xff] }
  0xcd   :  { %1972 = vmatpush1.msra.mxu0 %v449_v61  ;;  %2043 = vmatpush1.msra.mxu1 %v451_v62 }
  0xce   :  { %1973 = vmatprep.subr.mxu0 %v394_v63  ;;  %2044 = vmatprep.subr.mxu1 %v396_v0  ;;  %v285_v63 = vld [vmem:[%s4740_s1 + $0x860] sm:$0xff]  ;;  %v287_v0 = vld [vmem:[%s4740_s1 + $0x870] sm:$0xff] }
  0xcf   :  { %1974 = vmatpush1.msra.mxu0 %v393_v1  ;;  %2045 = vmatpush1.msra.mxu1 %v395_v2  ;;  %v230_v1 = vld [vmem:[%s4740_s1 + $0x6a8] sm:$0xff]  ;;  %v232_v2 = vld [vmem:[%s4740_s1 + $0x6b8] sm:$0xff] }
  0xd0   :  { %1975 = vmatprep.subr.mxu0 %v338_v4  ;;  %2046 = vmatprep.subr.mxu1 %v340_v5  ;;  %v229_v4 = vld [vmem:[%s4740_s1 + $0x6a0] sm:$0xff]  ;;  %v231_v5 = vld [vmem:[%s4740_s1 + $0x6b0] sm:$0xff] }
  0xd1   :  { %1976 = vmatpush1.msra.mxu0 %v337_v6  ;;  %2047 = vmatpush1.msra.mxu1 %v339_v7  ;;  %v4351_v7 = vsub.s32 %v2585_v58, %v4251_v24  ;;  %v347_v58 = vld [vmem:[%s4740_s1 + $0xa50] sm:$0xff] }
  0xd2   :  { %1977 = vmatprep.subr.mxu0 %v282_v8  ;;  %2048 = vmatprep.subr.mxu1 %v284_v9  ;;  %v174_v8 = vld [vmem:[%s4740_s1 + $0x4e8] sm:$0xff]  ;;  %v176_v9 = vld [vmem:[%s4740_s1 + $0x4f8] sm:$0xff] }
  0xd3   :  { %1978 = vmatpush1.msra.mxu0 %v281_v10  ;;  %2049 = vmatpush1.msra.mxu1 %v283_v11  ;;  %v173_v11 = vld [vmem:[%s4740_s1 + $0x4e0] sm:$0xff] }
  0xd4   :  { %1979 = vmatprep.subr.mxu0 %v226_v12  ;;  %2050 = vmatprep.subr.mxu1 %v228_v13  ;;  %v601_v33 = vpop.f32.mrf.mxu0  ;;  %v672_v36 = vpop.f32.mrf.mxu1  ;;  %v175_v12 = vld [vmem:[%s4740_s1 + $0x4f0] sm:$0xff] }
  0xd5   :  { %1980 = vmatpush1.msra.mxu0 %v225_v14  ;;  %2051 = vmatpush1.msra.mxu1 %v227_v15  ;;  %v118_v15 = vld [vmem:[%s4740_s1 + $0x328] sm:$0xff] }
  0xd6   :  { %1981 = vmatprep.subr.mxu0 %v170_v16  ;;  %2052 = vmatprep.subr.mxu1 %v172_v17  ;;  %v603_v47 = vpop.f32.mrf.mxu0  ;;  %v674_v51 = vpop.f32.mrf.mxu1  ;;  %v120_v16 = vld [vmem:[%s4740_s1 + $0x338] sm:$0xff] }
  0xd7   :  { %1982 = vmatpush1.msra.mxu0 %v169_v18  ;;  %2053 = vmatpush1.msra.mxu1 %v171_v19 }
  0xd8   :  { %1983 = vmatprep.subr.mxu0 %v114_v20  ;;  %2054 = vmatprep.subr.mxu1 %v116_v21  ;;  %v117_v20 = vld [vmem:[%s4740_s1 + $0x320] sm:$0xff]  ;;  %v119_v21 = vld [vmem:[%s4740_s1 + $0x330] sm:$0xff] }
  0xd9   :  { %1984 = vmatpush1.msra.mxu0 %v113_v22  ;;  %2055 = vmatpush1.msra.mxu1 %v115_v23 }
  0xda   :  { %1985 = vmatprep.subr.mxu0 %v58_v25  ;;  %2056 = vmatprep.subr.mxu1 %v60_v26  ;;  %v525_v32 = vpop.permute.xlu0 %524  ;;  %v62_v25 = vld [vmem:[%s4740_s1 + $0x168] sm:$0xff]  ;;  %v64_v26 = vld [vmem:[%s4740_s1 + $0x178] sm:$0xff] }
  0xdb   :  { %1986 = vmatpush1.msra.mxu0 %v57_v27  ;;  %2019 = vmatprep.mubr.f32.mxu0 %v2978_v3  ;;  %v4296_v42 = vrot.slane %v525_v32, %v529_v29  ;;  %v61_v29 = vld [vmem:[%s4740_s1 + $0x160] sm:$0xff] }
  0xdc   :  { %2057 = vmatpush1.msra.mxu1 %v59_v28  ;;  %2090 = vmatprep.mubr.f32.mxu1 %v2978_v3 }
  0xdd   :  { %2964 = vmatmul.mubr.msk.f32.vlgmr.msra.gmra.mxu0 %vm531_vm0, %v3932_v48  ;;  %2965 = vmatmul.mubr.msk.f32.vlgmr.msra.gmra.mxu1 %vm531_vm0, %v3932_v48  ;;  %v602_v56 = vadd.f32 %v601_v33, %v4296_v42  ;;  %v604_v57 = vadd.f32 %v603_v47, %v4296_v42  ;;  %v673_v61 = vadd.f32 %v672_v36, %v4296_v42 }
  0xde   :  { %2111 = vmatprep.subr.mxu0 %v510_v30  ;;  %2182 = vmatprep.subr.mxu1 %v512_v31  ;;  %v675_v62 = vadd.f32 %v674_v51, %v4296_v42  ;;  %v63_v30 = vld [vmem:[%s4740_s1 + $0x170] sm:$0xff] }
  0xdf   :  { %2112 = vmatpush1.msra.mxu0 %v509_v34  ;;  %2183 = vmatpush1.msra.mxu1 %v511_v35  ;;  %v2579_v6 = vcombine.low %v602_v56, %v604_v57  ;;  %v514_v34 = vld [vmem:[%s4740_s1 + $0xf88] sm:$0xff]  ;;  %v516_v35 = vld [vmem:[%s4740_s1 + $0xf98] sm:$0xff]  ;;  %v345_v57 = vld [vmem:[%s4740_s1 + $0xa40] sm:$0xff] }
  0xe0   :  { %2113 = vmatprep.subr.mxu0 %v454_v37  ;;  %2184 = vmatprep.subr.mxu1 %v456_v39  ;;  %v2580_v10 = vcombine.low %v673_v61, %v675_v62  ;;  %v513_v39 = vld [vmem:[%s4740_s1 + $0xf80] sm:$0xff]  ;;  %v291_v62 = vld [vmem:[%s4740_s1 + $0x890] sm:$0xff] }
  0xe1   :  { %2114 = vmatpush1.msra.mxu0 %v453_v40  ;;  %2185 = vmatpush1.msra.mxu1 %v455_v41  ;;  %v2589_v19 = vrot.slane %v2579_v6, %v4351_v7  ;;  %v515_v40 = vld [vmem:[%s4740_s1 + $0xf90] sm:$0xff]  ;;  %v458_v41 = vld [vmem:[%s4740_s1 + $0xdc8] sm:$0xff]  ;;  %v289_v61 = vld [vmem:[%s4740_s1 + $0x880] sm:$0xff] }
  0xe2   :  { %2115 = vmatprep.subr.mxu0 %v398_v45  ;;  %2186 = vmatprep.subr.mxu1 %v400_v46  ;;  %v2596_v24 = vrot.slane %v2580_v10, %v4351_v7  ;;  %v457_v45 = vld [vmem:[%s4740_s1 + $0xdc0] sm:$0xff]  ;;  %v459_v46 = vld [vmem:[%s4740_s1 + $0xdd0] sm:$0xff]  ;;  %v124_v10 = vld [vmem:[%s4740_s1 + $0x358] sm:$0xff] }
  0xe3   :  { %2116 = vmatpush1.msra.mxu0 %v397_v49  ;;  %2187 = vmatpush1.msra.mxu1 %v399_v50  ;;  %v402_v49 = vld [vmem:[%s4740_s1 + $0xc08] sm:$0xff]  ;;  %v404_v50 = vld [vmem:[%s4740_s1 + $0xc18] sm:$0xff]  ;;  %v177_v6 = vld [vmem:[%s4740_s1 + $0x500] sm:$0xff] }
  0xe4   :  { %2117 = vmatprep.subr.mxu0 %v342_v52  ;;  %2188 = vmatprep.subr.mxu1 %v344_v53  ;;  %v2611_v33 = vcombine.low %v2589_v19, %v2596_v24  ;;  %v401_v52 = vld [vmem:[%s4740_s1 + $0xc00] sm:$0xff]  ;;  %v403_v53 = vld [vmem:[%s4740_s1 + $0xc10] sm:$0xff]  ;;  %v464_v24 = vld [vmem:[%s4740_s1 + $0xdf8] sm:$0xff] }
  0xe5   :  { %2118 = vmatpush1.msra.mxu0 %v341_v54  ;;  %2189 = vmatpush1.msra.mxu1 %v343_v55  ;;  %v346_v54 = vld [vmem:[%s4740_s1 + $0xa48] sm:$0xff]  ;;  %v348_v55 = vld [vmem:[%s4740_s1 + $0xa58] sm:$0xff] }
  0xe6   :  { %2119 = vmatprep.subr.mxu0 %v286_v59  ;;  %2190 = vmatprep.subr.mxu1 %v288_v60  ;;  %v2619_v47 = vrot.slane %v2611_v33, %v4351_v7  ;;  %v290_v59 = vld [vmem:[%s4740_s1 + $0x888] sm:$0xff]  ;;  %v292_v60 = vld [vmem:[%s4740_s1 + $0x898] sm:$0xff] }
  0xe7   :  { %2120 = vmatpush1.msra.mxu0 %v285_v63  ;;  %2191 = vmatpush1.msra.mxu1 %v287_v0  ;;  %v234_v63 = vld [vmem:[%s4740_s1 + $0x6c8] sm:$0xff]  ;;  %v236_v0 = vld [vmem:[%s4740_s1 + $0x6d8] sm:$0xff] }
  0xe8   :  { %2121 = vmatprep.subr.mxu0 %v230_v1  ;;  %2192 = vmatprep.subr.mxu1 %v232_v2  ;;  %v743_v13 = vpop.f32.mrf.mxu0  ;;  %v814_v14 = vpop.f32.mrf.mxu1  ;;  %v233_v1 = vld [vmem:[%s4740_s1 + $0x6c0] sm:$0xff]  ;;  %v235_v2 = vld [vmem:[%s4740_s1 + $0x6d0] sm:$0xff]  ;;  %v352_v33 = vld [vmem:[%s4740_s1 + $0xa78] sm:$0xff] }
  0xe9   :  { %2122 = vmatpush1.msra.mxu0 %v229_v4  ;;  %2193 = vmatpush1.msra.mxu1 %v231_v5  ;;  %v744_v17 = vadd.f32 %v743_v13, %v4296_v42  ;;  %v815_v18 = vadd.f32 %v814_v14, %v4296_v42  ;;  %v178_v4 = vld [vmem:[%s4740_s1 + $0x508] sm:$0xff]  ;;  %v180_v5 = vld [vmem:[%s4740_s1 + $0x518] sm:$0xff] }
  0xea   :  { %2123 = vmatprep.subr.mxu0 %v174_v8  ;;  %2194 = vmatprep.subr.mxu1 %v176_v9  ;;  %v745_v22 = vpop.f32.mrf.mxu0  ;;  %v816_v23 = vpop.f32.mrf.mxu1  ;;  %v179_v8 = vld [vmem:[%s4740_s1 + $0x510] sm:$0xff]  ;;  %v122_v9 = vld [vmem:[%s4740_s1 + $0x348] sm:$0xff]  ;;  %v68_v14 = vld [vmem:[%s4740_s1 + $0x198] sm:$0xff] }
  0xeb   :  { %2124 = vmatpush1.msra.mxu0 %v173_v11  ;;  %2195 = vmatpush1.msra.mxu1 %v175_v12  ;;  %v746_v27 = vadd.f32 %v745_v22, %v4296_v42  ;;  %v817_v28 = vadd.f32 %v816_v23, %v4296_v42  ;;  %v121_v11 = vld [vmem:[%s4740_s1 + $0x340] sm:$0xff]  ;;  %v123_v12 = vld [vmem:[%s4740_s1 + $0x350] sm:$0xff]  ;;  %v66_v13 = vld [vmem:[%s4740_s1 + $0x188] sm:$0xff] }
  0xec   :  { %2125 = vmatprep.subr.mxu0 %v118_v15  ;;  %2196 = vmatprep.subr.mxu1 %v120_v16  ;;  %v65_v15 = vld [vmem:[%s4740_s1 + $0x180] sm:$0xff]  ;;  %v67_v16 = vld [vmem:[%s4740_s1 + $0x190] sm:$0xff]  ;;  %v462_v23 = vld [vmem:[%s4740_s1 + $0xde8] sm:$0xff] }
  0xed   :  { %2126 = vmatpush1.msra.mxu0 %v117_v20  ;;  %2197 = vmatpush1.msra.mxu1 %v119_v21  ;;  %v2581_v31 = vcombine.low %v744_v17, %v746_v27  ;;  %v2582_v32 = vcombine.low %v815_v18, %v817_v28  ;;  %v518_v17 = vld [vmem:[%s4740_s1 + $0xfa8] sm:$0xff]  ;;  %v520_v18 = vld [vmem:[%s4740_s1 + $0xfb8] sm:$0xff]  ;;  %v517_v20 = vld [vmem:[%s4740_s1 + $0xfa0] sm:$0xff] }
  0xee   :  { %2127 = vmatprep.subr.mxu0 %v62_v25  ;;  %2198 = vmatprep.subr.mxu1 %v64_v26  ;;  %v519_v21 = vld [vmem:[%s4740_s1 + $0xfb0] sm:$0xff]  ;;  %v461_v25 = vld [vmem:[%s4740_s1 + $0xde0] sm:$0xff]  ;;  %v408_v27 = vld [vmem:[%s4740_s1 + $0xc38] sm:$0xff] }
  0xef   :  { %2128 = vmatpush1.msra.mxu0 %v61_v29  ;;  %2161 = vmatprep.mubr.f32.mxu0 %v2978_v3  ;;  %v2603_v36 = vrot.slane %v2581_v31, %v4351_v7  ;;  %v2610_v37 = vrot.slane %v2582_v32, %v4351_v7  ;;  %v463_v26 = vld [vmem:[%s4740_s1 + $0xdf0] sm:$0xff]  ;;  %v405_v29 = vld [vmem:[%s4740_s1 + $0xc20] sm:$0xff]  ;;  %v350_v32 = vld [vmem:[%s4740_s1 + $0xa68] sm:$0xff] }
  0xf0   :  { %2199 = vmatpush1.msra.mxu1 %v63_v30  ;;  %2232 = vmatprep.mubr.f32.mxu1 %v2978_v3  ;;  %v407_v30 = vld [vmem:[%s4740_s1 + $0xc30] sm:$0xff] }
  0xf1   :  { %2966 = vmatmul.mubr.msk.f32.vlgmr.msra.gmra.mxu0 %vm531_vm0, %v3932_v48  ;;  %2967 = vmatmul.mubr.msk.f32.vlgmr.msra.gmra.mxu1 %vm531_vm0, %v3932_v48  ;;  %v2612_v44 = vcombine.low %v2603_v36, %v2610_v37 }
  0xf2   :  { %2253 = vmatprep.subr.mxu0 %v514_v34  ;;  %2324 = vmatprep.subr.mxu1 %v516_v35  ;;  %v349_v34 = vld [vmem:[%s4740_s1 + $0xa60] sm:$0xff]  ;;  %v351_v35 = vld [vmem:[%s4740_s1 + $0xa70] sm:$0xff] }
  0xf3   :  { %2254 = vmatpush1.msra.mxu0 %v513_v39  ;;  %2325 = vmatpush1.msra.mxu1 %v515_v40  ;;  %v2626_v51 = vrot.slane %v2612_v44, %v4351_v7  ;;  %v294_v39 = vld [vmem:[%s4740_s1 + $0x8a8] sm:$0xff]  ;;  %v296_v40 = vld [vmem:[%s4740_s1 + $0x8b8] sm:$0xff]  ;;  %v293_v44 = vld [vmem:[%s4740_s1 + $0x8a0] sm:$0xff] }
  0xf4   :  { %2255 = vmatprep.subr.mxu0 %v458_v41  ;;  %2326 = vmatprep.subr.mxu1 %v460_v43 }
  0xf5   :  { %2256 = vmatpush1.msra.mxu0 %v457_v45  ;;  %2327 = vmatpush1.msra.mxu1 %v459_v46  ;;  %v2627_v56 = vcombine.low %v2619_v47, %v2626_v51  ;;  %v295_v45 = vld [vmem:[%s4740_s1 + $0x8b0] sm:$0xff]  ;;  %v238_v46 = vld [vmem:[%s4740_s1 + $0x6e8] sm:$0xff]  ;;  %v240_v47 = vld [vmem:[%s4740_s1 + $0x6f8] sm:$0xff] }
  0xf6   :  { %2257 = vmatprep.subr.mxu0 %v402_v49  ;;  %2328 = vmatprep.subr.mxu1 %v404_v50  ;;  %v237_v49 = vld [vmem:[%s4740_s1 + $0x6e0] sm:$0xff]  ;;  %v239_v50 = vld [vmem:[%s4740_s1 + $0x6f0] sm:$0xff] }
  0xf7   :  { %2258 = vmatpush1.msra.mxu0 %v401_v52  ;;  %2329 = vmatpush1.msra.mxu1 %v403_v53  ;;  %2929 = vst [vmem:[%s4743_s3] sm:$0xff] %v2627_v56  ;;  %v182_v52 = vld [vmem:[%s4740_s1 + $0x528] sm:$0xff]  ;;  %v184_v53 = vld [vmem:[%s4740_s1 + $0x538] sm:$0xff]  ;;  %v183_v56 = vld [vmem:[%s4740_s1 + $0x530] sm:$0xff] }
  0xf8   :  { %2259 = vmatprep.subr.mxu0 %v346_v54  ;;  %2330 = vmatprep.subr.mxu1 %v348_v55  ;;  %v181_v55 = vld [vmem:[%s4740_s1 + $0x520] sm:$0xff] }
  0xf9   :  { %2260 = vmatpush1.msra.mxu0 %v345_v57  ;;  %2331 = vmatpush1.msra.mxu1 %v347_v58 }
  0xfa   :  { %2261 = vmatprep.subr.mxu0 %v290_v59  ;;  %2332 = vmatprep.subr.mxu1 %v292_v60  ;;  %v126_v59 = vld [vmem:[%s4740_s1 + $0x368] sm:$0xff]  ;;  %v128_v60 = vld [vmem:[%s4740_s1 + $0x378] sm:$0xff] }
  0xfb   :  { %2262 = vmatpush1.msra.mxu0 %v289_v61  ;;  %2333 = vmatpush1.msra.mxu1 %v291_v62 }
  0xfc   :  { %2263 = vmatprep.subr.mxu0 %v234_v63  ;;  %2334 = vmatprep.subr.mxu1 %v236_v0  ;;  %v885_v19 = vpop.f32.mrf.mxu0  ;;  %v956_v22 = vpop.f32.mrf.mxu1  ;;  %v125_v0 = vld [vmem:[%s4740_s1 + $0x360] sm:$0xff] }
  0xfd   :  { %2264 = vmatpush1.msra.mxu0 %v233_v1  ;;  %2335 = vmatpush1.msra.mxu1 %v235_v2  ;;  %v886_v36 = vadd.f32 %v885_v19, %v4296_v42  ;;  %v957_v41 = vadd.f32 %v956_v22, %v4296_v42  ;;  %v127_v1 = vld [vmem:[%s4740_s1 + $0x370] sm:$0xff] }
  0xfe   :  { %2265 = vmatprep.subr.mxu0 %v178_v4  ;;  %2336 = vmatprep.subr.mxu1 %v180_v5  ;;  %v887_v28 = vpop.f32.mrf.mxu0  ;;  %v958_v31 = vpop.f32.mrf.mxu1 }
  0xff   :  { %2266 = vmatpush1.msra.mxu0 %v177_v6  ;;  %2337 = vmatpush1.msra.mxu1 %v179_v8  ;;  %v888_v37 = vadd.f32 %v887_v28, %v4296_v42  ;;  %v959_v43 = vadd.f32 %v958_v31, %v4296_v42  ;;  %v70_v6 = vld [vmem:[%s4740_s1 + $0x1a8] sm:$0xff]  ;;  %v72_v8 = vld [vmem:[%s4740_s1 + $0x1b8] sm:$0xff] }
 0x100   :  { %2267 = vmatprep.subr.mxu0 %v122_v9  ;;  %2338 = vmatprep.subr.mxu1 %v124_v10 }
 0x101   :  { %2268 = vmatpush1.msra.mxu0 %v121_v11  ;;  %2339 = vmatpush1.msra.mxu1 %v123_v12  ;;  %v2628_v51 = vcombine.low %v886_v36, %v888_v37  ;;  %v2629_v54 = vcombine.low %v957_v41, %v959_v43  ;;  %v69_v11 = vld [vmem:[%s4740_s1 + $0x1a0] sm:$0xff]  ;;  %v71_v12 = vld [vmem:[%s4740_s1 + $0x1b0] sm:$0xff] }
 0x102   :  { %2269 = vmatprep.subr.mxu0 %v66_v13  ;;  %2340 = vmatprep.subr.mxu1 %v68_v14 }
 0x103   :  { %2270 = vmatpush1.msra.mxu0 %v65_v15  ;;  %2303 = vmatprep.mubr.f32.mxu0 %v2978_v3  ;;  %v2638_v63 = vrot.slane %v2628_v51, %v4351_v7  ;;  %v2645_v5 = vrot.slane %v2629_v54, %v4351_v7 }
 0x104   :  { %2341 = vmatpush1.msra.mxu1 %v67_v16  ;;  %2374 = vmatprep.mubr.f32.mxu1 %v2978_v3 }
 0x105   :  { %2968 = vmatmul.mubr.msk.f32.vlgmr.msra.gmra.mxu0 %vm531_vm0, %v3932_v48  ;;  %2969 = vmatmul.mubr.msk.f32.vlgmr.msra.gmra.mxu1 %vm531_vm0, %v3932_v48  ;;  %v406_v48 = vld [vmem:[%s4740_s1 + $0xc28] sm:$0xff]  ;;  %v2660_v15 = vcombine.low %v2638_v63, %v2645_v5 }
 0x106   :  { %2395 = vmatprep.subr.mxu0 %v518_v17  ;;  %2466 = vmatprep.subr.mxu1 %v520_v18  ;;  %v2977_v18 = vld [vmem:[%s4742_s0] sm:$0x1] }
 0x107   :  { %2396 = vmatpush1.msra.mxu0 %v517_v20  ;;  %2467 = vmatpush1.msra.mxu1 %v519_v21  ;;  %v2668_v20 = vrot.slane %v2660_v15, %v4351_v7 }
 0x108   :  { %2397 = vmatprep.subr.mxu0 %v462_v23  ;;  %2468 = vmatprep.subr.mxu1 %v464_v24 }
 0x109   :  { %2398 = vmatpush1.msra.mxu0 %v461_v25  ;;  %2469 = vmatpush1.msra.mxu1 %v463_v26 }
 0x10a   :  { %2399 = vmatprep.subr.mxu0 %v406_v48  ;;  %2470 = vmatprep.subr.mxu1 %v408_v27 }
 0x10b   :  { %2400 = vmatpush1.msra.mxu0 %v405_v29  ;;  %2471 = vmatpush1.msra.mxu1 %v407_v30 }
 0x10c   :  { %2401 = vmatprep.subr.mxu0 %v350_v32  ;;  %2472 = vmatprep.subr.mxu1 %v352_v33 }
 0x10d   :  { %2402 = vmatpush1.msra.mxu0 %v349_v34  ;;  %2473 = vmatpush1.msra.mxu1 %v351_v35 }
 0x10e   :  { %2403 = vmatprep.subr.mxu0 %v294_v39  ;;  %2474 = vmatprep.subr.mxu1 %v296_v40 }
 0x10f   :  { %2404 = vmatpush1.msra.mxu0 %v293_v44  ;;  %2475 = vmatpush1.msra.mxu1 %v295_v45 }
 0x110   :  { %2405 = vmatprep.subr.mxu0 %v238_v46  ;;  %2476 = vmatprep.subr.mxu1 %v240_v47  ;;  %v1027_v57 = vpop.f32.mrf.mxu0  ;;  %v1098_v58 = vpop.f32.mrf.mxu1 }
 0x111   :  { %2406 = vmatpush1.msra.mxu0 %v237_v49  ;;  %2477 = vmatpush1.msra.mxu1 %v239_v50  ;;  %v1028_v61 = vadd.f32 %v1027_v57, %v4296_v42  ;;  %v1099_v62 = vadd.f32 %v1098_v58, %v4296_v42 }
 0x112   :  { %2407 = vmatprep.subr.mxu0 %v182_v52  ;;  %2478 = vmatprep.subr.mxu1 %v184_v53  ;;  %v1029_v2 = vpop.f32.mrf.mxu0  ;;  %v1100_v4 = vpop.f32.mrf.mxu1 }
 0x113   :  { %2408 = vmatpush1.msra.mxu0 %v181_v55  ;;  %2479 = vmatpush1.msra.mxu1 %v183_v56  ;;  %v1030_v9 = vadd.f32 %v1029_v2, %v4296_v42  ;;  %v1101_v10 = vadd.f32 %v1100_v4, %v4296_v42 }
 0x114   :  { %2409 = vmatprep.subr.mxu0 %v126_v59  ;;  %2480 = vmatprep.subr.mxu1 %v128_v60 }
 0x115   :  { %2410 = vmatpush1.msra.mxu0 %v125_v0  ;;  %2481 = vmatpush1.msra.mxu1 %v127_v1  ;;  %v2630_v13 = vcombine.low %v1028_v61, %v1030_v9  ;;  %v2631_v14 = vcombine.low %v1099_v62, %v1101_v10 }
 0x116   :  { %2411 = vmatprep.subr.mxu0 %v70_v6  ;;  %2482 = vmatprep.subr.mxu1 %v72_v8 }
 0x117   :  { %2412 = vmatpush1.msra.mxu0 %v69_v11  ;;  %2445 = vmatprep.mubr.f32.mxu0 %v2978_v3  ;;  %v2652_v16 = vrot.slane %v2630_v13, %v4351_v7  ;;  %v2659_v17 = vrot.slane %v2631_v14, %v4351_v7 }
 0x118   :  { %2483 = vmatpush1.msra.mxu1 %v71_v12  ;;  %2516 = vmatprep.mubr.f32.mxu1 %v2978_v3 }
 0x119   :  { %2970 = vmatmul.mubr.msk.f32.vlgmr.msra.gmra.mxu0 %vm531_vm0, %v2977_v18  ;;  %2971 = vmatmul.mubr.msk.f32.vlgmr.msra.gmra.mxu1 %vm531_vm0, %v2977_v18  ;;  %v2661_v19 = vcombine.low %v2652_v16, %v2659_v17 }
 0x11b   :  { %v2675_v21 = vrot.slane %v2661_v19, %v4351_v7 }
 0x11d   :  { %v2676_v22 = vcombine.low %v2668_v20, %v2675_v21 }
 0x11f   :  { %2930 = vst [vmem:[%s4743_s3 + $0x8] sm:$0xff] %v2676_v22 }
 0x125   :  { %v1169_v23 = vpop.f32.mrf.mxu0  ;;  %v1240_v3 = vpop.f32.mrf.mxu1 }
 0x126   :  { %v1170_v26 = vadd.f32 %v1169_v23, %v4296_v42  ;;  %v1241_v48 = vadd.f32 %v1240_v3, %v4296_v42 }
 0x127   :  { %v1171_v24 = vpop.f32.mrf.mxu0  ;;  %v1242_v25 = vpop.f32.mrf.mxu1 }
 0x128   :  { %v1172_v27 = vadd.f32 %v1171_v24, %v4296_v42  ;;  %v1243_v28 = vadd.f32 %v1242_v25, %v4296_v42 }
 0x12a   :  { %v2677_v29 = vcombine.low %v1170_v26, %v1172_v27  ;;  %v2678_v30 = vcombine.low %v1241_v48, %v1243_v28 }
 0x12c   :  { %v2687_v37 = vrot.slane %v2677_v29, %v4351_v7  ;;  %v2694_v39 = vrot.slane %v2678_v30, %v4351_v7 }
 0x12e   :  { %v2709_v45 = vcombine.low %v2687_v37, %v2694_v39 }
 0x130   :  { %v2717_v50 = vrot.slane %v2709_v45, %v4351_v7 }
 0x139   :  { %v1311_v31 = vpop.f32.mrf.mxu0  ;;  %v1382_v32 = vpop.f32.mrf.mxu1 }
 0x13a   :  { %v1312_v33 = vadd.f32 %v1311_v31, %v4296_v42  ;;  %v1383_v34 = vadd.f32 %v1382_v32, %v4296_v42 }
 0x13b   :  { %v1313_v35 = vpop.f32.mrf.mxu0  ;;  %v1384_v36 = vpop.f32.mrf.mxu1 }
 0x13c   :  { %v1314_v40 = vadd.f32 %v1313_v35, %v4296_v42  ;;  %v1385_v41 = vadd.f32 %v1384_v36, %v4296_v42 }
 0x13e   :  { %v2679_v43 = vcombine.low %v1312_v33, %v1314_v40  ;;  %v2680_v44 = vcombine.low %v1383_v34, %v1385_v41 }
 0x140   :  { %v2701_v46 = vrot.slane %v2679_v43, %v4351_v7  ;;  %v2708_v47 = vrot.slane %v2680_v44, %v4351_v7 }
 0x142   :  { %v2710_v49 = vcombine.low %v2701_v46, %v2708_v47 }
 0x144   :  { %v2724_v51 = vrot.slane %v2710_v49, %v4351_v7 }
 0x146   :  { %v2725_v52 = vcombine.low %v2717_v50, %v2724_v51 }
 0x148   :  { %2931 = vst [vmem:[%s4743_s3 + $0x10] sm:$0xff] %v2725_v52 }
 0x14d   :  { %v1453_v53 = vpop.f32.mrf.mxu0  ;;  %v1524_v54 = vpop.f32.mrf.mxu1 }
 0x14e   :  { %v1454_v57 = vadd.f32 %v1453_v53, %v4296_v42  ;;  %v1525_v58 = vadd.f32 %v1524_v54, %v4296_v42 }
 0x14f   :  { %v1455_v55 = vpop.f32.mrf.mxu0  ;;  %v1526_v56 = vpop.f32.mrf.mxu1 }
 0x150   :  { %v1456_v59 = vadd.f32 %v1455_v55, %v4296_v42  ;;  %v1527_v60 = vadd.f32 %v1526_v56, %v4296_v42 }
 0x152   :  { %v2726_v61 = vcombine.low %v1454_v57, %v1456_v59  ;;  %v2727_v62 = vcombine.low %v1525_v58, %v1527_v60 }
 0x154   :  { %v2736_v6 = vrot.slane %v2726_v61, %v4351_v7  ;;  %v2743_v8 = vrot.slane %v2727_v62, %v4351_v7 }
 0x156   :  { %v2758_v13 = vcombine.low %v2736_v6, %v2743_v8 }
 0x158   :  { %v2766_v17 = vrot.slane %v2758_v13, %v4351_v7 }
 0x161   :  { %v1595_v63 = vpop.f32.mrf.mxu0  ;;  %v1666_v0 = vpop.f32.mrf.mxu1 }
 0x162   :  { %v1596_v1 = vadd.f32 %v1595_v63, %v4296_v42  ;;  %v1667_v2 = vadd.f32 %v1666_v0, %v4296_v42 }
 0x163   :  { %v1597_v4 = vpop.f32.mrf.mxu0  ;;  %v1668_v5 = vpop.f32.mrf.mxu1 }
 0x164   :  { %v1598_v9 = vadd.f32 %v1597_v4, %v4296_v42  ;;  %v1669_v10 = vadd.f32 %v1668_v5, %v4296_v42 }
 0x166   :  { %v2728_v11 = vcombine.low %v1596_v1, %v1598_v9  ;;  %v2729_v12 = vcombine.low %v1667_v2, %v1669_v10 }
 0x168   :  { %v2750_v14 = vrot.slane %v2728_v11, %v4351_v7  ;;  %v2757_v15 = vrot.slane %v2729_v12, %v4351_v7 }
 0x16a   :  { %v2759_v16 = vcombine.low %v2750_v14, %v2757_v15 }
 0x16c   :  { %v2773_v18 = vrot.slane %v2759_v16, %v4351_v7 }
 0x16e   :  { %v2774_v19 = vcombine.low %v2766_v17, %v2773_v18 }
 0x170   :  { %2932 = vst [vmem:[%s4743_s3 + $0x18] sm:$0xff] %v2774_v19 }
 0x175   :  { %v1737_v20 = vpop.f32.mrf.mxu0  ;;  %v1808_v21 = vpop.f32.mrf.mxu1 }
 0x176   :  { %v1738_v3 = vadd.f32 %v1737_v20, %v4296_v42  ;;  %v1809_v24 = vadd.f32 %v1808_v21, %v4296_v42 }
 0x177   :  { %v1739_v22 = vpop.f32.mrf.mxu0  ;;  %v1810_v23 = vpop.f32.mrf.mxu1 }
 0x178   :  { %v1740_v25 = vadd.f32 %v1739_v22, %v4296_v42  ;;  %v1811_v26 = vadd.f32 %v1810_v23, %v4296_v42 }
 0x17a   :  { %v2775_v48 = vcombine.low %v1738_v3, %v1740_v25  ;;  %v2776_v27 = vcombine.low %v1809_v24, %v1811_v26 }
 0x17c   :  { %v2785_v34 = vrot.slane %v2775_v48, %v4351_v7  ;;  %v2792_v35 = vrot.slane %v2776_v27, %v4351_v7 }
 0x17e   :  { %v2807_v41 = vcombine.low %v2785_v34, %v2792_v35 }
 0x180   :  { %v2815_v46 = vrot.slane %v2807_v41, %v4351_v7 }
 0x189   :  { %v1879_v28 = vpop.f32.mrf.mxu0  ;;  %v1950_v29 = vpop.f32.mrf.mxu1 }
 0x18a   :  { %v1880_v30 = vadd.f32 %v1879_v28, %v4296_v42  ;;  %v1951_v31 = vadd.f32 %v1950_v29, %v4296_v42 }
 0x18b   :  { %v1881_v32 = vpop.f32.mrf.mxu0  ;;  %v1952_v33 = vpop.f32.mrf.mxu1 }
 0x18c   :  { %v1882_v36 = vadd.f32 %v1881_v32, %v4296_v42  ;;  %v1953_v37 = vadd.f32 %v1952_v33, %v4296_v42 }
 0x18e   :  { %v2777_v39 = vcombine.low %v1880_v30, %v1882_v36  ;;  %v2778_v40 = vcombine.low %v1951_v31, %v1953_v37 }
 0x190   :  { %v2799_v43 = vrot.slane %v2777_v39, %v4351_v7  ;;  %v2806_v44 = vrot.slane %v2778_v40, %v4351_v7 }
 0x192   :  { %v2808_v45 = vcombine.low %v2799_v43, %v2806_v44 }
 0x194   :  { %v2822_v47 = vrot.slane %v2808_v45, %v4351_v7 }
 0x196   :  { %v2823_v49 = vcombine.low %v2815_v46, %v2822_v47 }
 0x198   :  { %2933 = vst [vmem:[%s4743_s3 + $0x20] sm:$0xff] %v2823_v49 }
 0x19d   :  { %v2021_v50 = vpop.f32.mrf.mxu0  ;;  %v2092_v51 = vpop.f32.mrf.mxu1 }
 0x19e   :  { %v2022_v54 = vadd.f32 %v2021_v50, %v4296_v42  ;;  %v2093_v55 = vadd.f32 %v2092_v51, %v4296_v42 }
 0x19f   :  { %v2023_v52 = vpop.f32.mrf.mxu0  ;;  %v2094_v53 = vpop.f32.mrf.mxu1 }
 0x1a0   :  { %v2024_v56 = vadd.f32 %v2023_v52, %v4296_v42  ;;  %v2095_v57 = vadd.f32 %v2094_v53, %v4296_v42 }
 0x1a2   :  { %v2824_v58 = vcombine.low %v2022_v54, %v2024_v56  ;;  %v2825_v59 = vcombine.low %v2093_v55, %v2095_v57 }
 0x1a4   :  { %v2834_v2 = vrot.slane %v2824_v58, %v4351_v7  ;;  %v2841_v4 = vrot.slane %v2825_v59, %v4351_v7 }
 0x1a6   :  { %v2856_v10 = vcombine.low %v2834_v2, %v2841_v4 }
 0x1a8   :  { %v2864_v14 = vrot.slane %v2856_v10, %v4351_v7 }
 0x1b1   :  { %v2163_v60 = vpop.f32.mrf.mxu0  ;;  %v2234_v61 = vpop.f32.mrf.mxu1 }
 0x1b2   :  { %v2164_v62 = vadd.f32 %v2163_v60, %v4296_v42  ;;  %v2235_v63 = vadd.f32 %v2234_v61, %v4296_v42 }
 0x1b3   :  { %v2165_v0 = vpop.f32.mrf.mxu0  ;;  %v2236_v1 = vpop.f32.mrf.mxu1 }
 0x1b4   :  { %v2166_v5 = vadd.f32 %v2165_v0, %v4296_v42  ;;  %v2237_v6 = vadd.f32 %v2236_v1, %v4296_v42 }
 0x1b6   :  { %v2826_v8 = vcombine.low %v2164_v62, %v2166_v5  ;;  %v2827_v9 = vcombine.low %v2235_v63, %v2237_v6 }
 0x1b8   :  { %v2848_v11 = vrot.slane %v2826_v8, %v4351_v7  ;;  %v2855_v12 = vrot.slane %v2827_v9, %v4351_v7 }
 0x1ba   :  { %v2857_v13 = vcombine.low %v2848_v11, %v2855_v12 }
 0x1bc   :  { %v2871_v15 = vrot.slane %v2857_v13, %v4351_v7 }
 0x1be   :  { %v2872_v16 = vcombine.low %v2864_v14, %v2871_v15 }
 0x1c0   :  { %2934 = vst [vmem:[%s4743_s3 + $0x28] sm:$0xff] %v2872_v16 }
 0x1c5   :  { %v2305_v17 = vpop.f32.mrf.mxu0  ;;  %v2376_v18 = vpop.f32.mrf.mxu1 }
 0x1c6   :  { %v2306_v21 = vadd.f32 %v2305_v17, %v4296_v42  ;;  %v2377_v22 = vadd.f32 %v2376_v18, %v4296_v42 }
 0x1c7   :  { %v2307_v19 = vpop.f32.mrf.mxu0  ;;  %v2378_v20 = vpop.f32.mrf.mxu1 }
 0x1c8   :  { %v2308_v23 = vadd.f32 %v2307_v19, %v4296_v42  ;;  %v2379_v3 = vadd.f32 %v2378_v20, %v4296_v42 }
 0x1ca   :  { %v2873_v24 = vcombine.low %v2306_v21, %v2308_v23  ;;  %v2874_v25 = vcombine.low %v2377_v22, %v2379_v3 }
 0x1cc   :  { %v2883_v27 = vrot.slane %v2873_v24, %v4351_v7  ;;  %v2890_v28 = vrot.slane %v2874_v25, %v4351_v7 }
 0x1ce   :  { %v2905_v37 = vcombine.low %v2883_v27, %v2890_v28 }
 0x1d0   :  { %v2913_v43 = vrot.slane %v2905_v37, %v4351_v7 }
 0x1d9   :  { %v2447_v26 = vpop.f32.mrf.mxu0  ;;  %v2518_v48 = vpop.f32.mrf.mxu1 }
 0x1da   :  { %v2448_v31 = vadd.f32 %v2447_v26, %v4296_v42  ;;  %v2519_v32 = vadd.f32 %v2518_v48, %v4296_v42 }
 0x1db   :  { %v2449_v29 = vpop.f32.mrf.mxu0  ;;  %v2520_v30 = vpop.f32.mrf.mxu1 }
 0x1dc   :  { %v2450_v33 = vadd.f32 %v2449_v29, %v4296_v42  ;;  %v2521_v34 = vadd.f32 %v2520_v30, %v4296_v42 }
 0x1de   :  { %v2875_v35 = vcombine.low %v2448_v31, %v2450_v33  ;;  %v2876_v36 = vcombine.low %v2519_v32, %v2521_v34 }
 0x1e0   :  { %v2897_v39 = vrot.slane %v2875_v35, %v4351_v7  ;;  %v2904_v40 = vrot.slane %v2876_v36, %v4351_v7 }
 0x1e2   :  { %v2906_v41 = vcombine.low %v2897_v39, %v2904_v40 }
 0x1e4   :  { %v2920_v44 = vrot.slane %v2906_v41, %v4351_v7 }
 0x1e6   :  { %v2921_v45 = vcombine.low %v2913_v43, %v2920_v44 }
 0x1e8   :  { %2939 = vst.msk [vmem:[%s4743_s3 + $0x30] sm:$0xff] %vm2937_vm1, %v2921_v45 }

</bundles_post_ra>
